<compile_context>
chip_gen: v6e
topology: v6e:2x2x1
jax: 0.10.0
libtpu: 0.0.40
codegen_flags: <defaults>
</compile_context>

<pallas_src>
import jax
import jax.numpy as jnp
from jax import lax
from jax.experimental import pallas as pl
from jax.experimental.pallas import tpu as pltpu

EPS = 1e-5

# bf16 operands feed the MXU at native rate on v5e/v6e/v7x; accumulation stays f32 via
# preferred_element_type.  The numerical check below is relaxed to 3e-2 accordingly.
MATMUL_DTYPE = jnp.bfloat16

# Scoped-VMEM ceiling.  v5e/v6e have 128 MiB physical VMEM (default scoped limit is much
# lower); v7x has 64 MiB per TensorCore.  Per-step usage of these kernels is only a few
# MiB even at real DenseNet shapes, so 64 MiB is a ceiling, not a demand.
_VMEM_LIMIT = 64 * 1024 * 1024


def _round_up(x, m):
    return (x + m - 1) // m * m


def _pick_row_tile(m):
    """Rows per tile for the flattened (N*H*W, C) passes.  Prefer large tiles: passes 1-2
    are HBM-bound and larger tiles amortize the ~0.35us per-grid-step overhead."""
    for cand in (512, 1024, 256, 128, 64, 32, 16, 8):
        if m % cand == 0:
            return cand
    return m


def _pick_row_strip(h):
    """Output rows per pass-3 grid step (8-16 keeps live values small and gives both
    TensorCores plenty of steps on v7x)."""
    for cand in (8, 16, 4, 2):
        if h % cand == 0:
            return cand
    return h


# --------------------------------------------------------------------------------------
# Kernels
# --------------------------------------------------------------------------------------
def _stats_kernel(x_ref, s_ref, ss_ref):
    """Accumulate per-channel sum and sum-of-squares across the row-tile grid."""
    @pl.when(pl.program_id(0) == 0)
    def _():
        s_ref[...] = jnp.zeros_like(s_ref)
        ss_ref[...] = jnp.zeros_like(ss_ref)

    x = x_ref[...]
    s_ref[...] += jnp.sum(x, axis=0, keepdims=True)
    ss_ref[...] += jnp.sum(x * x, axis=0, keepdims=True)


def _bn_relu_conv1x1_kernel(x_ref, scale_ref, shift_ref, w_ref, b_ref,
                            y_ref, ys_ref, yss_ref):
    """BN1 (folded scale/shift) + ReLU + 1x1 conv as a row-tiled bf16 MXU matmul.
    BN2 batch statistics are accumulated from the f32 result *before* the bf16 down-cast
    of the stored intermediate, so y is never re-read just for stats."""
    @pl.when(pl.program_id(0) == 0)
    def _():
        ys_ref[...] = jnp.zeros_like(ys_ref)
        yss_ref[...] = jnp.zeros_like(yss_ref)

    a = jnp.maximum(x_ref[...] * scale_ref[...] + shift_ref[...], 0.0)
    y = jnp.dot(a.astype(MATMUL_DTYPE), w_ref[...],
                preferred_element_type=jnp.float32) + b_ref[...]
    ys_ref[...] += jnp.sum(y, axis=0, keepdims=True)
    yss_ref[...] += jnp.sum(y * y, axis=0, keepdims=True)
    y_ref[...] = y.astype(y_ref.dtype)                      # bf16 intermediate to HBM


def _bn_relu_conv3x3_kernel(y_ref, scale_ref, shift_ref, wst_ref, b_ref, o_ref,
                            pad_ref, p_ref, acc_ref):
    """BN2 + ReLU + 3x3 conv (padding=1) for one (image, row-strip) grid step.

    Padded-activation layout (per strip): padded row hh in [0, TH+2) holds BN2+ReLU of
    image row h0-1+hh (zero outside the image); within a padded row, columns [0,8) are a
    sublane-aligned left halo, [8, 8+W) the interior, [8+W, Wp) the right halo.  Only the
    halo columns are zero-filled; the interior store at offset 8 is aligned (Wp % 8 == 0).

    The 9 taps are folded into one (Mpad, Cb) @ (Cb, 9*Cout) matmul; output (h, w) lives
    at accumulator row h*Wp + w and tap (dh, dw) contributes P[h*Wp + w + dh*Wp + 7 + dw,
    (3*dh+dw)*Cout : +Cout].  Accumulation goes through a VMEM scratch (not a whole-image
    register chain) and rows are streamed straight into o_ref (no Wp->W relayout).
    """
    _, H, W, Cb = y_ref.shape
    _, TH, _, Cout = o_ref.shape
    Wp = pad_ref.shape[0] // (TH + 2)
    m = acc_ref.shape[0]
    tail = Wp - 8 - W

    h0 = pl.program_id(1) * TH                      # first output row of this strip
    scale = scale_ref[...]                          # (1, Cb) f32
    shift = shift_ref[...]

    zeros_left = jnp.zeros((8, Cb), pad_ref.dtype)
    zeros_tail = jnp.zeros((tail, Cb), pad_ref.dtype)

    # ---- fill the zero-padded activation strip (per-row BN2 + ReLU from the ref) -------
    for hh in range(TH + 2):
        base = hh * Wp
        pad_ref[pl.ds(base, 8), :] = zeros_left                  # aligned left halo
        pad_ref[pl.ds(base + 8 + W, tail), :] = zeros_tail       # right halo / tail
        r = h0 + (hh - 1)                                        # image row for this pad row
        if hh == 0 or hh == TH + 1:
            # Boundary halo rows may fall outside the image (conv zero padding).
            rc = jnp.clip(r, 0, H - 1)
            row = y_ref[0, pl.ds(rc, 1), :, :][0].astype(jnp.float32)
            act = jnp.maximum(row * scale + shift, 0.0)
            act = jnp.where(jnp.logical_and(r >= 0, r < H), act, 0.0)
        else:
            row = y_ref[0, pl.ds(r, 1), :, :][0].astype(jnp.float32)
            act = jnp.maximum(row * scale + shift, 0.0)
        pad_ref[pl.ds(base + 8, W), :] = act.astype(pad_ref.dtype)   # aligned interior

    # ---- one folded MXU matmul over all 9 taps ------------------------------------------
    p_ref[...] = jnp.dot(pad_ref[...], wst_ref[...], preferred_element_type=jnp.float32)

    # ---- 9 shifted adds into the VMEM accumulator ---------------------------------------
    for t in range(9):
        dh, dw = divmod(t, 3)
        start = dh * Wp + 7 + dw
        tap = p_ref[pl.ds(start, m), t * Cout:(t + 1) * Cout]
        if t == 0:
            acc_ref[...] = tap
        else:
            acc_ref[...] += tap

    # ---- stream output rows straight out of the accumulator -----------------------------
    # TODO(synk): when W*Cout is a multiple of 128 (DenseNet: 56*32=1792) emit a lane-dense
    # (1, TH, W*Cout) output slab instead to avoid masked partial stores.
    bias = b_ref[...]
    for h in range(TH):
        o_ref[0, h] = (acc_ref[pl.ds(h * Wp, W), :] + bias).astype(o_ref.dtype)


# --------------------------------------------------------------------------------------
# Wrapper
# --------------------------------------------------------------------------------------
def _bn_scale_shift(s, ss, count, gamma, beta):
    """Fold batch-stat BatchNorm into per-channel scale/shift: bn(x) = x*scale + shift."""
    mean = s / count
    var = jnp.maximum(ss / count - mean * mean, 0.0)       # biased variance (training BN)
    inv = lax.rsqrt(var + EPS)
    scale = gamma * inv
    shift = beta - mean * scale
    return scale, shift


def conv_block_forward(x_nchw, params):
    """ConvBlock forward.  x_nchw: (N, Cin, H, W) f32 -> (N, Cout, H, W) f32."""
    N, Cin, H, W = x_nchw.shape
    w1 = params["conv11_w"]                                # (Cb, Cin, 1, 1)  OIHW
    w2 = params["conv33_w"]                                # (Cout, Cb, 3, 3) OIHW
    Cb, Cout = w1.shape[0], w2.shape[0]
    M = N * H * W
    TM = _pick_row_tile(M)
    TH = _pick_row_strip(H)
    Wp = _round_up(W, 8) + 16                      # aligned 8-wide left halo + right halo + slack
    m_acc = _round_up((TH - 1) * Wp + W, 8)        # accumulator rows (all tap reads in bounds)

    # NCHW <-> NHWC relayout at the block boundary.  In a full DenseNet the whole network
    # would stay NHWC, making these transposes disappear; they are kept only to preserve
    # the PyTorch module's NCHW interface.
    x2d = jnp.transpose(x_nchw, (0, 2, 3, 1)).reshape(M, Cin)
    w1_m = jnp.transpose(w1[:, :, 0, 0], (1, 0)).astype(MATMUL_DTYPE)          # (Cin, Cb)
    # Stacked 3x3 weight: wst[ci, (3*dh+dw)*Cout + o] = w2[o, ci, dh, dw]
    wst = jnp.transpose(w2, (1, 2, 3, 0)).reshape(Cb, 9 * Cout).astype(MATMUL_DTYPE)
    b1 = params["conv11_b"].reshape(1, Cb).astype(jnp.float32)
    b2 = params["conv33_b"].reshape(1, Cout).astype(jnp.float32)

    # ---- pass 1: BN1 batch statistics (row-tiled grid reduction) ----------------------
    # TODO(synk): passes 1-2 could be merged into one pallas_call with a leading phase
    # axis (and bf16 x from the producer layer) to drop a launch; kept separate here.
    s1, ss1 = pl.pallas_call(
        _stats_kernel,
        grid=(M // TM,),
        in_specs=[pl.BlockSpec((TM, Cin), lambda i: (i, 0))],
        out_specs=(pl.BlockSpec((1, Cin), lambda i: (0, 0)),
                   pl.BlockSpec((1, Cin), lambda i: (0, 0))),
        out_shape=(jax.ShapeDtypeStruct((1, Cin), jnp.float32),
                   jax.ShapeDtypeStruct((1, Cin), jnp.float32)),
        compiler_params=pltpu.CompilerParams(
            dimension_semantics=("arbitrary",), vmem_limit_bytes=_VMEM_LIMIT),
    )(x2d)
    scale1, shift1 = _bn_scale_shift(s1, ss1, M,
                                     params["bn11_g"].reshape(1, Cin),
                                     params["bn11_b"].reshape(1, Cin))

    # ---- pass 2: BN1 + ReLU + 1x1 conv (bf16 MXU), fused with BN2 partial statistics ---
    y2d, s2, ss2 = pl.pallas_call(
        _bn_relu_conv1x1_kernel,
        grid=(M // TM,),
        in_specs=[pl.BlockSpec((TM, Cin), lambda i: (i, 0)),
                  pl.BlockSpec((1, Cin), lambda i: (0, 0)),
                  pl.BlockSpec((1, Cin), lambda i: (0, 0)),
                  pl.BlockSpec((Cin, Cb), lambda i: (0, 0)),
                  pl.BlockSpec((1, Cb), lambda i: (0, 0))],
        out_specs=(pl.BlockSpec((TM, Cb), lambda i: (i, 0)),
                   pl.BlockSpec((1, Cb), lambda i: (0, 0)),
                   pl.BlockSpec((1, Cb), lambda i: (0, 0))),
        out_shape=(jax.ShapeDtypeStruct((M, Cb), MATMUL_DTYPE),   # bf16 intermediate
                   jax.ShapeDtypeStruct((1, Cb), jnp.float32),
                   jax.ShapeDtypeStruct((1, Cb), jnp.float32)),
        compiler_params=pltpu.CompilerParams(
            dimension_semantics=("arbitrary",), vmem_limit_bytes=_VMEM_LIMIT),
    )(x2d, scale1, shift1, w1_m, b1)
    scale2, shift2 = _bn_scale_shift(s2, ss2, M,
                                     params["bn33_g"].reshape(1, Cb),
                                     params["bn33_b"].reshape(1, Cb))

    # ---- pass 3: BN2 + ReLU + 3x3 conv (padding=1), gridded over (batch, H-strip) ------
    y4 = y2d.reshape(N, H, W, Cb)
    out_nhwc = pl.pallas_call(
        _bn_relu_conv3x3_kernel,
        grid=(N, H // TH),
        in_specs=[pl.BlockSpec((1, H, W, Cb), lambda n, s: (n, 0, 0, 0)),
                  pl.BlockSpec((1, Cb), lambda n, s: (0, 0)),
                  pl.BlockSpec((1, Cb), lambda n, s: (0, 0)),
                  pl.BlockSpec((Cb, 9 * Cout), lambda n, s: (0, 0)),
                  pl.BlockSpec((1, Cout), lambda n, s: (0, 0))],
        out_specs=pl.BlockSpec((1, TH, W, Cout), lambda n, s: (n, s, 0, 0)),
        out_shape=jax.ShapeDtypeStruct((N, H, W, Cout), jnp.float32),
        scratch_shapes=[pltpu.VMEM(((TH + 2) * Wp, Cb), MATMUL_DTYPE),     # padded strip
                        pltpu.VMEM(((TH + 2) * Wp, 9 * Cout), jnp.float32),  # folded P
                        pltpu.VMEM((m_acc, Cout), jnp.float32)],             # accumulator
        compiler_params=pltpu.CompilerParams(
            dimension_semantics=("parallel", "parallel"), vmem_limit_bytes=_VMEM_LIMIT),
    )(y4, scale2, shift2, wst, b2)

    return jnp.transpose(out_nhwc, (0, 3, 1, 2))


# --------------------------------------------------------------------------------------
# Pure-JAX NCHW reference matching the PyTorch forward (f32, highest precision)
# --------------------------------------------------------------------------------------
def reference_forward(x, params):
    def bn(t, g, b):
        mean = t.mean(axis=(0, 2, 3), keepdims=True)
        var = ((t - mean) ** 2).mean(axis=(0, 2, 3), keepdims=True)
        return (t - mean) / jnp.sqrt(var + EPS) * g.reshape(1, -1, 1, 1) + b.reshape(1, -1, 1, 1)

    a = jnp.maximum(bn(x, params["bn11_g"], params["bn11_b"]), 0.0)
    y = lax.conv_general_dilated(a, params["conv11_w"], (1, 1), "VALID",
                                 dimension_numbers=("NCHW", "OIHW", "NCHW"),
                                 precision=lax.Precision.HIGHEST)
    y = y + params["conv11_b"].reshape(1, -1, 1, 1)
    z = jnp.maximum(bn(y, params["bn33_g"], params["bn33_b"]), 0.0)
    o = lax.conv_general_dilated(z, params["conv33_w"], (1, 1), ((1, 1), (1, 1)),
                                 dimension_numbers=("NCHW", "OIHW", "NCHW"),
                                 precision=lax.Precision.HIGHEST)
    return o + params["conv33_b"].reshape(1, -1, 1, 1)


if __name__ == "__main__":
    N, Cin, H, W = 2, 4, 16, 16
    Cb, Cout = 8, 4

    key = jax.random.PRNGKey(0)
    kx, kw1, kb1, kw2, kb2 = jax.random.split(key, 5)

    x = jax.random.normal(kx, (N, Cin, H, W), dtype=jnp.float32)
    params = {
        "bn11_g": jnp.ones((Cin,), jnp.float32),
        "bn11_b": jnp.zeros((Cin,), jnp.float32),
        "conv11_w": 0.1 * jax.random.normal(kw1, (Cb, Cin, 1, 1), dtype=jnp.float32),
        "conv11_b": 0.1 * jax.random.normal(kb1, (Cb,), dtype=jnp.float32),
        "bn33_g": jnp.ones((Cb,), jnp.float32),
        "bn33_b": jnp.zeros((Cb,), jnp.float32),
        "conv33_w": 0.1 * jax.random.normal(kw2, (Cout, Cb, 3, 3), dtype=jnp.float32),
        "conv33_b": 0.1 * jax.random.normal(kb2, (Cout,), dtype=jnp.float32),
    }

    out = jax.jit(conv_block_forward)(x, params)
    jax.block_until_ready(out)

    ref = reference_forward(x, params)
    assert out.shape == (N, Cout, H, W), out.shape
    # Tolerance relaxed to 3e-2: matmul operands and the y intermediate are bf16
    # (per performance review); accumulation remains f32.
    assert jnp.allclose(out, ref, atol=3e-2, rtol=3e-2), float(jnp.max(jnp.abs(out - ref)))

    print("KERNEL_OK")
</pallas_src>

<mosaic_0001>
module attributes {stable_mosaic.version = 11 : i64} {
  func.func @_stats_kernel(%arg0: i32, %arg1: memref<512x4xf32, #tpu.memory_space<vmem>>, %arg2: memref<1x4xf32, #tpu.memory_space<vmem>>, %arg3: memref<1x4xf32, #tpu.memory_space<vmem>>) attributes {dimension_semantics = [#tpu.dimension_semantics<arbitrary>], iteration_bounds = array<i64: 1>, scalar_prefetch = 0 : i64, scratch_operands = 0 : i64, tpu.core_type = #tpu.core_type<tc>, window_params = [{transform_indices = @transform_0, window_bounds = array<i64: 512, 4>}, {pipeline_mode = #tpu.pipeline_mode<synchronous>, transform_indices = @transform_1, window_bounds = array<i64: 1, 4>}, {pipeline_mode = #tpu.pipeline_mode<synchronous>, transform_indices = @transform_2, window_bounds = array<i64: 1, 4>}]} {
    %c0_i32 = arith.constant 0 : i32
    %0 = arith.cmpi eq, %arg0, %c0_i32 : i32
    %1 = arith.extui %0 : i1 to i32
    %c0_i32_0 = arith.constant 0 : i32
    %2 = arith.cmpi ne, %1, %c0_i32_0 : i32
    scf.if %2 {
      %cst_11 = arith.constant 0.000000e+00 : f32
      %15 = vector.broadcast %cst_11 : f32 to vector<1x4xf32>
      %c0_12 = arith.constant 0 : index
      %c0_13 = arith.constant 0 : index
      %16 = vector.load %arg2[%c0_12, %c0_13] : memref<1x4xf32, #tpu.memory_space<vmem>>, vector<1x4xf32>
      tpu.vector_store %arg2[%c0_12, %c0_13], %15 {strides = array<i32>} : memref<1x4xf32, #tpu.memory_space<vmem>>, vector<1x4xf32>,
      %cst_14 = arith.constant 0.000000e+00 : f32
      %17 = vector.broadcast %cst_14 : f32 to vector<1x4xf32>
      %c0_15 = arith.constant 0 : index
      %c0_16 = arith.constant 0 : index
      %18 = vector.load %arg3[%c0_15, %c0_16] : memref<1x4xf32, #tpu.memory_space<vmem>>, vector<1x4xf32>
      tpu.vector_store %arg3[%c0_15, %c0_16], %17 {strides = array<i32>} : memref<1x4xf32, #tpu.memory_space<vmem>>, vector<1x4xf32>,
    } else {
    }
    %c0 = arith.constant 0 : index
    %c0_1 = arith.constant 0 : index
    %3 = vector.load %arg1[%c0, %c0_1] : memref<512x4xf32, #tpu.memory_space<vmem>>, vector<512x4xf32>
    %c0_2 = arith.constant 0 : index
    %c0_3 = arith.constant 0 : index
    %4 = vector.load %arg2[%c0_2, %c0_3] : memref<1x4xf32, #tpu.memory_space<vmem>>, vector<1x4xf32>
    %cst = arith.constant dense<0.000000e+00> : vector<4xf32>
    %5 = vector.multi_reduction <add>, %3, %cst [0] : vector<512x4xf32> to vector<4xf32>
    %6 = vector.shape_cast %5 : vector<4xf32> to vector<1x4xf32>
    %7 = arith.addf %4, %6 : vector<1x4xf32>
    %c0_4 = arith.constant 0 : index
    %c0_5 = arith.constant 0 : index
    %8 = vector.load %arg2[%c0_4, %c0_5] : memref<1x4xf32, #tpu.memory_space<vmem>>, vector<1x4xf32>
    tpu.vector_store %arg2[%c0_4, %c0_5], %7 {strides = array<i32>} : memref<1x4xf32, #tpu.memory_space<vmem>>, vector<1x4xf32>,
    %c0_6 = arith.constant 0 : index
    %c0_7 = arith.constant 0 : index
    %9 = vector.load %arg3[%c0_6, %c0_7] : memref<1x4xf32, #tpu.memory_space<vmem>>, vector<1x4xf32>
    %10 = arith.mulf %3, %3 : vector<512x4xf32>
    %cst_8 = arith.constant dense<0.000000e+00> : vector<4xf32>
    %11 = vector.multi_reduction <add>, %10, %cst_8 [0] : vector<512x4xf32> to vector<4xf32>
    %12 = vector.shape_cast %11 : vector<4xf32> to vector<1x4xf32>
    %13 = arith.addf %9, %12 : vector<1x4xf32>
    %c0_9 = arith.constant 0 : index
    %c0_10 = arith.constant 0 : index
    %14 = vector.load %arg3[%c0_9, %c0_10] : memref<1x4xf32, #tpu.memory_space<vmem>>, vector<1x4xf32>
    tpu.vector_store %arg3[%c0_9, %c0_10], %13 {strides = array<i32>} : memref<1x4xf32, #tpu.memory_space<vmem>>, vector<1x4xf32>,
    return
  }
  func.func @transform_0(%arg0: i32) -> (i32, i32) {
    %c0_i32 = arith.constant 0 : i32
    %c0_i32_0 = arith.constant 0 : i32
    return %arg0, %c0_i32 : i32, i32
  }
  func.func @transform_1(%arg0: i32) -> (i32, i32) {
    %c0_i32 = arith.constant 0 : i32
    %c0_i32_0 = arith.constant 0 : i32
    %c0_i32_1 = arith.constant 0 : i32
    return %c0_i32, %c0_i32_0 : i32, i32
  }
  func.func @transform_2(%arg0: i32) -> (i32, i32) {
    %c0_i32 = arith.constant 0 : i32
    %c0_i32_0 = arith.constant 0 : i32
    %c0_i32_1 = arith.constant 0 : i32
    return %c0_i32, %c0_i32_0 : i32, i32
  }
}

module attributes {stable_mosaic.version = 11 : i64} {
  func.func @_bn_relu_conv1x1_kernel(%arg0: i32, %arg1: memref<512x4xf32, #tpu.memory_space<vmem>>, %arg2: memref<1x4xf32, #tpu.memory_space<vmem>>, %arg3: memref<1x4xf32, #tpu.memory_space<vmem>>, %arg4: memref<4x8xbf16, #tpu.memory_space<vmem>>, %arg5: memref<1x8xf32, #tpu.memory_space<vmem>>, %arg6: memref<512x8xbf16, #tpu.memory_space<vmem>>, %arg7: memref<1x8xf32, #tpu.memory_space<vmem>>, %arg8: memref<1x8xf32, #tpu.memory_space<vmem>>) attributes {dimension_semantics = [#tpu.dimension_semantics<arbitrary>], iteration_bounds = array<i64: 1>, scalar_prefetch = 0 : i64, scratch_operands = 0 : i64, tpu.core_type = #tpu.core_type<tc>, window_params = [{transform_indices = @transform_0, window_bounds = array<i64: 512, 4>}, {pipeline_mode = #tpu.pipeline_mode<synchronous>, transform_indices = @transform_1, window_bounds = array<i64: 1, 4>}, {pipeline_mode = #tpu.pipeline_mode<synchronous>, transform_indices = @transform_2, window_bounds = array<i64: 1, 4>}, {pipeline_mode = #tpu.pipeline_mode<synchronous>, transform_indices = @transform_3, window_bounds = array<i64: 4, 8>}, {pipeline_mode = #tpu.pipeline_mode<synchronous>, transform_indices = @transform_4, window_bounds = array<i64: 1, 8>}, {transform_indices = @transform_5, window_bounds = array<i64: 512, 8>}, {pipeline_mode = #tpu.pipeline_mode<synchronous>, transform_indices = @transform_6, window_bounds = array<i64: 1, 8>}, {pipeline_mode = #tpu.pipeline_mode<synchronous>, transform_indices = @transform_7, window_bounds = array<i64: 1, 8>}]} {
    %c0_i32 = arith.constant 0 : i32
    %0 = arith.cmpi eq, %arg0, %c0_i32 : i32
    %1 = arith.extui %0 : i1 to i32
    %c0_i32_0 = arith.constant 0 : i32
    %2 = arith.cmpi ne, %1, %c0_i32_0 : i32
    scf.if %2 {
      %cst_23 = arith.constant 0.000000e+00 : f32
      %31 = vector.broadcast %cst_23 : f32 to vector<1x8xf32>
      %c0_24 = arith.constant 0 : index
      %c0_25 = arith.constant 0 : index
      %32 = vector.load %arg7[%c0_24, %c0_25] : memref<1x8xf32, #tpu.memory_space<vmem>>, vector<1x8xf32>
      tpu.vector_store %arg7[%c0_24, %c0_25], %31 {strides = array<i32>} : memref<1x8xf32, #tpu.memory_space<vmem>>, vector<1x8xf32>,
      %cst_26 = arith.constant 0.000000e+00 : f32
      %33 = vector.broadcast %cst_26 : f32 to vector<1x8xf32>
      %c0_27 = arith.constant 0 : index
      %c0_28 = arith.constant 0 : index
      %34 = vector.load %arg8[%c0_27, %c0_28] : memref<1x8xf32, #tpu.memory_space<vmem>>, vector<1x8xf32>
      tpu.vector_store %arg8[%c0_27, %c0_28], %33 {strides = array<i32>} : memref<1x8xf32, #tpu.memory_space<vmem>>, vector<1x8xf32>,
    } else {
    }
    %c0 = arith.constant 0 : index
    %c0_1 = arith.constant 0 : index
    %3 = vector.load %arg1[%c0, %c0_1] : memref<512x4xf32, #tpu.memory_space<vmem>>, vector<512x4xf32>
    %c0_2 = arith.constant 0 : index
    %c0_3 = arith.constant 0 : index
    %4 = vector.load %arg2[%c0_2, %c0_3] : memref<1x4xf32, #tpu.memory_space<vmem>>, vector<1x4xf32>
    %5 = vector.broadcast %4 : vector<1x4xf32> to vector<512x4xf32>
    %6 = arith.mulf %3, %5 : vector<512x4xf32>
    %c0_4 = arith.constant 0 : index
    %c0_5 = arith.constant 0 : index
    %7 = vector.load %arg3[%c0_4, %c0_5] : memref<1x4xf32, #tpu.memory_space<vmem>>, vector<1x4xf32>
    %8 = vector.broadcast %7 : vector<1x4xf32> to vector<512x4xf32>
    %9 = arith.addf %6, %8 : vector<512x4xf32>
    %cst = arith.constant 0.000000e+00 : f32
    %10 = vector.broadcast %cst : f32 to vector<512x4xf32>
    %11 = arith.maximumf %9, %10 : vector<512x4xf32>
    %12 = arith.truncf %11 : vector<512x4xf32> to vector<512x4xbf16>
    %c0_6 = arith.constant 0 : index
    %c0_7 = arith.constant 0 : index
    %13 = vector.load %arg4[%c0_6, %c0_7] : memref<4x8xbf16, #tpu.memory_space<vmem>>, vector<4x8xbf16>
    %cst_8 = arith.constant dense<0.000000e+00> : vector<512x8xf32>
    %14 = tpu.matmul %12, %13, %cst_8 {dimension_numbers = #tpu.dot_dimension_numbers<[1], [0], [0], [1], [0, 0, 1, 1], [], []>} : vector<512x4xbf16>, vector<4x8xbf16>, vector<512x8xf32> -> vector<512x8xf32>
    %c0_9 = arith.constant 0 : index
    %c0_10 = arith.constant 0 : index
    %15 = vector.load %arg5[%c0_9, %c0_10] : memref<1x8xf32, #tpu.memory_space<vmem>>, vector<1x8xf32>
    %16 = vector.broadcast %15 : vector<1x8xf32> to vector<512x8xf32>
    %17 = arith.addf %14, %16 : vector<512x8xf32>
    %c0_11 = arith.constant 0 : index
    %c0_12 = arith.constant 0 : index
    %18 = vector.load %arg7[%c0_11, %c0_12] : memref<1x8xf32, #tpu.memory_space<vmem>>, vector<1x8xf32>
    %cst_13 = arith.constant dense<0.000000e+00> : vector<8xf32>
    %19 = vector.multi_reduction <add>, %17, %cst_13 [0] : vector<512x8xf32> to vector<8xf32>
    %20 = vector.shape_cast %19 : vector<8xf32> to vector<1x8xf32>
    %21 = arith.addf %18, %20 : vector<1x8xf32>
    %c0_14 = arith.constant 0 : index
    %c0_15 = arith.constant 0 : index
    %22 = vector.load %arg7[%c0_14, %c0_15] : memref<1x8xf32, #tpu.memory_space<vmem>>, vector<1x8xf32>
    tpu.vector_store %arg7[%c0_14, %c0_15], %21 {strides = array<i32>} : memref<1x8xf32, #tpu.memory_space<vmem>>, vector<1x8xf32>,
    %c0_16 = arith.constant 0 : index
    %c0_17 = arith.constant 0 : index
    %23 = vector.load %arg8[%c0_16, %c0_17] : memref<1x8xf32, #tpu.memory_space<vmem>>, vector<1x8xf32>
    %24 = arith.mulf %17, %17 : vector<512x8xf32>
    %cst_18 = arith.constant dense<0.000000e+00> : vector<8xf32>
    %25 = vector.multi_reduction <add>, %24, %cst_18 [0] : vector<512x8xf32> to vector<8xf32>
    %26 = vector.shape_cast %25 : vector<8xf32> to vector<1x8xf32>
    %27 = arith.addf %23, %26 : vector<1x8xf32>
    %c0_19 = arith.constant 0 : index
    %c0_20 = arith.constant 0 : index
    %28 = vector.load %arg8[%c0_19, %c0_20] : memref<1x8xf32, #tpu.memory_space<vmem>>, vector<1x8xf32>
    tpu.vector_store %arg8[%c0_19, %c0_20], %27 {strides = array<i32>} : memref<1x8xf32, #tpu.memory_space<vmem>>, vector<1x8xf32>,
    %29 = arith.truncf %17 : vector<512x8xf32> to vector<512x8xbf16>
    %c0_21 = arith.constant 0 : index
    %c0_22 = arith.constant 0 : index
    %30 = vector.load %arg6[%c0_21, %c0_22] : memref<512x8xbf16, #tpu.memory_space<vmem>>, vector<512x8xbf16>
    tpu.vector_store %arg6[%c0_21, %c0_22], %29 {strides = array<i32>} : memref<512x8xbf16, #tpu.memory_space<vmem>>, vector<512x8xbf16>,
    return
  }
  func.func @transform_0(%arg0: i32) -> (i32, i32) {
    %c0_i32 = arith.constant 0 : i32
    %c0_i32_0 = arith.constant 0 : i32
    return %arg0, %c0_i32 : i32, i32
  }
  func.func @transform_1(%arg0: i32) -> (i32, i32) {
    %c0_i32 = arith.constant 0 : i32
    %c0_i32_0 = arith.constant 0 : i32
    %c0_i32_1 = arith.constant 0 : i32
    return %c0_i32, %c0_i32_0 : i32, i32
  }
  func.func @transform_2(%arg0: i32) -> (i32, i32) {
    %c0_i32 = arith.constant 0 : i32
    %c0_i32_0 = arith.constant 0 : i32
    %c0_i32_1 = arith.constant 0 : i32
    return %c0_i32, %c0_i32_0 : i32, i32
  }
  func.func @transform_3(%arg0: i32) -> (i32, i32) {
    %c0_i32 = arith.constant 0 : i32
    %c0_i32_0 = arith.constant 0 : i32
    %c0_i32_1 = arith.constant 0 : i32
    return %c0_i32, %c0_i32_0 : i32, i32
  }
  func.func @transform_4(%arg0: i32) -> (i32, i32) {
    %c0_i32 = arith.constant 0 : i32
    %c0_i32_0 = arith.constant 0 : i32
    %c0_i32_1 = arith.constant 0 : i32
    return %c0_i32, %c0_i32_0 : i32, i32
  }
  func.func @transform_5(%arg0: i32) -> (i32, i32) {
    %c0_i32 = arith.constant 0 : i32
    %c0_i32_0 = arith.constant 0 : i32
    return %arg0, %c0_i32 : i32, i32
  }
  func.func @transform_6(%arg0: i32) -> (i32, i32) {
    %c0_i32 = arith.constant 0 : i32
    %c0_i32_0 = arith.constant 0 : i32
    %c0_i32_1 = arith.constant 0 : i32
    return %c0_i32, %c0_i32_0 : i32, i32
  }
  func.func @transform_7(%arg0: i32) -> (i32, i32) {
    %c0_i32 = arith.constant 0 : i32
    %c0_i32_0 = arith.constant 0 : i32
    %c0_i32_1 = arith.constant 0 : i32
    return %c0_i32, %c0_i32_0 : i32, i32
  }
}

module attributes {stable_mosaic.version = 11 : i64} {
  func.func @_bn_relu_conv3x3_kernel(%arg0: i32, %arg1: i32, %arg2: memref<1x16x16x8xbf16, #tpu.memory_space<vmem>>, %arg3: memref<1x8xf32, #tpu.memory_space<vmem>>, %arg4: memref<1x8xf32, #tpu.memory_space<vmem>>, %arg5: memref<8x36xbf16, #tpu.memory_space<vmem>>, %arg6: memref<1x4xf32, #tpu.memory_space<vmem>>, %arg7: memref<1x8x16x4xf32, #tpu.memory_space<vmem>>, %arg8: memref<320x8xbf16, #tpu.memory_space<vmem>>, %arg9: memref<320x36xf32, #tpu.memory_space<vmem>>, %arg10: memref<240x4xf32, #tpu.memory_space<vmem>>) attributes {dimension_semantics = [#tpu.dimension_semantics<parallel>, #tpu.dimension_semantics<parallel>], iteration_bounds = array<i64: 2, 2>, scalar_prefetch = 0 : i64, scratch_operands = 3 : i64, tpu.core_type = #tpu.core_type<tc>, window_params = [{transform_indices = @transform_0, window_bounds = array<i64: 1, 16, 16, 8>}, {pipeline_mode = #tpu.pipeline_mode<synchronous>, transform_indices = @transform_1, window_bounds = array<i64: 1, 8>}, {pipeline_mode = #tpu.pipeline_mode<synchronous>, transform_indices = @transform_2, window_bounds = array<i64: 1, 8>}, {pipeline_mode = #tpu.pipeline_mode<synchronous>, transform_indices = @transform_3, window_bounds = array<i64: 8, 36>}, {pipeline_mode = #tpu.pipeline_mode<synchronous>, transform_indices = @transform_4, window_bounds = array<i64: 1, 4>}, {transform_indices = @transform_5, window_bounds = array<i64: 1, 8, 16, 4>}]} {
    %c8_i32 = arith.constant 8 : i32
    %0 = arith.muli %arg1, %c8_i32 : i32
    %c0 = arith.constant 0 : index
    %c0_0 = arith.constant 0 : index
    %1 = vector.load %arg3[%c0, %c0_0] : memref<1x8xf32, #tpu.memory_space<vmem>>, vector<1x8xf32>
    %c0_1 = arith.constant 0 : index
    %c0_2 = arith.constant 0 : index
    %2 = vector.load %arg4[%c0_1, %c0_2] : memref<1x8xf32, #tpu.memory_space<vmem>>, vector<1x8xf32>
    %cst = arith.constant 0.000000e+00 : bf16
    %3 = vector.broadcast %cst : bf16 to vector<8x8xbf16>
    %cst_3 = arith.constant 0.000000e+00 : bf16
    %4 = vector.broadcast %cst_3 : bf16 to vector<8x8xbf16>
    %c0_4 = arith.constant 0 : index
    %c0_5 = arith.constant 0 : index
    %5 = vector.load %arg8[%c0_4, %c0_5] : memref<320x8xbf16, #tpu.memory_space<vmem>>, vector<8x8xbf16>
    tpu.vector_store %arg8[%c0_4, %c0_5], %3 {strides = array<i32>} : memref<320x8xbf16, #tpu.memory_space<vmem>>, vector<8x8xbf16>,
    %c24 = arith.constant 24 : index
    %c0_6 = arith.constant 0 : index
    %6 = vector.load %arg8[%c24, %c0_6] : memref<320x8xbf16, #tpu.memory_space<vmem>>, vector<8x8xbf16>
    tpu.vector_store %arg8[%c24, %c0_6], %4 {strides = array<i32>} : memref<320x8xbf16, #tpu.memory_space<vmem>>, vector<8x8xbf16>,
    %c-1_i32 = arith.constant -1 : i32
    %7 = arith.addi %0, %c-1_i32 : i32
    %c0_i32 = arith.constant 0 : i32
    %c15_i32 = arith.constant 15 : i32
    %8 = arith.maxsi %c0_i32, %7 : i32
    %9 = arith.minsi %c15_i32, %8 : i32
    %c0_7 = arith.constant 0 : index
    %10 = arith.index_cast %9 : i32 to index
    %c0_8 = arith.constant 0 : index
    %c0_9 = arith.constant 0 : index
    %11 = vector.load %arg2[%c0_7, %10, %c0_8, %c0_9] : memref<1x16x16x8xbf16, #tpu.memory_space<vmem>>, vector<1x1x16x8xbf16>
    %12 = vector.shape_cast %11 : vector<1x1x16x8xbf16> to vector<1x16x8xbf16>
    %13 = vector.shape_cast %12 : vector<1x16x8xbf16> to vector<16x8xbf16>
    %14 = arith.extf %13 : vector<16x8xbf16> to vector<16x8xf32>
    %15 = vector.broadcast %1 : vector<1x8xf32> to vector<16x8xf32>
    %16 = arith.mulf %14, %15 : vector<16x8xf32>
    %17 = vector.broadcast %2 : vector<1x8xf32> to vector<16x8xf32>
    %18 = arith.addf %16, %17 : vector<16x8xf32>
    %cst_10 = arith.constant 0.000000e+00 : f32
    %19 = vector.broadcast %cst_10 : f32 to vector<16x8xf32>
    %20 = arith.maximumf %18, %19 : vector<16x8xf32>
    %c0_i32_11 = arith.constant 0 : i32
    %21 = arith.cmpi sge, %7, %c0_i32_11 : i32
    %c16_i32 = arith.constant 16 : i32
    %22 = arith.cmpi slt, %7, %c16_i32 : i32
    %23 = arith.andi %21, %22 : i1
    %cst_12 = arith.constant 0.000000e+00 : f32
    %24 = vector.broadcast %cst_12 : f32 to vector<16x8xf32>
    %25 = arith.select %23, %20, %24 : vector<16x8xf32>
    %26 = arith.truncf %25 : vector<16x8xf32> to vector<16x8xbf16>
    %c8 = arith.constant 8 : index
    %c0_13 = arith.constant 0 : index
    %27 = vector.load %arg8[%c8, %c0_13] : memref<320x8xbf16, #tpu.memory_space<vmem>>, vector<16x8xbf16>
    tpu.vector_store %arg8[%c8, %c0_13], %26 {strides = array<i32>} : memref<320x8xbf16, #tpu.memory_space<vmem>>, vector<16x8xbf16>,
    %c32 = arith.constant 32 : index
    %c0_14 = arith.constant 0 : index
    %28 = vector.load %arg8[%c32, %c0_14] : memref<320x8xbf16, #tpu.memory_space<vmem>>, vector<8x8xbf16>
    tpu.vector_store %arg8[%c32, %c0_14], %3 {strides = array<i32>} : memref<320x8xbf16, #tpu.memory_space<vmem>>, vector<8x8xbf16>,
    %c56 = arith.constant 56 : index
    %c0_15 = arith.constant 0 : index
    %29 = vector.load %arg8[%c56, %c0_15] : memref<320x8xbf16, #tpu.memory_space<vmem>>, vector<8x8xbf16>
    tpu.vector_store %arg8[%c56, %c0_15], %4 {strides = array<i32>} : memref<320x8xbf16, #tpu.memory_space<vmem>>, vector<8x8xbf16>,
    %c0_i32_16 = arith.constant 0 : i32
    %30 = arith.addi %0, %c0_i32_16 : i32
    %c0_17 = arith.constant 0 : index
    %31 = arith.index_cast %30 : i32 to index
    %c0_18 = arith.constant 0 : index
    %c0_19 = arith.constant 0 : index
    %32 = vector.load %arg2[%c0_17, %31, %c0_18, %c0_19] : memref<1x16x16x8xbf16, #tpu.memory_space<vmem>>, vector<1x1x16x8xbf16>
    %33 = vector.shape_cast %32 : vector<1x1x16x8xbf16> to vector<1x16x8xbf16>
    %34 = vector.shape_cast %33 : vector<1x16x8xbf16> to vector<16x8xbf16>
    %35 = arith.extf %34 : vector<16x8xbf16> to vector<16x8xf32>
    %36 = vector.broadcast %1 : vector<1x8xf32> to vector<16x8xf32>
    %37 = arith.mulf %35, %36 : vector<16x8xf32>
    %38 = vector.broadcast %2 : vector<1x8xf32> to vector<16x8xf32>
    %39 = arith.addf %37, %38 : vector<16x8xf32>
    %cst_20 = arith.constant 0.000000e+00 : f32
    %40 = vector.broadcast %cst_20 : f32 to vector<16x8xf32>
    %41 = arith.maximumf %39, %40 : vector<16x8xf32>
    %42 = arith.truncf %41 : vector<16x8xf32> to vector<16x8xbf16>
    %c40 = arith.constant 40 : index
    %c0_21 = arith.constant 0 : index
    %43 = vector.load %arg8[%c40, %c0_21] : memref<320x8xbf16, #tpu.memory_space<vmem>>, vector<16x8xbf16>
    tpu.vector_store %arg8[%c40, %c0_21], %42 {strides = array<i32>} : memref<320x8xbf16, #tpu.memory_space<vmem>>, vector<16x8xbf16>,
    %c64 = arith.constant 64 : index
    %c0_22 = arith.constant 0 : index
    %44 = vector.load %arg8[%c64, %c0_22] : memref<320x8xbf16, #tpu.memory_space<vmem>>, vector<8x8xbf16>
    tpu.vector_store %arg8[%c64, %c0_22], %3 {strides = array<i32>} : memref<320x8xbf16, #tpu.memory_space<vmem>>, vector<8x8xbf16>,
    %c88 = arith.constant 88 : index
    %c0_23 = arith.constant 0 : index
    %45 = vector.load %arg8[%c88, %c0_23] : memref<320x8xbf16, #tpu.memory_space<vmem>>, vector<8x8xbf16>
    tpu.vector_store %arg8[%c88, %c0_23], %4 {strides = array<i32>} : memref<320x8xbf16, #tpu.memory_space<vmem>>, vector<8x8xbf16>,
    %c1_i32 = arith.constant 1 : i32
    %46 = arith.addi %0, %c1_i32 : i32
    %c0_24 = arith.constant 0 : index
    %47 = arith.index_cast %46 : i32 to index
    %c0_25 = arith.constant 0 : index
    %c0_26 = arith.constant 0 : index
    %48 = vector.load %arg2[%c0_24, %47, %c0_25, %c0_26] : memref<1x16x16x8xbf16, #tpu.memory_space<vmem>>, vector<1x1x16x8xbf16>
    %49 = vector.shape_cast %48 : vector<1x1x16x8xbf16> to vector<1x16x8xbf16>
    %50 = vector.shape_cast %49 : vector<1x16x8xbf16> to vector<16x8xbf16>
    %51 = arith.extf %50 : vector<16x8xbf16> to vector<16x8xf32>
    %52 = vector.broadcast %1 : vector<1x8xf32> to vector<16x8xf32>
    %53 = arith.mulf %51, %52 : vector<16x8xf32>
    %54 = vector.broadcast %2 : vector<1x8xf32> to vector<16x8xf32>
    %55 = arith.addf %53, %54 : vector<16x8xf32>
    %cst_27 = arith.constant 0.000000e+00 : f32
    %56 = vector.broadcast %cst_27 : f32 to vector<16x8xf32>
    %57 = arith.maximumf %55, %56 : vector<16x8xf32>
    %58 = arith.truncf %57 : vector<16x8xf32> to vector<16x8xbf16>
    %c72 = arith.constant 72 : index
    %c0_28 = arith.constant 0 : index
    %59 = vector.load %arg8[%c72, %c0_28] : memref<320x8xbf16, #tpu.memory_space<vmem>>, vector<16x8xbf16>
    tpu.vector_store %arg8[%c72, %c0_28], %58 {strides = array<i32>} : memref<320x8xbf16, #tpu.memory_space<vmem>>, vector<16x8xbf16>,
    %c96 = arith.constant 96 : index
    %c0_29 = arith.constant 0 : index
    %60 = vector.load %arg8[%c96, %c0_29] : memref<320x8xbf16, #tpu.memory_space<vmem>>, vector<8x8xbf16>
    tpu.vector_store %arg8[%c96, %c0_29], %3 {strides = array<i32>} : memref<320x8xbf16, #tpu.memory_space<vmem>>, vector<8x8xbf16>,
    %c120 = arith.constant 120 : index
    %c0_30 = arith.constant 0 : index
    %61 = vector.load %arg8[%c120, %c0_30] : memref<320x8xbf16, #tpu.memory_space<vmem>>, vector<8x8xbf16>
    tpu.vector_store %arg8[%c120, %c0_30], %4 {strides = array<i32>} : memref<320x8xbf16, #tpu.memory_space<vmem>>, vector<8x8xbf16>,
    %c2_i32 = arith.constant 2 : i32
    %62 = arith.addi %0, %c2_i32 : i32
    %c0_31 = arith.constant 0 : index
    %63 = arith.index_cast %62 : i32 to index
    %c0_32 = arith.constant 0 : index
    %c0_33 = arith.constant 0 : index
    %64 = vector.load %arg2[%c0_31, %63, %c0_32, %c0_33] : memref<1x16x16x8xbf16, #tpu.memory_space<vmem>>, vector<1x1x16x8xbf16>
    %65 = vector.shape_cast %64 : vector<1x1x16x8xbf16> to vector<1x16x8xbf16>
    %66 = vector.shape_cast %65 : vector<1x16x8xbf16> to vector<16x8xbf16>
    %67 = arith.extf %66 : vector<16x8xbf16> to vector<16x8xf32>
    %68 = vector.broadcast %1 : vector<1x8xf32> to vector<16x8xf32>
    %69 = arith.mulf %67, %68 : vector<16x8xf32>
    %70 = vector.broadcast %2 : vector<1x8xf32> to vector<16x8xf32>
    %71 = arith.addf %69, %70 : vector<16x8xf32>
    %cst_34 = arith.constant 0.000000e+00 : f32
    %72 = vector.broadcast %cst_34 : f32 to vector<16x8xf32>
    %73 = arith.maximumf %71, %72 : vector<16x8xf32>
    %74 = arith.truncf %73 : vector<16x8xf32> to vector<16x8xbf16>
    %c104 = arith.constant 104 : index
    %c0_35 = arith.constant 0 : index
    %75 = vector.load %arg8[%c104, %c0_35] : memref<320x8xbf16, #tpu.memory_space<vmem>>, vector<16x8xbf16>
    tpu.vector_store %arg8[%c104, %c0_35], %74 {strides = array<i32>} : memref<320x8xbf16, #tpu.memory_space<vmem>>, vector<16x8xbf16>,
    %c128 = arith.constant 128 : index
    %c0_36 = arith.constant 0 : index
    %76 = vector.load %arg8[%c128, %c0_36] : memref<320x8xbf16, #tpu.memory_space<vmem>>, vector<8x8xbf16>
    tpu.vector_store %arg8[%c128, %c0_36], %3 {strides = array<i32>} : memref<320x8xbf16, #tpu.memory_space<vmem>>, vector<8x8xbf16>,
    %c152 = arith.constant 152 : index
    %c0_37 = arith.constant 0 : index
    %77 = vector.load %arg8[%c152, %c0_37] : memref<320x8xbf16, #tpu.memory_space<vmem>>, vector<8x8xbf16>
    tpu.vector_store %arg8[%c152, %c0_37], %4 {strides = array<i32>} : memref<320x8xbf16, #tpu.memory_space<vmem>>, vector<8x8xbf16>,
    %c3_i32 = arith.constant 3 : i32
    %78 = arith.addi %0, %c3_i32 : i32
    %c0_38 = arith.constant 0 : index
    %79 = arith.index_cast %78 : i32 to index
    %c0_39 = arith.constant 0 : index
    %c0_40 = arith.constant 0 : index
    %80 = vector.load %arg2[%c0_38, %79, %c0_39, %c0_40] : memref<1x16x16x8xbf16, #tpu.memory_space<vmem>>, vector<1x1x16x8xbf16>
    %81 = vector.shape_cast %80 : vector<1x1x16x8xbf16> to vector<1x16x8xbf16>
    %82 = vector.shape_cast %81 : vector<1x16x8xbf16> to vector<16x8xbf16>
    %83 = arith.extf %82 : vector<16x8xbf16> to vector<16x8xf32>
    %84 = vector.broadcast %1 : vector<1x8xf32> to vector<16x8xf32>
    %85 = arith.mulf %83, %84 : vector<16x8xf32>
    %86 = vector.broadcast %2 : vector<1x8xf32> to vector<16x8xf32>
    %87 = arith.addf %85, %86 : vector<16x8xf32>
    %cst_41 = arith.constant 0.000000e+00 : f32
    %88 = vector.broadcast %cst_41 : f32 to vector<16x8xf32>
    %89 = arith.maximumf %87, %88 : vector<16x8xf32>
    %90 = arith.truncf %89 : vector<16x8xf32> to vector<16x8xbf16>
    %c136 = arith.constant 136 : index
    %c0_42 = arith.constant 0 : index
    %91 = vector.load %arg8[%c136, %c0_42] : memref<320x8xbf16, #tpu.memory_space<vmem>>, vector<16x8xbf16>
    tpu.vector_store %arg8[%c136, %c0_42], %90 {strides = array<i32>} : memref<320x8xbf16, #tpu.memory_space<vmem>>, vector<16x8xbf16>,
    %c160 = arith.constant 160 : index
    %c0_43 = arith.constant 0 : index
    %92 = vector.load %arg8[%c160, %c0_43] : memref<320x8xbf16, #tpu.memory_space<vmem>>, vector<8x8xbf16>
    tpu.vector_store %arg8[%c160, %c0_43], %3 {strides = array<i32>} : memref<320x8xbf16, #tpu.memory_space<vmem>>, vector<8x8xbf16>,
    %c184 = arith.constant 184 : index
    %c0_44 = arith.constant 0 : index
    %93 = vector.load %arg8[%c184, %c0_44] : memref<320x8xbf16, #tpu.memory_space<vmem>>, vector<8x8xbf16>
    tpu.vector_store %arg8[%c184, %c0_44], %4 {strides = array<i32>} : memref<320x8xbf16, #tpu.memory_space<vmem>>, vector<8x8xbf16>,
    %c4_i32 = arith.constant 4 : i32
    %94 = arith.addi %0, %c4_i32 : i32
    %c0_45 = arith.constant 0 : index
    %95 = arith.index_cast %94 : i32 to index
    %c0_46 = arith.constant 0 : index
    %c0_47 = arith.constant 0 : index
    %96 = vector.load %arg2[%c0_45, %95, %c0_46, %c0_47] : memref<1x16x16x8xbf16, #tpu.memory_space<vmem>>, vector<1x1x16x8xbf16>
    %97 = vector.shape_cast %96 : vector<1x1x16x8xbf16> to vector<1x16x8xbf16>
    %98 = vector.shape_cast %97 : vector<1x16x8xbf16> to vector<16x8xbf16>
    %99 = arith.extf %98 : vector<16x8xbf16> to vector<16x8xf32>
    %100 = vector.broadcast %1 : vector<1x8xf32> to vector<16x8xf32>
    %101 = arith.mulf %99, %100 : vector<16x8xf32>
    %102 = vector.broadcast %2 : vector<1x8xf32> to vector<16x8xf32>
    %103 = arith.addf %101, %102 : vector<16x8xf32>
    %cst_48 = arith.constant 0.000000e+00 : f32
    %104 = vector.broadcast %cst_48 : f32 to vector<16x8xf32>
    %105 = arith.maximumf %103, %104 : vector<16x8xf32>
    %106 = arith.truncf %105 : vector<16x8xf32> to vector<16x8xbf16>
    %c168 = arith.constant 168 : index
    %c0_49 = arith.constant 0 : index
    %107 = vector.load %arg8[%c168, %c0_49] : memref<320x8xbf16, #tpu.memory_space<vmem>>, vector<16x8xbf16>
    tpu.vector_store %arg8[%c168, %c0_49], %106 {strides = array<i32>} : memref<320x8xbf16, #tpu.memory_space<vmem>>, vector<16x8xbf16>,
    %c192 = arith.constant 192 : index
    %c0_50 = arith.constant 0 : index
    %108 = vector.load %arg8[%c192, %c0_50] : memref<320x8xbf16, #tpu.memory_space<vmem>>, vector<8x8xbf16>
    tpu.vector_store %arg8[%c192, %c0_50], %3 {strides = array<i32>} : memref<320x8xbf16, #tpu.memory_space<vmem>>, vector<8x8xbf16>,
    %c216 = arith.constant 216 : index
    %c0_51 = arith.constant 0 : index
    %109 = vector.load %arg8[%c216, %c0_51] : memref<320x8xbf16, #tpu.memory_space<vmem>>, vector<8x8xbf16>
    tpu.vector_store %arg8[%c216, %c0_51], %4 {strides = array<i32>} : memref<320x8xbf16, #tpu.memory_space<vmem>>, vector<8x8xbf16>,
    %c5_i32 = arith.constant 5 : i32
    %110 = arith.addi %0, %c5_i32 : i32
    %c0_52 = arith.constant 0 : index
    %111 = arith.index_cast %110 : i32 to index
    %c0_53 = arith.constant 0 : index
    %c0_54 = arith.constant 0 : index
    %112 = vector.load %arg2[%c0_52, %111, %c0_53, %c0_54] : memref<1x16x16x8xbf16, #tpu.memory_space<vmem>>, vector<1x1x16x8xbf16>
    %113 = vector.shape_cast %112 : vector<1x1x16x8xbf16> to vector<1x16x8xbf16>
    %114 = vector.shape_cast %113 : vector<1x16x8xbf16> to vector<16x8xbf16>
    %115 = arith.extf %114 : vector<16x8xbf16> to vector<16x8xf32>
    %116 = vector.broadcast %1 : vector<1x8xf32> to vector<16x8xf32>
    %117 = arith.mulf %115, %116 : vector<16x8xf32>
    %118 = vector.broadcast %2 : vector<1x8xf32> to vector<16x8xf32>
    %119 = arith.addf %117, %118 : vector<16x8xf32>
    %cst_55 = arith.constant 0.000000e+00 : f32
    %120 = vector.broadcast %cst_55 : f32 to vector<16x8xf32>
    %121 = arith.maximumf %119, %120 : vector<16x8xf32>
    %122 = arith.truncf %121 : vector<16x8xf32> to vector<16x8xbf16>
    %c200 = arith.constant 200 : index
    %c0_56 = arith.constant 0 : index
    %123 = vector.load %arg8[%c200, %c0_56] : memref<320x8xbf16, #tpu.memory_space<vmem>>, vector<16x8xbf16>
    tpu.vector_store %arg8[%c200, %c0_56], %122 {strides = array<i32>} : memref<320x8xbf16, #tpu.memory_space<vmem>>, vector<16x8xbf16>,
    %c224 = arith.constant 224 : index
    %c0_57 = arith.constant 0 : index
    %124 = vector.load %arg8[%c224, %c0_57] : memref<320x8xbf16, #tpu.memory_space<vmem>>, vector<8x8xbf16>
    tpu.vector_store %arg8[%c224, %c0_57], %3 {strides = array<i32>} : memref<320x8xbf16, #tpu.memory_space<vmem>>, vector<8x8xbf16>,
    %c248 = arith.constant 248 : index
    %c0_58 = arith.constant 0 : index
    %125 = vector.load %arg8[%c248, %c0_58] : memref<320x8xbf16, #tpu.memory_space<vmem>>, vector<8x8xbf16>
    tpu.vector_store %arg8[%c248, %c0_58], %4 {strides = array<i32>} : memref<320x8xbf16, #tpu.memory_space<vmem>>, vector<8x8xbf16>,
    %c6_i32 = arith.constant 6 : i32
    %126 = arith.addi %0, %c6_i32 : i32
    %c0_59 = arith.constant 0 : index
    %127 = arith.index_cast %126 : i32 to index
    %c0_60 = arith.constant 0 : index
    %c0_61 = arith.constant 0 : index
    %128 = vector.load %arg2[%c0_59, %127, %c0_60, %c0_61] : memref<1x16x16x8xbf16, #tpu.memory_space<vmem>>, vector<1x1x16x8xbf16>
    %129 = vector.shape_cast %128 : vector<1x1x16x8xbf16> to vector<1x16x8xbf16>
    %130 = vector.shape_cast %129 : vector<1x16x8xbf16> to vector<16x8xbf16>
    %131 = arith.extf %130 : vector<16x8xbf16> to vector<16x8xf32>
    %132 = vector.broadcast %1 : vector<1x8xf32> to vector<16x8xf32>
    %133 = arith.mulf %131, %132 : vector<16x8xf32>
    %134 = vector.broadcast %2 : vector<1x8xf32> to vector<16x8xf32>
    %135 = arith.addf %133, %134 : vector<16x8xf32>
    %cst_62 = arith.constant 0.000000e+00 : f32
    %136 = vector.broadcast %cst_62 : f32 to vector<16x8xf32>
    %137 = arith.maximumf %135, %136 : vector<16x8xf32>
    %138 = arith.truncf %137 : vector<16x8xf32> to vector<16x8xbf16>
    %c232 = arith.constant 232 : index
    %c0_63 = arith.constant 0 : index
    %139 = vector.load %arg8[%c232, %c0_63] : memref<320x8xbf16, #tpu.memory_space<vmem>>, vector<16x8xbf16>
    tpu.vector_store %arg8[%c232, %c0_63], %138 {strides = array<i32>} : memref<320x8xbf16, #tpu.memory_space<vmem>>, vector<16x8xbf16>,
    %c256 = arith.constant 256 : index
    %c0_64 = arith.constant 0 : index
    %140 = vector.load %arg8[%c256, %c0_64] : memref<320x8xbf16, #tpu.memory_space<vmem>>, vector<8x8xbf16>
    tpu.vector_store %arg8[%c256, %c0_64], %3 {strides = array<i32>} : memref<320x8xbf16, #tpu.memory_space<vmem>>, vector<8x8xbf16>,
    %c280 = arith.constant 280 : index
    %c0_65 = arith.constant 0 : index
    %141 = vector.load %arg8[%c280, %c0_65] : memref<320x8xbf16, #tpu.memory_space<vmem>>, vector<8x8xbf16>
    tpu.vector_store %arg8[%c280, %c0_65], %4 {strides = array<i32>} : memref<320x8xbf16, #tpu.memory_space<vmem>>, vector<8x8xbf16>,
    %c7_i32 = arith.constant 7 : i32
    %142 = arith.addi %0, %c7_i32 : i32
    %c0_66 = arith.constant 0 : index
    %143 = arith.index_cast %142 : i32 to index
    %c0_67 = arith.constant 0 : index
    %c0_68 = arith.constant 0 : index
    %144 = vector.load %arg2[%c0_66, %143, %c0_67, %c0_68] : memref<1x16x16x8xbf16, #tpu.memory_space<vmem>>, vector<1x1x16x8xbf16>
    %145 = vector.shape_cast %144 : vector<1x1x16x8xbf16> to vector<1x16x8xbf16>
    %146 = vector.shape_cast %145 : vector<1x16x8xbf16> to vector<16x8xbf16>
    %147 = arith.extf %146 : vector<16x8xbf16> to vector<16x8xf32>
    %148 = vector.broadcast %1 : vector<1x8xf32> to vector<16x8xf32>
    %149 = arith.mulf %147, %148 : vector<16x8xf32>
    %150 = vector.broadcast %2 : vector<1x8xf32> to vector<16x8xf32>
    %151 = arith.addf %149, %150 : vector<16x8xf32>
    %cst_69 = arith.constant 0.000000e+00 : f32
    %152 = vector.broadcast %cst_69 : f32 to vector<16x8xf32>
    %153 = arith.maximumf %151, %152 : vector<16x8xf32>
    %154 = arith.truncf %153 : vector<16x8xf32> to vector<16x8xbf16>
    %c264 = arith.constant 264 : index
    %c0_70 = arith.constant 0 : index
    %155 = vector.load %arg8[%c264, %c0_70] : memref<320x8xbf16, #tpu.memory_space<vmem>>, vector<16x8xbf16>
    tpu.vector_store %arg8[%c264, %c0_70], %154 {strides = array<i32>} : memref<320x8xbf16, #tpu.memory_space<vmem>>, vector<16x8xbf16>,
    %c288 = arith.constant 288 : index
    %c0_71 = arith.constant 0 : index
    %156 = vector.load %arg8[%c288, %c0_71] : memref<320x8xbf16, #tpu.memory_space<vmem>>, vector<8x8xbf16>
    tpu.vector_store %arg8[%c288, %c0_71], %3 {strides = array<i32>} : memref<320x8xbf16, #tpu.memory_space<vmem>>, vector<8x8xbf16>,
    %c312 = arith.constant 312 : index
    %c0_72 = arith.constant 0 : index
    %157 = vector.load %arg8[%c312, %c0_72] : memref<320x8xbf16, #tpu.memory_space<vmem>>, vector<8x8xbf16>
    tpu.vector_store %arg8[%c312, %c0_72], %4 {strides = array<i32>} : memref<320x8xbf16, #tpu.memory_space<vmem>>, vector<8x8xbf16>,
    %c8_i32_73 = arith.constant 8 : i32
    %158 = arith.addi %0, %c8_i32_73 : i32
    %c0_i32_74 = arith.constant 0 : i32
    %c15_i32_75 = arith.constant 15 : i32
    %159 = arith.maxsi %c0_i32_74, %158 : i32
    %160 = arith.minsi %c15_i32_75, %159 : i32
    %c0_76 = arith.constant 0 : index
    %161 = arith.index_cast %160 : i32 to index
    %c0_77 = arith.constant 0 : index
    %c0_78 = arith.constant 0 : index
    %162 = vector.load %arg2[%c0_76, %161, %c0_77, %c0_78] : memref<1x16x16x8xbf16, #tpu.memory_space<vmem>>, vector<1x1x16x8xbf16>
    %163 = vector.shape_cast %162 : vector<1x1x16x8xbf16> to vector<1x16x8xbf16>
    %164 = vector.shape_cast %163 : vector<1x16x8xbf16> to vector<16x8xbf16>
    %165 = arith.extf %164 : vector<16x8xbf16> to vector<16x8xf32>
    %166 = vector.broadcast %1 : vector<1x8xf32> to vector<16x8xf32>
    %167 = arith.mulf %165, %166 : vector<16x8xf32>
    %168 = vector.broadcast %2 : vector<1x8xf32> to vector<16x8xf32>
    %169 = arith.addf %167, %168 : vector<16x8xf32>
    %cst_79 = arith.constant 0.000000e+00 : f32
    %170 = vector.broadcast %cst_79 : f32 to vector<16x8xf32>
    %171 = arith.maximumf %169, %170 : vector<16x8xf32>
    %c0_i32_80 = arith.constant 0 : i32
    %172 = arith.cmpi sge, %158, %c0_i32_80 : i32
    %c16_i32_81 = arith.constant 16 : i32
    %173 = arith.cmpi slt, %158, %c16_i32_81 : i32
    %174 = arith.andi %172, %173 : i1
    %cst_82 = arith.constant 0.000000e+00 : f32
    %175 = vector.broadcast %cst_82 : f32 to vector<16x8xf32>
    %176 = arith.select %174, %171, %175 : vector<16x8xf32>
    %177 = arith.truncf %176 : vector<16x8xf32> to vector<16x8xbf16>
    %c296 = arith.constant 296 : index
    %c0_83 = arith.constant 0 : index
    %178 = vector.load %arg8[%c296, %c0_83] : memref<320x8xbf16, #tpu.memory_space<vmem>>, vector<16x8xbf16>
    tpu.vector_store %arg8[%c296, %c0_83], %177 {strides = array<i32>} : memref<320x8xbf16, #tpu.memory_space<vmem>>, vector<16x8xbf16>,
    %c0_84 = arith.constant 0 : index
    %c0_85 = arith.constant 0 : index
    %179 = vector.load %arg8[%c0_84, %c0_85] : memref<320x8xbf16, #tpu.memory_space<vmem>>, vector<320x8xbf16>
    %c0_86 = arith.constant 0 : index
    %c0_87 = arith.constant 0 : index
    %180 = vector.load %arg5[%c0_86, %c0_87] : memref<8x36xbf16, #tpu.memory_space<vmem>>, vector<8x36xbf16>
    %cst_88 = arith.constant dense<0.000000e+00> : vector<320x36xf32>
    %181 = tpu.matmul %179, %180, %cst_88 {dimension_numbers = #tpu.dot_dimension_numbers<[1], [0], [0], [1], [0, 0, 1, 1], [], []>} : vector<320x8xbf16>, vector<8x36xbf16>, vector<320x36xf32> -> vector<320x36xf32>
    %c0_89 = arith.constant 0 : index
    %c0_90 = arith.constant 0 : index
    %182 = vector.load %arg9[%c0_89, %c0_90] : memref<320x36xf32, #tpu.memory_space<vmem>>, vector<320x36xf32>
    tpu.vector_store %arg9[%c0_89, %c0_90], %181 {strides = array<i32>} : memref<320x36xf32, #tpu.memory_space<vmem>>, vector<320x36xf32>,
    %c7 = arith.constant 7 : index
    %c0_91 = arith.constant 0 : index
    %183 = vector.load %arg9[%c7, %c0_91] : memref<320x36xf32, #tpu.memory_space<vmem>>, vector<240x4xf32>
    %c0_92 = arith.constant 0 : index
    %c0_93 = arith.constant 0 : index
    %184 = vector.load %arg10[%c0_92, %c0_93] : memref<240x4xf32, #tpu.memory_space<vmem>>, vector<240x4xf32>
    tpu.vector_store %arg10[%c0_92, %c0_93], %183 {strides = array<i32>} : memref<240x4xf32, #tpu.memory_space<vmem>>, vector<240x4xf32>,
    %c8_94 = arith.constant 8 : index
    %c4 = arith.constant 4 : index
    %185 = vector.load %arg9[%c8_94, %c4] : memref<320x36xf32, #tpu.memory_space<vmem>>, vector<240x4xf32>
    %c0_95 = arith.constant 0 : index
    %c0_96 = arith.constant 0 : index
    %186 = vector.load %arg10[%c0_95, %c0_96] : memref<240x4xf32, #tpu.memory_space<vmem>>, vector<240x4xf32>
    %187 = arith.addf %186, %185 : vector<240x4xf32>
    %c0_97 = arith.constant 0 : index
    %c0_98 = arith.constant 0 : index
    %188 = vector.load %arg10[%c0_97, %c0_98] : memref<240x4xf32, #tpu.memory_space<vmem>>, vector<240x4xf32>
    tpu.vector_store %arg10[%c0_97, %c0_98], %187 {strides = array<i32>} : memref<240x4xf32, #tpu.memory_space<vmem>>, vector<240x4xf32>,
    %c9 = arith.constant 9 : index
    %c8_99 = arith.constant 8 : index
    %189 = vector.load %arg9[%c9, %c8_99] : memref<320x36xf32, #tpu.memory_space<vmem>>, vector<240x4xf32>
    %c0_100 = arith.constant 0 : index
    %c0_101 = arith.constant 0 : index
    %190 = vector.load %arg10[%c0_100, %c0_101] : memref<240x4xf32, #tpu.memory_space<vmem>>, vector<240x4xf32>
    %191 = arith.addf %190, %189 : vector<240x4xf32>
    %c0_102 = arith.constant 0 : index
    %c0_103 = arith.constant 0 : index
    %192 = vector.load %arg10[%c0_102, %c0_103] : memref<240x4xf32, #tpu.memory_space<vmem>>, vector<240x4xf32>
    tpu.vector_store %arg10[%c0_102, %c0_103], %191 {strides = array<i32>} : memref<240x4xf32, #tpu.memory_space<vmem>>, vector<240x4xf32>,
    %c39 = arith.constant 39 : index
    %c12 = arith.constant 12 : index
    %193 = vector.load %arg9[%c39, %c12] : memref<320x36xf32, #tpu.memory_space<vmem>>, vector<240x4xf32>
    %c0_104 = arith.constant 0 : index
    %c0_105 = arith.constant 0 : index
    %194 = vector.load %arg10[%c0_104, %c0_105] : memref<240x4xf32, #tpu.memory_space<vmem>>, vector<240x4xf32>
    %195 = arith.addf %194, %193 : vector<240x4xf32>
    %c0_106 = arith.constant 0 : index
    %c0_107 = arith.constant 0 : index
    %196 = vector.load %arg10[%c0_106, %c0_107] : memref<240x4xf32, #tpu.memory_space<vmem>>, vector<240x4xf32>
    tpu.vector_store %arg10[%c0_106, %c0_107], %195 {strides = array<i32>} : memref<240x4xf32, #tpu.memory_space<vmem>>, vector<240x4xf32>,
    %c40_108 = arith.constant 40 : index
    %c16 = arith.constant 16 : index
    %197 = vector.load %arg9[%c40_108, %c16] : memref<320x36xf32, #tpu.memory_space<vmem>>, vector<240x4xf32>
    %c0_109 = arith.constant 0 : index
    %c0_110 = arith.constant 0 : index
    %198 = vector.load %arg10[%c0_109, %c0_110] : memref<240x4xf32, #tpu.memory_space<vmem>>, vector<240x4xf32>
    %199 = arith.addf %198, %197 : vector<240x4xf32>
    %c0_111 = arith.constant 0 : index
    %c0_112 = arith.constant 0 : index
    %200 = vector.load %arg10[%c0_111, %c0_112] : memref<240x4xf32, #tpu.memory_space<vmem>>, vector<240x4xf32>
    tpu.vector_store %arg10[%c0_111, %c0_112], %199 {strides = array<i32>} : memref<240x4xf32, #tpu.memory_space<vmem>>, vector<240x4xf32>,
    %c41 = arith.constant 41 : index
    %c20 = arith.constant 20 : index
    %201 = vector.load %arg9[%c41, %c20] : memref<320x36xf32, #tpu.memory_space<vmem>>, vector<240x4xf32>
    %c0_113 = arith.constant 0 : index
    %c0_114 = arith.constant 0 : index
    %202 = vector.load %arg10[%c0_113, %c0_114] : memref<240x4xf32, #tpu.memory_space<vmem>>, vector<240x4xf32>
    %203 = arith.addf %202, %201 : vector<240x4xf32>
    %c0_115 = arith.constant 0 : index
    %c0_116 = arith.constant 0 : index
    %204 = vector.load %arg10[%c0_115, %c0_116] : memref<240x4xf32, #tpu.memory_space<vmem>>, vector<240x4xf32>
    tpu.vector_store %arg10[%c0_115, %c0_116], %203 {strides = array<i32>} : memref<240x4xf32, #tpu.memory_space<vmem>>, vector<240x4xf32>,
    %c71 = arith.constant 71 : index
    %c24_117 = arith.constant 24 : index
    %205 = vector.load %arg9[%c71, %c24_117] : memref<320x36xf32, #tpu.memory_space<vmem>>, vector<240x4xf32>
    %c0_118 = arith.constant 0 : index
    %c0_119 = arith.constant 0 : index
    %206 = vector.load %arg10[%c0_118, %c0_119] : memref<240x4xf32, #tpu.memory_space<vmem>>, vector<240x4xf32>
    %207 = arith.addf %206, %205 : vector<240x4xf32>
    %c0_120 = arith.constant 0 : index
    %c0_121 = arith.constant 0 : index
    %208 = vector.load %arg10[%c0_120, %c0_121] : memref<240x4xf32, #tpu.memory_space<vmem>>, vector<240x4xf32>
    tpu.vector_store %arg10[%c0_120, %c0_121], %207 {strides = array<i32>} : memref<240x4xf32, #tpu.memory_space<vmem>>, vector<240x4xf32>,
    %c72_122 = arith.constant 72 : index
    %c28 = arith.constant 28 : index
    %209 = vector.load %arg9[%c72_122, %c28] : memref<320x36xf32, #tpu.memory_space<vmem>>, vector<240x4xf32>
    %c0_123 = arith.constant 0 : index
    %c0_124 = arith.constant 0 : index
    %210 = vector.load %arg10[%c0_123, %c0_124] : memref<240x4xf32, #tpu.memory_space<vmem>>, vector<240x4xf32>
    %211 = arith.addf %210, %209 : vector<240x4xf32>
    %c0_125 = arith.constant 0 : index
    %c0_126 = arith.constant 0 : index
    %212 = vector.load %arg10[%c0_125, %c0_126] : memref<240x4xf32, #tpu.memory_space<vmem>>, vector<240x4xf32>
    tpu.vector_store %arg10[%c0_125, %c0_126], %211 {strides = array<i32>} : memref<240x4xf32, #tpu.memory_space<vmem>>, vector<240x4xf32>,
    %c73 = arith.constant 73 : index
    %c32_127 = arith.constant 32 : index
    %213 = vector.load %arg9[%c73, %c32_127] : memref<320x36xf32, #tpu.memory_space<vmem>>, vector<240x4xf32>
    %c0_128 = arith.constant 0 : index
    %c0_129 = arith.constant 0 : index
    %214 = vector.load %arg10[%c0_128, %c0_129] : memref<240x4xf32, #tpu.memory_space<vmem>>, vector<240x4xf32>
    %215 = arith.addf %214, %213 : vector<240x4xf32>
    %c0_130 = arith.constant 0 : index
    %c0_131 = arith.constant 0 : index
    %216 = vector.load %arg10[%c0_130, %c0_131] : memref<240x4xf32, #tpu.memory_space<vmem>>, vector<240x4xf32>
    tpu.vector_store %arg10[%c0_130, %c0_131], %215 {strides = array<i32>} : memref<240x4xf32, #tpu.memory_space<vmem>>, vector<240x4xf32>,
    %c0_132 = arith.constant 0 : index
    %c0_133 = arith.constant 0 : index
    %217 = vector.load %arg6[%c0_132, %c0_133] : memref<1x4xf32, #tpu.memory_space<vmem>>, vector<1x4xf32>
    %c0_134 = arith.constant 0 : index
    %c0_135 = arith.constant 0 : index
    %218 = vector.load %arg10[%c0_134, %c0_135] : memref<240x4xf32, #tpu.memory_space<vmem>>, vector<16x4xf32>
    %219 = vector.broadcast %217 : vector<1x4xf32> to vector<16x4xf32>
    %220 = arith.addf %218, %219 : vector<16x4xf32>
    %c0_136 = arith.constant 0 : index
    %c0_137 = arith.constant 0 : index
    %c0_138 = arith.constant 0 : index
    %c0_139 = arith.constant 0 : index
    %221 = vector.load %arg7[%c0_136, %c0_137, %c0_138, %c0_139] : memref<1x8x16x4xf32, #tpu.memory_space<vmem>>, vector<1x1x16x4xf32>
    %222 = vector.shape_cast %221 : vector<1x1x16x4xf32> to vector<16x4xf32>
    %223 = vector.shape_cast %220 : vector<16x4xf32> to vector<1x1x16x4xf32>
    tpu.vector_store %arg7[%c0_136, %c0_137, %c0_138, %c0_139], %223 {strides = array<i32>} : memref<1x8x16x4xf32, #tpu.memory_space<vmem>>, vector<1x1x16x4xf32>,
    %c32_140 = arith.constant 32 : index
    %c0_141 = arith.constant 0 : index
    %224 = vector.load %arg10[%c32_140, %c0_141] : memref<240x4xf32, #tpu.memory_space<vmem>>, vector<16x4xf32>
    %225 = vector.broadcast %217 : vector<1x4xf32> to vector<16x4xf32>
    %226 = arith.addf %224, %225 : vector<16x4xf32>
    %c0_142 = arith.constant 0 : index
    %c1 = arith.constant 1 : index
    %c0_143 = arith.constant 0 : index
    %c0_144 = arith.constant 0 : index
    %227 = vector.load %arg7[%c0_142, %c1, %c0_143, %c0_144] : memref<1x8x16x4xf32, #tpu.memory_space<vmem>>, vector<1x1x16x4xf32>
    %228 = vector.shape_cast %227 : vector<1x1x16x4xf32> to vector<16x4xf32>
    %229 = vector.shape_cast %226 : vector<16x4xf32> to vector<1x1x16x4xf32>
    tpu.vector_store %arg7[%c0_142, %c1, %c0_143, %c0_144], %229 {strides = array<i32>} : memref<1x8x16x4xf32, #tpu.memory_space<vmem>>, vector<1x1x16x4xf32>,
    %c64_145 = arith.constant 64 : index
    %c0_146 = arith.constant 0 : index
    %230 = vector.load %arg10[%c64_145, %c0_146] : memref<240x4xf32, #tpu.memory_space<vmem>>, vector<16x4xf32>
    %231 = vector.broadcast %217 : vector<1x4xf32> to vector<16x4xf32>
    %232 = arith.addf %230, %231 : vector<16x4xf32>
    %c0_147 = arith.constant 0 : index
    %c2 = arith.constant 2 : index
    %c0_148 = arith.constant 0 : index
    %c0_149 = arith.constant 0 : index
    %233 = vector.load %arg7[%c0_147, %c2, %c0_148, %c0_149] : memref<1x8x16x4xf32, #tpu.memory_space<vmem>>, vector<1x1x16x4xf32>
    %234 = vector.shape_cast %233 : vector<1x1x16x4xf32> to vector<16x4xf32>
    %235 = vector.shape_cast %232 : vector<16x4xf32> to vector<1x1x16x4xf32>
    tpu.vector_store %arg7[%c0_147, %c2, %c0_148, %c0_149], %235 {strides = array<i32>} : memref<1x8x16x4xf32, #tpu.memory_space<vmem>>, vector<1x1x16x4xf32>,
    %c96_150 = arith.constant 96 : index
    %c0_151 = arith.constant 0 : index
    %236 = vector.load %arg10[%c96_150, %c0_151] : memref<240x4xf32, #tpu.memory_space<vmem>>, vector<16x4xf32>
    %237 = vector.broadcast %217 : vector<1x4xf32> to vector<16x4xf32>
    %238 = arith.addf %236, %237 : vector<16x4xf32>
    %c0_152 = arith.constant 0 : index
    %c3 = arith.constant 3 : index
    %c0_153 = arith.constant 0 : index
    %c0_154 = arith.constant 0 : index
    %239 = vector.load %arg7[%c0_152, %c3, %c0_153, %c0_154] : memref<1x8x16x4xf32, #tpu.memory_space<vmem>>, vector<1x1x16x4xf32>
    %240 = vector.shape_cast %239 : vector<1x1x16x4xf32> to vector<16x4xf32>
    %241 = vector.shape_cast %238 : vector<16x4xf32> to vector<1x1x16x4xf32>
    tpu.vector_store %arg7[%c0_152, %c3, %c0_153, %c0_154], %241 {strides = array<i32>} : memref<1x8x16x4xf32, #tpu.memory_space<vmem>>, vector<1x1x16x4xf32>,
    %c128_155 = arith.constant 128 : index
    %c0_156 = arith.constant 0 : index
    %242 = vector.load %arg10[%c128_155, %c0_156] : memref<240x4xf32, #tpu.memory_space<vmem>>, vector<16x4xf32>
    %243 = vector.broadcast %217 : vector<1x4xf32> to vector<16x4xf32>
    %244 = arith.addf %242, %243 : vector<16x4xf32>
    %c0_157 = arith.constant 0 : index
    %c4_158 = arith.constant 4 : index
    %c0_159 = arith.constant 0 : index
    %c0_160 = arith.constant 0 : index
    %245 = vector.load %arg7[%c0_157, %c4_158, %c0_159, %c0_160] : memref<1x8x16x4xf32, #tpu.memory_space<vmem>>, vector<1x1x16x4xf32>
    %246 = vector.shape_cast %245 : vector<1x1x16x4xf32> to vector<16x4xf32>
    %247 = vector.shape_cast %244 : vector<16x4xf32> to vector<1x1x16x4xf32>
    tpu.vector_store %arg7[%c0_157, %c4_158, %c0_159, %c0_160], %247 {strides = array<i32>} : memref<1x8x16x4xf32, #tpu.memory_space<vmem>>, vector<1x1x16x4xf32>,
    %c160_161 = arith.constant 160 : index
    %c0_162 = arith.constant 0 : index
    %248 = vector.load %arg10[%c160_161, %c0_162] : memref<240x4xf32, #tpu.memory_space<vmem>>, vector<16x4xf32>
    %249 = vector.broadcast %217 : vector<1x4xf32> to vector<16x4xf32>
    %250 = arith.addf %248, %249 : vector<16x4xf32>
    %c0_163 = arith.constant 0 : index
    %c5 = arith.constant 5 : index
    %c0_164 = arith.constant 0 : index
    %c0_165 = arith.constant 0 : index
    %251 = vector.load %arg7[%c0_163, %c5, %c0_164, %c0_165] : memref<1x8x16x4xf32, #tpu.memory_space<vmem>>, vector<1x1x16x4xf32>
    %252 = vector.shape_cast %251 : vector<1x1x16x4xf32> to vector<16x4xf32>
    %253 = vector.shape_cast %250 : vector<16x4xf32> to vector<1x1x16x4xf32>
    tpu.vector_store %arg7[%c0_163, %c5, %c0_164, %c0_165], %253 {strides = array<i32>} : memref<1x8x16x4xf32, #tpu.memory_space<vmem>>, vector<1x1x16x4xf32>,
    %c192_166 = arith.constant 192 : index
    %c0_167 = arith.constant 0 : index
    %254 = vector.load %arg10[%c192_166, %c0_167] : memref<240x4xf32, #tpu.memory_space<vmem>>, vector<16x4xf32>
    %255 = vector.broadcast %217 : vector<1x4xf32> to vector<16x4xf32>
    %256 = arith.addf %254, %255 : vector<16x4xf32>
    %c0_168 = arith.constant 0 : index
    %c6 = arith.constant 6 : index
    %c0_169 = arith.constant 0 : index
    %c0_170 = arith.constant 0 : index
    %257 = vector.load %arg7[%c0_168, %c6, %c0_169, %c0_170] : memref<1x8x16x4xf32, #tpu.memory_space<vmem>>, vector<1x1x16x4xf32>
    %258 = vector.shape_cast %257 : vector<1x1x16x4xf32> to vector<16x4xf32>
    %259 = vector.shape_cast %256 : vector<16x4xf32> to vector<1x1x16x4xf32>
    tpu.vector_store %arg7[%c0_168, %c6, %c0_169, %c0_170], %259 {strides = array<i32>} : memref<1x8x16x4xf32, #tpu.memory_space<vmem>>, vector<1x1x16x4xf32>,
    %c224_171 = arith.constant 224 : index
    %c0_172 = arith.constant 0 : index
    %260 = vector.load %arg10[%c224_171, %c0_172] : memref<240x4xf32, #tpu.memory_space<vmem>>, vector<16x4xf32>
    %261 = vector.broadcast %217 : vector<1x4xf32> to vector<16x4xf32>
    %262 = arith.addf %260, %261 : vector<16x4xf32>
    %c0_173 = arith.constant 0 : index
    %c7_174 = arith.constant 7 : index
    %c0_175 = arith.constant 0 : index
    %c0_176 = arith.constant 0 : index
    %263 = vector.load %arg7[%c0_173, %c7_174, %c0_175, %c0_176] : memref<1x8x16x4xf32, #tpu.memory_space<vmem>>, vector<1x1x16x4xf32>
    %264 = vector.shape_cast %263 : vector<1x1x16x4xf32> to vector<16x4xf32>
    %265 = vector.shape_cast %262 : vector<16x4xf32> to vector<1x1x16x4xf32>
    tpu.vector_store %arg7[%c0_173, %c7_174, %c0_175, %c0_176], %265 {strides = array<i32>} : memref<1x8x16x4xf32, #tpu.memory_space<vmem>>, vector<1x1x16x4xf32>,
    return
  }
  func.func @transform_0(%arg0: i32, %arg1: i32) -> (i32, i32, i32, i32) {
    %c0_i32 = arith.constant 0 : i32
    %c0_i32_0 = arith.constant 0 : i32
    %c0_i32_1 = arith.constant 0 : i32
    %c0_i32_2 = arith.constant 0 : i32
    return %arg0, %c0_i32, %c0_i32_0, %c0_i32_1 : i32, i32, i32, i32
  }
  func.func @transform_1(%arg0: i32, %arg1: i32) -> (i32, i32) {
    %c0_i32 = arith.constant 0 : i32
    %c0_i32_0 = arith.constant 0 : i32
    %c0_i32_1 = arith.constant 0 : i32
    return %c0_i32, %c0_i32_0 : i32, i32
  }
  func.func @transform_2(%arg0: i32, %arg1: i32) -> (i32, i32) {
    %c0_i32 = arith.constant 0 : i32
    %c0_i32_0 = arith.constant 0 : i32
    %c0_i32_1 = arith.constant 0 : i32
    return %c0_i32, %c0_i32_0 : i32, i32
  }
  func.func @transform_3(%arg0: i32, %arg1: i32) -> (i32, i32) {
    %c0_i32 = arith.constant 0 : i32
    %c0_i32_0 = arith.constant 0 : i32
    %c0_i32_1 = arith.constant 0 : i32
    return %c0_i32, %c0_i32_0 : i32, i32
  }
  func.func @transform_4(%arg0: i32, %arg1: i32) -> (i32, i32) {
    %c0_i32 = arith.constant 0 : i32
    %c0_i32_0 = arith.constant 0 : i32
    %c0_i32_1 = arith.constant 0 : i32
    return %c0_i32, %c0_i32_0 : i32, i32
  }
  func.func @transform_5(%arg0: i32, %arg1: i32) -> (i32, i32, i32, i32) {
    %c0_i32 = arith.constant 0 : i32
    %c0_i32_0 = arith.constant 0 : i32
    %c0_i32_1 = arith.constant 0 : i32
    return %arg0, %arg1, %c0_i32, %c0_i32_0 : i32, i32, i32, i32
  }
}

</mosaic_0001>

<bundles_post_ra>
// kernel: conv_block_forward.3
= control target key start
LH: loop header
LB: loop body
LE: loop exit
PB: predicated region body
PF: predicated region fallthrough
CT: control target
= control target key end

     0   :  { %vm14_vm0 = vcmask 24576   ;;  %vm82_vm1 = vcmask 31744   ;;  %v428_v0 = vmov 0.0   ;;  %s1318_s0 = inlined_call_operand.vmem [shape: f32[512,4], index: 0, kind: input, shape index: {}]   ;;  %s1319_s1 = inlined_call_operand.vmem [shape: f32[1,4], index: 1, kind: output, shape index: {0}]   ;;  %s1320_s2 = inlined_call_operand.vmem [shape: f32[1,4], index: 2, kind: output, shape index: {1}]  }
   0x1   :  { %15 = vst.msk [vmem:[%s1319_s1] sm:$0x1] %vm14_vm0, %v428_v0  ;;  %16 = vst.msk [vmem:[%s1320_s2] sm:$0x1] %vm14_vm0, %v428_v0  ;;  %v455_v1 = vld [vmem:[%s1318_s0] sm:$0xff]  ;;  %v460_v2 = vld [vmem:[%s1318_s0 + $0x8] sm:$0xff] }
   0x2   :  { %v465_v3 = vld [vmem:[%s1318_s0 + $0x10] sm:$0xff]  ;;  %v83_v4 = vsel %vm82_vm1, %v455_v1, 0.0  ;;  %v84_v5 = vsel %vm82_vm1, %v460_v2, 0.0  ;;  %v476_v7 = vld [vmem:[%s1318_s0 + $0x18] sm:$0xff]  ;;  %v483_v10 = vld [vmem:[%s1318_s0 + $0x20] sm:$0xff] }
   0x3   :  { %v86_v6 = vsel %vm82_vm1, %v465_v3, 0.0  ;;  %v85_v8 = vadd.f32 %v84_v5, %v83_v4  ;;  %v88_v9 = vsel %vm82_vm1, %v476_v7, 0.0  ;;  %v90_v12 = vsel %vm82_vm1, %v483_v10, 0.0  ;;  %v490_v13 = vld [vmem:[%s1318_s0 + $0x28] sm:$0xff]  ;;  %v497_v16 = vld [vmem:[%s1318_s0 + $0x30] sm:$0xff]  ;;  %v502_v18 = vld [vmem:[%s1318_s0 + $0x38] sm:$0xff] }
   0x4   :  { %v92_v15 = vsel %vm82_vm1, %v490_v13, 0.0  ;;  %v507_v19 = vld [vmem:[%s1318_s0 + $0x40] sm:$0xff]  ;;  %v94_v20 = vsel %vm82_vm1, %v497_v16, 0.0  ;;  %v514_v21 = vld [vmem:[%s1318_s0 + $0x48] sm:$0xff]  ;;  %v519_v22 = vld [vmem:[%s1318_s0 + $0x50] sm:$0xff]  ;;  %v96_v25 = vsel %vm82_vm1, %v502_v18, 0.0 }
   0x5   :  { %v87_v11 = vadd.f32 %v86_v6, %v85_v8  ;;  %v524_v23 = vld [vmem:[%s1318_s0 + $0x58] sm:$0xff]  ;;  %v98_v26 = vsel %vm82_vm1, %v507_v19, 0.0  ;;  %v533_v27 = vld [vmem:[%s1318_s0 + $0x108] sm:$0xff]  ;;  %v538_v28 = vld [vmem:[%s1318_s0 + $0x110] sm:$0xff]  ;;  %v100_v30 = vsel %vm82_vm1, %v514_v21, 0.0  ;;  %v102_v31 = vsel %vm82_vm1, %v519_v22, 0.0 }
   0x6   :  { %v543_v29 = vld [vmem:[%s1318_s0 + $0x118] sm:$0xff]  ;;  %v551_v32 = vsel %vm82_vm1, %v524_v23, 0.0  ;;  %v556_v33 = vld [vmem:[%s1318_s0 + $0x120] sm:$0xff]  ;;  %v561_v34 = vld [vmem:[%s1318_s0 + $0x128] sm:$0xff]  ;;  %v570_v37 = vsel %vm82_vm1, %v533_v27, 0.0  ;;  %v574_v38 = vsel %vm82_vm1, %v538_v28, 0.0 }
   0x7   :  { %v89_v14 = vadd.f32 %v88_v9, %v87_v11  ;;  %v566_v35 = vld [vmem:[%s1318_s0 + $0x130] sm:$0xff]  ;;  %1339 = vst [vmem:[#allocation2_spill] sm:$0xff] %v570_v37  ;;  %1340 = vst [vmem:[#allocation3_spill] sm:$0xff] %v574_v38  ;;  %v578_v39 = vsel %vm82_vm1, %v543_v29, 0.0  ;;  %v583_v40 = vld [vmem:[%s1318_s0 + $0x138] sm:$0xff]  ;;  %v597_v43 = vsel %vm82_vm1, %v556_v33, 0.0  ;;  %v222_v37 = vmul.f32 %v465_v3, %v465_v3 }
   0x8   :  { %1341 = vst [vmem:[#allocation4_spill] sm:$0xff] %v578_v39  ;;  %v588_v41 = vld [vmem:[%s1318_s0 + $0x140] sm:$0xff]  ;;  %v593_v42 = vld [vmem:[%s1318_s0 + $0x148] sm:$0xff]  ;;  %1342 = vst [vmem:[#allocation5_spill] sm:$0xff] %v597_v43  ;;  %v601_v44 = vsel %vm82_vm1, %v561_v34, 0.0  ;;  %v605_v45 = vsel %vm82_vm1, %v566_v35, 0.0 }
   0x9   :  { %v91_v17 = vadd.f32 %v90_v12, %v89_v14  ;;  %1343 = vst [vmem:[#allocation6_spill] sm:$0xff] %v601_v44  ;;  %1344 = vst [vmem:[#allocation7_spill] sm:$0xff] %v605_v45  ;;  %v610_v46 = vld [vmem:[%s1318_s0 + $0x150] sm:$0xff]  ;;  %v615_v47 = vld [vmem:[%s1318_s0 + $0x158] sm:$0xff]  ;;  %v624_v50 = vsel %vm82_vm1, %v583_v40, 0.0  ;;  %v628_v51 = vsel %vm82_vm1, %v588_v41, 0.0 }
   0xa   :  { %v620_v48 = vld [vmem:[%s1318_s0 + $0x160] sm:$0xff]  ;;  %1345 = vst [vmem:[#allocation8_spill] sm:$0xff] %v624_v50  ;;  %1346 = vst [vmem:[#allocation9_spill] sm:$0xff] %v628_v51  ;;  %v632_v52 = vsel %vm82_vm1, %v593_v42, 0.0  ;;  %v637_v53 = vld [vmem:[%s1318_s0 + $0x168] sm:$0xff]  ;;  %v651_v56 = vsel %vm82_vm1, %v610_v46, 0.0 }
   0xb   :  { %v93_v24 = vadd.f32 %v92_v15, %v91_v17  ;;  %1347 = vst [vmem:[#allocation10_spill] sm:$0xff] %v632_v52  ;;  %v642_v54 = vld [vmem:[%s1318_s0 + $0x170] sm:$0xff]  ;;  %v647_v55 = vld [vmem:[%s1318_s0 + $0x178] sm:$0xff]  ;;  %1348 = vst [vmem:[#allocation11_spill] sm:$0xff] %v651_v56  ;;  %v655_v57 = vsel %vm82_vm1, %v615_v47, 0.0  ;;  %v659_v58 = vsel %vm82_vm1, %v620_v48, 0.0 }
   0xc   :  { %1349 = vst [vmem:[#allocation12_spill] sm:$0xff] %v655_v57  ;;  %1350 = vst [vmem:[#allocation13_spill] sm:$0xff] %v659_v58  ;;  %v664_v59 = vld [vmem:[%s1318_s0 + $0x180] sm:$0xff]  ;;  %v669_v60 = vld [vmem:[%s1318_s0 + $0x188] sm:$0xff]  ;;  %v678_v63 = vsel %vm82_vm1, %v637_v53, 0.0  ;;  %v682_v0 = vsel %vm82_vm1, %v642_v54, 0.0 }
   0xd   :  { %v95_v36 = vadd.f32 %v94_v20, %v93_v24  ;;  %v674_v61 = vld [vmem:[%s1318_s0 + $0x190] sm:$0xff]  ;;  %1351 = vst [vmem:[#allocation14_spill] sm:$0xff] %v678_v63  ;;  %1352 = vst [vmem:[#allocation15_spill] sm:$0xff] %v682_v0  ;;  %v686_v4 = vsel %vm82_vm1, %v647_v55, 0.0  ;;  %v691_v5 = vld [vmem:[%s1318_s0 + $0x198] sm:$0xff]  ;;  %v705_v9 = vsel %vm82_vm1, %v664_v59, 0.0 }
   0xe   :  { %1353 = vst [vmem:[#allocation16_spill] sm:$0xff] %v686_v4  ;;  %v696_v6 = vld [vmem:[%s1318_s0 + $0x1a0] sm:$0xff]  ;;  %v701_v8 = vld [vmem:[%s1318_s0 + $0x1a8] sm:$0xff]  ;;  %1354 = vst [vmem:[#allocation17_spill] sm:$0xff] %v705_v9  ;;  %v709_v11 = vsel %vm82_vm1, %v669_v60, 0.0  ;;  %v713_v12 = vsel %vm82_vm1, %v674_v61, 0.0 }
   0xf   :  { %v97_v49 = vadd.f32 %v96_v25, %v95_v36  ;;  %1355 = vst [vmem:[#allocation18_spill] sm:$0xff] %v709_v11  ;;  %1356 = vst [vmem:[#allocation19_spill] sm:$0xff] %v713_v12  ;;  %v718_v14 = vld [vmem:[%s1318_s0 + $0x60] sm:$0xff]  ;;  %v723_v15 = vld [vmem:[%s1318_s0 + $0x1b0] sm:$0xff]  ;;  %v737_v25 = vsel %vm82_vm1, %v691_v5, 0.0  ;;  %v745_v36 = vsel %vm82_vm1, %v701_v8, 0.0 }
  0x10   :  { %v728_v17 = vld [vmem:[%s1318_s0 + $0x1b8] sm:$0xff]  ;;  %v733_v20 = vld [vmem:[%s1318_s0 + $0x1c0] sm:$0xff]  ;;  %1357 = vst [vmem:[#allocation20_spill] sm:$0xff] %v737_v25  ;;  %1359 = vst [vmem:[#allocation22_spill] sm:$0xff] %v745_v36 }
  0x11   :  { %v99_v62 = vadd.f32 %v98_v26, %v97_v49  ;;  %v741_v26 = vsel %vm82_vm1, %v696_v6, 0.0  ;;  %v750_v49 = vld [vmem:[%s1318_s0 + $0x1c8] sm:$0xff]  ;;  %v768_v36 = vsel %vm82_vm1, %v728_v17, 0.0  ;;  %v772_v25 = vsel %vm82_vm1, %v733_v20, 0.0  ;;  %v777_v12 = vld [vmem:[%s1318_s0 + $0x1e0] sm:$0xff]  ;;  %v804_v0 = vld [vmem:[%s1318_s0 + $0x1f8] sm:$0xff] }
  0x12   :  { %1358 = vst [vmem:[#allocation21_spill] sm:$0xff] %v741_v26  ;;  %v764_v26 = vsel %vm82_vm1, %v723_v15, 0.0  ;;  %1361 = vst [vmem:[#allocation24_spill] sm:$0xff] %v768_v36  ;;  %v782_v11 = vld [vmem:[%s1318_s0 + $0x1e8] sm:$0xff]  ;;  %v791_v9 = vsel %vm82_vm1, %v750_v49, 0.0  ;;  %v826_v58 = vsel %vm82_vm1, %v804_v0, 0.0 }
  0x13   :  { %v101_v24 = vadd.f32 %v100_v30, %v99_v62  ;;  %v755_v30 = vld [vmem:[%s1318_s0 + $0x1d0] sm:$0xff]  ;;  %v760_v62 = vld [vmem:[%s1318_s0 + $0x1d8] sm:$0xff]  ;;  %1360 = vst [vmem:[#allocation23_spill] sm:$0xff] %v764_v26  ;;  %1362 = vst [vmem:[#allocation25_spill] sm:$0xff] %v772_v25 }
  0x14   :  { %v787_v26 = vld [vmem:[%s1318_s0 + $0x1f0] sm:$0xff]  ;;  %1364 = vst [vmem:[#allocation27_spill] sm:$0xff] %v791_v9  ;;  %v795_v25 = vsel %vm82_vm1, %v755_v30, 0.0  ;;  %v799_v4 = vsel %vm82_vm1, %v760_v62, 0.0  ;;  %1367 = vst [vmem:[#allocation30_spill] sm:$0xff] %v804_v0  ;;  %v814_v9 = vsel %vm82_vm1, %v782_v11, 0.0 }
  0x15   :  { %1363 = vst [vmem:[#allocation26_spill] sm:$0xff] %v787_v26  ;;  %v103_v36 = vadd.f32 %v102_v31, %v101_v24  ;;  %1365 = vst [vmem:[#allocation28_spill] sm:$0xff] %v795_v25  ;;  %v106_v31 = vsel %vm82_vm1, %v718_v14, 0.0  ;;  %v810_v24 = vsel %vm82_vm1, %v777_v12, 0.0  ;;  %v818_v25 = vsel %vm82_vm1, %v787_v26, 0.0  ;;  %v855_v56 = vld [vmem:[%s1318_s0 + $0x90] sm:$0xff] }
  0x16   :  { %1366 = vst [vmem:[#allocation29_spill] sm:$0xff] %v799_v4  ;;  %1368 = vst [vmem:[#allocation31_spill] sm:$0xff] %v810_v24  ;;  %v30_v4 = vld [vmem:[%s1318_s0 + $0x68] sm:$0xff]  ;;  %v860_v52 = vld [vmem:[%s1318_s0 + $0x98] sm:$0xff] }
  0x17   :  { %1369 = vst [vmem:[#allocation32_spill] sm:$0xff] %v814_v9  ;;  %1370 = vst [vmem:[#allocation33_spill] sm:$0xff] %v818_v25  ;;  %v105_v63 = vadd.f32 %v551_v32, %v103_v36  ;;  %v108_v24 = vsel %vm82_vm1, %v30_v4, 0.0  ;;  %v31_v9 = vld [vmem:[%s1318_s0 + $0x70] sm:$0xff]  ;;  %v835_v25 = vld [vmem:[%s1318_s0 + $0x78] sm:$0xff]  ;;  %v120_v39 = vsel %vm82_vm1, %v860_v52, 0.0 }
  0x18   :  { %1371 = vst [vmem:[#allocation34_spill] sm:$0xff] %v826_v58  ;;  %1372 = vst [vmem:[#allocation35_spill] sm:$0xff] %v835_v25  ;;  %v840_v32 = vld [vmem:[%s1318_s0 + $0x80] sm:$0xff]  ;;  %v845_v36 = vld [vmem:[%s1318_s0 + $0x88] sm:$0xff]  ;;  %v110_v58 = vsel %vm82_vm1, %v31_v9, 0.0 }
  0x19   :  { %v107_v57 = vadd.f32 %v106_v31, %v105_v63  ;;  %1373 = vst [vmem:[#allocation36_spill] sm:$0xff] %v840_v32  ;;  %1374 = vst [vmem:[#allocation37_spill] sm:$0xff] %v845_v36  ;;  %v220_v63 = vmul.f32 %v455_v1, %v455_v1  ;;  %v221_v31 = vmul.f32 %v460_v2, %v460_v2  ;;  %v865_v51 = vld [vmem:[%s1318_s0 + $0xa0] sm:$0xff]  ;;  %v112_v1 = vsel %vm82_vm1, %v835_v25, 0.0  ;;  %v876_v44 = vld [vmem:[%s1318_s0 + $0xa8] sm:$0xff] }
  0x1a   :  { %1375 = vst [vmem:[#allocation38_spill] sm:$0xff] %v855_v56  ;;  %1376 = vst [vmem:[#allocation39_spill] sm:$0xff] %v860_v52  ;;  %v114_v2 = vsel %vm82_vm1, %v840_v32, 0.0  ;;  %v116_v45 = vsel %vm82_vm1, %v845_v36, 0.0  ;;  %v881_v43 = vld [vmem:[%s1318_s0 + $0xb0] sm:$0xff]  ;;  %v122_v38 = vsel %vm82_vm1, %v865_v51, 0.0  ;;  %v223_v25 = vmul.f32 %v476_v7, %v476_v7 }
  0x1b   :  { %1377 = vst [vmem:[#allocation40_spill] sm:$0xff] %v865_v51  ;;  %v109_v50 = vadd.f32 %v108_v24, %v107_v57  ;;  %1378 = vst [vmem:[#allocation41_spill] sm:$0xff] %v876_v44  ;;  %v886_v57 = vld [vmem:[%s1318_s0 + $0xb8] sm:$0xff]  ;;  %v118_v24 = vsel %vm82_vm1, %v855_v56, 0.0  ;;  %v899_v36 = vld [vmem:[%s1318_s0 + $0xc0] sm:$0xff]  ;;  %v124_v51 = vsel %vm82_vm1, %v876_v44, 0.0 }
  0x1c   :  { %1379 = vst [vmem:[#allocation42_spill] sm:$0xff] %v881_v43  ;;  %1380 = vst [vmem:[#allocation43_spill] sm:$0xff] %v886_v57  ;;  %v904_v32 = vld [vmem:[%s1318_s0 + $0xc8] sm:$0xff]  ;;  %v909_v52 = vld [vmem:[%s1318_s0 + $0xd0] sm:$0xff]  ;;  %v915_v3 = vsel %vm82_vm1, %v881_v43, 0.0 }
  0x1d   :  { %1381 = vst [vmem:[#allocation44_spill] sm:$0xff] %v899_v36  ;;  %1382 = vst [vmem:[#allocation45_spill] sm:$0xff] %v904_v32  ;;  %v111_v56 = vadd.f32 %v110_v58, %v109_v50  ;;  %v922_v0 = vld [vmem:[%s1318_s0 + $0xd8] sm:$0xff]  ;;  %v927_v26 = vld [vmem:[%s1318_s0 + $0xe0] sm:$0xff]  ;;  %v931_v50 = vsel %vm82_vm1, %v886_v57, 0.0  ;;  %v935_v58 = vsel %vm82_vm1, %v899_v36, 0.0 }
  0x1e   :  { %1383 = vst [vmem:[#allocation46_spill] sm:$0xff] %v909_v52  ;;  %1384 = vst [vmem:[#allocation47_spill] sm:$0xff] %v922_v0  ;;  %v939_v7 = vsel %vm82_vm1, %v904_v32, 0.0  ;;  %v943_v43 = vsel %vm82_vm1, %v909_v52, 0.0  ;;  %v948_v44 = vld [vmem:[%s1318_s0 + $0xe8] sm:$0xff]  ;;  %v953_v57 = vld [vmem:[%s1318_s0 + $0xf0] sm:$0xff]  ;;  %v224_v52 = vmul.f32 %v483_v10, %v483_v10  ;;  %v228_v10 = vmul.f32 %v507_v19, %v507_v19 }
  0x1f   :  { %1385 = vst [vmem:[#allocation48_spill] sm:$0xff] %v927_v26  ;;  %1386 = vst [vmem:[#allocation49_spill] sm:$0xff] %v935_v58  ;;  %v113_v36 = vadd.f32 %v112_v1, %v111_v56  ;;  %v957_v58 = vsel %vm82_vm1, %v922_v0, 0.0  ;;  %v961_v32 = vsel %vm82_vm1, %v927_v26, 0.0  ;;  %v225_v56 = vmul.f32 %v490_v13, %v490_v13 }
  0x20   :  { %1387 = vst [vmem:[#allocation50_spill] sm:$0xff] %v939_v7  ;;  %1388 = vst [vmem:[#allocation51_spill] sm:$0xff] %v943_v43  ;;  %v967_v43 = vsel %vm82_vm1, %v948_v44, 0.0  ;;  %v971_v7 = vsel %vm82_vm1, %v953_v57, 0.0  ;;  %v226_v1 = vmul.f32 %v497_v16, %v497_v16  ;;  %v227_v26 = vmul.f32 %v502_v18, %v502_v18 }
  0x21   :  { %1389 = vst [vmem:[#allocation52_spill] sm:$0xff] %v948_v44  ;;  %1390 = vst [vmem:[#allocation53_spill] sm:$0xff] %v953_v57  ;;  %v115_v0 = vadd.f32 %v114_v2, %v113_v36  ;;  %v229_v44 = vmul.f32 %v514_v21, %v514_v21  ;;  %v230_v57 = vmul.f32 %v519_v22, %v519_v22 }
  0x22   :  { %1391 = vst [vmem:[#allocation54_spill] sm:$0xff] %v971_v7  ;;  %v231_v7 = vmul.f32 %v524_v23, %v524_v23  ;;  %v232_v13 = vmul.f32 %v718_v14, %v718_v14  ;;  %v989_v16 = vmul.f32 %v30_v4, %v30_v4  ;;  %v991_v2 = vmul.f32 %v31_v9, %v31_v9 }
  0x23   :  { %v117_v36 = vadd.f32 %v116_v45, %v115_v0  ;;  %v253_v18 = vmul.f32 %v533_v27, %v533_v27  ;;  %v254_v19 = vmul.f32 %v538_v28, %v538_v28  ;;  %v255_v21 = vmul.f32 %v543_v29, %v543_v29 }
  0x24   :  { %v256_v22 = vmul.f32 %v556_v33, %v556_v33  ;;  %v257_v23 = vmul.f32 %v561_v34, %v561_v34  ;;  %v258_v45 = vmul.f32 %v566_v35, %v566_v35  ;;  %v259_v4 = vmul.f32 %v583_v40, %v583_v40 }
  0x25   :  { %v119_v0 = vadd.f32 %v118_v24, %v117_v36  ;;  %v260_v27 = vmul.f32 %v588_v41, %v588_v41  ;;  %v261_v28 = vmul.f32 %v593_v42, %v593_v42  ;;  %v262_v29 = vmul.f32 %v610_v46, %v610_v46 }
  0x26   :  { %v263_v33 = vmul.f32 %v615_v47, %v615_v47  ;;  %v284_v34 = vsel %vm82_vm1, %v220_v63, 0.0  ;;  %v285_v35 = vsel %vm82_vm1, %v221_v31, 0.0  ;;  %v264_v40 = vmul.f32 %v620_v48, %v620_v48 }
  0x27   :  { %v121_v9 = vadd.f32 %v120_v39, %v119_v0  ;;  %v286_v14 = vadd.f32 %v285_v35, %v284_v34  ;;  %v287_v41 = vsel %vm82_vm1, %v222_v37, 0.0  ;;  %v265_v42 = vmul.f32 %v637_v53, %v637_v53  ;;  %v1392_v0 = vld [vmem:[#allocation26_spill] sm:$0xff] }
  0x28   :  { %v266_v46 = vmul.f32 %v642_v54, %v642_v54  ;;  %v267_v47 = vmul.f32 %v647_v55, %v647_v55  ;;  %v289_v63 = vsel %vm82_vm1, %v223_v25, 0.0  ;;  %v268_v39 = vmul.f32 %v664_v59, %v664_v59  ;;  %v1393_v34 = vld [vmem:[#allocation30_spill] sm:$0xff] }
  0x29   :  { %v123_v24 = vadd.f32 %v122_v38, %v121_v9  ;;  %v269_v48 = vmul.f32 %v669_v60, %v669_v60  ;;  %v288_v31 = vadd.f32 %v287_v41, %v286_v14  ;;  %v270_v37 = vmul.f32 %v674_v61, %v674_v61  ;;  %v1394_v41 = vld [vmem:[#allocation49_spill] sm:$0xff] }
  0x2a   :  { %v271_v53 = vmul.f32 %v691_v5, %v691_v5  ;;  %v272_v54 = vmul.f32 %v696_v6, %v696_v6  ;;  %v291_v55 = vsel %vm82_vm1, %v224_v52, 0.0  ;;  %v273_v38 = vmul.f32 %v701_v8, %v701_v8 }
  0x2b   :  { %v125_v25 = vadd.f32 %v124_v51, %v123_v24  ;;  %v274_v59 = vmul.f32 %v723_v15, %v723_v15  ;;  %v290_v60 = vadd.f32 %v289_v63, %v288_v31  ;;  %v275_v36 = vmul.f32 %v728_v17, %v728_v17 }
  0x2c   :  { %v276_v61 = vmul.f32 %v733_v20, %v733_v20  ;;  %v277_v5 = vmul.f32 %v750_v49, %v750_v49  ;;  %v293_v6 = vsel %vm82_vm1, %v225_v56, 0.0  ;;  %v278_v52 = vmul.f32 %v755_v30, %v755_v30 }
  0x2d   :  { %v127_v51 = vadd.f32 %v915_v3, %v125_v25  ;;  %v279_v8 = vmul.f32 %v760_v62, %v760_v62  ;;  %v292_v15 = vadd.f32 %v291_v55, %v290_v60  ;;  %v280_v17 = vmul.f32 %v777_v12, %v777_v12  ;;  %v1396_v25 = vld [vmem:[#allocation51_spill] sm:$0xff] }
  0x2e   :  { %v281_v20 = vmul.f32 %v782_v11, %v782_v11  ;;  %v282_v49 = vmul.f32 %v1392_v0, %v1392_v0  ;;  %v295_v56 = vsel %vm82_vm1, %v226_v1, 0.0  ;;  %v283_v30 = vmul.f32 %v1393_v34, %v1393_v34  ;;  %v1398_v34 = vld [vmem:[#allocation54_spill] sm:$0xff] }
  0x2f   :  { %v129_v3 = vadd.f32 %v931_v50, %v127_v51  ;;  %v294_v35 = vadd.f32 %v293_v6, %v292_v15  ;;  %v297_v62 = vsel %vm82_vm1, %v227_v26, 0.0  ;;  %v299_v9 = vsel %vm82_vm1, %v228_v10, 0.0 }
  0x30   :  { %v301_v12 = vsel %vm82_vm1, %v229_v44, 0.0  ;;  %v303_v14 = vsel %vm82_vm1, %v230_v57, 0.0  ;;  %v305_v11 = vsel %vm82_vm1, %v231_v7, 0.0  ;;  %v307_v1 = vsel %vm82_vm1, %v232_v13, 0.0  ;;  %v1395_v7 = vld [vmem:[#allocation50_spill] sm:$0xff] }
  0x31   :  { %v131_v63 = vadd.f32 %v1394_v41, %v129_v3  ;;  %v296_v24 = vadd.f32 %v295_v56, %v294_v35  ;;  %v1072_v50 = vsel %vm82_vm1, %v253_v18, 0.0  ;;  %v1075_v31 = vsel %vm82_vm1, %v254_v19, 0.0  ;;  %v1397_v56 = vld [vmem:[#allocation35_spill] sm:$0xff] }
  0x32   :  { %v1078_v26 = vsel %vm82_vm1, %v255_v21, 0.0  ;;  %v1081_v44 = vsel %vm82_vm1, %v256_v22, 0.0  ;;  %v1084_v57 = vsel %vm82_vm1, %v257_v23, 0.0  ;;  %v1088_v13 = vsel %vm82_vm1, %v258_v45, 0.0 }
  0x33   :  { %v133_v10 = vadd.f32 %v1395_v7, %v131_v63  ;;  %v298_v55 = vadd.f32 %v297_v62, %v296_v24  ;;  %v1091_v18 = vsel %vm82_vm1, %v259_v4, 0.0  ;;  %v1094_v19 = vsel %vm82_vm1, %v260_v27, 0.0  ;;  %v1399_v62 = vld [vmem:[#allocation36_spill] sm:$0xff] }
  0x34   :  { %v1097_v21 = vsel %vm82_vm1, %v261_v28, 0.0  ;;  %v1100_v22 = vsel %vm82_vm1, %v262_v29, 0.0  ;;  %v1103_v23 = vsel %vm82_vm1, %v263_v33, 0.0  ;;  %v1107_v45 = vsel %vm82_vm1, %v264_v40, 0.0 }
  0x35   :  { %v135_v60 = vadd.f32 %v1396_v25, %v133_v10  ;;  %v300_v6 = vadd.f32 %v299_v9, %v298_v55  ;;  %v1110_v4 = vsel %vm82_vm1, %v265_v42, 0.0  ;;  %v1113_v27 = vsel %vm82_vm1, %v266_v46, 0.0  ;;  %v1401_v10 = vld [vmem:[#allocation38_spill] sm:$0xff] }
  0x36   :  { %v1116_v28 = vsel %vm82_vm1, %v267_v47, 0.0  ;;  %v1119_v29 = vsel %vm82_vm1, %v268_v39, 0.0  ;;  %v1122_v33 = vsel %vm82_vm1, %v269_v48, 0.0  ;;  %v1126_v40 = vsel %vm82_vm1, %v270_v37, 0.0  ;;  %v1402_v25 = vld [vmem:[#allocation2_spill] sm:$0xff] }
  0x37   :  { %v137_v51 = vadd.f32 %v957_v58, %v135_v60  ;;  %v302_v15 = vadd.f32 %v301_v12, %v300_v6  ;;  %v1129_v42 = vsel %vm82_vm1, %v271_v53, 0.0  ;;  %v1132_v46 = vsel %vm82_vm1, %v272_v54, 0.0 }
  0x38   :  { %v1135_v47 = vsel %vm82_vm1, %v273_v38, 0.0  ;;  %v1138_v39 = vsel %vm82_vm1, %v274_v59, 0.0  ;;  %v1141_v48 = vsel %vm82_vm1, %v275_v36, 0.0  ;;  %v1145_v37 = vsel %vm82_vm1, %v276_v61, 0.0 }
  0x39   :  { %v139_v58 = vadd.f32 %v961_v32, %v137_v51  ;;  %v304_v0 = vadd.f32 %v303_v14, %v302_v15  ;;  %v1148_v53 = vsel %vm82_vm1, %v277_v5, 0.0  ;;  %v1151_v54 = vsel %vm82_vm1, %v278_v52, 0.0  ;;  %v1165_v32 = vld [vmem:[%s1318_s0 + $0xf8] sm:$0xff]  ;;  %v1403_v51 = vld [vmem:[#allocation39_spill] sm:$0xff] }
  0x3a   :  { %v1154_v38 = vsel %vm82_vm1, %v279_v8, 0.0  ;;  %v1157_v59 = vsel %vm82_vm1, %v280_v17, 0.0  ;;  %v1160_v36 = vsel %vm82_vm1, %v281_v20, 0.0  ;;  %v1169_v52 = vsel %vm82_vm1, %v282_v49, 0.0 }
  0x3b   :  { %v141_v61 = vadd.f32 %v967_v43, %v139_v58  ;;  %v306_v5 = vadd.f32 %v305_v11, %v304_v0  ;;  %v1172_v8 = vsel %vm82_vm1, %v283_v30, 0.0  ;;  %v144_v17 = vsel %vm82_vm1, %v1165_v32, 0.0  ;;  %v1183_v43 = vld [vmem:[%s1318_s0 + $0x100] sm:$0xff]  ;;  %v1404_v58 = vld [vmem:[#allocation3_spill] sm:$0xff] }
  0x3c   :  { %v235_v20 = vmul.f32 %v1397_v56, %v1397_v56  ;;  %v309_v3 = vsel %vm82_vm1, %v989_v16, 0.0  ;;  %v146_v30 = vsel %vm82_vm1, %v1183_v43, 0.0  ;;  %v236_v9 = vmul.f32 %v1399_v62, %v1399_v62  ;;  %v1400_v16 = vld [vmem:[#allocation37_spill] sm:$0xff] }
  0x3d   :  { %v143_v49 = vadd.f32 %v1398_v34, %v141_v61  ;;  %v308_v35 = vadd.f32 %v307_v1, %v306_v5  ;;  %v311_v12 = vsel %vm82_vm1, %v991_v2, 0.0  ;;  %v237_v41 = vmul.f32 %v1400_v16, %v1400_v16  ;;  %v1405_v5 = vld [vmem:[#allocation40_spill] sm:$0xff]  ;;  %v1408_v62 = vld [vmem:[#allocation5_spill] sm:$0xff] }
  0x3e   :  { %v313_v63 = vsel %vm82_vm1, %v235_v20, 0.0  ;;  %v238_v1 = vmul.f32 %v1401_v10, %v1401_v10  ;;  %v315_v55 = vsel %vm82_vm1, %v236_v9, 0.0  ;;  %v239_v2 = vmul.f32 %v1403_v51, %v1403_v51  ;;  %v1406_v20 = vld [vmem:[#allocation4_spill] sm:$0xff] }
  0x3f   :  { %v145_v14 = vadd.f32 %v144_v17, %v143_v49  ;;  %v310_v11 = vadd.f32 %v309_v3, %v308_v35  ;;  %v317_v15 = vsel %vm82_vm1, %v237_v41, 0.0  ;;  %v240_v17 = vmul.f32 %v1405_v5, %v1405_v5  ;;  %v1407_v49 = vld [vmem:[#allocation41_spill] sm:$0xff]  ;;  %v1410_v41 = vld [vmem:[#allocation6_spill] sm:$0xff] }
  0x40   :  { %v319_v56 = vsel %vm82_vm1, %v238_v1, 0.0  ;;  %v241_v35 = vmul.f32 %v1407_v49, %v1407_v49 }
  0x41   :  { %v147_v24 = vadd.f32 %v146_v30, %v145_v14  ;;  %v312_v7 = vadd.f32 %v311_v12, %v310_v11  ;;  %v321_v30 = vsel %vm82_vm1, %v239_v2, 0.0  ;;  %v1409_v14 = vld [vmem:[#allocation42_spill] sm:$0xff]  ;;  %v323_v16 = vsel %vm82_vm1, %v240_v17, 0.0 }
  0x42   :  { %v242_v11 = vmul.f32 %v1409_v14, %v1409_v14  ;;  %v325_v1 = vsel %vm82_vm1, %v241_v35, 0.0 }
  0x43   :  { %v149_v60 = vadd.f32 %v1402_v25, %v147_v24  ;;  %v314_v6 = vadd.f32 %v313_v63, %v312_v7  ;;  %v1411_v7 = vld [vmem:[#allocation43_spill] sm:$0xff] }
  0x44   :  { %v243_v10 = vmul.f32 %v1411_v7, %v1411_v7  ;;  %v327_v2 = vsel %vm82_vm1, %v242_v11, 0.0 }
  0x45   :  { %v151_v0 = vadd.f32 %v1404_v58, %v149_v60  ;;  %v316_v61 = vadd.f32 %v315_v55, %v314_v6  ;;  %v1412_v55 = vld [vmem:[#allocation7_spill] sm:$0xff]  ;;  %v1413_v6 = vld [vmem:[#allocation44_spill] sm:$0xff] }
  0x46   :  { %v244_v51 = vmul.f32 %v1413_v6, %v1413_v6  ;;  %v329_v17 = vsel %vm82_vm1, %v243_v10, 0.0 }
  0x47   :  { %v153_v3 = vadd.f32 %v1406_v20, %v151_v0  ;;  %v318_v34 = vadd.f32 %v317_v15, %v316_v61  ;;  %v1414_v15 = vld [vmem:[#allocation8_spill] sm:$0xff]  ;;  %v1415_v61 = vld [vmem:[#allocation45_spill] sm:$0xff] }
  0x48   :  { %v245_v5 = vmul.f32 %v1415_v61, %v1415_v61  ;;  %v331_v35 = vsel %vm82_vm1, %v244_v51, 0.0 }
  0x49   :  { %v155_v9 = vadd.f32 %v1408_v62, %v153_v3  ;;  %v320_v12 = vadd.f32 %v319_v56, %v318_v34  ;;  %v1416_v56 = vld [vmem:[#allocation9_spill] sm:$0xff]  ;;  %v1417_v34 = vld [vmem:[#allocation46_spill] sm:$0xff] }
  0x4a   :  { %v246_v49 = vmul.f32 %v1417_v34, %v1417_v34  ;;  %v333_v11 = vsel %vm82_vm1, %v245_v5, 0.0 }
  0x4b   :  { %v157_v63 = vadd.f32 %v1410_v41, %v155_v9  ;;  %v322_v24 = vadd.f32 %v321_v30, %v320_v12  ;;  %v1418_v30 = vld [vmem:[#allocation10_spill] sm:$0xff]  ;;  %v1419_v12 = vld [vmem:[#allocation47_spill] sm:$0xff] }
  0x4c   :  { %v247_v14 = vmul.f32 %v1419_v12, %v1419_v12  ;;  %v335_v10 = vsel %vm82_vm1, %v246_v49, 0.0  ;;  %v1427_v49 = vld [vmem:[#allocation15_spill] sm:$0xff]  ;;  %v1428_v12 = vld [vmem:[#allocation16_spill] sm:$0xff] }
  0x4d   :  { %v159_v25 = vadd.f32 %v1412_v55, %v157_v63  ;;  %v324_v60 = vadd.f32 %v323_v16, %v322_v24  ;;  %v1420_v16 = vld [vmem:[#allocation11_spill] sm:$0xff]  ;;  %v1421_v24 = vld [vmem:[#allocation48_spill] sm:$0xff] }
  0x4e   :  { %v248_v7 = vmul.f32 %v1421_v24, %v1421_v24  ;;  %v337_v51 = vsel %vm82_vm1, %v247_v14, 0.0 }
  0x4f   :  { %v161_v58 = vadd.f32 %v1414_v15, %v159_v25  ;;  %v326_v0 = vadd.f32 %v325_v1, %v324_v60  ;;  %v1422_v1 = vld [vmem:[#allocation12_spill] sm:$0xff] }
  0x50   :  { %v1423_v60 = vld [vmem:[#allocation52_spill] sm:$0xff]  ;;  %v339_v5 = vsel %vm82_vm1, %v248_v7, 0.0  ;;  %v1430_v7 = vld [vmem:[#allocation18_spill] sm:$0xff] }
  0x51   :  { %v163_v20 = vadd.f32 %v1416_v56, %v161_v58  ;;  %v328_v3 = vadd.f32 %v327_v2, %v326_v0  ;;  %v249_v6 = vmul.f32 %v1423_v60, %v1423_v60  ;;  %v1424_v2 = vld [vmem:[#allocation13_spill] sm:$0xff] }
  0x52   :  { %v1425_v0 = vld [vmem:[#allocation53_spill] sm:$0xff] }
  0x53   :  { %v165_v62 = vadd.f32 %v1418_v30, %v163_v20  ;;  %v330_v9 = vadd.f32 %v329_v17, %v328_v3  ;;  %v250_v61 = vmul.f32 %v1425_v0, %v1425_v0  ;;  %v1426_v17 = vld [vmem:[#allocation14_spill] sm:$0xff]  ;;  %v251_v3 = vmul.f32 %v1165_v32, %v1165_v32 }
  0x54   :  { %v341_v34 = vsel %vm82_vm1, %v249_v6, 0.0  ;;  %v1432_v6 = vld [vmem:[#allocation20_spill] sm:$0xff]  ;;  %v1434_v0 = vld [vmem:[#allocation22_spill] sm:$0xff] }
  0x55   :  { %v167_v41 = vadd.f32 %v1420_v16, %v165_v62  ;;  %v332_v63 = vadd.f32 %v331_v35, %v330_v9  ;;  %v252_v62 = vmul.f32 %v1183_v43, %v1183_v43  ;;  %v343_v9 = vsel %vm82_vm1, %v250_v61, 0.0 }
  0x56   :  { %v345_v16 = vsel %vm82_vm1, %v251_v3, 0.0  ;;  %v1436_v3 = vld [vmem:[#allocation24_spill] sm:$0xff] }
  0x57   :  { %v169_v55 = vadd.f32 %v1422_v1, %v167_v41  ;;  %v334_v25 = vadd.f32 %v333_v11, %v332_v63  ;;  %v1429_v41 = vld [vmem:[#allocation17_spill] sm:$0xff]  ;;  %v347_v32 = vsel %vm82_vm1, %v252_v62, 0.0  ;;  %v1438_v62 = vld [vmem:[#allocation27_spill] sm:$0xff] }
  0x59   :  { %v171_v15 = vadd.f32 %v1424_v2, %v169_v55  ;;  %v336_v58 = vadd.f32 %v335_v10, %v334_v25  ;;  %v1431_v55 = vld [vmem:[#allocation19_spill] sm:$0xff]  ;;  %v1433_v2 = vld [vmem:[#allocation21_spill] sm:$0xff] }
  0x5b   :  { %v173_v56 = vadd.f32 %v1426_v17, %v171_v15  ;;  %v338_v20 = vadd.f32 %v337_v51, %v336_v58  ;;  %v1435_v17 = vld [vmem:[#allocation23_spill] sm:$0xff] }
  0x5d   :  { %v175_v35 = vadd.f32 %v1427_v49, %v173_v56  ;;  %v340_v30 = vadd.f32 %v339_v5, %v338_v20 }
  0x5f   :  { %v177_v14 = vadd.f32 %v1428_v12, %v175_v35  ;;  %v342_v11 = vadd.f32 %v341_v34, %v340_v30  ;;  %v1437_v35 = vld [vmem:[#allocation25_spill] sm:$0xff]  ;;  %v1439_v12 = vld [vmem:[#allocation28_spill] sm:$0xff] }
  0x61   :  { %v179_v63 = vadd.f32 %v1429_v41, %v177_v14  ;;  %v344_v24 = vadd.f32 %v343_v9, %v342_v11  ;;  %v1440_v11 = vld [vmem:[#allocation29_spill] sm:$0xff]  ;;  %v1441_v41 = vld [vmem:[#allocation31_spill] sm:$0xff] }
  0x63   :  { %v181_v10 = vadd.f32 %v1430_v7, %v179_v63  ;;  %v346_v1 = vadd.f32 %v345_v16, %v344_v24  ;;  %v1442_v24 = vld [vmem:[#allocation32_spill] sm:$0xff]  ;;  %v1443_v7 = vld [vmem:[#allocation33_spill] sm:$0xff] }
  0x65   :  { %v183_v25 = vadd.f32 %v1431_v55, %v181_v10  ;;  %v348_v60 = vadd.f32 %v347_v32, %v346_v1  ;;  %v1444_v1 = vld [vmem:[#allocation34_spill] sm:$0xff] }
  0x67   :  { %v185_v43 = vadd.f32 %v1432_v6, %v183_v25  ;;  %v350_v51 = vadd.f32 %v1072_v50, %v348_v60 }
  0x69   :  { %v187_v15 = vadd.f32 %v1433_v2, %v185_v43  ;;  %v352_v58 = vadd.f32 %v1075_v31, %v350_v51 }
  0x6b   :  { %v189_v61 = vadd.f32 %v1434_v0, %v187_v15  ;;  %v354_v5 = vadd.f32 %v1078_v26, %v352_v58 }
  0x6d   :  { %v191_v56 = vadd.f32 %v1435_v17, %v189_v61  ;;  %v356_v20 = vadd.f32 %v1081_v44, %v354_v5 }
  0x6f   :  { %v193_v34 = vadd.f32 %v1436_v3, %v191_v56  ;;  %v358_v49 = vadd.f32 %v1084_v57, %v356_v20 }
  0x71   :  { %v195_v30 = vadd.f32 %v1437_v35, %v193_v34  ;;  %v360_v50 = vadd.f32 %v1088_v13, %v358_v49 }
  0x73   :  { %v197_v9 = vadd.f32 %v1438_v62, %v195_v30  ;;  %v362_v31 = vadd.f32 %v1091_v18, %v360_v50 }
  0x75   :  { %v199_v14 = vadd.f32 %v1439_v12, %v197_v9  ;;  %v364_v26 = vadd.f32 %v1094_v19, %v362_v31 }
  0x77   :  { %v201_v16 = vadd.f32 %v1440_v11, %v199_v14  ;;  %v366_v44 = vadd.f32 %v1097_v21, %v364_v26 }
  0x79   :  { %v203_v63 = vadd.f32 %v1441_v41, %v201_v16  ;;  %v368_v57 = vadd.f32 %v1100_v22, %v366_v44 }
  0x7b   :  { %v205_v32 = vadd.f32 %v1442_v24, %v203_v63  ;;  %v370_v13 = vadd.f32 %v1103_v23, %v368_v57 }
  0x7d   :  { %v207_v10 = vadd.f32 %v1443_v7, %v205_v32  ;;  %v372_v18 = vadd.f32 %v1107_v45, %v370_v13  ;;  %v81_v45 = vld [vmem:[%s1319_s1] sm:$0x1] }
  0x7f   :  { %v209_v55 = vadd.f32 %v1444_v1, %v207_v10  ;;  %v374_v19 = vadd.f32 %v1110_v4, %v372_v18 }
  0x81   :  { %v210_v25 = vrot.slane %v209_v55, 4  ;;  %v376_v60 = vadd.f32 %v1113_v27, %v374_v19 }
  0x83   :  { %v211_v21 = vadd.f32 %v210_v25, %v209_v55  ;;  %v378_v6 = vadd.f32 %v1116_v28, %v376_v60 }
  0x85   :  { %v212_v43 = vrot.slane %v211_v21, 2  ;;  %v380_v22 = vadd.f32 %v1119_v29, %v378_v6 }
  0x87   :  { %v213_v51 = vadd.f32 %v212_v43, %v211_v21  ;;  %v382_v23 = vadd.f32 %v1122_v33, %v380_v22 }
  0x89   :  { %v214_v2 = vrot.slane %v213_v51, 1  ;;  %v384_v15 = vadd.f32 %v1126_v40, %v382_v23 }
  0x8b   :  { %v215_v4 = vadd.f32 %v214_v2, %v213_v51  ;;  %v386_v58 = vadd.f32 %v1129_v42, %v384_v15 }
  0x8d   :  { %v216_v27 = vadd.f32 %v215_v4, %v81_v45  ;;  %v388_v0 = vadd.f32 %v1132_v46, %v386_v58 }
  0x8f   :  { %218 = vst.msk [vmem:[%s1319_s1] sm:$0x1] %vm14_vm0, %v216_v27  ;;  %v390_v28 = vadd.f32 %v1135_v47, %v388_v0 }
  0x91   :  { %v392_v29 = vadd.f32 %v1138_v39, %v390_v28 }
  0x93   :  { %v394_v33 = vadd.f32 %v1141_v48, %v392_v29 }
  0x95   :  { %v396_v40 = vadd.f32 %v1145_v37, %v394_v33  ;;  %v219_v37 = vld [vmem:[%s1320_s2] sm:$0x1] }
  0x97   :  { %v398_v61 = vadd.f32 %v1148_v53, %v396_v40 }
  0x99   :  { %v400_v42 = vadd.f32 %v1151_v54, %v398_v61 }
  0x9b   :  { %v402_v5 = vadd.f32 %v1154_v38, %v400_v42 }
  0x9d   :  { %v404_v46 = vadd.f32 %v1157_v59, %v402_v5 }
  0x9f   :  { %v406_v17 = vadd.f32 %v1160_v36, %v404_v46 }
  0xa1   :  { %v408_v56 = vadd.f32 %v1169_v52, %v406_v17 }
  0xa3   :  { %v410_v47 = vadd.f32 %v1172_v8, %v408_v56 }
  0xa5   :  { %v411_v20 = vrot.slane %v410_v47, 4 }
  0xa7   :  { %v412_v39 = vadd.f32 %v411_v20, %v410_v47 }
  0xa9   :  { %v413_v3 = vrot.slane %v412_v39, 2 }
  0xab   :  { %v414_v48 = vadd.f32 %v413_v3, %v412_v39 }
  0xad   :  { %v415_v34 = vrot.slane %v414_v48, 1 }
  0xaf   :  { %v416_v53 = vadd.f32 %v415_v34, %v414_v48 }
  0xb1   :  { %v417_v54 = vadd.f32 %v416_v53, %v219_v37 }
  0xb3   :  { %418 = vst.msk [vmem:[%s1320_s2] sm:$0x1] %vm14_vm0, %v417_v54 }

// kernel: conv_block_forward.4
= control target key start
LH: loop header
LB: loop body
LE: loop exit
PB: predicated region body
PF: predicated region fallthrough
CT: control target
= control target key end

     0   :  { %vm438_vm0 = vcmask 1041408   ;;  %vm341_vm1 = vcmask 31744   ;;  %vm1325_vm2 = vcmask 60416   ;;  %vm28_vm3 = vcmask 57344   ;;  %s2894_s3 = inlined_call_operand.vmem [shape: bf16[4,8], index: 3, kind: input, shape index: {}]   ;;  %s2895_s0 = inlined_call_operand.vmem [shape: f32[512,4], index: 0, kind: input, shape index: {}]   ;;  %s2896_s1 = inlined_call_operand.vmem [shape: f32[1,4], index: 1, kind: input, shape index: {}]   ;;  %s2897_s2 = inlined_call_operand.vmem [shape: f32[1,4], index: 2, kind: input, shape index: {}]   ;;  %s2898_s4 = inlined_call_operand.vmem [shape: f32[1,8], index: 4, kind: input, shape index: {}]   ;;  %s2899_s5 = inlined_call_operand.vmem [shape: bf16[512,8], index: 5, kind: output, shape index: {0}]   ;;  %s2900_s6 = inlined_call_operand.vmem [shape: f32[1,8], index: 6, kind: output, shape index: {1}]   ;;  %s2901_s7 = inlined_call_operand.vmem [shape: f32[1,8], index: 7, kind: output, shape index: {2}]  }
   0x1   :  { %v333_v0 = vld [vmem:[%s2894_s3] sm:$0x3]  ;;  %v32_v2 = vld [vmem:[%s2895_s0 + $0x8] sm:$0xff]  ;;  %v33_v6 = vld [vmem:[%s2895_s0 + $0x10] sm:$0xff]  ;;  %vm732_vm4 = vcmask 64512  }
   0x2   :  { %v31_v1 = vld [vmem:[%s2895_s0] sm:$0xff]  ;;  %1666 = vmatprep.subr.msk.bf16.mxu0 %vm438_vm0, %v333_v0  ;;  %v440_v3 = vsel %vm438_vm0, %v333_v0, 0  ;;  %1667 = vmatprep.subr.msk.bf16.mxu1 %vm438_vm0, %v333_v0  ;;  %v34_v9 = vld [vmem:[%s2895_s0 + $0x18] sm:$0xff]  ;;  %v36_v12 = vld [vmem:[%s2895_s0 + $0x28] sm:$0xff] }
   0x3   :  { %v1723_v4 = vld [vmem:[%s2896_s1] ss:$0 sm:$0xff]  ;;  %1599 = vmatpush3.bf16.msra.mxu0 %v440_v3  ;;  %1665 = vmatpush3.bf16.msra.mxu1 %v440_v3  ;;  %v37_v16 = vld [vmem:[%s2895_s0 + $0x30] sm:$0xff]  ;;  %v38_v17 = vld [vmem:[%s2895_s0 + $0x38] sm:$0xff] }
   0x4   :  { %v1728_v5 = vld [vmem:[%s2897_s2] ss:$0 sm:$0xff]  ;;  %v102_v7 = vmul.f32 %v1723_v4, %v31_v1  ;;  %v103_v8 = vmul.f32 %v1723_v4, %v32_v2  ;;  %v104_v10 = vmul.f32 %v1723_v4, %v33_v6  ;;  %v105_v13 = vmul.f32 %v1723_v4, %v34_v9  ;;  %v40_v27 = vld [vmem:[%s2895_s0 + $0x48] sm:$0xff]  ;;  %v41_v32 = vld [vmem:[%s2895_s0 + $0x50] sm:$0xff] }
   0x5   :  { %v35_v11 = vld [vmem:[%s2895_s0 + $0x20] sm:$0xff]  ;;  %v107_v15 = vmul.f32 %v1723_v4, %v36_v12  ;;  %v108_v21 = vmul.f32 %v1723_v4, %v37_v16  ;;  %v109_v25 = vmul.f32 %v1723_v4, %v38_v17  ;;  %v42_v37 = vld [vmem:[%s2895_s0 + $0x58] sm:$0xff]  ;;  %v111_v41 = vmul.f32 %v1723_v4, %v40_v27  ;;  %v44_v42 = vld [vmem:[%s2895_s0 + $0x68] sm:$0xff] }
   0x6   :  { %v106_v14 = vmul.f32 %v1723_v4, %v35_v11  ;;  %v173_v18 = vadd.f32 %v1728_v5, %v102_v7  ;;  %v174_v19 = vadd.f32 %v1728_v5, %v103_v8  ;;  %v175_v20 = vadd.f32 %v1728_v5, %v104_v10  ;;  %v39_v26 = vld [vmem:[%s2895_s0 + $0x40] sm:$0xff]  ;;  %v45_v46 = vld [vmem:[%s2895_s0 + $0x70] sm:$0xff]  ;;  %v46_v55 = vld [vmem:[%s2895_s0 + $0x78] sm:$0xff] }
   0x7   :  { %v176_v22 = vadd.f32 %v1728_v5, %v105_v13  ;;  %v178_v24 = vadd.f32 %v1728_v5, %v107_v15  ;;  %v179_v31 = vadd.f32 %v1728_v5, %v108_v21  ;;  %v180_v36 = vadd.f32 %v1728_v5, %v109_v25  ;;  %v43_v38 = vld [vmem:[%s2895_s0 + $0x60] sm:$0xff]  ;;  %v48_v60 = vld [vmem:[%s2895_s0 + $0x88] sm:$0xff]  ;;  %v49_v0 = vld [vmem:[%s2895_s0 + $0x90] sm:$0xff] }
   0x8   :  { %v177_v23 = vadd.f32 %v1728_v5, %v106_v14  ;;  %v237_v28 = vmax.f32 %v173_v18, 0.0  ;;  %v238_v29 = vmax.f32 %v174_v19, 0.0  ;;  %v239_v30 = vmax.f32 %v175_v20, 0.0  ;;  %v47_v56 = vld [vmem:[%s2895_s0 + $0x80] sm:$0xff]  ;;  %v50_v1 = vld [vmem:[%s2895_s0 + $0x98] sm:$0xff]  ;;  %v52_v10 = vld [vmem:[%s2895_s0 + $0xa8] sm:$0xff] }
   0x9   :  { %v240_v33 = vmax.f32 %v176_v22, 0.0  ;;  %v242_v35 = vmax.f32 %v178_v24, 0.0  ;;  %v110_v40 = vmul.f32 %v1723_v4, %v39_v26  ;;  %v112_v45 = vmul.f32 %v1723_v4, %v41_v32  ;;  %v51_v6 = vld [vmem:[%s2895_s0 + $0xa0] sm:$0xff]  ;;  %v53_v15 = vld [vmem:[%s2895_s0 + $0xb0] sm:$0xff]  ;;  %v54_v20 = vld [vmem:[%s2895_s0 + $0xb8] sm:$0xff] }
   0xa   :  { %v241_v34 = vmax.f32 %v177_v23, 0.0  ;;  %v301_v39 = vpack.c.bf16 %v238_v29, %v237_v28  ;;  %v182_v48 = vadd.f32 %v1728_v5, %v111_v41  ;;  %v113_v49 = vmul.f32 %v1723_v4, %v42_v37  ;;  %v55_v25 = vld [vmem:[%s2895_s0 + $0xc0] sm:$0xff]  ;;  %v56_v29 = vld [vmem:[%s2895_s0 + $0xc8] sm:$0xff] }
   0xb   :  { %v302_v43 = vpack.c.bf16 %v240_v33, %v239_v30  ;;  %v181_v47 = vadd.f32 %v1728_v5, %v110_v40  ;;  %v114_v50 = vmul.f32 %v1723_v4, %v43_v38  ;;  %v243_v51 = vmax.f32 %v179_v31, 0.0  ;;  %v57_v33 = vld [vmem:[%s2895_s0 + $0xd0] sm:$0xff] }
   0xc   :  { %v303_v44 = vpack.c.bf16 %v242_v35, %v241_v34  ;;  %1600 = vmatprep.mubr.msk.bf16.mxu0 %vm341_vm1, %v301_v39  ;;  %v244_v52 = vmax.f32 %v180_v36, 0.0  ;;  %v183_v53 = vadd.f32 %v1728_v5, %v112_v45  ;;  %v115_v54 = vmul.f32 %v1723_v4, %v44_v42  ;;  %v58_v42 = vld [vmem:[%s2895_s0 + $0xd8] sm:$0xff] }
   0xd   :  { %1601 = vmatmul.mubr.msk.bf16.vlgmr.msra.gmra.mxu0 %vm341_vm1, %v302_v43  ;;  %v245_v57 = vmax.f32 %v181_v47, 0.0  ;;  %v246_v58 = vmax.f32 %v182_v48, 0.0  ;;  %v116_v59 = vmul.f32 %v1723_v4, %v45_v46  ;;  %v184_v61 = vadd.f32 %v1728_v5, %v113_v49  ;;  %v59_v47 = vld [vmem:[%s2895_s0 + $0xe0] sm:$0xff] }
   0xe   :  { %1604 = vmatprep.mubr.msk.bf16.mxu0 %vm341_vm1, %v303_v44  ;;  %v185_v62 = vadd.f32 %v1728_v5, %v114_v50  ;;  %v186_v63 = vadd.f32 %v1728_v5, %v115_v54  ;;  %v117_v2 = vmul.f32 %v1723_v4, %v46_v55  ;;  %v118_v3 = vmul.f32 %v1723_v4, %v47_v56  ;;  %v63_v54 = vld [vmem:[%s2895_s0 + $0x100] sm:$0xff]  ;;  %v60_v56 = vld [vmem:[%s2895_s0 + $0xe8] sm:$0xff] }
   0xf   :  { %v304_v7 = vpack.c.bf16 %v244_v52, %v243_v51  ;;  %v247_v8 = vmax.f32 %v183_v53, 0.0  ;;  %v119_v9 = vmul.f32 %v1723_v4, %v48_v60  ;;  %v305_v11 = vpack.c.bf16 %v246_v58, %v245_v57  ;;  %v64_v58 = vld [vmem:[%s2895_s0 + $0x108] sm:$0xff] }
  0x10   :  { %v187_v12 = vadd.f32 %v1728_v5, %v116_v59  ;;  %v120_v13 = vmul.f32 %v1723_v4, %v49_v0  ;;  %v121_v14 = vmul.f32 %v1723_v4, %v50_v1  ;;  %v248_v16 = vmax.f32 %v184_v61, 0.0  ;;  %v66_v0 = vld [vmem:[%s2895_s0 + $0x118] sm:$0xff] }
  0x11   :  { %v249_v17 = vmax.f32 %v185_v62, 0.0  ;;  %v250_v18 = vmax.f32 %v186_v63, 0.0  ;;  %v122_v19 = vmul.f32 %v1723_v4, %v51_v6  ;;  %v188_v21 = vadd.f32 %v1728_v5, %v117_v2  ;;  %v65_v63 = vld [vmem:[%s2895_s0 + $0x110] sm:$0xff] }
  0x12   :  { %v189_v22 = vadd.f32 %v1728_v5, %v118_v3  ;;  %v190_v23 = vadd.f32 %v1728_v5, %v119_v9  ;;  %v123_v24 = vmul.f32 %v1723_v4, %v52_v10  ;;  %v191_v26 = vadd.f32 %v1728_v5, %v120_v13  ;;  %v61_v6 = vld [vmem:[%s2895_s0 + $0xf0] sm:$0xff]  ;;  %v68_v13 = vld [vmem:[%s2895_s0 + $0x128] sm:$0xff] }
  0x13   :  { %v192_v27 = vadd.f32 %v1728_v5, %v121_v14  ;;  %v124_v28 = vmul.f32 %v1723_v4, %v53_v15  ;;  %v193_v30 = vadd.f32 %v1728_v5, %v122_v19  ;;  %v125_v32 = vmul.f32 %v1723_v4, %v54_v20 }
  0x14   :  { %v194_v31 = vadd.f32 %v1728_v5, %v123_v24  ;;  %v306_v34 = vpack.c.bf16 %v248_v16, %v247_v8  ;;  %v307_v35 = vpack.c.bf16 %v250_v18, %v249_v17  ;;  %v251_v36 = vmax.f32 %v187_v12, 0.0  ;;  %v67_v8 = vld [vmem:[%s2895_s0 + $0x120] sm:$0xff]  ;;  %v69_v18 = vld [vmem:[%s2895_s0 + $0x130] sm:$0xff] }
  0x15   :  { %1605 = vmatmul.mubr.msk.bf16.gmra.mxu0 %vm341_vm1, %v304_v7  ;;  %v126_v37 = vmul.f32 %v1723_v4, %v55_v25  ;;  %v252_v38 = vmax.f32 %v188_v21, 0.0  ;;  %v253_v39 = vmax.f32 %v189_v22, 0.0  ;;  %v254_v40 = vmax.f32 %v190_v23, 0.0  ;;  %v70_v23 = vld [vmem:[%s2895_s0 + $0x138] sm:$0xff] }
  0x16   :  { %1608 = vmatprep.mubr.msk.bf16.mxu0 %vm341_vm1, %v305_v11  ;;  %v127_v41 = vmul.f32 %v1723_v4, %v56_v29  ;;  %v255_v43 = vmax.f32 %v191_v26, 0.0  ;;  %v256_v44 = vmax.f32 %v192_v27, 0.0  ;;  %v1862_v45 = vadd.f32 %v1728_v5, %v124_v28  ;;  %v71_v28 = vld [vmem:[%s2895_s0 + $0x140] sm:$0xff] }
  0x17   :  { %v128_v46 = vmul.f32 %v1723_v4, %v57_v33  ;;  %v257_v48 = vmax.f32 %v193_v30, 0.0  ;;  %v258_v49 = vmax.f32 %v194_v31, 0.0  ;;  %v1869_v50 = vadd.f32 %v1728_v5, %v125_v32  ;;  %v72_v33 = vld [vmem:[%s2895_s0 + $0x148] sm:$0xff] }
  0x18   :  { %v1872_v51 = vadd.f32 %v1728_v5, %v126_v37  ;;  %v1875_v52 = vadd.f32 %v1728_v5, %v127_v41  ;;  %v129_v53 = vmul.f32 %v1723_v4, %v58_v42  ;;  %v308_v55 = vpack.c.bf16 %v252_v38, %v251_v36  ;;  %v73_v38 = vld [vmem:[%s2895_s0 + $0x150] sm:$0xff] }
  0x19   :  { %v130_v57 = vmul.f32 %v1723_v4, %v59_v47  ;;  %v309_v59 = vpack.c.bf16 %v254_v40, %v253_v39  ;;  %v1889_v60 = vpack.c.bf16 %v256_v44, %v255_v43  ;;  %v259_v61 = vmax.f32 %v1862_v45, 0.0  ;;  %v74_v39 = vld [vmem:[%s2895_s0 + $0x158] sm:$0xff]  ;;  %v75_v44 = vld [vmem:[%s2895_s0 + $0x160] sm:$0xff] }
  0x1a   :  { %v1893_v62 = vadd.f32 %v1728_v5, %v128_v46  ;;  %v1902_v1 = vpack.c.bf16 %v258_v49, %v257_v48  ;;  %v260_v2 = vmax.f32 %v1869_v50, 0.0  ;;  %v261_v3 = vmax.f32 %v1872_v51, 0.0  ;;  %v86_v45 = vld [vmem:[%s2895_s0 + $0x1b8] sm:$0xff] }
  0x1b   :  { %v134_v7 = vmul.f32 %v1723_v4, %v63_v54  ;;  %v262_v9 = vmax.f32 %v1875_v52, 0.0  ;;  %v1915_v10 = vadd.f32 %v1728_v5, %v129_v53  ;;  %v131_v11 = vmul.f32 %v1723_v4, %v60_v56  ;;  %v76_v53 = vld [vmem:[%s2895_s0 + $0x168] sm:$0xff] }
  0x1c   :  { %v135_v12 = vmul.f32 %v1723_v4, %v64_v58  ;;  %v1923_v14 = vadd.f32 %v1728_v5, %v130_v57  ;;  %v136_v16 = vmul.f32 %v1723_v4, %v65_v63  ;;  %v137_v17 = vmul.f32 %v1723_v4, %v66_v0  ;;  %v77_v58 = vld [vmem:[%s2895_s0 + $0x170] sm:$0xff] }
  0x1d   :  { %1609 = vmatmul.mubr.msk.bf16.gmra.mxu0 %vm341_vm1, %v306_v34  ;;  %v205_v15 = vadd.f32 %v1728_v5, %v134_v7  ;;  %v263_v19 = vmax.f32 %v1893_v62, 0.0  ;;  %v132_v20 = vmul.f32 %v1723_v4, %v61_v6  ;;  %v138_v22 = vmul.f32 %v1723_v4, %v67_v8  ;;  %v78_v8 = vld [vmem:[%s2895_s0 + $0x178] sm:$0xff]  ;;  %v83_v62 = vld [vmem:[%s2895_s0 + $0x1a0] sm:$0xff] }
  0x1e   :  { %1612 = vmatprep.mubr.msk.bf16.mxu0 %vm341_vm1, %v307_v35  ;;  %v206_v21 = vadd.f32 %v1728_v5, %v135_v12  ;;  %v207_v25 = vadd.f32 %v1728_v5, %v136_v16  ;;  %v208_v26 = vadd.f32 %v1728_v5, %v137_v17  ;;  %v139_v27 = vmul.f32 %v1723_v4, %v68_v13  ;;  %v79_v16 = vld [vmem:[%s2895_s0 + $0x180] sm:$0xff] }
  0x1f   :  { %v269_v24 = vmax.f32 %v205_v15, 0.0  ;;  %v1945_v29 = vadd.f32 %v1728_v5, %v131_v11  ;;  %v209_v31 = vadd.f32 %v1728_v5, %v138_v22  ;;  %v140_v32 = vmul.f32 %v1723_v4, %v69_v18 }
  0x20   :  { %v270_v30 = vmax.f32 %v206_v21, 0.0  ;;  %v271_v34 = vmax.f32 %v207_v25, 0.0  ;;  %v272_v35 = vmax.f32 %v208_v26, 0.0  ;;  %v210_v36 = vadd.f32 %v1728_v5, %v139_v27  ;;  %v80_v27 = vld [vmem:[%s2895_s0 + $0x188] sm:$0xff] }
  0x21   :  { %v141_v37 = vmul.f32 %v1723_v4, %v70_v23  ;;  %v273_v41 = vmax.f32 %v209_v31, 0.0  ;;  %v211_v42 = vadd.f32 %v1728_v5, %v140_v32  ;;  %v142_v43 = vmul.f32 %v1723_v4, %v71_v28 }
  0x22   :  { %v317_v40 = vpack.c.bf16 %v270_v30, %v269_v24  ;;  %v318_v46 = vpack.c.bf16 %v272_v35, %v271_v34  ;;  %v274_v47 = vmax.f32 %v210_v36, 0.0  ;;  %v143_v49 = vmul.f32 %v1723_v4, %v72_v33  ;;  %v81_v36 = vld [vmem:[%s2895_s0 + $0x190] sm:$0xff] }
  0x23   :  { %v212_v48 = vadd.f32 %v1728_v5, %v141_v37  ;;  %v275_v54 = vmax.f32 %v211_v42, 0.0  ;;  %v144_v56 = vmul.f32 %v1723_v4, %v73_v38  ;;  %v145_v57 = vmul.f32 %v1723_v4, %v74_v39 }
  0x24   :  { %1632 = vmatprep.mubr.msk.bf16.mxu1 %vm341_vm1, %v317_v40  ;;  %v319_v63 = vpack.c.bf16 %v274_v47, %v273_v41  ;;  %v214_v6 = vadd.f32 %v1728_v5, %v143_v49  ;;  %v146_v7 = vmul.f32 %v1723_v4, %v75_v44  ;;  %v147_v15 = vmul.f32 %v1723_v4, %v76_v53  ;;  %v82_v40 = vld [vmem:[%s2895_s0 + $0x198] sm:$0xff]  ;;  %v84_v41 = vld [vmem:[%s2895_s0 + $0x1a8] sm:$0xff]  ;;  %v89_v49 = vld [vmem:[%s2895_s0 + $0x1d0] sm:$0xff] }
  0x25   :  { %1613 = vmatmul.mubr.msk.bf16.gmra.mxu0 %vm341_vm1, %v308_v55  ;;  %v213_v55 = vadd.f32 %v1728_v5, %v142_v43  ;;  %1633 = vmatmul.mubr.msk.bf16.vlgmr.msra.gmra.mxu1 %vm341_vm1, %v318_v46  ;;  %v276_v0 = vmax.f32 %v212_v48, 0.0  ;;  %v215_v12 = vadd.f32 %v1728_v5, %v144_v56  ;;  %v216_v13 = vadd.f32 %v1728_v5, %v145_v57  ;;  %v88_v43 = vld [vmem:[%s2895_s0 + $0x1c8] sm:$0xff]  ;;  %v90_v53 = vld [vmem:[%s2895_s0 + $0x1d8] sm:$0xff] }
  0x26   :  { %1616 = vmatprep.mubr.msk.bf16.mxu0 %vm341_vm1, %v309_v59  ;;  %v62_v59 = vld [vmem:[%s2895_s0 + $0xf8] sm:$0xff]  ;;  %v264_v17 = vmax.f32 %v1915_v10, 0.0  ;;  %1636 = vmatprep.mubr.msk.bf16.mxu1 %vm341_vm1, %v319_v63  ;;  %v278_v18 = vmax.f32 %v214_v6, 0.0  ;;  %v217_v21 = vadd.f32 %v1728_v5, %v146_v7  ;;  %v148_v22 = vmul.f32 %v1723_v4, %v77_v58  ;;  %v91_v58 = vld [vmem:[%s2895_s0 + $0x1e0] sm:$0xff]  ;;  %v92_v7 = vld [vmem:[%s2895_s0 + $0x1e8] sm:$0xff] }
  0x27   :  { %v277_v11 = vmax.f32 %v213_v55, 0.0  ;;  %v265_v23 = vmax.f32 %v1923_v14, 0.0  ;;  %v133_v24 = vmul.f32 %v1723_v4, %v62_v59  ;;  %v218_v25 = vadd.f32 %v1728_v5, %v147_v15  ;;  %v93_v15 = vld [vmem:[%s2895_s0 + $0x1f0] sm:$0xff] }
  0x28   :  { %v149_v26 = vmul.f32 %v1723_v4, %v78_v8  ;;  %v266_v10 = vmax.f32 %v1945_v29, 0.0  ;;  %v2007_v28 = vadd.f32 %v1728_v5, %v132_v20  ;;  %v320_v30 = vpack.c.bf16 %v276_v0, %v275_v54 }
  0x29   :  { %v150_v31 = vmul.f32 %v1723_v4, %v79_v16  ;;  %v321_v14 = vpack.c.bf16 %v278_v18, %v277_v11  ;;  %v279_v32 = vmax.f32 %v215_v12, 0.0  ;;  %v280_v33 = vmax.f32 %v216_v13, 0.0 }
  0x2a   :  { %v2013_v34 = vadd.f32 %v1728_v5, %v148_v22  ;;  %v281_v35 = vmax.f32 %v217_v21, 0.0  ;;  %v282_v29 = vmax.f32 %v218_v25, 0.0  ;;  %v151_v20 = vmul.f32 %v1723_v4, %v80_v27  ;;  %v94_v22 = vld [vmem:[%s2895_s0 + $0x1f8] sm:$0xff] }
  0x2b   :  { %v312_v37 = vpack.c.bf16 %v260_v2, %v259_v61  ;;  %v2034_v38 = vpack.c.bf16 %v264_v17, %v263_v19  ;;  %v2037_v39 = vadd.f32 %v1728_v5, %v149_v26  ;;  %v2045_v50 = vpack.c.bf16 %v266_v10, %v265_v23  ;;  %v87_v2 = vld [vmem:[%s2895_s0 + $0x1c0] sm:$0xff] }
  0x2c   :  { %v2048_v51 = vadd.f32 %v1728_v5, %v133_v24  ;;  %v267_v52 = vmax.f32 %v2007_v28, 0.0  ;;  %v2053_v61 = vadd.f32 %v1728_v5, %v150_v31  ;;  %v152_v19 = vmul.f32 %v1723_v4, %v81_v36  ;;  %v2142_v28 = vld [vmem:[%s2898_s4] ss:$0 sm:$0xff] }
  0x2d   :  { %1617 = vmatmul.mubr.msk.bf16.gmra.mxu0 %vm341_vm1, %v1889_v60  ;;  %v85_v60 = vld [vmem:[%s2895_s0 + $0x1b0] sm:$0xff]  ;;  %1637 = vmatmul.mubr.msk.bf16.gmra.mxu1 %vm341_vm1, %v320_v30  ;;  %v323_v44 = vpack.c.bf16 %v282_v29, %v281_v35  ;;  %v222_v46 = vadd.f32 %v1728_v5, %v151_v20  ;;  %v153_v47 = vmul.f32 %v1723_v4, %v82_v40  ;;  %v284_v54 = vmax.f32 %v2037_v39, 0.0 }
  0x2e   :  { %1620 = vmatprep.mubr.msk.bf16.mxu0 %vm341_vm1, %v1902_v1  ;;  %v313_v1 = vpack.c.bf16 %v262_v9, %v261_v3  ;;  %1640 = vmatprep.mubr.msk.bf16.mxu1 %vm341_vm1, %v321_v14  ;;  %v322_v3 = vpack.c.bf16 %v280_v33, %v279_v32  ;;  %v283_v9 = vmax.f32 %v2013_v34, 0.0  ;;  %v156_v42 = vmul.f32 %v1723_v4, %v85_v60 }
  0x2f   :  { %v157_v48 = vmul.f32 %v1723_v4, %v86_v45  ;;  %v154_v55 = vmul.f32 %v1723_v4, %v83_v62  ;;  %v158_v57 = vmul.f32 %v1723_v4, %v87_v2  ;;  %v285_v59 = vmax.f32 %v2053_v61, 0.0 }
  0x30   :  { %v227_v56 = vadd.f32 %v1728_v5, %v156_v42  ;;  %v155_v63 = vmul.f32 %v1723_v4, %v84_v41  ;;  %v159_v6 = vmul.f32 %v1723_v4, %v88_v43  ;;  %v160_v12 = vmul.f32 %v1723_v4, %v89_v49 }
  0x31   :  { %v228_v0 = vadd.f32 %v1728_v5, %v157_v48  ;;  %v229_v11 = vadd.f32 %v1728_v5, %v158_v57  ;;  %v161_v13 = vmul.f32 %v1723_v4, %v90_v53  ;;  %v286_v16 = vmax.f32 %v222_v46, 0.0 }
  0x32   :  { %v291_v8 = vmax.f32 %v227_v56, 0.0  ;;  %v230_v18 = vadd.f32 %v1728_v5, %v159_v6  ;;  %v162_v21 = vmul.f32 %v1723_v4, %v91_v58  ;;  %v231_v24 = vadd.f32 %v1728_v5, %v160_v12 }
  0x33   :  { %v292_v17 = vmax.f32 %v228_v0, 0.0  ;;  %v293_v23 = vmax.f32 %v229_v11, 0.0  ;;  %v232_v25 = vadd.f32 %v1728_v5, %v161_v13  ;;  %v163_v26 = vmul.f32 %v1723_v4, %v92_v7 }
  0x34   :  { %v294_v10 = vmax.f32 %v230_v18, 0.0  ;;  %v233_v30 = vadd.f32 %v1728_v5, %v162_v21  ;;  %v164_v31 = vmul.f32 %v1723_v4, %v93_v15  ;;  %v295_v14 = vmax.f32 %v231_v24, 0.0 }
  0x35   :  { %1621 = vmatmul.mubr.msk.bf16.gmra.mxu0 %vm341_vm1, %v312_v37  ;;  %1641 = vmatmul.mubr.msk.bf16.gmra.mxu1 %vm341_vm1, %v322_v3  ;;  %v328_v27 = vpack.c.bf16 %v292_v17, %v291_v8  ;;  %v296_v32 = vmax.f32 %v232_v25, 0.0  ;;  %v234_v33 = vadd.f32 %v1728_v5, %v163_v26  ;;  %v165_v34 = vmul.f32 %v1723_v4, %v94_v22 }
  0x36   :  { %1624 = vmatprep.mubr.msk.bf16.mxu0 %vm341_vm1, %v313_v1  ;;  %1644 = vmatprep.mubr.msk.bf16.mxu1 %vm341_vm1, %v323_v44  ;;  %v268_v35 = vmax.f32 %v2048_v51, 0.0  ;;  %v329_v29 = vpack.c.bf16 %v294_v10, %v293_v23  ;;  %v297_v20 = vmax.f32 %v233_v30, 0.0  ;;  %v235_v36 = vadd.f32 %v1728_v5, %v164_v31 }
  0x37   :  { %v223_v60 = vadd.f32 %v1728_v5, %v152_v19  ;;  %v330_v37 = vpack.c.bf16 %v296_v32, %v295_v14  ;;  %v298_v1 = vmax.f32 %v234_v33, 0.0  ;;  %v236_v39 = vadd.f32 %v1728_v5, %v165_v34 }
  0x38   :  { %v324_v40 = vpack.c.bf16 %v284_v54, %v283_v9  ;;  %v224_v45 = vadd.f32 %v1728_v5, %v153_v47  ;;  %v225_v61 = vadd.f32 %v1728_v5, %v154_v55  ;;  %v299_v62 = vmax.f32 %v235_v36, 0.0 }
  0x39   :  { %v325_v4 = vpack.c.bf16 %v286_v16, %v285_v59  ;;  %v226_v51 = vadd.f32 %v1728_v5, %v155_v63  ;;  %v331_v2 = vpack.c.bf16 %v298_v1, %v297_v20  ;;  %v300_v3 = vmax.f32 %v236_v39, 0.0 }
  0x3a   :  { %v287_v9 = vmax.f32 %v223_v60, 0.0  ;;  %v288_v41 = vmax.f32 %v224_v45, 0.0  ;;  %v316_v42 = vpack.c.bf16 %v268_v35, %v267_v52  ;;  %v289_v43 = vmax.f32 %v225_v61, 0.0 }
  0x3b   :  { %v332_v19 = vpack.c.bf16 %v300_v3, %v299_v62  ;;  %v1670_v54 = vmov 0.0  }
  0x3c   :  { %v326_v44 = vpack.c.bf16 %v288_v41, %v287_v9  ;;  %29 = vst.msk [vmem:[%s2900_s6] sm:$0x1] %vm28_vm3, %v1670_v54  ;;  %30 = vst.msk [vmem:[%s2901_s7] sm:$0x1] %vm28_vm3, %v1670_v54 }
  0x3d   :  { %1625 = vmatmul.mubr.msk.bf16.gmra.mxu0 %vm341_vm1, %v2034_v38  ;;  %1645 = vmatmul.mubr.msk.bf16.gmra.mxu1 %vm341_vm1, %v324_v40  ;;  %v290_v38 = vmax.f32 %v226_v51, 0.0 }
  0x3e   :  { %1628 = vmatprep.mubr.msk.bf16.mxu0 %vm341_vm1, %v2045_v50  ;;  %1648 = vmatprep.mubr.msk.bf16.mxu1 %vm341_vm1, %v325_v4 }
  0x3f   :  { %v327_v5 = vpack.c.bf16 %v290_v38, %v289_v43 }
  0x45   :  { %1629 = vmatmul.mubr.msk.bf16.gmra.mxu0 %vm341_vm1, %v316_v42  ;;  %1649 = vmatmul.mubr.msk.bf16.gmra.mxu1 %vm341_vm1, %v326_v44 }
  0x46   :  { %1652 = vmatprep.mubr.msk.bf16.mxu1 %vm341_vm1, %v327_v5 }
  0x4d   :  { %1653 = vmatmul.mubr.msk.bf16.gmra.mxu1 %vm341_vm1, %v328_v27 }
  0x4e   :  { %1656 = vmatprep.mubr.msk.bf16.mxu1 %vm341_vm1, %v329_v29 }
  0x55   :  { %1657 = vmatmul.mubr.msk.bf16.gmra.mxu1 %vm341_vm1, %v330_v37 }
  0x56   :  { %1660 = vmatprep.mubr.msk.bf16.mxu1 %vm341_vm1, %v331_v2 }
  0x5d   :  { %1661 = vmatmul.mubr.msk.bf16.gmra.mxu1 %vm341_vm1, %v332_v19 }
  0xcd   :  { %v1602_v50 = vpop.f32.mrf.mxu0 }
  0xce   :  { %v485_v52 = vadd.f32 %v1602_v50, %v2142_v28 }
  0xcf   :  { %v476_v46 = vpop.f32.mrf.mxu0 }
  0xd0   :  { %v1503_v47 = vpack.c.bf16 %v485_v52, %v485_v52  ;;  %v477_v48 = vadd.f32 %v2142_v28, %v476_v46  ;;  %v872_v59 = vmul.f32 %v485_v52, %v485_v52  ;;  %v736_v13 = vsel %vm732_vm4, %v485_v52, 0.0 }
  0xd1   :  { %v1603_v49 = vpop.f32.mrf.mxu0 }
  0xd2   :  { %1328 = vst.msk [vmem:[%s2899_s5 + $0x8] sm:$0xf] %vm1325_vm2, %v1503_v47  ;;  %v1501_v53 = vpack.c.bf16 %v477_v48, %v477_v48  ;;  %v488_v55 = vadd.f32 %v1603_v49, %v2142_v28  ;;  %v870_v57 = vmul.f32 %v477_v48, %v477_v48  ;;  %v733_v63 = vsel %vm732_vm4, %v477_v48, 0.0 }
  0xd3   :  { %v479_v56 = vpop.f32.mrf.mxu0  ;;  %v937_v27 = vsel %vm732_vm4, %v872_v59, 0.0 }
  0xd4   :  { %1326 = vst.msk [vmem:[%s2899_s5] sm:$0xf] %vm1325_vm2, %v1501_v53  ;;  %v480_v58 = vadd.f32 %v2142_v28, %v479_v56  ;;  %v1504_v0 = vpack.c.bf16 %v488_v55, %v488_v55  ;;  %v934_v17 = vsel %vm732_vm4, %v870_v57, 0.0  ;;  %v873_v18 = vmul.f32 %v488_v55, %v488_v55 }
  0xd5   :  { %v1606_v6 = vpop.f32.mrf.mxu0  ;;  %v738_v10 = vsel %vm732_vm4, %v488_v55, 0.0 }
  0xd6   :  { %v734_v7 = vsel %vm732_vm4, %v480_v58, 0.0  ;;  %v871_v8 = vmul.f32 %v480_v58, %v480_v58  ;;  %v1502_v11 = vpack.c.bf16 %v480_v58, %v480_v58  ;;  %v501_v12 = vadd.f32 %v1606_v6, %v2142_v28  ;;  %1329 = vst.msk [vmem:[%s2899_s5 + $0xc] sm:$0xf] %vm1325_vm2, %v1504_v0 }
  0xd7   :  { %v735_v15 = vadd.f32 %v734_v7, %v733_v63  ;;  %v492_v16 = vpop.f32.mrf.mxu0  ;;  %v939_v34 = vsel %vm732_vm4, %v873_v18, 0.0 }
  0xd8   :  { %v935_v21 = vsel %vm732_vm4, %v871_v8, 0.0  ;;  %1327 = vst.msk [vmem:[%s2899_s5 + $0x4] sm:$0xf] %vm1325_vm2, %v1502_v11  ;;  %v1507_v22 = vpack.c.bf16 %v501_v12, %v501_v12  ;;  %v493_v25 = vadd.f32 %v2142_v28, %v492_v16  ;;  %v876_v39 = vmul.f32 %v501_v12, %v501_v12 }
  0xd9   :  { %v737_v23 = vadd.f32 %v736_v13, %v735_v15  ;;  %v936_v24 = vadd.f32 %v935_v21, %v934_v17  ;;  %v1607_v26 = vpop.f32.mrf.mxu0  ;;  %v744_v9 = vsel %vm732_vm4, %v501_v12, 0.0 }
  0xda   :  { %1332 = vst.msk [vmem:[%s2899_s5 + $0x18] sm:$0xf] %vm1325_vm2, %v1507_v22  ;;  %v504_v30 = vadd.f32 %v1607_v26, %v2142_v28  ;;  %v874_v32 = vmul.f32 %v493_v25, %v493_v25  ;;  %v740_v35 = vsel %vm732_vm4, %v493_v25, 0.0  ;;  %v1505_v29 = vpack.c.bf16 %v493_v25, %v493_v25 }
  0xdb   :  { %v938_v31 = vadd.f32 %v937_v27, %v936_v24  ;;  %v739_v14 = vadd.f32 %v738_v10, %v737_v23  ;;  %v495_v33 = vpop.f32.mrf.mxu0  ;;  %v945_v52 = vsel %vm732_vm4, %v876_v39, 0.0 }
  0xdc   :  { %v1508_v20 = vpack.c.bf16 %v504_v30, %v504_v30  ;;  %v496_v37 = vadd.f32 %v2142_v28, %v495_v33  ;;  %v941_v40 = vsel %vm732_vm4, %v874_v32, 0.0  ;;  %1330 = vst.msk [vmem:[%s2899_s5 + $0x10] sm:$0xf] %vm1325_vm2, %v1505_v29  ;;  %v877_v41 = vmul.f32 %v504_v30, %v504_v30 }
  0xdd   :  { %v741_v36 = vadd.f32 %v740_v35, %v739_v14  ;;  %v940_v60 = vadd.f32 %v939_v34, %v938_v31  ;;  %v1610_v1 = vpop.f32.mrf.mxu0  ;;  %v746_v46 = vsel %vm732_vm4, %v504_v30, 0.0 }
  0xde   :  { %1333 = vst.msk [vmem:[%s2899_s5 + $0x1c] sm:$0xf] %vm1325_vm2, %v1508_v20  ;;  %v517_v45 = vadd.f32 %v1610_v1, %v2142_v28  ;;  %v742_v62 = vsel %vm732_vm4, %v496_v37, 0.0  ;;  %v875_v4 = vmul.f32 %v496_v37, %v496_v37  ;;  %v1506_v51 = vpack.c.bf16 %v496_v37, %v496_v37 }
  0xdf   :  { %v942_v61 = vadd.f32 %v941_v40, %v940_v60  ;;  %v508_v2 = vpop.f32.mrf.mxu0  ;;  %v743_v3 = vadd.f32 %v742_v62, %v741_v36  ;;  %v947_v55 = vsel %vm732_vm4, %v877_v41, 0.0 }
  0xe0   :  { %v1511_v19 = vpack.c.bf16 %v517_v45, %v517_v45  ;;  %v943_v42 = vsel %vm732_vm4, %v875_v4, 0.0  ;;  %1331 = vst.msk [vmem:[%s2899_s5 + $0x14] sm:$0xf] %vm1325_vm2, %v1506_v51  ;;  %v509_v43 = vadd.f32 %v2142_v28, %v508_v2  ;;  %v880_v63 = vmul.f32 %v517_v45, %v517_v45 }
  0xe1   :  { %v1611_v38 = vpop.f32.mrf.mxu0  ;;  %v745_v44 = vadd.f32 %v744_v9, %v743_v3  ;;  %v944_v5 = vadd.f32 %v943_v42, %v942_v61  ;;  %v752_v22 = vsel %vm732_vm4, %v517_v45, 0.0 }
  0xe2   :  { %1336 = vst.msk [vmem:[%s2899_s5 + $0x28] sm:$0xf] %vm1325_vm2, %v1511_v19  ;;  %v520_v50 = vadd.f32 %v1611_v38, %v2142_v28  ;;  %v878_v47 = vmul.f32 %v509_v43, %v509_v43  ;;  %v1509_v48 = vpack.c.bf16 %v509_v43, %v509_v43  ;;  %v748_v56 = vsel %vm732_vm4, %v509_v43, 0.0 }
  0xe3   :  { %v511_v49 = vpop.f32.mrf.mxu0  ;;  %v946_v53 = vadd.f32 %v945_v52, %v944_v5  ;;  %v747_v54 = vadd.f32 %v746_v46, %v745_v44  ;;  %v953_v14 = vsel %vm732_vm4, %v880_v63, 0.0 }
  0xe4   :  { %1334 = vst.msk [vmem:[%s2899_s5 + $0x20] sm:$0xf] %vm1325_vm2, %v1509_v48  ;;  %v1512_v57 = vpack.c.bf16 %v520_v50, %v520_v50  ;;  %v512_v58 = vadd.f32 %v2142_v28, %v511_v49  ;;  %v949_v8 = vsel %vm732_vm4, %v878_v47, 0.0  ;;  %v881_v17 = vmul.f32 %v520_v50, %v520_v50 }
  0xe5   :  { %v1614_v59 = vpop.f32.mrf.mxu0  ;;  %v749_v0 = vadd.f32 %v748_v56, %v747_v54  ;;  %v948_v6 = vadd.f32 %v947_v55, %v946_v53  ;;  %v1634_v21 = vpop.f32.mrf.mxu1  ;;  %v754_v32 = vsel %vm732_vm4, %v520_v50, 0.0 }
  0xe6   :  { %v533_v7 = vadd.f32 %v1614_v59, %v2142_v28  ;;  %1337 = vst.msk [vmem:[%s2899_s5 + $0x2c] sm:$0xf] %vm1325_vm2, %v1512_v57  ;;  %v750_v11 = vsel %vm732_vm4, %v512_v58, 0.0  ;;  %v879_v12 = vmul.f32 %v512_v58, %v512_v58  ;;  %v1510_v13 = vpack.c.bf16 %v512_v58, %v512_v58 }
  0xe7   :  { %v524_v15 = vpop.f32.mrf.mxu0  ;;  %v950_v16 = vadd.f32 %v949_v8, %v948_v6  ;;  %v751_v18 = vadd.f32 %v750_v11, %v749_v0  ;;  %v2236_v31 = vpop.f32.mrf.mxu1  ;;  %v955_v29 = vsel %vm732_vm4, %v881_v17, 0.0  ;;  %v2254_v45 = vadd.f32 %v1634_v21, %v2142_v28 }
  0xe8   :  { %v951_v23 = vsel %vm732_vm4, %v879_v12, 0.0  ;;  %1335 = vst.msk [vmem:[%s2899_s5 + $0x24] sm:$0xf] %vm1325_vm2, %v1510_v13  ;;  %v1515_v24 = vpack.c.bf16 %v533_v7, %v533_v7  ;;  %v525_v25 = vadd.f32 %v2142_v28, %v524_v15  ;;  %v884_v61 = vmul.f32 %v533_v7, %v533_v7 }
  0xe9   :  { %v1615_v26 = vpop.f32.mrf.mxu0  ;;  %v753_v27 = vadd.f32 %v752_v22, %v751_v18  ;;  %v952_v10 = vadd.f32 %v951_v23, %v950_v16  ;;  %v2245_v60 = vpop.f32.mrf.mxu1  ;;  %v760_v43 = vsel %vm732_vm4, %v533_v7, 0.0  ;;  %v1535_v49 = vpack.c.bf16 %v2254_v45, %v2254_v45 }
  0xea   :  { %v536_v30 = vadd.f32 %v1615_v26, %v2142_v28  ;;  %1340 = vst.msk [vmem:[%s2899_s5 + $0x38] sm:$0xf] %vm1325_vm2, %v1515_v24  ;;  %v882_v33 = vmul.f32 %v525_v25, %v525_v25  ;;  %v1513_v34 = vpack.c.bf16 %v525_v25, %v525_v25  ;;  %v756_v37 = vsel %vm732_vm4, %v525_v25, 0.0 }
  0xeb   :  { %v527_v35 = vpop.f32.mrf.mxu0  ;;  %v954_v20 = vadd.f32 %v953_v14, %v952_v10  ;;  %v755_v36 = vadd.f32 %v754_v32, %v753_v27  ;;  %v2257_v2 = vpop.f32.mrf.mxu1  ;;  %v961_v57 = vsel %vm732_vm4, %v884_v61, 0.0  ;;  %1360 = vst.msk [vmem:[%s2899_s5 + $0x88] sm:$0xf] %vm1325_vm2, %v1535_v49  ;;  %v2301_v23 = vadd.f32 %v2142_v28, %v2236_v31 }
  0xec   :  { %1338 = vst.msk [vmem:[%s2899_s5 + $0x30] sm:$0xf] %vm1325_vm2, %v1513_v34  ;;  %v1516_v1 = vpack.c.bf16 %v536_v30, %v536_v30  ;;  %v528_v39 = vadd.f32 %v2142_v28, %v527_v35  ;;  %v957_v3 = vsel %vm732_vm4, %v882_v33, 0.0  ;;  %v885_v44 = vmul.f32 %v536_v30, %v536_v30 }
  0xed   :  { %v1618_v40 = vpop.f32.mrf.mxu0  ;;  %v757_v62 = vadd.f32 %v756_v37, %v755_v36  ;;  %v956_v4 = vadd.f32 %v955_v29, %v954_v20  ;;  %v2266_v50 = vpop.f32.mrf.mxu1  ;;  %v762_v58 = vsel %vm732_vm4, %v536_v30, 0.0 }
  0xee   :  { %v549_v51 = vadd.f32 %v1618_v40, %v2142_v28  ;;  %1341 = vst.msk [vmem:[%s2899_s5 + $0x3c] sm:$0xf] %vm1325_vm2, %v1516_v1  ;;  %v758_v19 = vsel %vm732_vm4, %v528_v39, 0.0  ;;  %v883_v9 = vmul.f32 %v528_v39, %v528_v39  ;;  %v1514_v41 = vpack.c.bf16 %v528_v39, %v528_v39 }
  0xef   :  { %v540_v42 = vpop.f32.mrf.mxu0  ;;  %v958_v38 = vadd.f32 %v957_v3, %v956_v4  ;;  %v759_v5 = vadd.f32 %v758_v19, %v757_v62  ;;  %v2277_v56 = vpop.f32.mrf.mxu1  ;;  %v963_v6 = vsel %vm732_vm4, %v885_v44, 0.0  ;;  %v1533_v19 = vpack.c.bf16 %v2301_v23, %v2301_v23 }
  0xf0   :  { %v959_v52 = vsel %vm732_vm4, %v883_v9, 0.0  ;;  %1339 = vst.msk [vmem:[%s2899_s5 + $0x34] sm:$0xf] %vm1325_vm2, %v1514_v41  ;;  %v1519_v46 = vpack.c.bf16 %v549_v51, %v549_v51  ;;  %v541_v47 = vadd.f32 %v2142_v28, %v540_v42  ;;  %v888_v12 = vmul.f32 %v549_v51, %v549_v51 }
  0xf1   :  { %v1619_v48 = vpop.f32.mrf.mxu0  ;;  %v761_v53 = vadd.f32 %v760_v43, %v759_v5  ;;  %v960_v54 = vadd.f32 %v959_v52, %v958_v38  ;;  %v2290_v11 = vpop.f32.mrf.mxu1  ;;  %v768_v14 = vsel %vm732_vm4, %v549_v51, 0.0  ;;  %1358 = vst.msk [vmem:[%s2899_s5 + $0x80] sm:$0xf] %vm1325_vm2, %v1533_v19 }
  0xf2   :  { %v552_v55 = vadd.f32 %v1619_v48, %v2142_v28  ;;  %1344 = vst.msk [vmem:[%s2899_s5 + $0x48] sm:$0xf] %vm1325_vm2, %v1519_v46  ;;  %v886_v59 = vmul.f32 %v541_v47, %v541_v47  ;;  %v1517_v63 = vpack.c.bf16 %v541_v47, %v541_v47  ;;  %v764_v13 = vsel %vm732_vm4, %v541_v47, 0.0 }
  0xf3   :  { %v543_v0 = vpop.f32.mrf.mxu0  ;;  %v962_v7 = vadd.f32 %v961_v57, %v960_v54  ;;  %v763_v8 = vadd.f32 %v762_v58, %v761_v53  ;;  %v2303_v24 = vpop.f32.mrf.mxu1  ;;  %v969_v37 = vsel %vm732_vm4, %v888_v12, 0.0 }
  0xf4   :  { %1342 = vst.msk [vmem:[%s2899_s5 + $0x40] sm:$0xf] %vm1325_vm2, %v1517_v63  ;;  %v1520_v15 = vpack.c.bf16 %v552_v55, %v552_v55  ;;  %v544_v16 = vadd.f32 %v2142_v28, %v543_v0  ;;  %v965_v25 = vsel %vm732_vm4, %v886_v59, 0.0  ;;  %v889_v34 = vmul.f32 %v552_v55, %v552_v55 }
  0xf5   :  { %v1622_v17 = vpop.f32.mrf.mxu0  ;;  %v765_v18 = vadd.f32 %v764_v13, %v763_v8  ;;  %v964_v21 = vadd.f32 %v963_v6, %v962_v7  ;;  %v2312_v31 = vpop.f32.mrf.mxu1  ;;  %v770_v62 = vsel %vm732_vm4, %v552_v55, 0.0 }
  0xf6   :  { %v565_v22 = vadd.f32 %v1622_v17, %v2142_v28  ;;  %1345 = vst.msk [vmem:[%s2899_s5 + $0x4c] sm:$0xf] %vm1325_vm2, %v1520_v15  ;;  %v766_v26 = vsel %vm732_vm4, %v544_v16, 0.0  ;;  %v887_v27 = vmul.f32 %v544_v16, %v544_v16  ;;  %v1518_v10 = vpack.c.bf16 %v544_v16, %v544_v16 }
  0xf7   :  { %v556_v30 = vpop.f32.mrf.mxu0  ;;  %v966_v32 = vadd.f32 %v965_v25, %v964_v21  ;;  %v767_v33 = vadd.f32 %v766_v26, %v765_v18  ;;  %v2322_v61 = vpop.f32.mrf.mxu1  ;;  %v971_v43 = vsel %vm732_vm4, %v889_v34, 0.0  ;;  %v2364_v17 = vadd.f32 %v2245_v60, %v2142_v28 }
  0xf8   :  { %v967_v35 = vsel %vm732_vm4, %v887_v27, 0.0  ;;  %1343 = vst.msk [vmem:[%s2899_s5 + $0x44] sm:$0xf] %vm1325_vm2, %v1518_v10  ;;  %v1523_v29 = vpack.c.bf16 %v565_v22, %v565_v22  ;;  %v557_v20 = vadd.f32 %v2142_v28, %v556_v30  ;;  %v892_v46 = vmul.f32 %v565_v22, %v565_v22 }
  0xf9   :  { %v1623_v36 = vpop.f32.mrf.mxu0  ;;  %v769_v1 = vadd.f32 %v768_v14, %v767_v33  ;;  %v968_v39 = vadd.f32 %v967_v35, %v966_v32  ;;  %v2331_v42 = vpop.f32.mrf.mxu1  ;;  %v776_v63 = vsel %vm732_vm4, %v565_v22, 0.0 }
  0xfa   :  { %v568_v40 = vadd.f32 %v1623_v36, %v2142_v28  ;;  %1348 = vst.msk [vmem:[%s2899_s5 + $0x58] sm:$0xf] %vm1325_vm2, %v1523_v29  ;;  %v890_v4 = vmul.f32 %v557_v20, %v557_v20  ;;  %v1521_v51 = vpack.c.bf16 %v557_v20, %v557_v20  ;;  %v772_v38 = vsel %vm732_vm4, %v557_v20, 0.0 }
  0xfb   :  { %v559_v3 = vpop.f32.mrf.mxu0  ;;  %v970_v9 = vadd.f32 %v969_v37, %v968_v39  ;;  %v771_v41 = vadd.f32 %v770_v62, %v769_v1  ;;  %v2345_v53 = vpop.f32.mrf.mxu1  ;;  %v977_v26 = vsel %vm732_vm4, %v892_v46, 0.0  ;;  %v1536_v37 = vpack.c.bf16 %v2364_v17, %v2364_v17 }
  0xfc   :  { %1346 = vst.msk [vmem:[%s2899_s5 + $0x50] sm:$0xf] %vm1325_vm2, %v1521_v51  ;;  %v1524_v44 = vpack.c.bf16 %v568_v40, %v568_v40  ;;  %v560_v5 = vadd.f32 %v2142_v28, %v559_v3  ;;  %v973_v54 = vsel %vm732_vm4, %v890_v4, 0.0  ;;  %v893_v6 = vmul.f32 %v568_v40, %v568_v40 }
  0xfd   :  { %v1626_v52 = vpop.f32.mrf.mxu0  ;;  %v773_v47 = vadd.f32 %v772_v38, %v771_v41  ;;  %v972_v48 = vadd.f32 %v971_v43, %v970_v9  ;;  %v2354_v8 = vpop.f32.mrf.mxu1  ;;  %v778_v27 = vsel %vm732_vm4, %v568_v40, 0.0  ;;  %1361 = vst.msk [vmem:[%s2899_s5 + $0x8c] sm:$0xf] %vm1325_vm2, %v1536_v37  ;;  %v621_v37 = vadd.f32 %v2142_v28, %v2277_v56 }
  0xfe   :  { %v581_v49 = vadd.f32 %v1626_v52, %v2142_v28  ;;  %1349 = vst.msk [vmem:[%s2899_s5 + $0x5c] sm:$0xf] %vm1325_vm2, %v1524_v44  ;;  %v774_v55 = vsel %vm732_vm4, %v560_v5, 0.0  ;;  %v891_v57 = vmul.f32 %v560_v5, %v560_v5  ;;  %v1522_v58 = vpack.c.bf16 %v560_v5, %v560_v5 }
  0xff   :  { %v572_v59 = vpop.f32.mrf.mxu0  ;;  %v974_v0 = vadd.f32 %v973_v54, %v972_v48  ;;  %v775_v7 = vadd.f32 %v774_v55, %v773_v47  ;;  %v2367_v25 = vpop.f32.mrf.mxu1  ;;  %v979_v60 = vsel %vm732_vm4, %v893_v6, 0.0  ;;  %v902_v56 = vmul.f32 %v2301_v23, %v2301_v23 }
 0x100   :  { %v975_v12 = vsel %vm732_vm4, %v891_v57, 0.0  ;;  %1347 = vst.msk [vmem:[%s2899_s5 + $0x54] sm:$0xf] %vm1325_vm2, %v1522_v58  ;;  %v1527_v13 = vpack.c.bf16 %v581_v49, %v581_v49  ;;  %v573_v15 = vadd.f32 %v2142_v28, %v572_v59  ;;  %v896_v1 = vmul.f32 %v581_v49, %v581_v49 }
 0x101   :  { %v1627_v16 = vpop.f32.mrf.mxu0  ;;  %v777_v18 = vadd.f32 %v776_v63, %v775_v7  ;;  %v976_v21 = vadd.f32 %v975_v12, %v974_v0  ;;  %v2376_v34 = vpop.f32.mrf.mxu1  ;;  %v784_v52 = vsel %vm732_vm4, %v581_v49, 0.0  ;;  %v2411_v59 = vadd.f32 %v2142_v28, %v2257_v2 }
 0x102   :  { %v584_v22 = vadd.f32 %v1627_v16, %v2142_v28  ;;  %1352 = vst.msk [vmem:[%s2899_s5 + $0x68] sm:$0xf] %vm1325_vm2, %v1527_v13  ;;  %v894_v10 = vmul.f32 %v573_v15, %v573_v15  ;;  %v1525_v30 = vpack.c.bf16 %v573_v15, %v573_v15  ;;  %v780_v35 = vsel %vm732_vm4, %v573_v15, 0.0 }
 0x103   :  { %v575_v14 = vpop.f32.mrf.mxu0  ;;  %v978_v32 = vadd.f32 %v977_v26, %v976_v21  ;;  %v779_v33 = vadd.f32 %v778_v27, %v777_v18  ;;  %v2387_v4 = vpop.f32.mrf.mxu1  ;;  %v985_v63 = vsel %vm732_vm4, %v896_v1, 0.0  ;;  %v2452_v1 = vadd.f32 %v2290_v11, %v2142_v28 }
 0x104   :  { %1350 = vst.msk [vmem:[%s2899_s5 + $0x60] sm:$0xf] %vm1325_vm2, %v1525_v30  ;;  %v1528_v29 = vpack.c.bf16 %v584_v22, %v584_v22  ;;  %v576_v20 = vadd.f32 %v2142_v28, %v575_v14  ;;  %v981_v51 = vsel %vm732_vm4, %v894_v10, 0.0  ;;  %v897_v38 = vmul.f32 %v584_v22, %v584_v22 }
 0x105   :  { %v1630_v36 = vpop.f32.mrf.mxu0  ;;  %v781_v39 = vadd.f32 %v780_v35, %v779_v33  ;;  %v980_v40 = vadd.f32 %v979_v60, %v978_v32  ;;  %v2399_v5 = vpop.f32.mrf.mxu1  ;;  %v786_v0 = vsel %vm732_vm4, %v584_v22, 0.0  ;;  %v1534_v14 = vpack.c.bf16 %v2411_v59, %v2411_v59 }
 0x106   :  { %v597_v62 = vadd.f32 %v1630_v36, %v2142_v28  ;;  %1353 = vst.msk [vmem:[%s2899_s5 + $0x6c] sm:$0xf] %vm1325_vm2, %v1528_v29  ;;  %v782_v3 = vsel %vm732_vm4, %v576_v20, 0.0  ;;  %v895_v19 = vmul.f32 %v576_v20, %v576_v20  ;;  %v1526_v9 = vpack.c.bf16 %v576_v20, %v576_v20 }
 0x107   :  { %v588_v41 = vpop.f32.mrf.mxu0  ;;  %v982_v43 = vadd.f32 %v981_v51, %v980_v40  ;;  %v783_v44 = vadd.f32 %v782_v3, %v781_v39  ;;  %v2413_v49 = vpop.f32.mrf.mxu1  ;;  %v987_v13 = vsel %vm732_vm4, %v897_v38, 0.0  ;;  %v2442_v29 = vadd.f32 %v2266_v50, %v2142_v28  ;;  %1359 = vst.msk [vmem:[%s2899_s5 + $0x84] sm:$0xf] %vm1325_vm2, %v1534_v14 }
 0x108   :  { %v983_v46 = vsel %vm732_vm4, %v895_v19, 0.0  ;;  %1351 = vst.msk [vmem:[%s2899_s5 + $0x64] sm:$0xf] %vm1325_vm2, %v1526_v9  ;;  %v1531_v47 = vpack.c.bf16 %v597_v62, %v597_v62  ;;  %v589_v48 = vadd.f32 %v2142_v28, %v588_v41  ;;  %v900_v18 = vmul.f32 %v597_v62, %v597_v62 }
 0x109   :  { %v1631_v54 = vpop.f32.mrf.mxu0  ;;  %v785_v55 = vadd.f32 %v784_v52, %v783_v44  ;;  %v984_v57 = vadd.f32 %v983_v46, %v982_v43  ;;  %v2422_v2 = vpop.f32.mrf.mxu1  ;;  %v792_v40 = vsel %vm732_vm4, %v597_v62, 0.0  ;;  %v1539_v3 = vpack.c.bf16 %v2442_v29, %v2442_v29 }
 0x10a   :  { %v600_v58 = vadd.f32 %v1631_v54, %v2142_v28  ;;  %1356 = vst.msk [vmem:[%s2899_s5 + $0x78] sm:$0xf] %vm1325_vm2, %v1531_v47  ;;  %v898_v6 = vmul.f32 %v589_v48, %v589_v48  ;;  %v1529_v7 = vpack.c.bf16 %v589_v48, %v589_v48  ;;  %v788_v21 = vsel %vm732_vm4, %v589_v48, 0.0 }
 0x10b   :  { %v591_v12 = vpop.f32.mrf.mxu0  ;;  %v986_v15 = vadd.f32 %v985_v63, %v984_v57  ;;  %v787_v16 = vadd.f32 %v786_v0, %v785_v55  ;;  %v2433_v60 = vpop.f32.mrf.mxu1  ;;  %v993_v62 = vsel %vm732_vm4, %v900_v18, 0.0  ;;  %v796_v43 = vsel %vm732_vm4, %v2301_v23, 0.0  ;;  %1364 = vst.msk [vmem:[%s2899_s5 + $0x98] sm:$0xf] %vm1325_vm2, %v1539_v3 }
 0x10c   :  { %1354 = vst.msk [vmem:[%s2899_s5 + $0x70] sm:$0xf] %vm1325_vm2, %v1529_v7  ;;  %v1532_v22 = vpack.c.bf16 %v600_v58, %v600_v58  ;;  %v592_v26 = vadd.f32 %v2142_v28, %v591_v12  ;;  %v989_v30 = vsel %vm732_vm4, %v898_v6, 0.0  ;;  %v901_v50 = vmul.f32 %v600_v58, %v600_v58 }
 0x10d   :  { %v789_v27 = vadd.f32 %v788_v21, %v787_v16  ;;  %v988_v10 = vadd.f32 %v987_v13, %v986_v15  ;;  %v2454_v39 = vpop.f32.mrf.mxu1  ;;  %v794_v41 = vsel %vm732_vm4, %v600_v58, 0.0  ;;  %v1537_v38 = vpack.c.bf16 %v621_v37, %v621_v37 }
 0x10e   :  { %1357 = vst.msk [vmem:[%s2899_s5 + $0x7c] sm:$0xf] %vm1325_vm2, %v1532_v22  ;;  %v790_v32 = vsel %vm732_vm4, %v592_v26, 0.0  ;;  %v899_v33 = vmul.f32 %v592_v26, %v592_v26  ;;  %v1530_v35 = vpack.c.bf16 %v592_v26, %v592_v26  ;;  %v903_v46 = vmul.f32 %v2411_v59, %v2411_v59 }
 0x10f   :  { %v990_v20 = vadd.f32 %v989_v30, %v988_v10  ;;  %v791_v36 = vadd.f32 %v790_v32, %v789_v27  ;;  %v2466_v9 = vpop.f32.mrf.mxu1  ;;  %v1540_v47 = vpack.c.bf16 %v2452_v1, %v2452_v1  ;;  %v995_v48 = vsel %vm732_vm4, %v901_v50, 0.0  ;;  %1362 = vst.msk [vmem:[%s2899_s5 + $0x90] sm:$0xf] %vm1325_vm2, %v1537_v38 }
 0x110   :  { %v991_v51 = vsel %vm732_vm4, %v899_v33, 0.0  ;;  %1355 = vst.msk [vmem:[%s2899_s5 + $0x74] sm:$0xf] %vm1325_vm2, %v1530_v35  ;;  %v624_v23 = vadd.f32 %v2142_v28, %v2303_v24  ;;  %v2489_v54 = vadd.f32 %v2312_v31, %v2142_v28  ;;  %v2493_v55 = vadd.f32 %v2142_v28, %v2322_v61 }
 0x111   :  { %v793_v11 = vadd.f32 %v792_v40, %v791_v36  ;;  %v992_v19 = vadd.f32 %v991_v51, %v990_v20  ;;  %v904_v57 = vmul.f32 %v2254_v45, %v2254_v45  ;;  %v997_v58 = vsel %vm732_vm4, %v902_v56, 0.0  ;;  %1365 = vst.msk [vmem:[%s2899_s5 + $0x9c] sm:$0xf] %vm1325_vm2, %v1540_v47  ;;  %v2502_v24 = vpop.f32.mrf.mxu1 }
 0x112   :  { %v905_v31 = vmul.f32 %v2364_v17, %v2364_v17  ;;  %v798_v61 = vsel %vm732_vm4, %v2411_v59, 0.0  ;;  %v1538_v6 = vpack.c.bf16 %v624_v23, %v624_v23  ;;  %v2510_v7 = vadd.f32 %v2331_v42, %v2142_v28 }
 0x113   :  { %v994_v44 = vadd.f32 %v993_v62, %v992_v19  ;;  %v795_v52 = vadd.f32 %v794_v41, %v793_v11  ;;  %v1543_v15 = vpack.c.bf16 %v2489_v54, %v2489_v54  ;;  %v2516_v16 = vadd.f32 %v2142_v28, %v2345_v53 }
 0x114   :  { %v800_v18 = vsel %vm732_vm4, %v2254_v45, 0.0  ;;  %v999_v21 = vsel %vm732_vm4, %v903_v46, 0.0  ;;  %1363 = vst.msk [vmem:[%s2899_s5 + $0x94] sm:$0xf] %vm1325_vm2, %v1538_v6  ;;  %v1541_v42 = vpack.c.bf16 %v2493_v55, %v2493_v55  ;;  %v1001_v59 = vsel %vm732_vm4, %v904_v57, 0.0  ;;  %v2532_v45 = vpop.f32.mrf.mxu1 }
 0x115   :  { %v797_v63 = vadd.f32 %v796_v43, %v795_v52  ;;  %v996_v0 = vadd.f32 %v995_v48, %v994_v44  ;;  %1368 = vst.msk [vmem:[%s2899_s5 + $0xa8] sm:$0xf] %vm1325_vm2, %v1543_v15  ;;  %v802_v53 = vsel %vm732_vm4, %v2364_v17, 0.0  ;;  %v1003_v27 = vsel %vm732_vm4, %v905_v31, 0.0 }
 0x116   :  { %v906_v10 = vmul.f32 %v621_v37, %v621_v37  ;;  %1366 = vst.msk [vmem:[%s2899_s5 + $0xa0] sm:$0xf] %vm1325_vm2, %v1541_v42  ;;  %v1544_v30 = vpack.c.bf16 %v2510_v7, %v2510_v7  ;;  %v804_v33 = vsel %vm732_vm4, %v621_v37, 0.0  ;;  %v1542_v35 = vpack.c.bf16 %v2516_v16, %v2516_v16 }
 0x117   :  { %v799_v12 = vadd.f32 %v798_v61, %v797_v63  ;;  %v998_v13 = vadd.f32 %v997_v58, %v996_v0  ;;  %v907_v20 = vmul.f32 %v624_v23, %v624_v23  ;;  %v2552_v17 = vadd.f32 %v2354_v8, %v2142_v28  ;;  %v2568_v8 = vpop.f32.mrf.mxu1 }
 0x118   :  { %1369 = vst.msk [vmem:[%s2899_s5 + $0xac] sm:$0xf] %vm1325_vm2, %v1544_v30  ;;  %v2556_v36 = vadd.f32 %v2142_v28, %v2367_v25  ;;  %v2560_v37 = vadd.f32 %v2376_v34, %v2142_v28  ;;  %v908_v40 = vmul.f32 %v2442_v29, %v2442_v29  ;;  %1367 = vst.msk [vmem:[%s2899_s5 + $0xa4] sm:$0xf] %vm1325_vm2, %v1542_v35  ;;  %v1005_v3 = vsel %vm732_vm4, %v906_v10, 0.0 }
 0x119   :  { %v801_v22 = vadd.f32 %v800_v18, %v799_v12  ;;  %v1000_v26 = vadd.f32 %v999_v21, %v998_v13  ;;  %v806_v25 = vsel %vm732_vm4, %v624_v23, 0.0  ;;  %v1547_v34 = vpack.c.bf16 %v2552_v17, %v2552_v17 }
 0x11a   :  { %v2576_v56 = vadd.f32 %v2142_v28, %v2387_v4  ;;  %v1545_v62 = vpack.c.bf16 %v2556_v36, %v2556_v36  ;;  %v808_v41 = vsel %vm732_vm4, %v2442_v29, 0.0  ;;  %v909_v43 = vmul.f32 %v2452_v1, %v2452_v1  ;;  %v2596_v29 = vpop.f32.mrf.mxu1 }
 0x11b   :  { %v1002_v14 = vadd.f32 %v1001_v59, %v1000_v26  ;;  %v803_v32 = vadd.f32 %v802_v53, %v801_v22  ;;  %v1007_v38 = vsel %vm732_vm4, %v907_v20, 0.0  ;;  %1372 = vst.msk [vmem:[%s2899_s5 + $0xb8] sm:$0xf] %vm1325_vm2, %v1547_v34  ;;  %v1548_v4 = vpack.c.bf16 %v2560_v37, %v2560_v37 }
 0x11c   :  { %v1009_v44 = vsel %vm732_vm4, %v908_v40, 0.0  ;;  %1370 = vst.msk [vmem:[%s2899_s5 + $0xb0] sm:$0xf] %vm1325_vm2, %v1545_v62  ;;  %v810_v47 = vsel %vm732_vm4, %v2452_v1, 0.0  ;;  %v910_v48 = vmul.f32 %v2493_v55, %v2493_v55  ;;  %v1546_v23 = vpack.c.bf16 %v2576_v56, %v2576_v56  ;;  %v1659_v13 = vpop.f32.mrf.mxu1 }
 0x11d   :  { %v805_v50 = vadd.f32 %v804_v33, %v803_v32  ;;  %v1004_v51 = vadd.f32 %v1003_v27, %v1002_v14  ;;  %1373 = vst.msk [vmem:[%s2899_s5 + $0xbc] sm:$0xf] %vm1325_vm2, %v1548_v4  ;;  %v2610_v57 = vadd.f32 %v2399_v5, %v2142_v28  ;;  %v2614_v1 = vadd.f32 %v2142_v28, %v2413_v49 }
 0x11e   :  { %v2618_v0 = vadd.f32 %v2422_v2, %v2142_v28  ;;  %v1011_v31 = vsel %vm732_vm4, %v909_v43, 0.0  ;;  %v812_v61 = vsel %vm732_vm4, %v2493_v55, 0.0  ;;  %v911_v6 = vmul.f32 %v2516_v16, %v2516_v16  ;;  %1371 = vst.msk [vmem:[%s2899_s5 + $0xb4] sm:$0xf] %vm1325_vm2, %v1546_v23  ;;  %v703_v32 = vpop.f32.mrf.mxu1 }
 0x11f   :  { %v1006_v11 = vadd.f32 %v1005_v3, %v1004_v51  ;;  %v807_v19 = vadd.f32 %v806_v25, %v805_v50  ;;  %v1551_v5 = vpack.c.bf16 %v2610_v57, %v2610_v57  ;;  %v912_v49 = vmul.f32 %v2489_v54, %v2489_v54 }
 0x120   :  { %v816_v55 = vsel %vm732_vm4, %v2489_v54, 0.0  ;;  %v1013_v15 = vsel %vm732_vm4, %v910_v48, 0.0  ;;  %v814_v18 = vsel %vm732_vm4, %v2516_v16, 0.0  ;;  %v1549_v21 = vpack.c.bf16 %v2614_v1, %v2614_v1 }
 0x121   :  { %v809_v52 = vadd.f32 %v808_v41, %v807_v19  ;;  %v1008_v46 = vadd.f32 %v1007_v38, %v1006_v11  ;;  %1376 = vst.msk [vmem:[%s2899_s5 + $0xc8] sm:$0xf] %vm1325_vm2, %v1551_v5  ;;  %v913_v59 = vmul.f32 %v2510_v7, %v2510_v7  ;;  %v1552_v54 = vpack.c.bf16 %v2618_v0, %v2618_v0 }
 0x122   :  { %v1015_v26 = vsel %vm732_vm4, %v911_v6, 0.0  ;;  %1374 = vst.msk [vmem:[%s2899_s5 + $0xc0] sm:$0xf] %vm1325_vm2, %v1549_v21  ;;  %v2655_v16 = vadd.f32 %v2142_v28, %v2433_v60  ;;  %v2659_v53 = vadd.f32 %v2454_v39, %v2142_v28  ;;  %v2663_v27 = vadd.f32 %v2142_v28, %v2466_v9 }
 0x123   :  { %v1010_v58 = vadd.f32 %v1009_v44, %v1008_v46  ;;  %v811_v63 = vadd.f32 %v810_v47, %v809_v52  ;;  %v1017_v10 = vsel %vm732_vm4, %v912_v49, 0.0  ;;  %1377 = vst.msk [vmem:[%s2899_s5 + $0xcc] sm:$0xf] %vm1325_vm2, %v1552_v54  ;;  %v818_v60 = vsel %vm732_vm4, %v2510_v7, 0.0 }
 0x124   :  { %v914_v39 = vmul.f32 %v2556_v36, %v2556_v36  ;;  %v1550_v9 = vpack.c.bf16 %v2655_v16, %v2655_v16  ;;  %v2678_v33 = vadd.f32 %v2502_v24, %v2142_v28  ;;  %v1555_v40 = vpack.c.bf16 %v2659_v53, %v2659_v53 }
 0x125   :  { %v813_v2 = vadd.f32 %v812_v61, %v811_v63  ;;  %v1012_v12 = vadd.f32 %v1011_v31, %v1010_v58  ;;  %v2684_v50 = vadd.f32 %v2142_v28, %v2532_v45  ;;  %v1019_v7 = vsel %vm732_vm4, %v913_v59, 0.0 }
 0x126   :  { %v820_v51 = vsel %vm732_vm4, %v2556_v36, 0.0  ;;  %v915_v3 = vmul.f32 %v2576_v56, %v2576_v56  ;;  %1375 = vst.msk [vmem:[%s2899_s5 + $0xc4] sm:$0xf] %vm1325_vm2, %v1550_v9  ;;  %v1553_v24 = vpack.c.bf16 %v2663_v27, %v2663_v27  ;;  %v916_v45 = vmul.f32 %v2552_v17, %v2552_v17  ;;  %1380 = vst.msk [vmem:[%s2899_s5 + $0xd8] sm:$0xf] %vm1325_vm2, %v1555_v40  ;;  %v1662_v36 = vpop.f32.mrf.mxu1 }
 0x127   :  { %v1014_v42 = vadd.f32 %v1013_v15, %v1012_v12  ;;  %v815_v22 = vadd.f32 %v814_v18, %v813_v2  ;;  %v824_v11 = vsel %vm732_vm4, %v2552_v17, 0.0  ;;  %v1021_v19 = vsel %vm732_vm4, %v914_v39, 0.0 }
 0x128   :  { %v822_v62 = vsel %vm732_vm4, %v2576_v56, 0.0  ;;  %1378 = vst.msk [vmem:[%s2899_s5 + $0xd0] sm:$0xf] %vm1325_vm2, %v1553_v24  ;;  %v1556_v41 = vpack.c.bf16 %v2678_v33, %v2678_v33  ;;  %v917_v38 = vmul.f32 %v2560_v37, %v2560_v37  ;;  %v1554_v17 = vpack.c.bf16 %v2684_v50, %v2684_v50  ;;  %v716_v58 = vpop.f32.mrf.mxu1 }
 0x129   :  { %v817_v30 = vadd.f32 %v816_v55, %v815_v22  ;;  %v1016_v14 = vadd.f32 %v1015_v26, %v1014_v42  ;;  %v1023_v44 = vsel %vm732_vm4, %v915_v3, 0.0  ;;  %v2725_v56 = vadd.f32 %v2568_v8, %v2142_v28 }
 0x12a   :  { %1381 = vst.msk [vmem:[%s2899_s5 + $0xdc] sm:$0xf] %vm1325_vm2, %v1556_v41  ;;  %v2729_v52 = vadd.f32 %v2142_v28, %v2596_v29  ;;  %v2732_v46 = vadd.f32 %v1659_v13, %v2142_v28  ;;  %v1025_v47 = vsel %vm732_vm4, %v916_v45, 0.0  ;;  %1379 = vst.msk [vmem:[%s2899_s5 + $0xd4] sm:$0xf] %vm1325_vm2, %v1554_v17  ;;  %v826_v8 = vsel %vm732_vm4, %v2560_v37, 0.0 }
 0x12b   :  { %v1018_v35 = vadd.f32 %v1017_v10, %v1016_v14  ;;  %v819_v20 = vadd.f32 %v818_v60, %v817_v30  ;;  %v918_v29 = vmul.f32 %v2614_v1, %v2614_v1  ;;  %v1559_v63 = vpack.c.bf16 %v2725_v56, %v2725_v56  ;;  %v1669_v45 = vld [vmem:[%s2898_s4] ss:$0 sm:$0xff] }
 0x12c   :  { %v2746_v31 = vadd.f32 %v2142_v28, %v703_v32  ;;  %v1557_v5 = vpack.c.bf16 %v2729_v52, %v2729_v52  ;;  %v1027_v49 = vsel %vm732_vm4, %v917_v38, 0.0  ;;  %v828_v2 = vsel %vm732_vm4, %v2614_v1, 0.0  ;;  %v1663_v1 = vpop.f32.mrf.mxu1 }
 0x12d   :  { %v821_v25 = vadd.f32 %v820_v51, %v819_v20  ;;  %v1020_v34 = vadd.f32 %v1019_v7, %v1018_v35  ;;  %v919_v37 = vmul.f32 %v2655_v16, %v2655_v16  ;;  %1384 = vst.msk [vmem:[%s2899_s5 + $0xe8] sm:$0xf] %vm1325_vm2, %v1559_v63  ;;  %v1560_v12 = vpack.c.bf16 %v2732_v46, %v2732_v46 }
 0x12e   :  { %v920_v13 = vmul.f32 %v2610_v57, %v2610_v57  ;;  %1382 = vst.msk [vmem:[%s2899_s5 + $0xe0] sm:$0xf] %vm1325_vm2, %v1557_v5  ;;  %v1029_v18 = vsel %vm732_vm4, %v918_v29, 0.0  ;;  %v830_v21 = vsel %vm732_vm4, %v2655_v16, 0.0  ;;  %v1558_v42 = vpack.c.bf16 %v2746_v31, %v2746_v31 }
 0x12f   :  { %v1022_v43 = vadd.f32 %v1021_v19, %v1020_v34  ;;  %v823_v4 = vadd.f32 %v822_v62, %v821_v25  ;;  %1385 = vst.msk [vmem:[%s2899_s5 + $0xec] sm:$0xf] %vm1325_vm2, %v1560_v12  ;;  %v2777_v59 = vadd.f32 %v1662_v36, %v2142_v28  ;;  %v2780_v26 = vadd.f32 %v2142_v28, %v716_v58 }
 0x130   :  { %v2783_v10 = vadd.f32 %v1663_v1, %v2142_v28  ;;  %v832_v16 = vsel %vm732_vm4, %v2610_v57, 0.0  ;;  %v921_v30 = vmul.f32 %v2618_v0, %v2618_v0  ;;  %v1031_v14 = vsel %vm732_vm4, %v919_v37, 0.0  ;;  %1383 = vst.msk [vmem:[%s2899_s5 + $0xe4] sm:$0xf] %vm1325_vm2, %v1558_v42  ;;  %v719_v28 = vpop.f32.mrf.mxu1 }
 0x131   :  { %v825_v48 = vadd.f32 %v824_v11, %v823_v4  ;;  %v1024_v23 = vadd.f32 %v1023_v44, %v1022_v43  ;;  %v1563_v32 = vpack.c.bf16 %v2777_v59, %v2777_v59  ;;  %v1033_v9 = vsel %vm732_vm4, %v920_v13, 0.0 }
 0x132   :  { %v834_v57 = vsel %vm732_vm4, %v2618_v0, 0.0  ;;  %v922_v35 = vmul.f32 %v2663_v27, %v2663_v27  ;;  %v1561_v20 = vpack.c.bf16 %v2780_v26, %v2780_v26  ;;  %v1564_v51 = vpack.c.bf16 %v2783_v10, %v2783_v10 }
 0x133   :  { %v1026_v61 = vadd.f32 %v1025_v47, %v1024_v23  ;;  %v827_v6 = vadd.f32 %v826_v8, %v825_v48  ;;  %1388 = vst.msk [vmem:[%s2899_s5 + $0xf8] sm:$0xf] %vm1325_vm2, %v1563_v32  ;;  %v1035_v3 = vsel %vm732_vm4, %v921_v30, 0.0  ;;  %v836_v0 = vsel %vm732_vm4, %v2663_v27, 0.0 }
 0x134   :  { %v923_v24 = vmul.f32 %v2684_v50, %v2684_v50  ;;  %1386 = vst.msk [vmem:[%s2899_s5 + $0xf0] sm:$0xf] %vm1325_vm2, %v1561_v20  ;;  %v720_v25 = vadd.f32 %v1669_v45, %v719_v28  ;;  %1389 = vst.msk [vmem:[%s2899_s5 + $0xfc] sm:$0xf] %vm1325_vm2, %v1564_v51  ;;  %v924_v27 = vmul.f32 %v2659_v53, %v2659_v53  ;;  %v1037_v11 = vsel %vm732_vm4, %v922_v35, 0.0 }
 0x135   :  { %v829_v55 = vadd.f32 %v828_v2, %v827_v6  ;;  %v1028_v15 = vadd.f32 %v1027_v49, %v1026_v61  ;;  %v838_v19 = vsel %vm732_vm4, %v2684_v50, 0.0  ;;  %v840_v38 = vsel %vm732_vm4, %v2659_v53, 0.0 }
 0x136   :  { %v1562_v62 = vpack.c.bf16 %v720_v25, %v720_v25  ;;  %v925_v4 = vmul.f32 %v2678_v33, %v2678_v33  ;;  %v1039_v17 = vsel %vm732_vm4, %v923_v24, 0.0  ;;  %v1041_v50 = vsel %vm732_vm4, %v924_v27, 0.0 }
 0x137   :  { %v1030_v22 = vadd.f32 %v1029_v18, %v1028_v15  ;;  %v831_v54 = vadd.f32 %v830_v21, %v829_v55  ;;  %v842_v48 = vsel %vm732_vm4, %v2678_v33, 0.0  ;;  %v926_v53 = vmul.f32 %v2729_v52, %v2729_v52 }
 0x138   :  { %1387 = vst.msk [vmem:[%s2899_s5 + $0xf4] sm:$0xf] %vm1325_vm2, %v1562_v62  ;;  %v1043_v8 = vsel %vm732_vm4, %v925_v4, 0.0  ;;  %v844_v29 = vsel %vm732_vm4, %v2729_v52, 0.0  ;;  %v927_v63 = vmul.f32 %v2746_v31, %v2746_v31  ;;  %v928_v5 = vmul.f32 %v2725_v56, %v2725_v56  ;;  %v731_v62 = vld [vmem:[%s2900_s6] sm:$0x1] }
 0x139   :  { %v833_v60 = vadd.f32 %v832_v16, %v831_v54  ;;  %v1032_v39 = vadd.f32 %v1031_v14, %v1030_v22  ;;  %v1045_v33 = vsel %vm732_vm4, %v926_v53, 0.0  ;;  %v846_v49 = vsel %vm732_vm4, %v2746_v31, 0.0 }
 0x13a   :  { %v848_v12 = vsel %vm732_vm4, %v2725_v56, 0.0  ;;  %v929_v52 = vmul.f32 %v2732_v46, %v2732_v46  ;;  %v1047_v13 = vsel %vm732_vm4, %v927_v63, 0.0  ;;  %v1049_v1 = vsel %vm732_vm4, %v928_v5, 0.0 }
 0x13b   :  { %v1034_v40 = vadd.f32 %v1033_v9, %v1032_v39  ;;  %v835_v7 = vadd.f32 %v834_v57, %v833_v60  ;;  %v850_v18 = vsel %vm732_vm4, %v2732_v46, 0.0  ;;  %v930_v31 = vmul.f32 %v2780_v26, %v2780_v26 }
 0x13c   :  { %v1051_v22 = vsel %vm732_vm4, %v929_v52, 0.0  ;;  %v852_v56 = vsel %vm732_vm4, %v2780_v26, 0.0  ;;  %v931_v54 = vmul.f32 %v720_v25, %v720_v25  ;;  %v932_v14 = vmul.f32 %v2777_v59, %v2777_v59 }
 0x13d   :  { %v837_v34 = vadd.f32 %v836_v0, %v835_v7  ;;  %v1036_v36 = vadd.f32 %v1035_v3, %v1034_v40  ;;  %v1053_v32 = vsel %vm732_vm4, %v930_v31, 0.0  ;;  %v854_v46 = vsel %vm732_vm4, %v720_v25, 0.0 }
 0x13e   :  { %v856_v28 = vsel %vm732_vm4, %v2777_v59, 0.0  ;;  %v933_v9 = vmul.f32 %v2783_v10, %v2783_v10  ;;  %v1055_v26 = vsel %vm732_vm4, %v931_v54, 0.0  ;;  %v1057_v20 = vsel %vm732_vm4, %v932_v14, 0.0 }
 0x13f   :  { %v1038_v41 = vadd.f32 %v1037_v11, %v1036_v36  ;;  %v839_v43 = vadd.f32 %v838_v19, %v837_v34  ;;  %v858_v40 = vsel %vm732_vm4, %v2783_v10, 0.0 }
 0x140   :  { %v1059_v3 = vsel %vm732_vm4, %v933_v9, 0.0 }
 0x141   :  { %v841_v44 = vadd.f32 %v840_v38, %v839_v43  ;;  %v1040_v47 = vadd.f32 %v1039_v17, %v1038_v41  ;;  %v869_v43 = vld [vmem:[%s2901_s7] sm:$0x1] }
 0x143   :  { %v1042_v23 = vadd.f32 %v1041_v50, %v1040_v47  ;;  %v843_v58 = vadd.f32 %v842_v48, %v841_v44 }
 0x145   :  { %v845_v61 = vadd.f32 %v844_v29, %v843_v58  ;;  %v1044_v6 = vadd.f32 %v1043_v8, %v1042_v23 }
 0x147   :  { %v1046_v2 = vadd.f32 %v1045_v33, %v1044_v6  ;;  %v847_v37 = vadd.f32 %v846_v49, %v845_v61 }
 0x149   :  { %v849_v55 = vadd.f32 %v848_v12, %v847_v37  ;;  %v1048_v15 = vadd.f32 %v1047_v13, %v1046_v2 }
 0x14b   :  { %v1050_v21 = vadd.f32 %v1049_v1, %v1048_v15  ;;  %v851_v42 = vadd.f32 %v850_v18, %v849_v55 }
 0x14d   :  { %v853_v16 = vadd.f32 %v852_v56, %v851_v42  ;;  %v1052_v30 = vadd.f32 %v1051_v22, %v1050_v21 }
 0x14f   :  { %v1054_v60 = vadd.f32 %v1053_v32, %v1052_v30  ;;  %v855_v39 = vadd.f32 %v854_v46, %v853_v16 }
 0x151   :  { %v857_v57 = vadd.f32 %v856_v28, %v855_v39  ;;  %v1056_v35 = vadd.f32 %v1055_v26, %v1054_v60 }
 0x153   :  { %v859_v7 = vadd.f32 %v858_v40, %v857_v57  ;;  %v1058_v51 = vadd.f32 %v1057_v20, %v1056_v35 }
 0x155   :  { %v860_v0 = vrot.slane %v859_v7, 4  ;;  %v1060_v24 = vadd.f32 %v1059_v3, %v1058_v51 }
 0x157   :  { %v861_v45 = vadd.f32 %v860_v0, %v859_v7  ;;  %v1061_v59 = vrot.slane %v1060_v24, 4 }
 0x159   :  { %v862_v25 = vrot.slane %v861_v45, 2  ;;  %v1062_v34 = vadd.f32 %v1061_v59, %v1060_v24 }
 0x15b   :  { %v863_v36 = vadd.f32 %v862_v25, %v861_v45  ;;  %v1063_v27 = vrot.slane %v1062_v34, 2 }
 0x15d   :  { %v864_v11 = vrot.slane %v863_v36, 1  ;;  %v1064_v19 = vadd.f32 %v1063_v27, %v1062_v34 }
 0x15f   :  { %v865_v41 = vadd.f32 %v864_v11, %v863_v36  ;;  %v1065_v10 = vrot.slane %v1064_v19, 1 }
 0x161   :  { %v866_v38 = vadd.f32 %v865_v41, %v731_v62  ;;  %v1066_v4 = vadd.f32 %v1065_v10, %v1064_v19 }
 0x163   :  { %868 = vst.msk [vmem:[%s2900_s6] sm:$0x1] %vm28_vm3, %v866_v38  ;;  %v1067_v17 = vadd.f32 %v1066_v4, %v869_v43 }
 0x165   :  { %1068 = vst.msk [vmem:[%s2901_s7] sm:$0x1] %vm28_vm3, %v1067_v17 }

// kernel: conv_block_forward.5
= control target key start
LH: loop header
LB: loop body
LE: loop exit
PB: predicated region body
PF: predicated region fallthrough
CT: control target
= control target key end

     0   :  { %s3594_s18 = smov 0   ;;  %s3596_s19 = smov 0   ;;  %s4672_s0 = inlined_call_operand.vmem [shape: bf16[2,16,16,8], index: 0, kind: input, shape index: {}]   ;;  %s4673_s1 = inlined_call_operand.vmem [shape: f32[1,8], index: 1, kind: input, shape index: {}]   ;;  %s4674_s2 = inlined_call_operand.vmem [shape: f32[1,8], index: 2, kind: input, shape index: {}]   ;;  %s4675_s3 = inlined_call_operand.vmem [shape: bf16[8,36], index: 3, kind: input, shape index: {}]   ;;  %s4676_s4 = inlined_call_operand.vmem [shape: f32[1,4], index: 4, kind: input, shape index: {}]   ;;  %s4677_s5 = inlined_call_operand.vmem [shape: f32[2,16,16,4], index: 5, kind: output, shape index: {}]  }
   0x1   :  { %s3598_s20 = smov 0   ;;  %s3600_s21 = smov 0  }
   0x2   :  { %s3602_s22 = smov 0  }
   0x3 LB: > { %s24_s23 = sadd.s32 1, %s3545_s20  ;;  %s27_s24 = sadd.s32 1, %s3549_s21  ;;  %s3553_s22 = sphi %s3602_s22, %s15_s22   ;;  %s3549_s21 = sphi %s3600_s21, %s4683_s21   ;;  %s3545_s20 = sphi %s3598_s20, %s4682_s20   ;;  %s3541_s19 = sphi %s3596_s19, %s4681_s19   ;;  %s3537_s18 = sphi %s3594_s18, %s4680_s18  }
   0x4   : > { %p25_p0 = scmp.ge.s32.totalorder %s24_s23, 2  ;;  %p3163_p1 = scmp.ge.s32.totalorder %s3553_s22, 1 }
   0x5   : > { %p201_p2 = scmp.lt.s32.totalorder %s3553_s22, 5 }
   0x6   : > { %s4685_s23 = smov (%p25_p0, %s24_s23), 0  ;;  %s4687_s24 = smov (!%p25_p0, %s27_s24), %s3549_s21 }
   0x7   : > { %p202_p3 = pnand %p3163_p1, %p201_p2  ;;  %p29_p4 = scmp.ge.s32.totalorder %s4687_s24, 2 }
   0x8   : > { %p234_p5 = scmp.lt.s32.totalorder (!%p202_p3), %s3541_s19, 1  ;;  %s3303_s27 = sshll.u32 (!%p202_p3), %s3537_s18, 6 }
   0x9   : > { %s4689_s24 = smov (%p29_p4, %s4687_s24), 0  ;;  %205 = sbr.rel (%p202_p3) target bundleno = 848 (0x350), region = 40 }
   0xa   : > { %s3653_s28 = sshll.u32 (!%p202_p3), %s3537_s18, 3  ;;  %s3557_s10 = smov (!%p202_p3), 112  }
   0xb   : > { %p242_p6 = scmp.lt.s32.totalorder (!%p202_p3), %s3653_s28, 15  ;;  %s3672_s12 = sadd.s32 (!%p202_p3), 4294967295, %s3653_s28 }
   0xc   : > { %p258_p7 = scmp.gt.s32.totalorder (!%p202_p3), %s3672_s12, 0  ;;  %p287_p8 = scmp.ge.s32.totalorder (!%p202_p3), %s3672_s12, 0 }
   0xd   : > { %p288_p9 = scmp.lt.s32.totalorder (!%p202_p3), %s3672_s12, 16  ;;  %p3171_p10 = scmp.lt.s32.totalorder (!%p202_p3), %s3672_s12, 15 }
   0xe   : > { %v592_v0 = vld [vmem:[%s4675_s3] sm:$0xf]  ;;  %vm754_vm0 = vcmask 1043456   ;;  %vm254_vm1 = vcmask 60416   ;;  %s4691_s19 = smov (!%p234_p5, %s3541_s19), 1  ;;  %v3555_v2 = vmov 0  }
   0xf   : > { %3445 = vmatprep.subr.msk.bf16.mxu1 %vm754_vm0, %v592_v0  ;;  %v756_v1 = vsel %vm754_vm0, %v592_v0, 0  ;;  %3444 = vmatprep.subr.msk.bf16.mxu0 %vm754_vm0, %v592_v0  ;;  %409 = vst.msk [vmem:[#allocation2 + $0x50] sm:$0xf] %vm254_vm1, %v3555_v2  ;;  %255 = vst.msk [vmem:[#allocation2] sm:$0xf] %vm254_vm1, %v3555_v2  ;;  %s3296_s29 = sshll.u32 %s4691_s19, 7  ;;  %p3702_p11 = pnand %p288_p9, %p287_p8 }
  0x10   : > { %3443 = vmatpush3.bf16.msra.mxu1 %v756_v1  ;;  %256 = vst.msk [vmem:[#allocation2 + $0xc] sm:$0xf] %vm254_vm1, %v3555_v2  ;;  %306 = vst.msk [vmem:[#allocation2 + $0x10] sm:$0xf] %vm254_vm1, %v3555_v2  ;;  %3401 = vmatpush3.bf16.msra.mxu0 %v756_v1  ;;  %s3660_s7 = scalar_lea.vmem %s4672_s0, %s3296_s29  ;;  %s3168_s8 = sshll.u32 %s4691_s19, 5  ;;  %vm693_vm2 = vcmask 64512  }
  0x11   : > { %307 = vst.msk [vmem:[#allocation2 + $0x1c] sm:$0xf] %vm254_vm1, %v3555_v2  ;;  %331 = vst.msk [vmem:[#allocation2 + $0x20] sm:$0xf] %vm254_vm1, %v3555_v2  ;;  %v3666_v3 = vld [vmem:[%s4673_s1] ss:$0 sm:$0xff]  ;;  %s3669_s11 = scalar_lea.vmem %s3660_s7, %s3303_s27 }
  0x12   : > { %332 = vst.msk [vmem:[#allocation2 + $0x2c] sm:$0xf] %vm254_vm1, %v3555_v2  ;;  %357 = vst.msk [vmem:[#allocation2 + $0x30] sm:$0xf] %vm254_vm1, %v3555_v2  ;;  %v3375_v4 = vld [vmem:[%s3669_s11 + $0x20] sm:$0xff]   ;;  %s243_s13 = scalar_select %p242_p6, %s3653_s28, 15 }
  0x13   : > { %358 = vst.msk [vmem:[#allocation2 + $0x3c] sm:$0xf] %vm254_vm1, %v3555_v2  ;;  %383 = vst.msk [vmem:[#allocation2 + $0x40] sm:$0xf] %vm254_vm1, %v3555_v2  ;;  %v3376_v5 = vld [vmem:[%s3669_s11 + $0x28] sm:$0xff]   ;;  %v3337_v6 = vld [vmem:[%s3669_s11] sm:$0xff]   ;;  %v3354_v8 = vunpack.c.l.bf16 %v3375_v4  ;;  %v3355_v9 = vunpack.c.h.bf16 %v3375_v4 }
  0x14   : > { %384 = vst.msk [vmem:[#allocation2 + $0x4c] sm:$0xf] %vm254_vm1, %v3555_v2  ;;  %410 = vst.msk [vmem:[#allocation2 + $0x5c] sm:$0xf] %vm254_vm1, %v3555_v2  ;;  %v3681_v7 = vld [vmem:[%s4674_s2] ss:$0 sm:$0xff]  ;;  %v3358_v10 = vunpack.c.l.bf16 %v3376_v5  ;;  %v3359_v11 = vunpack.c.h.bf16 %v3376_v5  ;;  %v3338_v13 = vunpack.c.l.bf16 %v3337_v6  ;;  %v3339_v14 = vunpack.c.h.bf16 %v3337_v6 }
  0x15   : > { %435 = vst.msk [vmem:[#allocation2 + $0x60] sm:$0xf] %vm254_vm1, %v3555_v2  ;;  %436 = vst.msk [vmem:[#allocation2 + $0x6c] sm:$0xf] %vm254_vm1, %v3555_v2  ;;  %v3372_v12 = vld [vmem:[%s3669_s11 + $0x8] sm:$0xff]   ;;  %s3167_s16 = sshll.u32 %s243_s13, 1  ;;  %v419_v17 = vmul.f32 %v3354_v8, %v3666_v3  ;;  %v420_v18 = vmul.f32 %v3355_v9, %v3666_v3 }
  0x16   : > { %461 = vst.msk [vmem:[#allocation2 + $0x70] sm:$0xf] %vm254_vm1, %v3555_v2  ;;  %462 = vst.msk [vmem:[#allocation2 + $0x7c] sm:$0xf] %vm254_vm1, %v3555_v2  ;;  %v3342_v15 = vunpack.c.l.bf16 %v3372_v12  ;;  %v3343_v16 = vunpack.c.h.bf16 %v3372_v12  ;;  %s3688_s17 = sadd.s32 %s3168_s8, %s3167_s16  ;;  %v445_v19 = vmul.f32 %v3358_v10, %v3666_v3  ;;  %v446_v20 = vmul.f32 %v3359_v11, %v3666_v3  ;;  %v3373_v33 = vld [vmem:[%s3669_s11 + $0x10] sm:$0xff]   ;;  %v3374_v38 = vld [vmem:[%s3669_s11 + $0x18] sm:$0xff]  }
  0x17   : > { %487 = vst.msk [vmem:[#allocation2 + $0x80] sm:$0xf] %vm254_vm1, %v3555_v2  ;;  %488 = vst.msk [vmem:[#allocation2 + $0x8c] sm:$0xf] %vm254_vm1, %v3555_v2  ;;  %v315_v21 = vmul.f32 %v3338_v13, %v3666_v3  ;;  %v316_v22 = vmul.f32 %v3339_v14, %v3666_v3  ;;  %v421_v25 = vadd.f32 %v3681_v7, %v419_v17  ;;  %s259_s19 = scalar_select %p258_p7, %s3672_s12, 0  ;;  %v3377_v43 = vld [vmem:[%s3669_s11 + $0x30] sm:$0xff]   ;;  %v3346_v53 = vunpack.c.l.bf16 %v3373_v33 }
  0x18   : > { %513 = vst.msk [vmem:[#allocation2 + $0x90] sm:$0xf] %vm254_vm1, %v3555_v2  ;;  %514 = vst.msk [vmem:[#allocation2 + $0x9c] sm:$0xf] %vm254_vm1, %v3555_v2  ;;  %v341_v23 = vmul.f32 %v3342_v15, %v3666_v3  ;;  %v342_v24 = vmul.f32 %v3343_v16, %v3666_v3  ;;  %v422_v26 = vadd.f32 %v3681_v7, %v420_v18  ;;  %s3180_s25 = scalar_select %p3702_p11, 0, 1  ;;  %v3347_v54 = vunpack.c.h.bf16 %v3373_v33 }
  0x19   : > { %v447_v27 = vadd.f32 %v3681_v7, %v445_v19  ;;  %v448_v28 = vadd.f32 %v3681_v7, %v446_v20  ;;  %v317_v29 = vadd.f32 %v3681_v7, %v315_v21  ;;  %v318_v30 = vadd.f32 %v3681_v7, %v316_v22  ;;  %s4693_s19 = smov (!%p3171_p10, %s259_s19), 15  ;;  %s3729_s29 = sadd.s32 8, %s3653_s28  ;;  %v3378_v10 = vld [vmem:[%s3669_s11 + $0x38] sm:$0xff]  }
  0x1a   : > { %v343_v31 = vadd.f32 %v3681_v7, %v341_v23  ;;  %v344_v32 = vadd.f32 %v3681_v7, %v342_v24  ;;  %v423_v34 = vmax.f32 %v421_v25, 0.0  ;;  %v424_v35 = vmax.f32 %v422_v26, 0.0  ;;  %s3299_s26 = sshll.u32 %s4693_s19, 3  ;;  %p516_p12 = scmp.gt.s32.totalorder %s3729_s29, 0 }
  0x1b   : > { %v449_v36 = vmax.f32 %v447_v27, 0.0  ;;  %v450_v37 = vmax.f32 %v448_v28, 0.0  ;;  %v319_v39 = vmax.f32 %v317_v29, 0.0  ;;  %v320_v40 = vmax.f32 %v318_v30, 0.0  ;;  %s264_s27 = scalar_lea.vmem %s3660_s7, %s3299_s26  ;;  %p3229_p13 = scmp.lt.s32.totalorder %s3729_s29, 15 }
  0x1c   : > { %v345_v41 = vmax.f32 %v343_v31, 0.0  ;;  %v346_v42 = vmax.f32 %v344_v32, 0.0  ;;  %v3316_v44 = vpack.c.bf16 %v423_v34, %v423_v34  ;;  %v3317_v45 = vpack.c.bf16 %v424_v35, %v424_v35  ;;  %v3333_v55 = vld [vmem:[%s264_s27] sm:$0xff]   ;;  %p533_p0 = scmp.ge.s32.totalorder %s3729_s29, 0  ;;  %p534_p1 = scmp.lt.s32.totalorder %s3729_s29, 16 }
  0x1d   : > { %v3319_v46 = vpack.c.bf16 %v449_v36, %v449_v36  ;;  %v3722_v47 = vstv %s3180_s25  ;;  %v3320_v48 = vpack.c.bf16 %v450_v37, %v450_v37  ;;  %v3304_v49 = vpack.c.bf16 %v319_v39, %v319_v39  ;;  %s517_s28 = scalar_select %p516_p12, %s3729_s29, 0 }
  0x1e   : > { %v3305_v50 = vpack.c.bf16 %v320_v40, %v320_v40  ;;  %433 = vst.msk [vmem:[#allocation2 + $0x54] sm:$0xf] %vm254_vm1, %v3316_v44  ;;  %434 = vst.msk [vmem:[#allocation2 + $0x58] sm:$0xf] %vm254_vm1, %v3317_v45  ;;  %v3307_v51 = vpack.c.bf16 %v345_v41, %v345_v41  ;;  %v3308_v52 = vpack.c.bf16 %v346_v42, %v346_v42  ;;  %v3350_v56 = vunpack.c.l.bf16 %v3374_v38  ;;  %p3762_p2 = pnand %p534_p1, %p533_p0  ;;  %s3558_s11 = smov 120  }
  0x1f   : > { %459 = vst.msk [vmem:[#allocation2 + $0x64] sm:$0xf] %vm254_vm1, %v3319_v46  ;;  %460 = vst.msk [vmem:[#allocation2 + $0x68] sm:$0xf] %vm254_vm1, %v3320_v48  ;;  %v3351_v57 = vunpack.c.h.bf16 %v3374_v38  ;;  %v3362_v58 = vunpack.c.l.bf16 %v3377_v43  ;;  %v3363_v59 = vunpack.c.h.bf16 %v3377_v43  ;;  %v3334_v60 = vunpack.c.l.bf16 %v3333_v55  ;;  %s4695_s28 = smov (!%p3229_p13, %s517_s28), 15  ;;  %s3559_s12 = smov 108  }
  0x20   : > { %329 = vst.msk [vmem:[#allocation2 + $0x14] sm:$0xf] %vm254_vm1, %v3304_v49  ;;  %330 = vst.msk [vmem:[#allocation2 + $0x18] sm:$0xf] %vm254_vm1, %v3305_v50  ;;  %v3335_v61 = vunpack.c.h.bf16 %v3333_v55  ;;  %v367_v62 = vmul.f32 %v3346_v53, %v3666_v3  ;;  %v368_v63 = vmul.f32 %v3347_v54, %v3666_v3  ;;  %v393_v0 = vmul.f32 %v3350_v56, %v3666_v3  ;;  %s3236_s6 = scalar_select %p3762_p2, 0, 1 }
  0x21   : > { %355 = vst.msk [vmem:[#allocation2 + $0x24] sm:$0xf] %vm254_vm1, %v3307_v51  ;;  %356 = vst.msk [vmem:[#allocation2 + $0x28] sm:$0xf] %vm254_vm1, %v3308_v52  ;;  %v394_v1 = vmul.f32 %v3351_v57, %v3666_v3  ;;  %v471_v2 = vmul.f32 %v3362_v58, %v3666_v3  ;;  %v472_v4 = vmul.f32 %v3363_v59, %v3666_v3  ;;  %vm293_vm3 = vcmp.eq.s32.totalorder %v3722_v47, 1  ;;  %s3329_s8 = sshll.u32 %s4695_s28, 3 }
  0x22   : > { %v275_v5 = vmul.f32 %v3334_v60, %v3666_v3  ;;  %v276_v6 = vmul.f32 %v3335_v61, %v3666_v3  ;;  %v369_v8 = vadd.f32 %v3681_v7, %v367_v62  ;;  %v370_v9 = vadd.f32 %v3681_v7, %v368_v63  ;;  %s522_s9 = scalar_lea.vmem %s3660_s7, %s3329_s8  ;;  %s3556_s7 = smov 124  }
  0x23   : > { %v395_v11 = vadd.f32 %v3681_v7, %v393_v0  ;;  %v396_v12 = vadd.f32 %v3681_v7, %v394_v1  ;;  %v473_v13 = vadd.f32 %v3681_v7, %v471_v2  ;;  %v474_v20 = vadd.f32 %v3681_v7, %v472_v4  ;;  %v3369_v47 = vld [vmem:[%s522_s9] sm:$0xff]   ;;  %s3560_s13 = smov 116   ;;  %s3561_s14 = smov 104  }
  0x24   : > { %v283_v14 = vadd.f32 %v3681_v7, %v275_v5  ;;  %v284_v15 = vadd.f32 %v3681_v7, %v276_v6  ;;  %v371_v16 = vmax.f32 %v369_v8, 0.0  ;;  %v372_v17 = vmax.f32 %v370_v9, 0.0  ;;  %s3562_s15 = smov 100   ;;  %s3563_s16 = smov 96  }
  0x25   : > { %v3495_v18 = vld [vmem:[#allocation2 + $0x50] sm:$0xff]   ;;  %v397_v19 = vmax.f32 %v395_v11, 0.0  ;;  %v3366_v21 = vunpack.c.l.bf16 %v3378_v10  ;;  %v3367_v22 = vunpack.c.h.bf16 %v3378_v10  ;;  %v3496_v23 = vld [vmem:[#allocation2 + $0x58] sm:$0xff]   ;;  %v398_v30 = vmax.f32 %v396_v12, 0.0  ;;  %s3169_s18 = sshll.u32 %s3688_s17, 3 }
  0x26   : > { %v285_v24 = vmax.f32 %v283_v14, 0.0  ;;  %v286_v25 = vmax.f32 %v284_v15, 0.0  ;;  %v3499_v26 = vld [vmem:[#allocation2 + $0x60] sm:$0xff]   ;;  %v3310_v27 = vpack.c.bf16 %v371_v16, %v371_v16  ;;  %v3311_v28 = vpack.c.bf16 %v372_v17, %v372_v17  ;;  %3422 = vmatprep.mubr.msk.bf16.mxu1 %vm693_vm2, %v3495_v18  ;;  %v3500_v43 = vld [vmem:[#allocation2 + $0x68] sm:$0xff]   ;;  %s4578_s29 = scalar_lea.vmem %s4677_s5, %s3169_s18 }
  0x27   : > { %v3313_v29 = vpack.c.bf16 %v397_v19, %v397_v19  ;;  %v497_v31 = vmul.f32 %v3366_v21, %v3666_v3  ;;  %v498_v32 = vmul.f32 %v3367_v22, %v3666_v3  ;;  %3423 = vmatmul.mubr.msk.bf16.vlgmr.msra.gmra.mxu1 %vm693_vm2, %v3496_v23  ;;  %v3314_v37 = vpack.c.bf16 %v398_v30, %v398_v30  ;;  %v3501_v55 = vld [vmem:[#allocation2 + $0x10] sm:$0xff]   ;;  %v3502_v4 = vld [vmem:[#allocation2 + $0x18] sm:$0xff]  }
  0x28   : > { %v294_v33 = vsel %vm293_vm3, %v285_v24, 0.0  ;;  %v295_v34 = vsel %vm293_vm3, %v286_v25, 0.0  ;;  %381 = vst.msk [vmem:[#allocation2 + $0x34] sm:$0xf] %vm254_vm1, %v3310_v27  ;;  %382 = vst.msk [vmem:[#allocation2 + $0x38] sm:$0xf] %vm254_vm1, %v3311_v28  ;;  %3426 = vmatprep.mubr.msk.bf16.mxu1 %vm693_vm2, %v3499_v26  ;;  %v3370_v48 = vunpack.c.l.bf16 %v3369_v47  ;;  %v3371_v49 = vunpack.c.h.bf16 %v3369_v47 }
  0x29   : > { %v3300_v35 = vpack.c.bf16 %v294_v33, %v294_v33  ;;  %v3301_v36 = vpack.c.bf16 %v295_v34, %v295_v34  ;;  %407 = vst.msk [vmem:[#allocation2 + $0x44] sm:$0xf] %vm254_vm1, %v3313_v29  ;;  %v475_v38 = vmax.f32 %v473_v13, 0.0  ;;  %v476_v39 = vmax.f32 %v474_v20, 0.0  ;;  %408 = vst.msk [vmem:[#allocation2 + $0x48] sm:$0xf] %vm254_vm1, %v3314_v37 }
  0x2a   : > { %v499_v40 = vadd.f32 %v3681_v7, %v497_v31  ;;  %v500_v41 = vadd.f32 %v3681_v7, %v498_v32  ;;  %v527_v52 = vmul.f32 %v3370_v48, %v3666_v3  ;;  %v538_v53 = vstv %s3236_s6  ;;  %v3503_v5 = vld [vmem:[#allocation2 + $0x20] sm:$0xff]   ;;  %v3504_v9 = vld [vmem:[#allocation2 + $0x28] sm:$0xff]  }
  0x2b   : > { %304 = vst.msk [vmem:[#allocation2 + $0x4] sm:$0xf] %vm254_vm1, %v3300_v35  ;;  %305 = vst.msk [vmem:[#allocation2 + $0x8] sm:$0xf] %vm254_vm1, %v3301_v36  ;;  %v3322_v42 = vpack.c.bf16 %v475_v38, %v475_v38  ;;  %v3323_v44 = vpack.c.bf16 %v476_v39, %v476_v39  ;;  %v528_v54 = vmul.f32 %v3371_v49, %v3666_v3  ;;  %vm539_vm4 = vcmp.eq.s32.totalorder %v538_v53, 1 }
  0x2c   : > { %v501_v45 = vmax.f32 %v499_v40, 0.0  ;;  %v502_v46 = vmax.f32 %v500_v41, 0.0  ;;  %v529_v56 = vadd.f32 %v3681_v7, %v527_v52  ;;  %vm951_vm5 = vcmask 293888  }
  0x2d   : > { %485 = vst.msk [vmem:[#allocation2 + $0x74] sm:$0xf] %vm254_vm1, %v3322_v42  ;;  %486 = vst.msk [vmem:[#allocation2 + $0x78] sm:$0xf] %vm254_vm1, %v3323_v44  ;;  %v530_v57 = vadd.f32 %v3681_v7, %v528_v54  ;;  %vm1022_vm6 = vcmask 31744  }
  0x2e   : > { %v3325_v50 = vpack.c.bf16 %v501_v45, %v501_v45  ;;  %v3326_v51 = vpack.c.bf16 %v502_v46, %v502_v46  ;;  %v531_v60 = vmax.f32 %v529_v56, 0.0 }
  0x2f   : > { %3427 = vmatmul.mubr.msk.bf16.gmra.mxu1 %vm693_vm2, %v3500_v43  ;;  %v532_v61 = vmax.f32 %v530_v57, 0.0  ;;  %v3505_v10 = vld [vmem:[#allocation2 + $0x30] sm:$0xff]   ;;  %v3506_v12 = vld [vmem:[#allocation2 + $0x38] sm:$0xff]  }
  0x30   : > { %511 = vst.msk [vmem:[#allocation2 + $0x84] sm:$0xf] %vm254_vm1, %v3325_v50  ;;  %512 = vst.msk [vmem:[#allocation2 + $0x88] sm:$0xf] %vm254_vm1, %v3326_v51  ;;  %v540_v63 = vsel %vm539_vm4, %v531_v60, 0.0  ;;  %v3507_v13 = vld [vmem:[#allocation2 + $0x40] sm:$0xff]  }
  0x31   : > { %v541_v0 = vsel %vm539_vm4, %v532_v61, 0.0  ;;  %v3330_v1 = vpack.c.bf16 %v540_v63, %v540_v63  ;;  %v3508_v14 = vld [vmem:[#allocation2 + $0x48] sm:$0xff]  }
  0x32   : > { %v3497_v58 = vld [vmem:[#allocation2] sm:$0xff]   ;;  %v3498_v59 = vld [vmem:[#allocation2 + $0x8] sm:$0xff]   ;;  %v3331_v2 = vpack.c.bf16 %v541_v0, %v541_v0 }
  0x33   : > { %3402 = vmatprep.mubr.msk.bf16.mxu0 %vm693_vm2, %v3497_v58  ;;  %550 = vst.msk [vmem:[#allocation2 + $0x94] sm:$0xf] %vm254_vm1, %v3330_v1 }
  0x34   : > { %v3509_v62 = vld [vmem:[#allocation2 + $0x70] sm:$0xff]   ;;  %3403 = vmatmul.mubr.msk.bf16.vlgmr.msra.gmra.mxu0 %vm693_vm2, %v3498_v59  ;;  %v3510_v3 = vld [vmem:[#allocation2 + $0x78] sm:$0xff]   ;;  %551 = vst.msk [vmem:[#allocation2 + $0x98] sm:$0xf] %vm254_vm1, %v3331_v2 }
  0x35   : > { %3406 = vmatprep.mubr.msk.bf16.mxu0 %vm693_vm2, %v3501_v55  ;;  %3430 = vmatprep.mubr.msk.bf16.mxu1 %vm693_vm2, %v3509_v62 }
  0x37   : > { %v3511_v7 = vld [vmem:[#allocation2 + $0x80] sm:$0xff]   ;;  %3431 = vmatmul.mubr.msk.bf16.gmra.mxu1 %vm693_vm2, %v3510_v3  ;;  %v3512_v6 = vld [vmem:[#allocation2 + $0x88] sm:$0xff]  }
  0x38   : > { %3434 = vmatprep.mubr.msk.bf16.mxu1 %vm693_vm2, %v3511_v7 }
  0x3a   : > { %v3513_v8 = vld [vmem:[#allocation2 + $0x90] sm:$0xff]  }
  0x3b   : > { %v3514_v11 = vld [vmem:[#allocation2 + $0x98] sm:$0xff]  }
  0x3c   : > { %3407 = vmatmul.mubr.msk.bf16.gmra.mxu0 %vm693_vm2, %v3502_v4 }
  0x3d   : > { %3410 = vmatprep.mubr.msk.bf16.mxu0 %vm693_vm2, %v3503_v5 }
  0x3f   : > { %3435 = vmatmul.mubr.msk.bf16.gmra.mxu1 %vm693_vm2, %v3512_v6 }
  0x40   : > { %3438 = vmatprep.mubr.msk.bf16.mxu1 %vm693_vm2, %v3513_v8 }
  0x44   : > { %3411 = vmatmul.mubr.msk.bf16.gmra.mxu0 %vm693_vm2, %v3504_v9 }
  0x45   : > { %3414 = vmatprep.mubr.msk.bf16.mxu0 %vm693_vm2, %v3505_v10 }
  0x47   : > { %3439 = vmatmul.mubr.msk.bf16.gmra.mxu1 %vm693_vm2, %v3514_v11 }
  0x4c   : > { %3415 = vmatmul.mubr.msk.bf16.gmra.mxu0 %vm693_vm2, %v3506_v12 }
  0x4d   : > { %3418 = vmatprep.mubr.msk.bf16.mxu0 %vm693_vm2, %v3507_v13 }
  0x54   : > { %3419 = vmatmul.mubr.msk.bf16.gmra.mxu0 %vm693_vm2, %v3508_v14 }
  0xe7   : > { %v3424_v15 = vpop.f32.mrf.mxu1 }
  0xe8   : > { %974 = vst.msk [vmem:[#allocation3 + $0xb0] sm:$0xff] %vm951_vm5, %v3424_v15 }
  0xe9   : > { %v872_v16 = vpop.f32.mrf.mxu1 }
  0xea   : > { %972 = vst.msk [vmem:[#allocation3 + $0xa0] sm:$0xff] %vm951_vm5, %v872_v16 }
  0xeb   : > { %v3425_v17 = vpop.f32.mrf.mxu1 }
  0xec   : > { %975 = vst.msk [vmem:[#allocation3 + $0xb8] sm:$0xff] %vm951_vm5, %v3425_v17 }
  0xed   : > { %v875_v18 = vpop.f32.mrf.mxu1 }
  0xee   : > { %973 = vst.msk [vmem:[#allocation3 + $0xa8] sm:$0xff] %vm951_vm5, %v875_v18 }
  0xef   : > { %v3428_v19 = vpop.f32.mrf.mxu1  ;;  %v1074_v20 = vld [vmem:[#allocation3 + $0xb0] sm:$0xff] }
  0xf0   : > { %978 = vst.msk [vmem:[#allocation3 + $0xd0] sm:$0xff] %vm951_vm5, %v3428_v19  ;;  %1185 = vrot.lane.b32.xlu1 %v1074_v20, %s3556_s7 }
  0xf1   : > { %v888_v21 = vpop.f32.mrf.mxu1  ;;  %v1072_v29 = vld [vmem:[#allocation3 + $0xa0] sm:$0xff] }
  0xf2   : > { %976 = vst.msk [vmem:[#allocation3 + $0xc0] sm:$0xff] %vm951_vm5, %v888_v21 }
  0xf3   : > { %v3828_v22 = vld [vmem:[#allocation3 + $0xb7] sm:$0xff]  ;;  %v3429_v23 = vpop.f32.mrf.mxu1 }
  0xf4   : > { %v3404_v24 = vpop.f32.mrf.mxu0  ;;  %1897 = vrot.lane.b32.xlu1 %v1074_v20, %s3557_s10  ;;  %979 = vst.msk [vmem:[#allocation3 + $0xd8] sm:$0xff] %vm951_vm5, %v3429_v23  ;;  %v1314_v43 = vld [vmem:[#allocation3 + $0xb1] sm:$0xff] }
  0xf5   : > { %1045 = vst.msk [vmem:[#allocation4 + $0xb0] sm:$0xff] %vm1022_vm6, %v3828_v22  ;;  %v891_v25 = vpop.f32.mrf.mxu1  ;;  %v3835_v27 = vld [vmem:[#allocation3 + $0xaf] sm:$0xff]  ;;  %v3837_v28 = vld [vmem:[#allocation3 + $0xa7] sm:$0xff]  ;;  %v1075_v46 = vld [vmem:[#allocation3 + $0xb8] sm:$0xff] }
  0xf6   : > { %954 = vst.msk [vmem:[#allocation3 + $0x10] sm:$0xff] %vm951_vm5, %v3404_v24  ;;  %v792_v26 = vpop.f32.mrf.mxu0  ;;  %977 = vst.msk [vmem:[#allocation3 + $0xc8] sm:$0xff] %vm951_vm5, %v891_v25  ;;  %v1312_v56 = vld [vmem:[#allocation3 + $0xa1] sm:$0xff]  ;;  %v1313_v6 = vld [vmem:[#allocation3 + $0xa9] sm:$0xff] }
  0xf7   : > { %952 = vst.msk [vmem:[#allocation3] sm:$0xff] %vm951_vm5, %v792_v26  ;;  %v3432_v30 = vpop.f32.mrf.mxu1  ;;  %v1073_v63 = vld [vmem:[#allocation3 + $0xa8] sm:$0xff]  ;;  %v1078_v15 = vld [vmem:[#allocation3 + $0xd0] sm:$0xff] }
  0xf8   : > { %1044 = vst.msk [vmem:[#allocation4 + $0xa8] sm:$0xff] %vm1022_vm6, %v3835_v27  ;;  %1043 = vst.msk [vmem:[#allocation4 + $0xa0] sm:$0xff] %vm1022_vm6, %v3837_v28  ;;  %v3405_v31 = vpop.f32.mrf.mxu0  ;;  %1181 = vrot.lane.b32.xlu1 %v1072_v29, %s3556_s7 }
  0xf9   : > { %982 = vst.msk [vmem:[#allocation3 + $0xf0] sm:$0xff] %vm951_vm5, %v3432_v30  ;;  %955 = vst.msk [vmem:[#allocation3 + $0x18] sm:$0xff] %vm951_vm5, %v3405_v31  ;;  %v904_v32 = vpop.f32.mrf.mxu1  ;;  %v3848_v33 = vld [vmem:[#allocation3 + $0xbf] sm:$0xff] }
  0xfa   : > { %v795_v34 = vpop.f32.mrf.mxu0  ;;  %980 = vst.msk [vmem:[#allocation3 + $0xe0] sm:$0xff] %vm951_vm5, %v904_v32  ;;  %v1076_v23 = vld [vmem:[#allocation3 + $0xc0] sm:$0xff] }
  0xfb   : > { %1046 = vst.msk [vmem:[#allocation4 + $0xb8] sm:$0xff] %vm1022_vm6, %v3848_v33  ;;  %v3854_v35 = vld [vmem:[#allocation3 + $0xd7] sm:$0xff]  ;;  %v3433_v36 = vpop.f32.mrf.mxu1 }
  0xfc   : > { %953 = vst.msk [vmem:[#allocation3 + $0x8] sm:$0xff] %vm951_vm5, %v795_v34  ;;  %v3408_v37 = vpop.f32.mrf.mxu0  ;;  %1893 = vrot.lane.b32.xlu1 %v1072_v29, %s3557_s10  ;;  %983 = vst.msk [vmem:[#allocation3 + $0xf8] sm:$0xff] %vm951_vm5, %v3433_v36  ;;  %v1315_v25 = vld [vmem:[#allocation3 + $0xb9] sm:$0xff] }
  0xfd   : > { %v1054_v38 = vld [vmem:[#allocation3 + $0x10] sm:$0xff]  ;;  %1049 = vst.msk [vmem:[#allocation4 + $0xd0] sm:$0xff] %vm1022_vm6, %v3854_v35  ;;  %v3862_v39 = vld [vmem:[#allocation3 + $0xc7] sm:$0xff]  ;;  %v907_v40 = vpop.f32.mrf.mxu1  ;;  %v1079_v26 = vld [vmem:[#allocation3 + $0xd8] sm:$0xff] }
  0xfe   : > { %958 = vst.msk [vmem:[#allocation3 + $0x30] sm:$0xff] %vm951_vm5, %v3408_v37  ;;  %1145 = vrot.lane.b32.xlu0 %v1054_v38, %s3556_s7  ;;  %v808_v41 = vpop.f32.mrf.mxu0  ;;  %981 = vst.msk [vmem:[#allocation3 + $0xe8] sm:$0xff] %vm951_vm5, %v907_v40  ;;  %v3865_v42 = vld [vmem:[#allocation3 + $0xcf] sm:$0xff]  ;;  %v1316_v36 = vld [vmem:[#allocation3 + $0xc1] sm:$0xff] }
  0xff   : > { %1047 = vst.msk [vmem:[#allocation4 + $0xc0] sm:$0xff] %vm1022_vm6, %v3862_v39  ;;  %v3436_v44 = vpop.f32.mrf.mxu1  ;;  %1048 = vst.msk [vmem:[#allocation4 + $0xc8] sm:$0xff] %vm1022_vm6, %v3865_v42  ;;  %v1317_v37 = vld [vmem:[#allocation3 + $0xc9] sm:$0xff] }
 0x100   : > { %956 = vst.msk [vmem:[#allocation3 + $0x20] sm:$0xff] %vm951_vm5, %v808_v41  ;;  %v3409_v45 = vpop.f32.mrf.mxu0  ;;  %1425 = vrot.lane.b32.xlu1 %v1314_v43, %s3558_s11  ;;  %986 = vst.msk [vmem:[#allocation3 + $0x110] sm:$0xff] %vm951_vm5, %v3436_v44  ;;  %v994_v47 = vld [vmem:[#allocation3 + $0x17] sm:$0xff] }
 0x101   : > { %959 = vst.msk [vmem:[#allocation3 + $0x38] sm:$0xff] %vm951_vm5, %v3409_v45  ;;  %v920_v48 = vpop.f32.mrf.mxu1  ;;  %v3876_v49 = vld [vmem:[#allocation3 + $0xdf] sm:$0xff]  ;;  %v1294_v20 = vld [vmem:[#allocation3 + $0x11] sm:$0xff] }
 0x102   : > { %1187 = vrot.lane.b32.xlu0 %v1075_v46, %s3556_s7  ;;  %1025 = vst.msk [vmem:[#allocation4 + $0x10] sm:$0xff] %vm1022_vm6, %v994_v47  ;;  %v811_v50 = vpop.f32.mrf.mxu0  ;;  %1050 = vst.msk [vmem:[#allocation4 + $0xd8] sm:$0xff] %vm1022_vm6, %v3876_v49  ;;  %v1055_v11 = vld [vmem:[#allocation3 + $0x18] sm:$0xff]  ;;  %v1082_v38 = vld [vmem:[#allocation3 + $0xf0] sm:$0xff] }
 0x103   : > { %984 = vst.msk [vmem:[#allocation3 + $0x100] sm:$0xff] %vm951_vm5, %v920_v48  ;;  %v993_v51 = vld [vmem:[#allocation3 + $0xf] sm:$0xff]  ;;  %957 = vst.msk [vmem:[#allocation3 + $0x28] sm:$0xff] %vm951_vm5, %v811_v50  ;;  %v992_v53 = vld [vmem:[#allocation3 + $0x7] sm:$0xff]  ;;  %v3437_v1 = vpop.f32.mrf.mxu1 }
 0x104   : > { %1024 = vst.msk [vmem:[#allocation4 + $0x8] sm:$0xff] %vm1022_vm6, %v993_v51  ;;  %v3412_v52 = vpop.f32.mrf.mxu0  ;;  %2137 = vrot.lane.b32.xlu1 %v1314_v43, %s3559_s12  ;;  %1023 = vst.msk [vmem:[#allocation4] sm:$0xff] %vm1022_vm6, %v992_v53  ;;  %v1053_v21 = vld [vmem:[#allocation3 + $0x8] sm:$0xff] }
 0x105   : > { %962 = vst.msk [vmem:[#allocation3 + $0x50] sm:$0xff] %vm951_vm5, %v3412_v52  ;;  %v3888_v54 = vld [vmem:[#allocation3 + $0xe7] sm:$0xff]  ;;  %v3894_v57 = vld [vmem:[#allocation3 + $0xef] sm:$0xff]  ;;  %987 = vst.msk [vmem:[#allocation3 + $0x118] sm:$0xff] %vm951_vm5, %v3437_v1  ;;  %v923_v4 = vpop.f32.mrf.mxu1 }
 0x106   : > { %1659 = vrot.lane.b32.xlu0 %v3828_v22, %s3560_s13  ;;  %v824_v55 = vpop.f32.mrf.mxu0  ;;  %1051 = vst.msk [vmem:[#allocation4 + $0xe0] sm:$0xff] %vm1022_vm6, %v3888_v54  ;;  %1052 = vst.msk [vmem:[#allocation4 + $0xe8] sm:$0xff] %vm1022_vm6, %v3894_v57  ;;  %v1293_v24 = vld [vmem:[#allocation3 + $0x9] sm:$0xff] }
 0x107   : > { %960 = vst.msk [vmem:[#allocation3 + $0x40] sm:$0xff] %vm951_vm5, %v824_v55  ;;  %v995_v0 = vld [vmem:[#allocation3 + $0x1f] sm:$0xff]  ;;  %985 = vst.msk [vmem:[#allocation3 + $0x108] sm:$0xff] %vm951_vm5, %v923_v4  ;;  %v3440_v9 = vpop.f32.mrf.mxu1  ;;  %v1104_v48 = vld [vmem:[#allocation4 + $0xa8] sm:$0xff] }
 0x108   : > { %v3413_v58 = vpop.f32.mrf.mxu0  ;;  %1421 = vrot.lane.b32.xlu1 %v1312_v56, %s3558_s11  ;;  %v3897_v59 = vld [vmem:[#allocation3 + $0x37] sm:$0xff]  ;;  %1026 = vst.msk [vmem:[#allocation4 + $0x18] sm:$0xff] %vm1022_vm6, %v995_v0  ;;  %v1056_v34 = vld [vmem:[#allocation3 + $0x20] sm:$0xff] }
 0x109   : > { %963 = vst.msk [vmem:[#allocation3 + $0x58] sm:$0xff] %vm951_vm5, %v3413_v58  ;;  %990 = vst.msk [vmem:[#allocation3 + $0x130] sm:$0xff] %vm951_vm5, %v3440_v9  ;;  %v936_v17 = vpop.f32.mrf.mxu1  ;;  %v1298_v40 = vld [vmem:[#allocation3 + $0x31] sm:$0xff] }
 0x10a   : > { %1899 = vrot.lane.b32.xlu0 %v1075_v46, %s3557_s10  ;;  %1029 = vst.msk [vmem:[#allocation4 + $0x30] sm:$0xff] %vm1022_vm6, %v3897_v59  ;;  %v827_v60 = vpop.f32.mrf.mxu0  ;;  %v3906_v61 = vld [vmem:[#allocation3 + $0x27] sm:$0xff]  ;;  %v3908_v62 = vld [vmem:[#allocation3 + $0x2f] sm:$0xff]  ;;  %v1059_v41 = vld [vmem:[#allocation3 + $0x38] sm:$0xff] }
 0x10b   : > { %961 = vst.msk [vmem:[#allocation3 + $0x48] sm:$0xff] %vm951_vm5, %v827_v60  ;;  %988 = vst.msk [vmem:[#allocation3 + $0x120] sm:$0xff] %vm951_vm5, %v936_v17  ;;  %v1296_v44 = vld [vmem:[#allocation3 + $0x21] sm:$0xff]  ;;  %v1297_v45 = vld [vmem:[#allocation3 + $0x29] sm:$0xff] }
 0x10c   : > { %v3416_v3 = vpop.f32.mrf.mxu0  ;;  %1657 = vrot.lane.b32.xlu1 %v3835_v27, %s3560_s13  ;;  %1028 = vst.msk [vmem:[#allocation4 + $0x28] sm:$0xff] %vm1022_vm6, %v3908_v62  ;;  %1027 = vst.msk [vmem:[#allocation4 + $0x20] sm:$0xff] %vm1022_vm6, %v3906_v61  ;;  %v1058_v27 = vld [vmem:[#allocation3 + $0x30] sm:$0xff]  ;;  %v1319_v46 = vld [vmem:[#allocation3 + $0xd9] sm:$0xff] }
 0x10d   : > { %966 = vst.msk [vmem:[#allocation3 + $0x70] sm:$0xff] %vm951_vm5, %v3416_v3  ;;  %v4045_v3 = vld [vmem:[#allocation3 + $0xf1] sm:$0xff] }
 0x10e   : > { %1183 = vrot.lane.b32.xlu0 %v1073_v63, %s3556_s7  ;;  %v840_v2 = vpop.f32.mrf.mxu0  ;;  %v3919_v7 = vld [vmem:[#allocation3 + $0x3f] sm:$0xff]  ;;  %v1559_v0 = vld [vmem:[#allocation3 + $0xf7] sm:$0xff] }
 0x10f   : > { %964 = vst.msk [vmem:[#allocation3 + $0x60] sm:$0xff] %vm951_vm5, %v840_v2  ;;  %v1105_v4 = vld [vmem:[#allocation4 + $0xb0] sm:$0xff] }
 0x110   : > { %1030 = vst.msk [vmem:[#allocation4 + $0x38] sm:$0xff] %vm1022_vm6, %v3919_v7  ;;  %v3417_v5 = vpop.f32.mrf.mxu0  ;;  %2133 = vrot.lane.b32.xlu1 %v1312_v56, %s3559_s12  ;;  %v3927_v8 = vld [vmem:[#allocation3 + $0x57] sm:$0xff] }
 0x111   : > { %967 = vst.msk [vmem:[#allocation3 + $0x78] sm:$0xff] %vm951_vm5, %v3417_v5 }
 0x112   : > { %1423 = vrot.lane.b32.xlu0 %v1313_v6, %s3558_s11  ;;  %1033 = vst.msk [vmem:[#allocation4 + $0x50] sm:$0xff] %vm1022_vm6, %v3927_v8  ;;  %v843_v10 = vpop.f32.mrf.mxu0  ;;  %v3935_v12 = vld [vmem:[#allocation3 + $0x4f] sm:$0xff]  ;;  %v3937_v13 = vld [vmem:[#allocation3 + $0x47] sm:$0xff] }
 0x113   : > { %965 = vst.msk [vmem:[#allocation3 + $0x68] sm:$0xff] %vm951_vm5, %v843_v10  ;;  %v1799_v10 = vld [vmem:[#allocation3 + $0xf8] sm:$0xff] }
 0x114   : > { %v3420_v14 = vpop.f32.mrf.mxu0  ;;  %1147 = vrot.lane.b32.xlu1 %v1055_v11, %s3556_s7  ;;  %1032 = vst.msk [vmem:[#allocation4 + $0x48] sm:$0xff] %vm1022_vm6, %v3935_v12  ;;  %1031 = vst.msk [vmem:[#allocation4 + $0x40] sm:$0xff] %vm1022_vm6, %v3937_v13 }
 0x115   : > { %970 = vst.msk [vmem:[#allocation3 + $0x90] sm:$0xff] %vm951_vm5, %v3420_v14 }
 0x116   : > { %1655 = vrot.lane.b32.xlu0 %v3837_v28, %s3560_s13  ;;  %v856_v16 = vpop.f32.mrf.mxu0  ;;  %v3947_v18 = vld [vmem:[#allocation3 + $0x5f] sm:$0xff]  ;;  %v1318_v28 = vld [vmem:[#allocation3 + $0xd1] sm:$0xff] }
 0x117   : > { %968 = vst.msk [vmem:[#allocation3 + $0x80] sm:$0xff] %vm951_vm5, %v856_v16  ;;  %v1081_v16 = vld [vmem:[#allocation3 + $0xe8] sm:$0xff] }
 0x118   : > { %1034 = vst.msk [vmem:[#allocation4 + $0x58] sm:$0xff] %vm1022_vm6, %v3947_v18  ;;  %v3421_v19 = vpop.f32.mrf.mxu0  ;;  %1193 = vrot.lane.b32.xlu1 %v1078_v15, %s3556_s7  ;;  %v3975_v29 = vld [vmem:[#allocation3 + $0x77] sm:$0xff] }
 0x119   : > { %971 = vst.msk [vmem:[#allocation3 + $0x98] sm:$0xff] %vm951_vm5, %v3421_v19 }
 0x11a   : > { %1895 = vrot.lane.b32.xlu0 %v1073_v63, %s3557_s10  ;;  %1037 = vst.msk [vmem:[#allocation4 + $0x70] sm:$0xff] %vm1022_vm6, %v3975_v29  ;;  %v3980_v30 = vld [vmem:[#allocation3 + $0x67] sm:$0xff]  ;;  %v3982_v31 = vld [vmem:[#allocation3 + $0x6f] sm:$0xff]  ;;  %v859_v43 = vpop.f32.mrf.mxu0 }
 0x11b   : > { %1036 = vst.msk [vmem:[#allocation4 + $0x68] sm:$0xff] %vm1022_vm6, %v3982_v31  ;;  %1035 = vst.msk [vmem:[#allocation4 + $0x60] sm:$0xff] %vm1022_vm6, %v3980_v30 }
 0x11c   : > { %1385 = vrot.lane.b32.xlu1 %v1294_v20, %s3558_s11  ;;  %969 = vst.msk [vmem:[#allocation3 + $0x88] sm:$0xff] %vm951_vm5, %v859_v43 }
 0x11e   : > { %2135 = vrot.lane.b32.xlu0 %v1313_v6, %s3559_s12  ;;  %v3984_v32 = vld [vmem:[#allocation3 + $0x7f] sm:$0xff] }
 0x11f   : > { %1038 = vst.msk [vmem:[#allocation4 + $0x78] sm:$0xff] %vm1022_vm6, %v3984_v32 }
 0x120   : > { %1905 = vrot.lane.b32.xlu1 %v1078_v15, %s3557_s10  ;;  %v3959_v22 = vld [vmem:[#allocation3 + $0x9f] sm:$0xff]  ;;  %v4024_v51 = vld [vmem:[#allocation3 + $0x97] sm:$0xff] }
 0x121   : > { %1042 = vst.msk [vmem:[#allocation4 + $0x98] sm:$0xff] %vm1022_vm6, %v3959_v22  ;;  %1041 = vst.msk [vmem:[#allocation4 + $0x90] sm:$0xff] %vm1022_vm6, %v4024_v51  ;;  %v1060_v15 = vld [vmem:[#allocation3 + $0x40] sm:$0xff] }
 0x122   : > { %1143 = vrot.lane.b32.xlu0 %v1053_v21, %s3556_s7 }
 0x123   : > { %v4028_v53 = vld [vmem:[#allocation3 + $0x8f] sm:$0xff]  ;;  %v4032_v55 = vld [vmem:[#allocation3 + $0x87] sm:$0xff] }
 0x124   : > { %1189 = vrot.lane.b32.xlu1 %v1076_v23, %s3556_s7  ;;  %1040 = vst.msk [vmem:[#allocation4 + $0x88] sm:$0xff] %vm1022_vm6, %v4028_v53  ;;  %1039 = vst.msk [vmem:[#allocation4 + $0x80] sm:$0xff] %vm1022_vm6, %v4032_v55 }
 0x126   : > { %1383 = vrot.lane.b32.xlu0 %v1293_v24, %s3558_s11  ;;  %v1299_v24 = vld [vmem:[#allocation3 + $0x39] sm:$0xff] }
 0x128   : > { %1661 = vrot.lane.b32.xlu1 %v3848_v33, %s3560_s13  ;;  %v1077_v33 = vld [vmem:[#allocation3 + $0xc8] sm:$0xff]  ;;  %v1102_v58 = vld [vmem:[#allocation4 + $0x98] sm:$0xff] }
 0x12a   : > { %1427 = vrot.lane.b32.xlu0 %v1315_v25, %s3558_s11 }
 0x12c   : > { %1901 = vrot.lane.b32.xlu1 %v1076_v23, %s3557_s10  ;;  %v4063_v23 = vld [vmem:[#allocation3 + $0xe1] sm:$0xff] }
 0x12e   : > { %1195 = vrot.lane.b32.xlu0 %v1079_v26, %s3556_s7 }
 0x130   : > { %1153 = vrot.lane.b32.xlu1 %v1058_v27, %s3556_s7 }
 0x132   : > { %1667 = vrot.lane.b32.xlu0 %v3854_v35, %s3560_s13  ;;  %v1295_v35 = vld [vmem:[#allocation3 + $0x19] sm:$0xff] }
 0x134   : > { %1433 = vrot.lane.b32.xlu1 %v1318_v28, %s3558_s11 }
 0x136   : > { %1907 = vrot.lane.b32.xlu0 %v1079_v26, %s3557_s10  ;;  %v1103_v26 = vld [vmem:[#allocation4 + $0xa0] sm:$0xff] }
 0x138   : > { %1865 = vrot.lane.b32.xlu1 %v1058_v27, %s3557_s10 }
 0x13a   : > { %1191 = vrot.lane.b32.xlu0 %v1077_v33, %s3556_s7 }
 0x13c   : > { %1149 = vrot.lane.b32.xlu1 %v1056_v34, %s3556_s7 }
 0x13e   : > { %1387 = vrot.lane.b32.xlu0 %v1295_v35, %s3558_s11 }
 0x140   : > { %1429 = vrot.lane.b32.xlu1 %v1316_v36, %s3558_s11 }
 0x142   : > { %1431 = vrot.lane.b32.xlu0 %v1317_v37, %s3558_s11  ;;  %v1085_v37 = vld [vmem:[#allocation4 + $0x10] sm:$0xff] }
 0x144   : > { %1665 = vrot.lane.b32.xlu1 %v3865_v42, %s3560_s13  ;;  %v1057_v42 = vld [vmem:[#allocation3 + $0x28] sm:$0xff] }
 0x146   : > { %1663 = vrot.lane.b32.xlu0 %v3862_v39, %s3560_s13  ;;  %v1080_v39 = vld [vmem:[#allocation3 + $0xe0] sm:$0xff] }
 0x148   : > { %1201 = vrot.lane.b32.xlu1 %v1082_v38, %s3556_s7 }
 0x14a   : > { %1903 = vrot.lane.b32.xlu0 %v1077_v33, %s3557_s10  ;;  %v4071_v33 = vld [vmem:[#allocation3 + $0xe9] sm:$0xff] }
 0x14c   : > { %1393 = vrot.lane.b32.xlu1 %v1298_v40, %s3558_s11 }
 0x14e   : > { %1155 = vrot.lane.b32.xlu0 %v1059_v41, %s3556_s7 }
 0x150   : > { %1913 = vrot.lane.b32.xlu1 %v1082_v38, %s3557_s10 }
 0x152   : > { %1627 = vrot.lane.b32.xlu0 %v3897_v59, %s3560_s13 }
 0x154   : > { %2105 = vrot.lane.b32.xlu1 %v1298_v40, %s3559_s12 }
 0x156   : > { %1867 = vrot.lane.b32.xlu0 %v1059_v41, %s3557_s10 }
 0x158   : > { %1197 = vrot.lane.b32.xlu1 %v1080_v39, %s3556_s7 }
 0x15a   : > { %1151 = vrot.lane.b32.xlu0 %v1057_v42, %s3556_s7 }
 0x15c   : > { %1389 = vrot.lane.b32.xlu1 %v1296_v44, %s3558_s11  ;;  %v1302_v44 = vld [vmem:[#allocation3 + $0x51] sm:$0xff] }
 0x15e   : > { %1391 = vrot.lane.b32.xlu0 %v1297_v45, %s3558_s11 }
 0x160   : > { %1625 = vrot.lane.b32.xlu1 %v3908_v62, %s3560_s13  ;;  %v1084_v62 = vld [vmem:[#allocation4 + $0x8] sm:$0xff] }
 0x162   : > { %1435 = vrot.lane.b32.xlu0 %v1319_v46, %s3558_s11  ;;  %v1186_v47 = vpop.permute.xlu1 %1185 }
 0x163   : > { %v1254_v50 = vadd.f32 %v1186_v47, %v1104_v48 }
 0x164   : > { %1669 = vrot.lane.b32.xlu1 %v3876_v49, %s3560_s13  ;;  %v1062_v49 = vld [vmem:[#allocation3 + $0x50] sm:$0xff] }
 0x165   : > { %1284 = vst.msk [vmem:[#allocation4 + $0xa8] sm:$0xff] %vm1022_vm6, %v1254_v50  ;;  %v1063_v50 = vld [vmem:[#allocation3 + $0x58] sm:$0xff] }
 0x166   : > { %1623 = vrot.lane.b32.xlu0 %v3906_v61, %s3560_s13  ;;  %v4026_v52 = vpop.permute.xlu1 %1897 }
 0x168   : > { %1909 = vrot.lane.b32.xlu1 %v1080_v39, %s3557_s10  ;;  %v1108_v39 = vld [vmem:[#allocation4 + $0xc8] sm:$0xff] }
 0x16a   : > { %1863 = vrot.lane.b32.xlu0 %v1057_v42, %s3557_s10  ;;  %v1182_v56 = vpop.permute.xlu1 %1181 }
 0x16b   : > { %v1252_v59 = vadd.f32 %v1182_v56, %v1102_v58  ;;  %v1083_v58 = vld [vmem:[#allocation4] sm:$0xff] }
 0x16c   : > { %1161 = vrot.lane.b32.xlu1 %v1062_v49, %s3556_s7  ;;  %v1344_v2 = vld [vmem:[#allocation4 + $0xa8] sm:$0xff] }
 0x16d   : > { %1282 = vst.msk [vmem:[#allocation4 + $0x98] sm:$0xff] %vm1022_vm6, %v1252_v59 }
 0x16e   : > { %2103 = vrot.lane.b32.xlu0 %v1297_v45, %s3559_s12  ;;  %v4043_v60 = vpop.permute.xlu1 %1893 }
 0x170   : > { %v1146_v61 = vpop.permute.xlu0 %1145  ;;  %1441 = vrot.lane.b32.xlu1 %v4045_v3, %s3558_s11 }
 0x171   : > { %v1234_v63 = vadd.f32 %v1146_v61, %v1084_v62  ;;  %v1106_v61 = vld [vmem:[#allocation4 + $0xb8] sm:$0xff] }
 0x172   : > { %1675 = vrot.lane.b32.xlu0 %v1559_v0, %s3560_s13  ;;  %v1426_v1 = vpop.permute.xlu1 %1425 }
 0x173   : > { %1264 = vst.msk [vmem:[#allocation4 + $0x8] sm:$0xff] %vm1022_vm6, %v1234_v63  ;;  %v1494_v6 = vadd.f32 %v1426_v1, %v1344_v2  ;;  %v1300_v1 = vld [vmem:[#allocation3 + $0x41] sm:$0xff] }
 0x174   : > { %v1188_v5 = vpop.permute.xlu0 %1187  ;;  %1873 = vrot.lane.b32.xlu1 %v1062_v49, %s3557_s10  ;;  %v1342_v19 = vld [vmem:[#allocation4 + $0x98] sm:$0xff] }
 0x175   : > { %v1255_v9 = vadd.f32 %v1188_v5, %v1105_v4  ;;  %1524 = vst.msk [vmem:[#allocation4 + $0xa8] sm:$0xff] %vm1022_vm6, %v1494_v6 }
 0x176   : > { %1915 = vrot.lane.b32.xlu0 %v1799_v10, %s3557_s10  ;;  %v4055_v11 = vpop.permute.xlu1 %2137 }
 0x177   : > { %1285 = vst.msk [vmem:[#allocation4 + $0xb0] sm:$0xff] %vm1022_vm6, %v1255_v9 }
 0x178   : > { %v4057_v14 = vpop.permute.xlu0 %1659  ;;  %1157 = vrot.lane.b32.xlu1 %v1060_v15, %s3556_s7 }
 0x17a   : > { %1199 = vrot.lane.b32.xlu0 %v1081_v16, %s3556_s7  ;;  %v1422_v17 = vpop.permute.xlu1 %1421  ;;  %v1324_v46 = vld [vmem:[#allocation4 + $0x8] sm:$0xff] }
 0x17b   : > { %v1492_v21 = vadd.f32 %v1422_v17, %v1342_v19 }
 0x17c   : > { %v4061_v20 = vpop.permute.xlu0 %1899  ;;  %1437 = vrot.lane.b32.xlu1 %v4063_v23, %s3558_s11 }
 0x17d   : > { %1522 = vst.msk [vmem:[#allocation4 + $0x98] sm:$0xff] %vm1022_vm6, %v1492_v21  ;;  %v1109_v21 = vld [vmem:[#allocation4 + $0xd0] sm:$0xff] }
 0x17e   : > { %1395 = vrot.lane.b32.xlu0 %v1299_v24, %s3558_s11  ;;  %v4069_v25 = vpop.permute.xlu1 %1657  ;;  %v1345_v5 = vld [vmem:[#allocation4 + $0xb0] sm:$0xff] }
 0x180   : > { %v1184_v27 = vpop.permute.xlu0 %1183  ;;  %1629 = vrot.lane.b32.xlu1 %v3919_v7, %s3560_s13 }
 0x181   : > { %v1253_v28 = vadd.f32 %v1184_v27, %v1103_v26  ;;  %v1560_v26 = vld [vmem:[#allocation3 + $0xff] sm:$0xff] }
 0x182   : > { %1439 = vrot.lane.b32.xlu0 %v4071_v33, %s3558_s11  ;;  %v4078_v34 = vpop.permute.xlu1 %2133 }
 0x183   : > { %1283 = vst.msk [vmem:[#allocation4 + $0xa0] sm:$0xff] %vm1022_vm6, %v1253_v28  ;;  %v1301_v28 = vld [vmem:[#allocation3 + $0x49] sm:$0xff] }
 0x184   : > { %v1424_v35 = vpop.permute.xlu0 %1423  ;;  %1673 = vrot.lane.b32.xlu1 %v3894_v57, %s3560_s13  ;;  %v1582_v4 = vld [vmem:[#allocation4 + $0x98] sm:$0xff] }
 0x186   : > { %1671 = vrot.lane.b32.xlu0 %v3888_v54, %s3560_s13  ;;  %v1148_v36 = vpop.permute.xlu1 %1147  ;;  %v1802_v54 = vld [vmem:[#allocation3 + $0x110] sm:$0xff] }
 0x187   : > { %v1235_v40 = vadd.f32 %v1148_v36, %v1085_v37  ;;  %v1088_v36 = vld [vmem:[#allocation4 + $0x28] sm:$0xff] }
 0x188   : > { %v4084_v38 = vpop.permute.xlu0 %1655  ;;  %1869 = vrot.lane.b32.xlu1 %v1060_v15, %s3557_s10  ;;  %v1061_v15 = vld [vmem:[#allocation3 + $0x48] sm:$0xff] }
 0x189   : > { %1265 = vst.msk [vmem:[#allocation4 + $0x10] sm:$0xff] %vm1022_vm6, %v1235_v40 }
 0x18a   : > { %v1343_v7 = vld [vmem:[#allocation4 + $0xa0] sm:$0xff]  ;;  %1911 = vrot.lane.b32.xlu0 %v1081_v16, %s3557_s10  ;;  %v1194_v42 = vpop.permute.xlu1 %1193 }
 0x18b   : > { %v1493_v41 = vadd.f32 %v1424_v35, %v1343_v7  ;;  %v1258_v57 = vadd.f32 %v1194_v42, %v1108_v39  ;;  %v1800_v7 = vld [vmem:[#allocation3 + $0x100] sm:$0xff] }
 0x18c   : > { %v4089_v43 = vpop.permute.xlu0 %1895  ;;  %1401 = vrot.lane.b32.xlu1 %v1302_v44, %s3558_s11 }
 0x18d   : > { %1523 = vst.msk [vmem:[#allocation4 + $0xa0] sm:$0xff] %vm1022_vm6, %v1493_v41  ;;  %1288 = vst.msk [vmem:[#allocation4 + $0xc8] sm:$0xff] %vm1022_vm6, %v1258_v57 }
 0x18e   : > { %2107 = vrot.lane.b32.xlu0 %v1299_v24, %s3559_s12  ;;  %v1386_v45 = vpop.permute.xlu1 %1385 }
 0x18f   : > { %v1474_v48 = vadd.f32 %v1386_v45, %v1324_v46 }
 0x190   : > { %v4095_v47 = vpop.permute.xlu0 %2135  ;;  %1921 = vrot.lane.b32.xlu1 %v1802_v54, %s3557_s10 }
 0x191   : > { %1504 = vst.msk [vmem:[#allocation4 + $0x8] sm:$0xff] %vm1022_vm6, %v1474_v48 }
 0x192   : > { %1163 = vrot.lane.b32.xlu0 %v1063_v50, %s3556_s7  ;;  %v4100_v49 = vpop.permute.xlu1 %1905 }
 0x194   : > { %v1144_v56 = vpop.permute.xlu0 %1143  ;;  %2113 = vrot.lane.b32.xlu1 %v1302_v44, %s3559_s12  ;;  %v1348_v44 = vld [vmem:[#allocation4 + $0xc8] sm:$0xff] }
 0x195   : > { %v1233_v59 = vadd.f32 %v1144_v56, %v1083_v58  ;;  %v1066_v58 = vld [vmem:[#allocation3 + $0x70] sm:$0xff] }
 0x196   : > { %1635 = vrot.lane.b32.xlu0 %v3927_v8, %s3560_s13  ;;  %v1190_v62 = vpop.permute.xlu1 %1189 }
 0x197   : > { %1263 = vst.msk [vmem:[#allocation4] sm:$0xff] %vm1022_vm6, %v1233_v59  ;;  %v1256_v0 = vadd.f32 %v1190_v62, %v1106_v61  ;;  %v1086_v62 = vld [vmem:[#allocation4 + $0x18] sm:$0xff] }
 0x198   : > { %v1384_v63 = vpop.permute.xlu0 %1383  ;;  %1397 = vrot.lane.b32.xlu1 %v1300_v1, %s3558_s11 }
 0x199   : > { %1286 = vst.msk [vmem:[#allocation4 + $0xb8] sm:$0xff] %vm1022_vm6, %v1256_v0  ;;  %v1325_v0 = vld [vmem:[#allocation4 + $0x10] sm:$0xff] }
 0x19a   : > { %1875 = vrot.lane.b32.xlu0 %v1063_v50, %s3557_s10  ;;  %v1662_v2 = vpop.permute.xlu1 %1661  ;;  %v1107_v50 = vld [vmem:[#allocation4 + $0xc0] sm:$0xff] }
 0x19b   : > { %v1732_v9 = vadd.f32 %v1662_v2, %v1582_v4 }
 0x19c   : > { %v1428_v6 = vpop.permute.xlu0 %1427  ;;  %1633 = vrot.lane.b32.xlu1 %v3935_v12, %s3560_s13 }
 0x19d   : > { %v1495_v10 = vadd.f32 %v1428_v6, %v1345_v5  ;;  %1762 = vst.msk [vmem:[#allocation4 + $0x98] sm:$0xff] %vm1022_vm6, %v1732_v9  ;;  %v1303_v6 = vld [vmem:[#allocation3 + $0x59] sm:$0xff] }
 0x19e   : > { %v1323_v16 = vld [vmem:[#allocation4] sm:$0xff]  ;;  %1159 = vrot.lane.b32.xlu0 %v1061_v15, %s3556_s7  ;;  %v1902_v19 = vpop.permute.xlu1 %1901 }
 0x19f   : > { %v1473_v17 = vadd.f32 %v1384_v63, %v1323_v16  ;;  %1525 = vst.msk [vmem:[#allocation4 + $0xb0] sm:$0xff] %vm1022_vm6, %v1495_v10 }
 0x1a0   : > { %v1196_v24 = vpop.permute.xlu0 %1195  ;;  %1677 = vrot.lane.b32.xlu1 %v1560_v26, %s3560_s13  ;;  %v1346_v9 = vld [vmem:[#allocation4 + $0xb8] sm:$0xff]  ;;  %v1584_v26 = vld [vmem:[#allocation4 + $0xa8] sm:$0xff] }
 0x1a1   : > { %1503 = vst.msk [vmem:[#allocation4] sm:$0xff] %vm1022_vm6, %v1473_v17  ;;  %v1259_v27 = vadd.f32 %v1196_v24, %v1109_v21  ;;  %v1064_v17 = vld [vmem:[#allocation3 + $0x60] sm:$0xff] }
 0x1a2   : > { %1399 = vrot.lane.b32.xlu0 %v1301_v28, %s3558_s11  ;;  %v1154_v35 = vpop.permute.xlu1 %1153 }
 0x1a3   : > { %1289 = vst.msk [vmem:[#allocation4 + $0xd0] sm:$0xff] %vm1022_vm6, %v1259_v27  ;;  %v1238_v40 = vadd.f32 %v1154_v35, %v1088_v36 }
 0x1a4   : > { %v1668_v37 = vpop.permute.xlu0 %1667  ;;  %v1822_v41 = vld [vmem:[#allocation4 + $0x98] sm:$0xff]  ;;  %1917 = vrot.lane.b32.xlu1 %v1800_v7, %s3557_s10  ;;  %v1112_v7 = vld [vmem:[#allocation4 + $0xe8] sm:$0xff] }
 0x1a5   : > { %v1972_v42 = vadd.f32 %v1902_v19, %v1822_v41  ;;  %1268 = vst.msk [vmem:[#allocation4 + $0x28] sm:$0xff] %vm1022_vm6, %v1238_v40  ;;  %v1561_v19 = vld [vmem:[#allocation3 + $0x107] sm:$0xff] }
 0x1a6   : > { %v1585_v39 = vld [vmem:[#allocation4 + $0xb0] sm:$0xff]  ;;  %1631 = vrot.lane.b32.xlu0 %v3937_v13, %s3560_s13  ;;  %v1434_v54 = vpop.permute.xlu1 %1433  ;;  %v1801_v40 = vld [vmem:[#allocation3 + $0x108] sm:$0xff] }
 0x1a7   : > { %v1735_v57 = vadd.f32 %v1668_v37, %v1585_v39  ;;  %2002 = vst.msk [vmem:[#allocation4 + $0x98] sm:$0xff] %vm1022_vm6, %v1972_v42  ;;  %v1498_v46 = vadd.f32 %v1434_v54, %v1348_v44 }
 0x1a8   : > { %v1908_v45 = vpop.permute.xlu0 %1907  ;;  %2109 = vrot.lane.b32.xlu1 %v1300_v1, %s3559_s12 }
 0x1a9   : > { %1765 = vst.msk [vmem:[#allocation4 + $0xb0] sm:$0xff] %vm1022_vm6, %v1735_v57  ;;  %1528 = vst.msk [vmem:[#allocation4 + $0xc8] sm:$0xff] %vm1022_vm6, %v1498_v46  ;;  %v4146_v57 = vld [vmem:[#allocation3 + $0x10f] sm:$0xff] }
 0x1aa   : > { %1871 = vrot.lane.b32.xlu0 %v1061_v15, %s3557_s10  ;;  %v4127_v48 = vpop.permute.xlu1 %1865  ;;  %v1089_v46 = vld [vmem:[#allocation4 + $0x30] sm:$0xff] }
 0x1ac   : > { %v1192_v56 = vpop.permute.xlu0 %1191  ;;  %1169 = vrot.lane.b32.xlu1 %v1066_v58, %s3556_s7  ;;  %v1328_v54 = vld [vmem:[#allocation4 + $0x28] sm:$0xff] }
 0x1ad   : > { %v1257_v59 = vadd.f32 %v1192_v56, %v1107_v50 }
 0x1ae   : > { %2111 = vrot.lane.b32.xlu0 %v1301_v28, %s3559_s12  ;;  %v1150_v61 = vpop.permute.xlu1 %1149  ;;  %v1583_v28 = vld [vmem:[#allocation4 + $0xa0] sm:$0xff] }
 0x1af   : > { %1287 = vst.msk [vmem:[#allocation4 + $0xc0] sm:$0xff] %vm1022_vm6, %v1257_v59  ;;  %v1236_v2 = vadd.f32 %v1150_v61, %v1086_v62 }
 0x1b0   : > { %v1825_v63 = vld [vmem:[#allocation4 + $0xb0] sm:$0xff]  ;;  %v1388_v1 = vpop.permute.xlu0 %1387  ;;  %1881 = vrot.lane.b32.xlu1 %v1066_v58, %s3557_s10  ;;  %v1067_v58 = vld [vmem:[#allocation3 + $0x78] sm:$0xff] }
 0x1b1   : > { %v1975_v4 = vadd.f32 %v1908_v45, %v1825_v63  ;;  %v1475_v5 = vadd.f32 %v1388_v1, %v1325_v0  ;;  %1266 = vst.msk [vmem:[#allocation4 + $0x18] sm:$0xff] %vm1022_vm6, %v1236_v2 }
 0x1b2   : > { %1403 = vrot.lane.b32.xlu0 %v1303_v6, %s3558_s11  ;;  %v1430_v10 = vpop.permute.xlu1 %1429 }
 0x1b3   : > { %2005 = vst.msk [vmem:[#allocation4 + $0xb0] sm:$0xff] %vm1022_vm6, %v1975_v4  ;;  %1505 = vst.msk [vmem:[#allocation4 + $0x10] sm:$0xff] %vm1022_vm6, %v1475_v5  ;;  %v1496_v16 = vadd.f32 %v1430_v10, %v1346_v9  ;;  %v1306_v4 = vld [vmem:[#allocation3 + $0x71] sm:$0xff] }
 0x1b4   : > { %v1432_v15 = vpop.permute.xlu0 %1431  ;;  %1165 = vrot.lane.b32.xlu1 %v1064_v17, %s3556_s7  ;;  %v1110_v9 = vld [vmem:[#allocation4 + $0xd8] sm:$0xff] }
 0x1b5   : > { %1526 = vst.msk [vmem:[#allocation4 + $0xb8] sm:$0xff] %vm1022_vm6, %v1496_v16  ;;  %v1087_v16 = vld [vmem:[#allocation4 + $0x20] sm:$0xff] }
 0x1b6   : > { %v1347_v21 = vld [vmem:[#allocation4 + $0xc0] sm:$0xff]  ;;  %1679 = vrot.lane.b32.xlu0 %v1561_v19, %s3560_s13  ;;  %v1666_v27 = vpop.permute.xlu1 %1665 }
 0x1b7   : > { %v1497_v24 = vadd.f32 %v1432_v15, %v1347_v21  ;;  %v1734_v36 = vadd.f32 %v1666_v27, %v1584_v26  ;;  %v1304_v19 = vld [vmem:[#allocation3 + $0x61] sm:$0xff] }
 0x1b8   : > { %v1664_v35 = vpop.permute.xlu0 %1663  ;;  %1637 = vrot.lane.b32.xlu1 %v3947_v18, %s3560_s13 }
 0x1b9   : > { %1527 = vst.msk [vmem:[#allocation4 + $0xc0] sm:$0xff] %vm1022_vm6, %v1497_v24  ;;  %v1733_v37 = vadd.f32 %v1664_v35, %v1583_v28  ;;  %1764 = vst.msk [vmem:[#allocation4 + $0xa8] sm:$0xff] %vm1022_vm6, %v1734_v36  ;;  %v4169_v24 = vld [vmem:[#allocation3 + $0x68] sm:$0xff]  ;;  %v1326_v28 = vld [vmem:[#allocation4 + $0x18] sm:$0xff] }
 0x1ba   : > { %1919 = vrot.lane.b32.xlu0 %v1801_v40, %s3557_s10  ;;  %v1202_v41 = vpop.permute.xlu1 %1201  ;;  %v1565_v1 = vld [vmem:[#allocation4 + $0x10] sm:$0xff] }
 0x1bb   : > { %1763 = vst.msk [vmem:[#allocation4 + $0xa0] sm:$0xff] %vm1022_vm6, %v1733_v37  ;;  %v1262_v42 = vadd.f32 %v1202_v41, %v1112_v7  ;;  %v1305_v40 = vld [vmem:[#allocation3 + $0x69] sm:$0xff] }
 0x1bc   : > { %v1904_v39 = vpop.permute.xlu0 %1903  ;;  %1681 = vrot.lane.b32.xlu1 %v4146_v57, %s3560_s13  ;;  %v1564_v7 = vld [vmem:[#allocation4 + $0x8] sm:$0xff] }
 0x1bd   : > { %1292 = vst.msk [vmem:[#allocation4 + $0xe8] sm:$0xff] %vm1022_vm6, %v1262_v42 }
 0x1be   : > { %2115 = vrot.lane.b32.xlu0 %v1303_v6, %s3559_s12  ;;  %v1394_v44 = vpop.permute.xlu1 %1393 }
 0x1bf   : > { %v1478_v50 = vadd.f32 %v1394_v44, %v1328_v54 }
 0x1c0   : > { %v1156_v45 = vpop.permute.xlu0 %1155  ;;  %1877 = vrot.lane.b32.xlu1 %v1064_v17, %s3557_s10  ;;  %v1824_v59 = vld [vmem:[#allocation4 + $0xa8] sm:$0xff] }
 0x1c1   : > { %v1239_v56 = vadd.f32 %v1156_v45, %v1089_v46  ;;  %1508 = vst.msk [vmem:[#allocation4 + $0x28] sm:$0xff] %vm1022_vm6, %v1478_v50  ;;  %v1974_v62 = vadd.f32 %v4100_v49, %v1824_v59  ;;  %v1586_v50 = vld [vmem:[#allocation4 + $0xb8] sm:$0xff]  ;;  %v1563_v59 = vld [vmem:[#allocation4] sm:$0xff] }
 0x1c2   : > { %v1823_v61 = vld [vmem:[#allocation4 + $0xa0] sm:$0xff]  ;;  %1171 = vrot.lane.b32.xlu0 %v1067_v58, %s3556_s7  ;;  %v4157_v0 = vpop.permute.xlu1 %1913 }
 0x1c3   : > { %v1973_v63 = vadd.f32 %v1904_v39, %v1823_v61  ;;  %1269 = vst.msk [vmem:[#allocation4 + $0x30] sm:$0xff] %vm1022_vm6, %v1239_v56  ;;  %2004 = vst.msk [vmem:[#allocation4 + $0xa8] sm:$0xff] %vm1022_vm6, %v1974_v62  ;;  %v1349_v39 = vld [vmem:[#allocation4 + $0xd0] sm:$0xff] }
 0x1c4   : > { %v1628_v2 = vpop.permute.xlu0 %1627  ;;  %1409 = vrot.lane.b32.xlu1 %v1306_v4, %s3558_s11 }
 0x1c5   : > { %2003 = vst.msk [vmem:[#allocation4 + $0xa0] sm:$0xff] %vm1022_vm6, %v1973_v63  ;;  %v1715_v5 = vadd.f32 %v1628_v2, %v1565_v1  ;;  %v4186_v63 = vld [vmem:[#allocation3 + $0x90] sm:$0xff] }
 0x1c6   : > { %1643 = vrot.lane.b32.xlu0 %v3975_v29, %s3560_s13  ;;  %v4165_v49 = vpop.permute.xlu1 %2105 }
 0x1c7   : > { %1745 = vst.msk [vmem:[#allocation4 + $0x10] sm:$0xff] %vm1022_vm6, %v1715_v5 }
 0x1c8   : > { %v1868_v6 = vpop.permute.xlu0 %1867  ;;  %2121 = vrot.lane.b32.xlu1 %v1306_v4, %s3559_s12 }
 0x1ca   : > { %1883 = vrot.lane.b32.xlu0 %v1067_v58, %s3557_s10  ;;  %v1198_v10 = vpop.permute.xlu1 %1197  ;;  %v3441_v58 = vpop.f32.mrf.mxu1 }
 0x1cb   : > { %v1260_v17 = vadd.f32 %v1198_v10, %v1110_v9  ;;  %991 = vst.msk [vmem:[#allocation3 + $0x138] sm:$0xff] %vm951_vm5, %v3441_v58  ;;  %v1111_v58 = vld [vmem:[#allocation4 + $0xe0] sm:$0xff] }
 0x1cc   : > { %v1152_v15 = vpop.permute.xlu0 %1151  ;;  %1405 = vrot.lane.b32.xlu1 %v1304_v19, %s3558_s11  ;;  %v939_v2 = vpop.f32.mrf.mxu1 }
 0x1cd   : > { %v1237_v21 = vadd.f32 %v1152_v15, %v1087_v16  ;;  %1290 = vst.msk [vmem:[#allocation4 + $0xd8] sm:$0xff] %vm1022_vm6, %v1260_v17  ;;  %v1092_v15 = vld [vmem:[#allocation4 + $0x48] sm:$0xff] }
 0x1ce   : > { %v1805_v26 = vld [vmem:[#allocation4 + $0x10] sm:$0xff]  ;;  %1167 = vrot.lane.b32.xlu0 %v4169_v24, %s3556_s7  ;;  %v1390_v35 = vpop.permute.xlu1 %1389  ;;  %989 = vst.msk [vmem:[#allocation3 + $0x128] sm:$0xff] %vm951_vm5, %v939_v2 }
 0x1cf   : > { %v1955_v27 = vadd.f32 %v1868_v6, %v1805_v26  ;;  %1267 = vst.msk [vmem:[#allocation4 + $0x20] sm:$0xff] %vm1022_vm6, %v1237_v21  ;;  %v1476_v37 = vadd.f32 %v1390_v35, %v1326_v28  ;;  %v1307_v21 = vld [vmem:[#allocation3 + $0x79] sm:$0xff]  ;;  %v1352_v35 = vld [vmem:[#allocation4 + $0xe8] sm:$0xff] }
 0x1d0   : > { %v1392_v36 = vpop.permute.xlu0 %1391  ;;  %1641 = vrot.lane.b32.xlu1 %v3982_v31, %s3560_s13 }
 0x1d1   : > { %1985 = vst.msk [vmem:[#allocation4 + $0x10] sm:$0xff] %vm1022_vm6, %v1955_v27  ;;  %1506 = vst.msk [vmem:[#allocation4 + $0x18] sm:$0xff] %vm1022_vm6, %v1476_v37 }
 0x1d2   : > { %1407 = vrot.lane.b32.xlu0 %v1305_v40, %s3558_s11  ;;  %v1626_v41 = vpop.permute.xlu1 %1625 }
 0x1d3   : > { %v1714_v44 = vadd.f32 %v1626_v41, %v1564_v7 }
 0x1d4   : > { %v1436_v42 = vpop.permute.xlu0 %1435  ;;  %2117 = vrot.lane.b32.xlu1 %v1304_v19, %s3559_s12  ;;  %v4202_v19 = vld [vmem:[#allocation3 + $0x80] sm:$0xff] }
 0x1d5   : > { %v1499_v54 = vadd.f32 %v1436_v42, %v1349_v39  ;;  %1744 = vst.msk [vmem:[#allocation4 + $0x8] sm:$0xff] %vm1022_vm6, %v1714_v44 }
 0x1d6   : > { %v1327_v45 = vld [vmem:[#allocation4 + $0x20] sm:$0xff]  ;;  %1639 = vrot.lane.b32.xlu0 %v3980_v30, %s3560_s13  ;;  %v1670_v56 = vpop.permute.xlu1 %1669 }
 0x1d7   : > { %v1477_v46 = vadd.f32 %v1392_v36, %v1327_v45  ;;  %1529 = vst.msk [vmem:[#allocation4 + $0xd0] sm:$0xff] %vm1022_vm6, %v1499_v54  ;;  %v1736_v62 = vadd.f32 %v1670_v56, %v1586_v50  ;;  %v4218_v45 = vld [vmem:[#allocation3 + $0x98] sm:$0xff] }
 0x1d8   : > { %v1624_v61 = vpop.permute.xlu0 %1623  ;;  %1177 = vrot.lane.b32.xlu1 %v4186_v63, %s3556_s7  ;;  %v1090_v50 = vld [vmem:[#allocation4 + $0x38] sm:$0xff] }
 0x1d9   : > { %1507 = vst.msk [vmem:[#allocation4 + $0x20] sm:$0xff] %vm1022_vm6, %v1477_v46  ;;  %v1713_v1 = vadd.f32 %v1624_v61, %v1563_v59  ;;  %1766 = vst.msk [vmem:[#allocation4 + $0xb8] sm:$0xff] %vm1022_vm6, %v1736_v62  ;;  %v1310_v62 = vld [vmem:[#allocation3 + $0x91] sm:$0xff] }
 0x1da   : > { %1879 = vrot.lane.b32.xlu0 %v4169_v24, %s3557_s10  ;;  %v1910_v4 = vpop.permute.xlu1 %1909 }
 0x1db   : > { %1743 = vst.msk [vmem:[#allocation4] sm:$0xff] %vm1022_vm6, %v1713_v1 }
 0x1dc   : > { %v1864_v5 = vpop.permute.xlu0 %1863  ;;  %v1804_v6 = vld [vmem:[#allocation4 + $0x8] sm:$0xff]  ;;  %1889 = vrot.lane.b32.xlu1 %v4186_v63, %s3557_s10 }
 0x1dd   : > { %v1954_v9 = vadd.f32 %v4127_v48, %v1804_v6  ;;  %v1350_v6 = vld [vmem:[#allocation4 + $0xd8] sm:$0xff] }
 0x1de   : > { %2119 = vrot.lane.b32.xlu0 %v1305_v40, %s3559_s12  ;;  %v1162_v10 = vpop.permute.xlu1 %1161  ;;  %v1589_v37 = vld [vmem:[#allocation4 + $0xd0] sm:$0xff] }
 0x1df   : > { %1984 = vst.msk [vmem:[#allocation4 + $0x8] sm:$0xff] %vm1022_vm6, %v1954_v9  ;;  %v1242_v17 = vadd.f32 %v1162_v10, %v1092_v15  ;;  %v1329_v10 = vld [vmem:[#allocation4 + $0x30] sm:$0xff] }
 0x1e0   : > { %v2104_v16 = vpop.permute.xlu0 %2103  ;;  %v1826_v26 = vld [vmem:[#allocation4 + $0xb8] sm:$0xff]  ;;  %1173 = vrot.lane.b32.xlu1 %v4202_v19, %s3556_s7 }
 0x1e1   : > { %v1976_v28 = vadd.f32 %v1910_v4, %v1826_v26  ;;  %1272 = vst.msk [vmem:[#allocation4 + $0x48] sm:$0xff] %vm1022_vm6, %v1242_v17 }
 0x1e2   : > { %v1803_v27 = vld [vmem:[#allocation4] sm:$0xff]  ;;  %1411 = vrot.lane.b32.xlu0 %v1307_v21, %s3558_s11  ;;  %v1442_v36 = vpop.permute.xlu1 %1441 }
 0x1e3   : > { %v1953_v48 = vadd.f32 %v1864_v5, %v1803_v27  ;;  %2006 = vst.msk [vmem:[#allocation4 + $0xb8] sm:$0xff] %vm1022_vm6, %v1976_v28  ;;  %v1502_v7 = vadd.f32 %v1442_v36, %v1352_v35  ;;  %v1588_v35 = vld [vmem:[#allocation4 + $0xc8] sm:$0xff] }
 0x1e4   : > { %v1676_v40 = vpop.permute.xlu0 %1675  ;;  %1645 = vrot.lane.b32.xlu1 %v3984_v32, %s3560_s13 }
 0x1e5   : > { %1983 = vst.msk [vmem:[#allocation4] sm:$0xff] %vm1022_vm6, %v1953_v48  ;;  %v1739_v41 = vadd.f32 %v1676_v40, %v1589_v37  ;;  %1532 = vst.msk [vmem:[#allocation4 + $0xe8] sm:$0xff] %vm1022_vm6, %v1502_v7  ;;  %v1587_v37 = vld [vmem:[#allocation4 + $0xc0] sm:$0xff] }
 0x1e6   : > { %2123 = vrot.lane.b32.xlu0 %v1307_v21, %s3559_s12  ;;  %v4215_v39 = vpop.permute.xlu1 %1873  ;;  %v2044_v42 = vld [vmem:[#allocation4 + $0x8] sm:$0xff]  ;;  %v1566_v21 = vld [vmem:[#allocation4 + $0x18] sm:$0xff] }
 0x1e7   : > { %1769 = vst.msk [vmem:[#allocation4 + $0xd0] sm:$0xff] %vm1022_vm6, %v1739_v41  ;;  %v2194_v54 = vadd.f32 %v4165_v49, %v2044_v42  ;;  %v1311_v49 = vld [vmem:[#allocation3 + $0x99] sm:$0xff]  ;;  %v1308_v41 = vld [vmem:[#allocation3 + $0x81] sm:$0xff] }
 0x1e8   : > { %v1916_v44 = vpop.permute.xlu0 %1915  ;;  %1885 = vrot.lane.b32.xlu1 %v4202_v19, %s3557_s10 }
 0x1e9   : > { %2224 = vst.msk [vmem:[#allocation4 + $0x8] sm:$0xff] %vm1022_vm6, %v2194_v54 }
 0x1ea   : > { %1179 = vrot.lane.b32.xlu0 %v4218_v45, %s3556_s7  ;;  %v1158_v46 = vpop.permute.xlu1 %1157 }
 0x1eb   : > { %v1240_v61 = vadd.f32 %v1158_v46, %v1090_v50  ;;  %v4246_v46 = vld [vmem:[#allocation3 + $0x88] sm:$0xff] }
 0x1ec   : > { %v2043_v56 = vld [vmem:[#allocation4] sm:$0xff]  ;;  %v1200_v59 = vpop.permute.xlu0 %1199  ;;  %1417 = vrot.lane.b32.xlu1 %v1310_v62, %s3558_s11 }
 0x1ed   : > { %v2193_v1 = vadd.f32 %v2104_v16, %v2043_v56  ;;  %v1261_v2 = vadd.f32 %v1200_v59, %v1111_v58  ;;  %1270 = vst.msk [vmem:[#allocation4 + $0x38] sm:$0xff] %vm1022_vm6, %v1240_v61  ;;  %v1332_v59 = vld [vmem:[#allocation4 + $0x48] sm:$0xff]  ;;  %v2045_v61 = vld [vmem:[#allocation4 + $0x10] sm:$0xff] }
 0x1ee   : > { %v1829_v4 = vld [vmem:[#allocation4 + $0xd0] sm:$0xff]  ;;  %1419 = vrot.lane.b32.xlu0 %v1311_v49, %s3558_s11  ;;  %v1438_v9 = vpop.permute.xlu1 %1437 }
 0x1ef   : > { %2223 = vst.msk [vmem:[#allocation4] sm:$0xff] %vm1022_vm6, %v2193_v1  ;;  %v1979_v5 = vadd.f32 %v1916_v44, %v1829_v4  ;;  %1291 = vst.msk [vmem:[#allocation4 + $0xe0] sm:$0xff] %vm1022_vm6, %v1261_v2  ;;  %v1500_v17 = vadd.f32 %v1438_v9, %v1350_v6 }
 0x1f0   : > { %v1396_v15 = vpop.permute.xlu0 %1395  ;;  %1653 = vrot.lane.b32.xlu1 %v3959_v22, %s3560_s13 }
 0x1f1   : > { %2009 = vst.msk [vmem:[#allocation4 + $0xd0] sm:$0xff] %vm1022_vm6, %v1979_v5  ;;  %v1479_v16 = vadd.f32 %v1396_v15, %v1329_v10  ;;  %1530 = vst.msk [vmem:[#allocation4 + $0xd8] sm:$0xff] %vm1022_vm6, %v1500_v17  ;;  %v1093_v17 = vld [vmem:[#allocation4 + $0x50] sm:$0xff] }
 0x1f2   : > { %1651 = vrot.lane.b32.xlu0 %v4024_v51, %s3560_s13  ;;  %v1630_v26 = vpop.permute.xlu1 %1629 }
 0x1f3   : > { %1509 = vst.msk [vmem:[#allocation4 + $0x30] sm:$0xff] %vm1022_vm6, %v1479_v16  ;;  %v1716_v28 = vadd.f32 %v1630_v26, %v1566_v21  ;;  %v2032_v16 = vld [vmem:[#allocation3 + $0xc1] sm:$0xff] }
 0x1f4   : > { %v1440_v27 = vpop.permute.xlu0 %1439  ;;  %2129 = vrot.lane.b32.xlu1 %v1310_v62, %s3559_s12 }
 0x1f5   : > { %1746 = vst.msk [vmem:[#allocation4 + $0x18] sm:$0xff] %vm1022_vm6, %v1716_v28  ;;  %v2034_v28 = vld [vmem:[#allocation3 + $0xd1] sm:$0xff] }
 0x1f6   : > { %v1351_v48 = vld [vmem:[#allocation4 + $0xe0] sm:$0xff]  ;;  %1891 = vrot.lane.b32.xlu0 %v4218_v45, %s3557_s10  ;;  %v1674_v36 = vpop.permute.xlu1 %1673 }
 0x1f7   : > { %v1501_v22 = vadd.f32 %v1440_v27, %v1351_v48  ;;  %v1738_v7 = vadd.f32 %v1674_v36, %v1588_v35 }
 0x1f8   : > { %v1672_v40 = vpop.permute.xlu0 %1671  ;;  %1413 = vrot.lane.b32.xlu1 %v1308_v41, %s3558_s11 }
 0x1f9   : > { %1531 = vst.msk [vmem:[#allocation4 + $0xe0] sm:$0xff] %vm1022_vm6, %v1501_v22  ;;  %v1737_v42 = vadd.f32 %v1672_v40, %v1587_v37  ;;  %1768 = vst.msk [vmem:[#allocation4 + $0xc8] sm:$0xff] %vm1022_vm6, %v1738_v7  ;;  %v1330_v22 = vld [vmem:[#allocation4 + $0x38] sm:$0xff]  ;;  %v1568_v40 = vld [vmem:[#allocation4 + $0x28] sm:$0xff] }
 0x1fa   : > { %2131 = vrot.lane.b32.xlu0 %v1311_v49, %s3559_s12  ;;  %v1870_v44 = vpop.permute.xlu1 %1869  ;;  %v1309_v49 = vld [vmem:[#allocation3 + $0x89] sm:$0xff] }
 0x1fb   : > { %1767 = vst.msk [vmem:[#allocation4 + $0xc0] sm:$0xff] %vm1022_vm6, %v1737_v42  ;;  %v1569_v26 = vld [vmem:[#allocation4 + $0x30] sm:$0xff]  ;;  %v1091_v42 = vld [vmem:[#allocation4 + $0x40] sm:$0xff] }
 0x1fc   : > { %v1912_v54 = vpop.permute.xlu0 %1911  ;;  %v1806_v50 = vld [vmem:[#allocation4 + $0x18] sm:$0xff]  ;;  %1649 = vrot.lane.b32.xlu1 %v4028_v53, %s3560_s13 }
 0x1fd   : > { %v1956_v56 = vadd.f32 %v1870_v44, %v1806_v50  ;;  %v2031_v50 = vld [vmem:[#allocation3 + $0xb9] sm:$0xff] }
 0x1fe   : > { %1175 = vrot.lane.b32.xlu0 %v4246_v46, %s3556_s7  ;;  %v1402_v58 = vpop.permute.xlu1 %1401 }
 0x1ff   : > { %1986 = vst.msk [vmem:[#allocation4 + $0x18] sm:$0xff] %vm1022_vm6, %v1956_v56  ;;  %v1482_v1 = vadd.f32 %v1402_v58, %v1332_v59  ;;  %v1590_v58 = vld [vmem:[#allocation4 + $0xd8] sm:$0xff] }
 0x200   : > { %v2108_v62 = vpop.permute.xlu0 %2107  ;;  %2125 = vrot.lane.b32.xlu1 %v1308_v41, %s3559_s12  ;;  %v1828_v4 = vld [vmem:[#allocation4 + $0xc8] sm:$0xff] }
 0x201   : > { %v2195_v2 = vadd.f32 %v2108_v62, %v2045_v61  ;;  %1512 = vst.msk [vmem:[#allocation4 + $0x48] sm:$0xff] %vm1022_vm6, %v1482_v1  ;;  %v1978_v6 = vadd.f32 %v4157_v0, %v1828_v4  ;;  %v2040_v1 = vld [vmem:[#allocation3 + $0x101] sm:$0xff] }
 0x202   : > { %v1827_v5 = vld [vmem:[#allocation4 + $0xc0] sm:$0xff]  ;;  %1415 = vrot.lane.b32.xlu0 %v1309_v49, %s3558_s11  ;;  %v4258_v10 = vpop.permute.xlu1 %1921 }
 0x203   : > { %v1977_v9 = vadd.f32 %v1912_v54, %v1827_v5  ;;  %2225 = vst.msk [vmem:[#allocation4 + $0x10] sm:$0xff] %vm1022_vm6, %v2195_v2  ;;  %2008 = vst.msk [vmem:[#allocation4 + $0xc8] sm:$0xff] %vm1022_vm6, %v1978_v6  ;;  %v2033_v2 = vld [vmem:[#allocation3 + $0xc9] sm:$0xff]  ;;  %v4285_v5 = vld [vmem:[#allocation3 + $0x111] sm:$0xff] }
 0x204   : > { %v1164_v15 = vpop.permute.xlu0 %1163  ;;  %2141 = vrot.lane.b32.xlu1 %v2032_v16, %s3559_s12 }
 0x205   : > { %2007 = vst.msk [vmem:[#allocation4 + $0xc0] sm:$0xff] %vm1022_vm6, %v1977_v9  ;;  %v1243_v21 = vadd.f32 %v1164_v15, %v1093_v17  ;;  %v2035_v15 = vld [vmem:[#allocation3 + $0xd9] sm:$0xff] }
 0x206   : > { %1647 = vrot.lane.b32.xlu0 %v4032_v55, %s3560_s13  ;;  %v4266_v0 = vpop.permute.xlu1 %2113 }
 0x207   : > { %1273 = vst.msk [vmem:[#allocation4 + $0x50] sm:$0xff] %vm1022_vm6, %v1243_v21 }
 0x208   : > { %v1636_v27 = vpop.permute.xlu0 %1635  ;;  %2145 = vrot.lane.b32.xlu1 %v2034_v28, %s3559_s12 }
 0x209   : > { %v1719_v48 = vadd.f32 %v1636_v27, %v1569_v26  ;;  %v2046_v26 = vld [vmem:[#allocation4 + $0x18] sm:$0xff] }
 0x20a   : > { %1887 = vrot.lane.b32.xlu0 %v4246_v46, %s3557_s10  ;;  %v1398_v35 = vpop.permute.xlu1 %1397 }
 0x20b   : > { %1749 = vst.msk [vmem:[#allocation4 + $0x30] sm:$0xff] %vm1022_vm6, %v1719_v48  ;;  %v1480_v37 = vadd.f32 %v1398_v35, %v1330_v22 }
 0x20c   : > { %v1876_v36 = vpop.permute.xlu0 %1875  ;;  %2149 = vrot.lane.b32.xlu1 %v4063_v23, %s3559_s12 }
 0x20d   : > { %1510 = vst.msk [vmem:[#allocation4 + $0x38] sm:$0xff] %vm1022_vm6, %v1480_v37 }
 0x20e   : > { %2127 = vrot.lane.b32.xlu0 %v1309_v49, %s3559_s12  ;;  %v1634_v7 = vpop.permute.xlu1 %1633  ;;  %v1567_v49 = vld [vmem:[#allocation4 + $0x20] sm:$0xff] }
 0x20f   : > { %v1718_v44 = vadd.f32 %v1634_v7, %v1568_v40  ;;  %v2039_v7 = vld [vmem:[#allocation3 + $0xf9] sm:$0xff] }
 0x210   : > { %v1160_v41 = vpop.permute.xlu0 %1159  ;;  %2153 = vrot.lane.b32.xlu1 %v4045_v3, %s3559_s12 }
 0x211   : > { %v1241_v54 = vadd.f32 %v1160_v41, %v1091_v42  ;;  %1748 = vst.msk [vmem:[#allocation4 + $0x28] sm:$0xff] %vm1022_vm6, %v1718_v44  ;;  %v1333_v44 = vld [vmem:[#allocation4 + $0x50] sm:$0xff] }
 0x212   : > { %v1809_v56 = vld [vmem:[#allocation4 + $0x30] sm:$0xff]  ;;  %2139 = vrot.lane.b32.xlu0 %v2031_v50, %s3559_s12  ;;  %v1678_v59 = vpop.permute.xlu1 %1677 }
 0x213   : > { %v1959_v23 = vadd.f32 %v1876_v36, %v1809_v56  ;;  %1271 = vst.msk [vmem:[#allocation4 + $0x40] sm:$0xff] %vm1022_vm6, %v1241_v54  ;;  %v1740_v62 = vadd.f32 %v1678_v59, %v1590_v58  ;;  %v1096_v36 = vld [vmem:[#allocation4 + $0x68] sm:$0xff]  ;;  %v1094_v58 = vld [vmem:[#allocation4 + $0x58] sm:$0xff]  ;;  %v1591_v59 = vld [vmem:[#allocation4 + $0xe0] sm:$0xff] }
 0x214   : > { %v1400_v61 = vpop.permute.xlu0 %1399  ;;  %2157 = vrot.lane.b32.xlu1 %v2040_v1, %s3559_s12 }
 0x215   : > { %1989 = vst.msk [vmem:[#allocation4 + $0x30] sm:$0xff] %vm1022_vm6, %v1959_v23  ;;  %1770 = vst.msk [vmem:[#allocation4 + $0xd8] sm:$0xff] %vm1022_vm6, %v1740_v62  ;;  %v4308_v23 = vld [vmem:[#allocation3 + $0x109] sm:$0xff] }
 0x216   : > { %2143 = vrot.lane.b32.xlu0 %v2033_v2, %s3559_s12  ;;  %v1918_v3 = vpop.permute.xlu1 %1917 }
 0x218   : > { %v1632_v4 = vpop.permute.xlu0 %1631  ;;  %v1808_v6 = vld [vmem:[#allocation4 + $0x28] sm:$0xff]  ;;  %2161 = vrot.lane.b32.xlu1 %v4285_v5, %s3559_s12 }
 0x219   : > { %v1717_v9 = vadd.f32 %v1632_v4, %v1567_v49  ;;  %v1958_v16 = vadd.f32 %v4215_v39, %v1808_v6 }
 0x21a   : > { %v1331_v17 = vld [vmem:[#allocation4 + $0x40] sm:$0xff]  ;;  %2147 = vrot.lane.b32.xlu0 %v2035_v15, %s3559_s12  ;;  %v2110_v27 = vpop.permute.xlu1 %2109 }
 0x21b   : > { %v1481_v21 = vadd.f32 %v1400_v61, %v1331_v17  ;;  %1747 = vst.msk [vmem:[#allocation4 + $0x20] sm:$0xff] %vm1022_vm6, %v1717_v9  ;;  %1988 = vst.msk [vmem:[#allocation4 + $0x28] sm:$0xff] %vm1022_vm6, %v1958_v16  ;;  %v2196_v48 = vadd.f32 %v2110_v27, %v2046_v26  ;;  %v2264_v17 = vld [vmem:[#allocation3 + $0x9f] sm:$0xff]  ;;  %v1097_v27 = vld [vmem:[#allocation4 + $0x70] sm:$0xff] }
 0x21c   : > { %v1872_v28 = vpop.permute.xlu0 %1871  ;;  %v1830_v22 = vld [vmem:[#allocation4 + $0xd8] sm:$0xff]  ;;  %2345 = vrot.lane.b32.xlu1 %v3935_v12, %s3561_s14  ;;  %v2049_v6 = vld [vmem:[#allocation4 + $0x30] sm:$0xff] }
 0x21d   : > { %1511 = vst.msk [vmem:[#allocation4 + $0x40] sm:$0xff] %vm1022_vm6, %v1481_v21  ;;  %v1980_v39 = vadd.f32 %v1918_v3, %v1830_v22  ;;  %2226 = vst.msk [vmem:[#allocation4 + $0x18] sm:$0xff] %vm1022_vm6, %v2196_v48 }
 0x21e   : > { %2151 = vrot.lane.b32.xlu0 %v4071_v33, %s3559_s12  ;;  %v1170_v35 = vpop.permute.xlu1 %1169 }
 0x21f   : > { %2010 = vst.msk [vmem:[#allocation4 + $0xd8] sm:$0xff] %vm1022_vm6, %v1980_v39  ;;  %v1246_v40 = vadd.f32 %v1170_v35, %v1096_v36 }
 0x220   : > { %v2112_v37 = vpop.permute.xlu0 %2111  ;;  %2349 = vrot.lane.b32.xlu1 %v3947_v18, %s3561_s14 }
 0x221   : > { %1276 = vst.msk [vmem:[#allocation4 + $0x68] sm:$0xff] %vm1022_vm6, %v1246_v40 }
 0x222   : > { %v1807_v41 = vld [vmem:[#allocation4 + $0x20] sm:$0xff]  ;;  %2155 = vrot.lane.b32.xlu0 %v2039_v7, %s3559_s12  ;;  %v4304_v33 = vpop.permute.xlu1 %1881  ;;  %v2048_v42 = vld [vmem:[#allocation4 + $0x28] sm:$0xff] }
 0x223   : > { %v1957_v12 = vadd.f32 %v1872_v28, %v1807_v41  ;;  %v2198_v50 = vadd.f32 %v4266_v0, %v2048_v42  ;;  %v2266_v28 = vld [vmem:[#allocation3 + $0xaf] sm:$0xff]  ;;  %v2268_v7 = vld [vmem:[#allocation3 + $0xbf] sm:$0xff] }
 0x224   : > { %v1404_v54 = vpop.permute.xlu0 %1403  ;;  %2353 = vrot.lane.b32.xlu1 %v3982_v31, %s3561_s14  ;;  %v1570_v31 = vld [vmem:[#allocation4 + $0x38] sm:$0xff] }
 0x225   : > { %1987 = vst.msk [vmem:[#allocation4 + $0x20] sm:$0xff] %vm1022_vm6, %v1957_v12  ;;  %v1483_v56 = vadd.f32 %v1404_v54, %v1333_v44  ;;  %2228 = vst.msk [vmem:[#allocation4 + $0x28] sm:$0xff] %vm1022_vm6, %v2198_v50  ;;  %v2270_v54 = vld [vmem:[#allocation3 + $0xcf] sm:$0xff] }
 0x226   : > { %2159 = vrot.lane.b32.xlu0 %v4308_v23, %s3559_s12  ;;  %v1166_v18 = vpop.permute.xlu1 %1165 }
 0x227   : > { %1513 = vst.msk [vmem:[#allocation4 + $0x50] sm:$0xff] %vm1022_vm6, %v1483_v56  ;;  %v1244_v0 = vadd.f32 %v1166_v18, %v1094_v58  ;;  %v1095_v18 = vld [vmem:[#allocation4 + $0x60] sm:$0xff] }
 0x228   : > { %v1680_v61 = vpop.permute.xlu0 %1679  ;;  %2357 = vrot.lane.b32.xlu1 %v3984_v32, %s3561_s14  ;;  %v1336_v35 = vld [vmem:[#allocation4 + $0x68] sm:$0xff] }
 0x229   : > { %v1741_v62 = vadd.f32 %v1680_v61, %v1591_v59  ;;  %1274 = vst.msk [vmem:[#allocation4 + $0x58] sm:$0xff] %vm1022_vm6, %v1244_v0  ;;  %v2272_v59 = vld [vmem:[#allocation3 + $0xdf] sm:$0xff]  ;;  %v2265_v61 = vld [vmem:[#allocation3 + $0xa7] sm:$0xff] }
 0x22a   : > { %2343 = vrot.lane.b32.xlu0 %v3937_v13, %s3561_s14  ;;  %v1638_v1 = vpop.permute.xlu1 %1637  ;;  %v1592_v13 = vld [vmem:[#allocation4 + $0xe8] sm:$0xff] }
 0x22b   : > { %1771 = vst.msk [vmem:[#allocation4 + $0xe0] sm:$0xff] %vm1022_vm6, %v1741_v62  ;;  %v1720_v49 = vadd.f32 %v1638_v1, %v1570_v31  ;;  %v1572_v31 = vld [vmem:[#allocation4 + $0x48] sm:$0xff] }
 0x22c   : > { %v2047_v2 = vld [vmem:[#allocation4 + $0x20] sm:$0xff]  ;;  %v1920_v3 = vpop.permute.xlu0 %1919  ;;  %2361 = vrot.lane.b32.xlu1 %v4028_v53, %s3561_s14 }
 0x22d   : > { %v2197_v4 = vadd.f32 %v2112_v37, %v2047_v2  ;;  %1750 = vst.msk [vmem:[#allocation4 + $0x38] sm:$0xff] %vm1022_vm6, %v1720_v49  ;;  %v2267_v49 = vld [vmem:[#allocation3 + $0xb7] sm:$0xff] }
 0x22e   : > { %2347 = vrot.lane.b32.xlu0 %v3927_v8, %s3561_s14  ;;  %v1682_v32 = vpop.permute.xlu1 %1681  ;;  %v1573_v36 = vld [vmem:[#allocation4 + $0x50] sm:$0xff] }
 0x22f   : > { %2227 = vst.msk [vmem:[#allocation4 + $0x20] sm:$0xff] %vm1022_vm6, %v2197_v4  ;;  %v1742_v15 = vadd.f32 %v1682_v32, %v1592_v13  ;;  %v1571_v32 = vld [vmem:[#allocation4 + $0x40] sm:$0xff] }
 0x230   : > { %v2116_v9 = vpop.permute.xlu0 %2115  ;;  %2365 = vrot.lane.b32.xlu1 %v2264_v17, %s3561_s14  ;;  %v1334_v50 = vld [vmem:[#allocation4 + $0x58] sm:$0xff] }
 0x231   : > { %v2199_v16 = vadd.f32 %v2116_v9, %v2049_v6  ;;  %1772 = vst.msk [vmem:[#allocation4 + $0xe8] sm:$0xff] %vm1022_vm6, %v1742_v15  ;;  %v2276_v15 = vld [vmem:[#allocation3 + $0xff] sm:$0xff] }
 0x232   : > { %v1831_v21 = vld [vmem:[#allocation4 + $0xe0] sm:$0xff]  ;;  %2351 = vrot.lane.b32.xlu0 %v3980_v30, %s3561_s14  ;;  %v1878_v53 = vpop.permute.xlu1 %1877 }
 0x233   : > { %v1981_v8 = vadd.f32 %v1920_v3, %v1831_v21  ;;  %2229 = vst.msk [vmem:[#allocation4 + $0x30] sm:$0xff] %vm1022_vm6, %v2199_v16  ;;  %v2274_v3 = vld [vmem:[#allocation3 + $0xef] sm:$0xff]  ;;  %v2269_v16 = vld [vmem:[#allocation3 + $0xc7] sm:$0xff] }
 0x234   : > { %v1172_v26 = vpop.permute.xlu0 %1171  ;;  %v1810_v22 = vld [vmem:[#allocation4 + $0x38] sm:$0xff]  ;;  %2369 = vrot.lane.b32.xlu1 %v2266_v28, %s3561_s14 }
 0x235   : > { %2011 = vst.msk [vmem:[#allocation4 + $0xe0] sm:$0xff] %vm1022_vm6, %v1981_v8  ;;  %v1247_v48 = vadd.f32 %v1172_v26, %v1097_v27  ;;  %v1960_v39 = vadd.f32 %v1878_v53, %v1810_v22  ;;  %v1100_v26 = vld [vmem:[#allocation4 + $0x88] sm:$0xff]  ;;  %v2271_v22 = vld [vmem:[#allocation3 + $0xd7] sm:$0xff] }
 0x236   : > { %2355 = vrot.lane.b32.xlu0 %v3975_v29, %s3561_s14  ;;  %v1410_v30 = vpop.permute.xlu1 %1409 }
 0x237   : > { %1277 = vst.msk [vmem:[#allocation4 + $0x70] sm:$0xff] %vm1022_vm6, %v1247_v48  ;;  %1990 = vst.msk [vmem:[#allocation4 + $0x38] sm:$0xff] %vm1022_vm6, %v1960_v39  ;;  %v1486_v40 = vadd.f32 %v1410_v30, %v1336_v35 }
 0x238   : > { %v1644_v37 = vpop.permute.xlu0 %1643  ;;  %2373 = vrot.lane.b32.xlu1 %v2268_v7, %s3561_s14  ;;  %v1832_v12 = vld [vmem:[#allocation4 + $0xe8] sm:$0xff] }
 0x239   : > { %v1723_v41 = vadd.f32 %v1644_v37, %v1573_v36  ;;  %1516 = vst.msk [vmem:[#allocation4 + $0x68] sm:$0xff] %vm1022_vm6, %v1486_v40  ;;  %v1982_v29 = vadd.f32 %v4258_v10, %v1832_v12  ;;  %v2280_v36 = vld [vmem:[#allocation3 + $0x11f] sm:$0xff]  ;;  %v2273_v37 = vld [vmem:[#allocation3 + $0xe7] sm:$0xff] }
 0x23a   : > { %2359 = vrot.lane.b32.xlu0 %v4032_v55, %s3561_s14  ;;  %v4345_v42 = vpop.permute.xlu1 %2121 }
 0x23b   : > { %1753 = vst.msk [vmem:[#allocation4 + $0x50] sm:$0xff] %vm1022_vm6, %v1723_v41  ;;  %2012 = vst.msk [vmem:[#allocation4 + $0xe8] sm:$0xff] %vm1022_vm6, %v1982_v29  ;;  %v1098_v41 = vld [vmem:[#allocation4 + $0x78] sm:$0xff] }
 0x23c   : > { %v1884_v44 = vpop.permute.xlu0 %1883  ;;  %2377 = vrot.lane.b32.xlu1 %v2270_v54, %s3561_s14 }
 0x23e   : > { %2363 = vrot.lane.b32.xlu0 %v4024_v51, %s3561_s14  ;;  %v1406_v56 = vpop.permute.xlu1 %1405  ;;  %v2050_v4 = vld [vmem:[#allocation4 + $0x38] sm:$0xff] }
 0x23f   : > { %v1484_v58 = vadd.f32 %v1406_v56, %v1334_v50  ;;  %v2275_v50 = vld [vmem:[#allocation3 + $0xf7] sm:$0xff] }
 0x240   : > { %v1168_v55 = vpop.permute.xlu0 %1167  ;;  %2381 = vrot.lane.b32.xlu1 %v2272_v59, %s3561_s14 }
 0x241   : > { %v1245_v10 = vadd.f32 %v1168_v55, %v1095_v18  ;;  %1514 = vst.msk [vmem:[#allocation4 + $0x58] sm:$0xff] %vm1022_vm6, %v1484_v58 }
 0x242   : > { %v1813_v0 = vld [vmem:[#allocation4 + $0x50] sm:$0xff]  ;;  %2367 = vrot.lane.b32.xlu0 %v2265_v61, %s3561_s14  ;;  %v1642_v51 = vpop.permute.xlu1 %1641 }
 0x243   : > { %v1963_v62 = vadd.f32 %v1884_v44, %v1813_v0  ;;  %1275 = vst.msk [vmem:[#allocation4 + $0x60] sm:$0xff] %vm1022_vm6, %v1245_v10  ;;  %v1722_v2 = vadd.f32 %v1642_v51, %v1572_v31  ;;  %v2282_v44 = vld [vmem:[#allocation3 + $0x12f] sm:$0xff]  ;;  %v2277_v31 = vld [vmem:[#allocation3 + $0x107] sm:$0xff] }
 0x244   : > { %v1408_v1 = vpop.permute.xlu0 %1407  ;;  %2385 = vrot.lane.b32.xlu1 %v2274_v3, %s3561_s14  ;;  %v2494_v61 = vld [vmem:[#allocation3 + $0x50] sm:$0xff] }
 0x245   : > { %1993 = vst.msk [vmem:[#allocation4 + $0x50] sm:$0xff] %vm1022_vm6, %v1963_v62  ;;  %1752 = vst.msk [vmem:[#allocation4 + $0x48] sm:$0xff] %vm1022_vm6, %v1722_v2  ;;  %v1101_v3 = vld [vmem:[#allocation4 + $0x90] sm:$0xff] }
 0x246   : > { %2371 = vrot.lane.b32.xlu0 %v2267_v49, %s3561_s14  ;;  %v2118_v13 = vpop.permute.xlu1 %2117  ;;  %v2496_v49 = vld [vmem:[#allocation3 + $0x60] sm:$0xff] }
 0x247   : > { %v2200_v9 = vadd.f32 %v2118_v13, %v2050_v4  ;;  %v2279_v13 = vld [vmem:[#allocation3 + $0x117] sm:$0xff] }
 0x248   : > { %v1640_v6 = vpop.permute.xlu0 %1639  ;;  %2389 = vrot.lane.b32.xlu1 %v2276_v15, %s3561_s14  ;;  %v1574_v56 = vld [vmem:[#allocation4 + $0x58] sm:$0xff] }
 0x249   : > { %v1721_v17 = vadd.f32 %v1640_v6, %v1571_v32  ;;  %2230 = vst.msk [vmem:[#allocation4 + $0x38] sm:$0xff] %vm1022_vm6, %v2200_v9 }
 0x24a   : > { %v1335_v21 = vld [vmem:[#allocation4 + $0x60] sm:$0xff]  ;;  %2375 = vrot.lane.b32.xlu0 %v2269_v16, %s3561_s14  ;;  %v1178_v53 = vpop.permute.xlu1 %1177 }
 0x24b   : > { %v1485_v8 = vadd.f32 %v1408_v1, %v1335_v21  ;;  %1751 = vst.msk [vmem:[#allocation4 + $0x40] sm:$0xff] %vm1022_vm6, %v1721_v17  ;;  %v1250_v28 = vadd.f32 %v1178_v53, %v1100_v26  ;;  %v2498_v17 = vld [vmem:[#allocation3 + $0x70] sm:$0xff]  ;;  %v2281_v16 = vld [vmem:[#allocation3 + $0x127] sm:$0xff] }
 0x24c   : > { %v1880_v27 = vpop.permute.xlu0 %1879  ;;  %v1812_v48 = vld [vmem:[#allocation4 + $0x48] sm:$0xff]  ;;  %2393 = vrot.lane.b32.xlu1 %v4146_v57, %s3561_s14  ;;  %v2053_v58 = vld [vmem:[#allocation4 + $0x50] sm:$0xff] }
 0x24d   : > { %1515 = vst.msk [vmem:[#allocation4 + $0x60] sm:$0xff] %vm1022_vm6, %v1485_v8  ;;  %v1962_v39 = vadd.f32 %v4304_v33, %v1812_v48  ;;  %1280 = vst.msk [vmem:[#allocation4 + $0x88] sm:$0xff] %vm1022_vm6, %v1250_v28  ;;  %v1337_v33 = vld [vmem:[#allocation4 + $0x70] sm:$0xff]  ;;  %v2493_v48 = vld [vmem:[#allocation3 + $0x48] sm:$0xff] }
 0x24e   : > { %2379 = vrot.lane.b32.xlu0 %v2271_v22, %s3561_s14  ;;  %v4369_v30 = vpop.permute.xlu1 %1889 }
 0x24f   : > { %1992 = vst.msk [vmem:[#allocation4 + $0x48] sm:$0xff] %vm1022_vm6, %v1962_v39 }
 0x250   : > { %v2120_v35 = vpop.permute.xlu0 %2119  ;;  %2397 = vrot.lane.b32.xlu1 %v2280_v36, %s3561_s14 }
 0x252   : > { %v1811_v40 = vld [vmem:[#allocation4 + $0x40] sm:$0xff]  ;;  %2383 = vrot.lane.b32.xlu0 %v2273_v37, %s3561_s14  ;;  %v1174_v57 = vpop.permute.xlu1 %1173 }
 0x253   : > { %v1961_v7 = vadd.f32 %v1880_v27, %v1811_v40  ;;  %v1248_v29 = vadd.f32 %v1174_v57, %v1098_v41  ;;  %v2495_v40 = vld [vmem:[#allocation3 + $0x58] sm:$0xff] }
 0x254   : > { %v1412_v12 = vpop.permute.xlu0 %1411  ;;  %2401 = vrot.lane.b32.xlu1 %v2282_v44, %s3561_s14  ;;  %v1340_v6 = vld [vmem:[#allocation4 + $0x88] sm:$0xff] }
 0x255   : > { %1991 = vst.msk [vmem:[#allocation4 + $0x40] sm:$0xff] %vm1022_vm6, %v1961_v7  ;;  %v1487_v54 = vadd.f32 %v1412_v12, %v1337_v33  ;;  %1278 = vst.msk [vmem:[#allocation4 + $0x78] sm:$0xff] %vm1022_vm6, %v1248_v29  ;;  %v2504_v12 = vld [vmem:[#allocation3 + $0xa0] sm:$0xff]  ;;  %v1576_v44 = vld [vmem:[#allocation4 + $0x68] sm:$0xff] }
 0x256   : > { %2387 = vrot.lane.b32.xlu0 %v2275_v50, %s3561_s14  ;;  %v1646_v55 = vpop.permute.xlu1 %1645  ;;  %v2052_v18 = vld [vmem:[#allocation4 + $0x48] sm:$0xff] }
 0x257   : > { %1517 = vst.msk [vmem:[#allocation4 + $0x70] sm:$0xff] %vm1022_vm6, %v1487_v54  ;;  %v1724_v10 = vadd.f32 %v1646_v55, %v1574_v56  ;;  %v2202_v0 = vadd.f32 %v4345_v42, %v2052_v18  ;;  %v1099_v56 = vld [vmem:[#allocation4 + $0x80] sm:$0xff]  ;;  %v2506_v18 = vld [vmem:[#allocation3 + $0xb0] sm:$0xff] }
 0x258   : > { %v2124_v59 = vpop.permute.xlu0 %2123  ;;  %2585 = vrot.lane.b32.xlu1 %v2494_v61, %s3562_s15 }
 0x259   : > { %v2203_v62 = vadd.f32 %v2124_v59, %v2053_v58  ;;  %1754 = vst.msk [vmem:[#allocation4 + $0x58] sm:$0xff] %vm1022_vm6, %v1724_v10  ;;  %2232 = vst.msk [vmem:[#allocation4 + $0x48] sm:$0xff] %vm1022_vm6, %v2202_v0  ;;  %v2499_v10 = vld [vmem:[#allocation3 + $0x78] sm:$0xff] }
 0x25a   : > { %2391 = vrot.lane.b32.xlu0 %v2277_v31, %s3561_s14  ;;  %v1886_v51 = vpop.permute.xlu1 %1885 }
 0x25b   : > { %2233 = vst.msk [vmem:[#allocation4 + $0x50] sm:$0xff] %vm1022_vm6, %v2203_v62 }
 0x25c   : > { %v2051_v1 = vld [vmem:[#allocation4 + $0x40] sm:$0xff]  ;;  %v1180_v2 = vpop.permute.xlu0 %1179  ;;  %2589 = vrot.lane.b32.xlu1 %v2496_v49, %s3562_s15 }
 0x25d   : > { %v2201_v4 = vadd.f32 %v2120_v35, %v2051_v1  ;;  %v1251_v42 = vadd.f32 %v1180_v2, %v1101_v3  ;;  %v2062_v3 = vld [vmem:[#allocation4 + $0x98] sm:$0xff] }
 0x25e   : > { %2395 = vrot.lane.b32.xlu0 %v2279_v13, %s3561_s14  ;;  %v1418_v32 = vpop.permute.xlu1 %1417  ;;  %v1577_v26 = vld [vmem:[#allocation4 + $0x70] sm:$0xff] }
 0x25f   : > { %2231 = vst.msk [vmem:[#allocation4 + $0x40] sm:$0xff] %vm1022_vm6, %v2201_v4  ;;  %1281 = vst.msk [vmem:[#allocation4 + $0x90] sm:$0xff] %vm1022_vm6, %v1251_v42  ;;  %v1490_v15 = vadd.f32 %v1418_v32, %v1340_v6  ;;  %v1575_v42 = vld [vmem:[#allocation4 + $0x60] sm:$0xff] }
 0x260   : > { %v1420_v9 = vpop.permute.xlu0 %1419  ;;  %v1814_v21 = vld [vmem:[#allocation4 + $0x58] sm:$0xff]  ;;  %2593 = vrot.lane.b32.xlu1 %v2498_v17, %s3562_s15 }
 0x261   : > { %v1964_v8 = vadd.f32 %v1886_v51, %v1814_v21  ;;  %1520 = vst.msk [vmem:[#allocation4 + $0x88] sm:$0xff] %vm1022_vm6, %v1490_v15 }
 0x262   : > { %2399 = vrot.lane.b32.xlu0 %v2281_v16, %s3561_s14  ;;  %v1654_v53 = vpop.permute.xlu1 %1653 }
 0x263   : > { %1994 = vst.msk [vmem:[#allocation4 + $0x58] sm:$0xff] %vm1022_vm6, %v1964_v8  ;;  %v2064_v8 = vld [vmem:[#allocation4 + $0xa8] sm:$0xff] }
 0x264   : > { %v1652_v27 = vpop.permute.xlu0 %1651  ;;  %2597 = vrot.lane.b32.xlu1 %v4202_v19, %s3562_s15  ;;  %v1338_v19 = vld [vmem:[#allocation4 + $0x78] sm:$0xff] }
 0x265   : > { %v1727_v28 = vadd.f32 %v1652_v27, %v1577_v26 }
 0x266   : > { %v1341_v22 = vld [vmem:[#allocation4 + $0x90] sm:$0xff]  ;;  %2583 = vrot.lane.b32.xlu0 %v2493_v48, %s3562_s15  ;;  %v4397_v35 = vpop.permute.xlu1 %2129 }
 0x267   : > { %v1491_v39 = vadd.f32 %v1420_v9, %v1341_v22  ;;  %1757 = vst.msk [vmem:[#allocation4 + $0x70] sm:$0xff] %vm1022_vm6, %v1727_v28 }
 0x268   : > { %v1892_v36 = vpop.permute.xlu0 %1891  ;;  %v1580_v37 = vld [vmem:[#allocation4 + $0x88] sm:$0xff]  ;;  %2601 = vrot.lane.b32.xlu1 %v4186_v63, %s3562_s15 }
 0x269   : > { %1521 = vst.msk [vmem:[#allocation4 + $0x90] sm:$0xff] %vm1022_vm6, %v1491_v39  ;;  %v1730_v7 = vadd.f32 %v4069_v25, %v1580_v37 }
 0x26a   : > { %2587 = vrot.lane.b32.xlu0 %v2495_v40, %s3562_s15  ;;  %v1414_v57 = vpop.permute.xlu1 %1413 }
 0x26b   : > { %1760 = vst.msk [vmem:[#allocation4 + $0x88] sm:$0xff] %vm1022_vm6, %v1730_v7  ;;  %v1488_v33 = vadd.f32 %v1414_v57, %v1338_v19  ;;  %v2514_v7 = vld [vmem:[#allocation3 + $0xf0] sm:$0xff]  ;;  %v2507_v57 = vld [vmem:[#allocation3 + $0xb8] sm:$0xff] }
 0x26c   : > { %v2132_v41 = vpop.permute.xlu0 %2131  ;;  %2605 = vrot.lane.b32.xlu1 %v2504_v12, %s3562_s15 }
 0x26d   : > { %1518 = vst.msk [vmem:[#allocation4 + $0x78] sm:$0xff] %vm1022_vm6, %v1488_v33  ;;  %v2068_v33 = vld [vmem:[#allocation4 + $0xc8] sm:$0xff] }
 0x26e   : > { %v1817_v29 = vld [vmem:[#allocation4 + $0x70] sm:$0xff]  ;;  %2591 = vrot.lane.b32.xlu0 %v4169_v24, %s3562_s15  ;;  %v1650_v25 = vpop.permute.xlu1 %1649  ;;  %v2054_v24 = vld [vmem:[#allocation4 + $0x58] sm:$0xff] }
 0x26f   : > { %v1967_v63 = vadd.f32 %v1892_v36, %v1817_v29  ;;  %v1726_v55 = vadd.f32 %v1650_v25, %v1576_v44 }
 0x270   : > { %v1581_v54 = vld [vmem:[#allocation4 + $0x90] sm:$0xff]  ;;  %v1176_v50 = vpop.permute.xlu0 %1175  ;;  %2609 = vrot.lane.b32.xlu1 %v2506_v18, %s3562_s15  ;;  %v2509_v18 = vld [vmem:[#allocation3 + $0xc8] sm:$0xff] }
 0x271   : > { %v1731_v58 = vadd.f32 %v4057_v14, %v1581_v54  ;;  %1997 = vst.msk [vmem:[#allocation4 + $0x70] sm:$0xff] %vm1022_vm6, %v1967_v63  ;;  %v1249_v59 = vadd.f32 %v1176_v50, %v1099_v56  ;;  %1756 = vst.msk [vmem:[#allocation4 + $0x68] sm:$0xff] %vm1022_vm6, %v1726_v55  ;;  %v2508_v14 = vld [vmem:[#allocation3 + $0xc0] sm:$0xff]  ;;  %v2518_v54 = vld [vmem:[#allocation3 + $0x110] sm:$0xff] }
 0x272   : > { %2595 = vrot.lane.b32.xlu0 %v2499_v10, %s3562_s15  ;;  %v2126_v61 = vpop.permute.xlu1 %2125  ;;  %v1820_v0 = vld [vmem:[#allocation4 + $0x88] sm:$0xff] }
 0x273   : > { %1761 = vst.msk [vmem:[#allocation4 + $0x90] sm:$0xff] %vm1022_vm6, %v1731_v58  ;;  %1279 = vst.msk [vmem:[#allocation4 + $0x80] sm:$0xff] %vm1022_vm6, %v1249_v59  ;;  %v2204_v31 = vadd.f32 %v2126_v61, %v2054_v24  ;;  %v1970_v51 = vadd.f32 %v4026_v52, %v1820_v0  ;;  %v2510_v52 = vld [vmem:[#allocation3 + $0xd0] sm:$0xff]  ;;  %v2070_v58 = vld [vmem:[#allocation4 + $0xd8] sm:$0xff] }
 0x274   : > { %v1416_v62 = vpop.permute.xlu0 %1415  ;;  %v1578_v1 = vld [vmem:[#allocation4 + $0x78] sm:$0xff]  ;;  %2613 = vrot.lane.b32.xlu1 %v2508_v14, %s3562_s15  ;;  %v2063_v59 = vld [vmem:[#allocation4 + $0xa0] sm:$0xff]  ;;  %v2522_v24 = vld [vmem:[#allocation3 + $0x130] sm:$0xff] }
 0x275   : > { %v1728_v2 = vadd.f32 %v1654_v53, %v1578_v1  ;;  %2234 = vst.msk [vmem:[#allocation4 + $0x58] sm:$0xff] %vm1022_vm6, %v2204_v31  ;;  %2000 = vst.msk [vmem:[#allocation4 + $0x88] sm:$0xff] %vm1022_vm6, %v1970_v51  ;;  %v2511_v0 = vld [vmem:[#allocation3 + $0xd8] sm:$0xff]  ;;  %v2072_v14 = vld [vmem:[#allocation4 + $0xe8] sm:$0xff] }
 0x276   : > { %2599 = vrot.lane.b32.xlu0 %v4246_v46, %s3562_s15  ;;  %v2142_v49 = vpop.permute.xlu1 %2141 }
 0x277   : > { %1758 = vst.msk [vmem:[#allocation4 + $0x78] sm:$0xff] %vm1022_vm6, %v1728_v2  ;;  %v2212_v32 = vadd.f32 %v2142_v49, %v2062_v3  ;;  %v2065_v2 = vld [vmem:[#allocation4 + $0xb0] sm:$0xff] }
 0x278   : > { %v2057_v4 = vld [vmem:[#allocation4 + $0x70] sm:$0xff]  ;;  %v1648_v13 = vpop.permute.xlu0 %1647  ;;  %v1816_v9 = vld [vmem:[#allocation4 + $0x68] sm:$0xff]  ;;  %2617 = vrot.lane.b32.xlu1 %v2510_v52, %s3562_s15 }
 0x279   : > { %v2207_v6 = vadd.f32 %v2132_v41, %v2057_v4  ;;  %v1725_v15 = vadd.f32 %v1648_v13, %v1575_v42  ;;  %v1966_v46 = vadd.f32 %v4369_v30, %v1816_v9  ;;  %2242 = vst.msk [vmem:[#allocation4 + $0x98] sm:$0xff] %vm1022_vm6, %v2212_v32  ;;  %v2512_v30 = vld [vmem:[#allocation3 + $0xe0] sm:$0xff]  ;;  %v2513_v32 = vld [vmem:[#allocation3 + $0xe8] sm:$0xff] }
 0x27a   : > { %v1339_v17 = vld [vmem:[#allocation4 + $0x80] sm:$0xff]  ;;  %2603 = vrot.lane.b32.xlu0 %v4218_v45, %s3562_s15  ;;  %v1821_v16 = vld [vmem:[#allocation4 + $0x90] sm:$0xff]  ;;  %v2146_v53 = vpop.permute.xlu1 %2145  ;;  %v2505_v45 = vld [vmem:[#allocation3 + $0xa8] sm:$0xff] }
 0x27b   : > { %2237 = vst.msk [vmem:[#allocation4 + $0x70] sm:$0xff] %vm1022_vm6, %v2207_v6  ;;  %v1489_v21 = vadd.f32 %v1416_v62, %v1339_v17  ;;  %1755 = vst.msk [vmem:[#allocation4 + $0x60] sm:$0xff] %vm1022_vm6, %v1725_v15  ;;  %v1971_v26 = vadd.f32 %v4061_v20, %v1821_v16  ;;  %v2214_v28 = vadd.f32 %v2146_v53, %v2064_v8  ;;  %v2066_v20 = vld [vmem:[#allocation4 + $0xb8] sm:$0xff]  ;;  %v2516_v4 = vld [vmem:[#allocation3 + $0x100] sm:$0xff] }
 0x27c   : > { %1996 = vst.msk [vmem:[#allocation4 + $0x68] sm:$0xff] %vm1022_vm6, %v1966_v46  ;;  %v1888_v27 = vpop.permute.xlu0 %1887  ;;  %2621 = vrot.lane.b32.xlu1 %v2512_v30, %s3562_s15  ;;  %v2060_v48 = vld [vmem:[#allocation4 + $0x88] sm:$0xff]  ;;  %v2067_v15 = vld [vmem:[#allocation4 + $0xc0] sm:$0xff]  ;;  %v2286_v53 = vld [vmem:[#allocation4 + $0x18] sm:$0xff] }
 0x27d   : > { %1519 = vst.msk [vmem:[#allocation4 + $0x80] sm:$0xff] %vm1022_vm6, %v1489_v21  ;;  %2001 = vst.msk [vmem:[#allocation4 + $0x90] sm:$0xff] %vm1022_vm6, %v1971_v26  ;;  %v2210_v22 = vadd.f32 %v4055_v11, %v2060_v48  ;;  %v2284_v52 = vld [vmem:[#allocation4 + $0x8] sm:$0xff]  ;;  %v2520_v16 = vld [vmem:[#allocation3 + $0x120] sm:$0xff] }
 0x27e   : > { %2607 = vrot.lane.b32.xlu0 %v2505_v45, %s3562_s15  ;;  %2244 = vst.msk [vmem:[#allocation4 + $0xa8] sm:$0xff] %vm1022_vm6, %v2214_v28  ;;  %v2150_v39 = vpop.permute.xlu1 %2149  ;;  %v1818_v36 = vld [vmem:[#allocation4 + $0x78] sm:$0xff]  ;;  %v2517_v8 = vld [vmem:[#allocation3 + $0x108] sm:$0xff] }
 0x27f   : > { %v2216_v40 = vadd.f32 %v2150_v39, %v2066_v20  ;;  %v1968_v19 = vadd.f32 %v4043_v60, %v1818_v36  ;;  %2240 = vst.msk [vmem:[#allocation4 + $0x88] sm:$0xff] %vm1022_vm6, %v2210_v22  ;;  %v2734_v30 = vld [vmem:[#allocation3 + $0x51] sm:$0xff]  ;;  %v2521_v48 = vld [vmem:[#allocation3 + $0x128] sm:$0xff]  ;;  %v2071_v39 = vld [vmem:[#allocation4 + $0xe0] sm:$0xff] }
 0x280   : > { %v2128_v37 = vpop.permute.xlu0 %2127  ;;  %2625 = vrot.lane.b32.xlu1 %v2514_v7, %s3562_s15  ;;  %v2288_v22 = vld [vmem:[#allocation4 + $0x28] sm:$0xff] }
 0x281   : > { %2246 = vst.msk [vmem:[#allocation4 + $0xb8] sm:$0xff] %vm1022_vm6, %v2216_v40  ;;  %1998 = vst.msk [vmem:[#allocation4 + $0x78] sm:$0xff] %vm1022_vm6, %v1968_v19  ;;  %v2738_v40 = vld [vmem:[#allocation3 + $0x71] sm:$0xff] }
 0x282   : > { %v1815_v41 = vld [vmem:[#allocation4 + $0x60] sm:$0xff]  ;;  %2611 = vrot.lane.b32.xlu0 %v2507_v57, %s3562_s15  ;;  %v2154_v12 = vpop.permute.xlu1 %2153  ;;  %v2515_v57 = vld [vmem:[#allocation3 + $0xf8] sm:$0xff] }
 0x283   : > { %v1965_v11 = vadd.f32 %v1888_v27, %v1815_v41  ;;  %v2056_v29 = vld [vmem:[#allocation4 + $0x68] sm:$0xff]  ;;  %v2218_v60 = vadd.f32 %v2154_v12, %v2068_v33  ;;  %v2069_v27 = vld [vmem:[#allocation4 + $0xd0] sm:$0xff]  ;;  %v2283_v12 = vld [vmem:[#allocation4] sm:$0xff] }
 0x284   : > { %v1579_v63 = vld [vmem:[#allocation4 + $0x80] sm:$0xff]  ;;  %v2061_v44 = vld [vmem:[#allocation4 + $0x90] sm:$0xff]  ;;  %v2140_v25 = vpop.permute.xlu0 %2139  ;;  %v2206_v50 = vadd.f32 %v4397_v35, %v2056_v29  ;;  %2633 = vrot.lane.b32.xlu1 %v2518_v54, %s3562_s15 }
 0x285   : > { %v1729_v56 = vadd.f32 %v4084_v38, %v1579_v63  ;;  %1995 = vst.msk [vmem:[#allocation4 + $0x60] sm:$0xff] %vm1022_vm6, %v1965_v11  ;;  %v2211_v55 = vadd.f32 %v2140_v25, %v2061_v44  ;;  %2248 = vst.msk [vmem:[#allocation4 + $0xc8] sm:$0xff] %vm1022_vm6, %v2218_v60  ;;  %v2290_v11 = vld [vmem:[#allocation4 + $0x38] sm:$0xff] }
 0x286   : > { %2615 = vrot.lane.b32.xlu0 %v2509_v18, %s3562_s15  ;;  %2236 = vst.msk [vmem:[#allocation4 + $0x68] sm:$0xff] %vm1022_vm6, %v2206_v50  ;;  %v2158_v35 = vpop.permute.xlu1 %2157  ;;  %v2742_v44 = vld [vmem:[#allocation3 + $0x91] sm:$0xff] }
 0x287   : > { %1759 = vst.msk [vmem:[#allocation4 + $0x80] sm:$0xff] %vm1022_vm6, %v1729_v56  ;;  %2241 = vst.msk [vmem:[#allocation4 + $0x90] sm:$0xff] %vm1022_vm6, %v2211_v55  ;;  %v2220_v10 = vadd.f32 %v2158_v35, %v2070_v58  ;;  %v2519_v60 = vld [vmem:[#allocation3 + $0x118] sm:$0xff]  ;;  %v2285_v50 = vld [vmem:[#allocation4 + $0x10] sm:$0xff] }
 0x288   : > { %v2144_v38 = vpop.permute.xlu0 %2143  ;;  %2641 = vrot.lane.b32.xlu1 %v2522_v24, %s3562_s15  ;;  %v2058_v62 = vld [vmem:[#allocation4 + $0x78] sm:$0xff]  ;;  %v2733_v35 = vld [vmem:[#allocation3 + $0x49] sm:$0xff] }
 0x289   : > { %v2213_v61 = vadd.f32 %v2144_v38, %v2063_v59  ;;  %2250 = vst.msk [vmem:[#allocation4 + $0xd8] sm:$0xff] %vm1022_vm6, %v2220_v10  ;;  %v2208_v31 = vadd.f32 %v4078_v34, %v2058_v62  ;;  %v2746_v18 = vld [vmem:[#allocation3 + $0xb1] sm:$0xff]  ;;  %v2287_v10 = vld [vmem:[#allocation4 + $0x20] sm:$0xff] }
 0x28a   : > { %2619 = vrot.lane.b32.xlu0 %v2511_v0, %s3562_s15  ;;  %v2162_v51 = vpop.permute.xlu1 %2161  ;;  %v2294_v59 = vld [vmem:[#allocation4 + $0x58] sm:$0xff] }
 0x28b   : > { %2243 = vst.msk [vmem:[#allocation4 + $0xa0] sm:$0xff] %vm1022_vm6, %v2213_v61  ;;  %v2222_v49 = vadd.f32 %v2162_v51, %v2072_v14  ;;  %2238 = vst.msk [vmem:[#allocation4 + $0x78] sm:$0xff] %vm1022_vm6, %v2208_v31  ;;  %v2750_v0 = vld [vmem:[#allocation3 + $0xd1] sm:$0xff]  ;;  %v2737_v31 = vld [vmem:[#allocation3 + $0x69] sm:$0xff] }
 0x28c   : > { %v2055_v1 = vld [vmem:[#allocation4 + $0x60] sm:$0xff]  ;;  %v2148_v3 = vpop.permute.xlu0 %2147  ;;  %2629 = vrot.lane.b32.xlu1 %v2516_v4, %s3562_s15 }
 0x28d   : > { %v2205_v42 = vadd.f32 %v2128_v37, %v2055_v1  ;;  %v2215_v13 = vadd.f32 %v2148_v3, %v2065_v2  ;;  %2252 = vst.msk [vmem:[#allocation4 + $0xe8] sm:$0xff] %vm1022_vm6, %v2222_v49  ;;  %v2296_v14 = vld [vmem:[#allocation4 + $0x68] sm:$0xff]  ;;  %v2289_v1 = vld [vmem:[#allocation4 + $0x30] sm:$0xff] }
 0x28e   : > { %2623 = vrot.lane.b32.xlu0 %v2513_v32, %s3562_s15  ;;  %v1819_v34 = vld [vmem:[#allocation4 + $0x80] sm:$0xff]  ;;  %v2346_v6 = vpop.permute.xlu1 %2345  ;;  %v2754_v49 = vld [vmem:[#allocation3 + $0xf1] sm:$0xff] }
 0x28f   : > { %2235 = vst.msk [vmem:[#allocation4 + $0x60] sm:$0xff] %vm1022_vm6, %v2205_v42  ;;  %2245 = vst.msk [vmem:[#allocation4 + $0xb0] sm:$0xff] %vm1022_vm6, %v2215_v13  ;;  %v1969_v9 = vadd.f32 %v4089_v43, %v1819_v34  ;;  %v2434_v46 = vadd.f32 %v2346_v6, %v2284_v52  ;;  %v2741_v42 = vld [vmem:[#allocation3 + $0x89] sm:$0xff]  ;;  %v2291_v34 = vld [vmem:[#allocation4 + $0x40] sm:$0xff] }
 0x290   : > { %v2152_v17 = vpop.permute.xlu0 %2151  ;;  %2637 = vrot.lane.b32.xlu1 %v2520_v16, %s3562_s15  ;;  %v2293_v16 = vld [vmem:[#allocation4 + $0x50] sm:$0xff] }
 0x291   : > { %v2217_v21 = vadd.f32 %v2152_v17, %v2067_v15  ;;  %1999 = vst.msk [vmem:[#allocation4 + $0x80] sm:$0xff] %vm1022_vm6, %v1969_v9  ;;  %2464 = vst.msk [vmem:[#allocation4 + $0x8] sm:$0xff] %vm1022_vm6, %v2434_v46  ;;  %v2745_v15 = vld [vmem:[#allocation3 + $0xa9] sm:$0xff] }
 0x292   : > { %2631 = vrot.lane.b32.xlu0 %v2517_v8, %s3562_s15  ;;  %v2350_v26 = vpop.permute.xlu1 %2349  ;;  %v2298_v13 = vld [vmem:[#allocation4 + $0x78] sm:$0xff]  ;;  %v2300_v46 = vld [vmem:[#allocation4 + $0x88] sm:$0xff] }
 0x293   : > { %2247 = vst.msk [vmem:[#allocation4 + $0xc0] sm:$0xff] %vm1022_vm6, %v2217_v21  ;;  %v2436_v28 = vadd.f32 %v2350_v26, %v2286_v53  ;;  %v2762_v53 = vld [vmem:[#allocation3 + $0x131] sm:$0xff] }
 0x294   : > { %v2156_v43 = vpop.permute.xlu0 %2155  ;;  %2825 = vrot.lane.b32.xlu1 %v2734_v30, %s3563_s16 }
 0x295   : > { %v2219_v45 = vadd.f32 %v2156_v43, %v2069_v27  ;;  %2466 = vst.msk [vmem:[#allocation4 + $0x18] sm:$0xff] %vm1022_vm6, %v2436_v28  ;;  %v2749_v27 = vld [vmem:[#allocation3 + $0xc9] sm:$0xff] }
 0x296   : > { %2639 = vrot.lane.b32.xlu0 %v2521_v48, %s3562_s15  ;;  %v2354_v20 = vpop.permute.xlu1 %2353  ;;  %v2295_v28 = vld [vmem:[#allocation4 + $0x60] sm:$0xff] }
 0x297   : > { %2249 = vst.msk [vmem:[#allocation4 + $0xd0] sm:$0xff] %vm1022_vm6, %v2219_v45  ;;  %v2438_v37 = vadd.f32 %v2354_v20, %v2288_v22  ;;  %v2736_v48 = vld [vmem:[#allocation3 + $0x61] sm:$0xff]  ;;  %v2753_v20 = vld [vmem:[#allocation3 + $0xe9] sm:$0xff] }
 0x298   : > { %v2160_v36 = vpop.permute.xlu0 %2159  ;;  %v2059_v7 = vld [vmem:[#allocation4 + $0x80] sm:$0xff]  ;;  %2833 = vrot.lane.b32.xlu1 %v2738_v40, %s3563_s16 }
 0x299   : > { %v2221_v19 = vadd.f32 %v2160_v36, %v2071_v39  ;;  %v2209_v41 = vadd.f32 %v4095_v47, %v2059_v7  ;;  %2468 = vst.msk [vmem:[#allocation4 + $0x28] sm:$0xff] %vm1022_vm6, %v2438_v37  ;;  %v2292_v47 = vld [vmem:[#allocation4 + $0x48] sm:$0xff]  ;;  %v2297_v37 = vld [vmem:[#allocation4 + $0x70] sm:$0xff] }
 0x29a   : > { %2627 = vrot.lane.b32.xlu0 %v2515_v57, %s3562_s15  ;;  %v2358_v33 = vpop.permute.xlu1 %2357  ;;  %v2304_v39 = vld [vmem:[#allocation4 + $0xa8] sm:$0xff] }
 0x29b   : > { %2251 = vst.msk [vmem:[#allocation4 + $0xe0] sm:$0xff] %vm1022_vm6, %v2221_v19  ;;  %2239 = vst.msk [vmem:[#allocation4 + $0x80] sm:$0xff] %vm1022_vm6, %v2209_v41  ;;  %v2440_v63 = vadd.f32 %v2358_v33, %v2290_v11  ;;  %v2740_v19 = vld [vmem:[#allocation3 + $0x81] sm:$0xff]  ;;  %v2306_v41 = vld [vmem:[#allocation4 + $0xb8] sm:$0xff] }
 0x29c   : > { %v2344_v29 = vpop.permute.xlu0 %2343  ;;  %2841 = vrot.lane.b32.xlu1 %v2742_v44, %s3563_s16 }
 0x29d   : > { %v2433_v25 = vadd.f32 %v2344_v29, %v2283_v12  ;;  %2470 = vst.msk [vmem:[#allocation4 + $0x38] sm:$0xff] %vm1022_vm6, %v2440_v63  ;;  %v2744_v63 = vld [vmem:[#allocation3 + $0xa1] sm:$0xff] }
 0x29e   : > { %2635 = vrot.lane.b32.xlu0 %v2519_v60, %s3562_s15  ;;  %v2362_v54 = vpop.permute.xlu1 %2361 }
 0x29f   : > { %2463 = vst.msk [vmem:[#allocation4] sm:$0xff] %vm1022_vm6, %v2433_v25  ;;  %v2442_v55 = vadd.f32 %v2362_v54, %v2292_v47  ;;  %v2761_v25 = vld [vmem:[#allocation3 + $0x129] sm:$0xff] }
 0x2a0   : > { %v2348_v56 = vpop.permute.xlu0 %2347  ;;  %2849 = vrot.lane.b32.xlu1 %v2746_v18, %s3563_s16  ;;  %v2301_v47 = vld [vmem:[#allocation4 + $0x90] sm:$0xff]  ;;  %v2735_v18 = vld [vmem:[#allocation3 + $0x59] sm:$0xff] }
 0x2a1   : > { %v2435_v58 = vadd.f32 %v2348_v56, %v2285_v50  ;;  %2472 = vst.msk [vmem:[#allocation4 + $0x48] sm:$0xff] %vm1022_vm6, %v2442_v55  ;;  %v2748_v56 = vld [vmem:[#allocation3 + $0xc1] sm:$0xff] }
 0x2a2   : > { %2823 = vrot.lane.b32.xlu0 %v2733_v35, %s3563_s16  ;;  %v2366_v38 = vpop.permute.xlu1 %2365  ;;  %v2299_v12 = vld [vmem:[#allocation4 + $0x80] sm:$0xff] }
 0x2a3   : > { %2465 = vst.msk [vmem:[#allocation4 + $0x10] sm:$0xff] %vm1022_vm6, %v2435_v58  ;;  %v2444_v61 = vadd.f32 %v2366_v38, %v2294_v59  ;;  %v2310_v58 = vld [vmem:[#allocation4 + $0xd8] sm:$0xff]  ;;  %v2303_v59 = vld [vmem:[#allocation4 + $0xa0] sm:$0xff] }
 0x2a4   : > { %v2352_v24 = vpop.permute.xlu0 %2351  ;;  %2857 = vrot.lane.b32.xlu1 %v2750_v0, %s3563_s16  ;;  %v2739_v0 = vld [vmem:[#allocation3 + $0x79] sm:$0xff] }
 0x2a5   : > { %v2437_v62 = vadd.f32 %v2352_v24, %v2287_v10  ;;  %2474 = vst.msk [vmem:[#allocation4 + $0x58] sm:$0xff] %vm1022_vm6, %v2444_v61  ;;  %v2752_v24 = vld [vmem:[#allocation3 + $0xe1] sm:$0xff] }
 0x2a6   : > { %2831 = vrot.lane.b32.xlu0 %v2737_v31, %s3563_s16  ;;  %v2370_v51 = vpop.permute.xlu1 %2369 }
 0x2a7   : > { %2467 = vst.msk [vmem:[#allocation4 + $0x20] sm:$0xff] %vm1022_vm6, %v2437_v62  ;;  %v2446_v3 = vadd.f32 %v2370_v51, %v2296_v14  ;;  %v2312_v62 = vld [vmem:[#allocation4 + $0xe8] sm:$0xff]  ;;  %v2305_v14 = vld [vmem:[#allocation4 + $0xb0] sm:$0xff] }
 0x2a8   : > { %v2356_v2 = vpop.permute.xlu0 %2355  ;;  %2865 = vrot.lane.b32.xlu1 %v2754_v49, %s3563_s16  ;;  %v2743_v49 = vld [vmem:[#allocation3 + $0x99] sm:$0xff] }
 0x2a9   : > { %v2439_v4 = vadd.f32 %v2356_v2, %v2289_v1  ;;  %2476 = vst.msk [vmem:[#allocation4 + $0x68] sm:$0xff] %vm1022_vm6, %v2446_v3  ;;  %v2756_v2 = vld [vmem:[#allocation3 + $0x101] sm:$0xff] }
 0x2aa   : > { %2839 = vrot.lane.b32.xlu0 %v2741_v42, %s3563_s16  ;;  %v2374_v32 = vpop.permute.xlu1 %2373 }
 0x2ab   : > { %2469 = vst.msk [vmem:[#allocation4 + $0x30] sm:$0xff] %vm1022_vm6, %v2439_v4  ;;  %v2448_v6 = vadd.f32 %v2374_v32, %v2298_v13  ;;  %v2524_v4 = vld [vmem:[#allocation4 + $0x8] sm:$0xff]  ;;  %v2307_v13 = vld [vmem:[#allocation4 + $0xc0] sm:$0xff] }
 0x2ac   : > { %v2360_v52 = vpop.permute.xlu0 %2359  ;;  %2873 = vrot.lane.b32.xlu1 %v4285_v5, %s3563_s16  ;;  %v2302_v5 = vld [vmem:[#allocation4 + $0x98] sm:$0xff] }
 0x2ad   : > { %v2441_v9 = vadd.f32 %v2360_v52, %v2291_v34  ;;  %2478 = vst.msk [vmem:[#allocation4 + $0x78] sm:$0xff] %vm1022_vm6, %v2448_v6  ;;  %v2760_v52 = vld [vmem:[#allocation3 + $0x121] sm:$0xff] }
 0x2ae   : > { %2847 = vrot.lane.b32.xlu0 %v2745_v15, %s3563_s16  ;;  %v2378_v17 = vpop.permute.xlu1 %2377  ;;  %v2526_v15 = vld [vmem:[#allocation4 + $0x18] sm:$0xff] }
 0x2af   : > { %2471 = vst.msk [vmem:[#allocation4 + $0x40] sm:$0xff] %vm1022_vm6, %v2441_v9  ;;  %v2450_v8 = vadd.f32 %v2378_v17, %v2300_v46  ;;  %v2747_v9 = vld [vmem:[#allocation3 + $0xb9] sm:$0xff]  ;;  %v2309_v46 = vld [vmem:[#allocation4 + $0xd0] sm:$0xff] }
 0x2b0   : > { %v2364_v21 = vpop.permute.xlu0 %2363  ;;  %2881 = vrot.lane.b32.xlu1 %v2762_v53, %s3563_s16  ;;  %v2751_v53 = vld [vmem:[#allocation3 + $0xd9] sm:$0xff] }
 0x2b1   : > { %v2443_v26 = vadd.f32 %v2364_v21, %v2293_v16  ;;  %2480 = vst.msk [vmem:[#allocation4 + $0x88] sm:$0xff] %vm1022_vm6, %v2450_v8 }
 0x2b2   : > { %2855 = vrot.lane.b32.xlu0 %v2749_v27, %s3563_s16  ;;  %v2382_v43 = vpop.permute.xlu1 %2381 }
 0x2b3   : > { %2473 = vst.msk [vmem:[#allocation4 + $0x50] sm:$0xff] %vm1022_vm6, %v2443_v26  ;;  %v2452_v45 = vadd.f32 %v2382_v43, %v2302_v5  ;;  %v2528_v26 = vld [vmem:[#allocation4 + $0x28] sm:$0xff]  ;;  %v2311_v5 = vld [vmem:[#allocation4 + $0xe0] sm:$0xff] }
 0x2b4   : > { %v2368_v30 = vpop.permute.xlu0 %2367  ;;  %2829 = vrot.lane.b32.xlu1 %v2736_v48, %s3563_s16  ;;  %v2530_v48 = vld [vmem:[#allocation4 + $0x38] sm:$0xff] }
 0x2b5   : > { %v2445_v22 = vadd.f32 %v2368_v30, %v2295_v28  ;;  %2482 = vst.msk [vmem:[#allocation4 + $0x98] sm:$0xff] %vm1022_vm6, %v2452_v45  ;;  %v2755_v45 = vld [vmem:[#allocation3 + $0xf9] sm:$0xff] }
 0x2b6   : > { %2863 = vrot.lane.b32.xlu0 %v2753_v20, %s3563_s16  ;;  %v2386_v36 = vpop.permute.xlu1 %2385  ;;  %v2523_v20 = vld [vmem:[#allocation4] sm:$0xff] }
 0x2b7   : > { %2475 = vst.msk [vmem:[#allocation4 + $0x60] sm:$0xff] %vm1022_vm6, %v2445_v22  ;;  %v2454_v7 = vadd.f32 %v2386_v36, %v2304_v39 }
 0x2b8   : > { %v2372_v40 = vpop.permute.xlu0 %2371  ;;  %2837 = vrot.lane.b32.xlu1 %v2740_v19, %s3563_s16 }
 0x2b9   : > { %v2447_v57 = vadd.f32 %v2372_v40, %v2297_v37  ;;  %2484 = vst.msk [vmem:[#allocation4 + $0xa8] sm:$0xff] %vm1022_vm6, %v2454_v7  ;;  %v2759_v40 = vld [vmem:[#allocation3 + $0x119] sm:$0xff]  ;;  %v2532_v7 = vld [vmem:[#allocation4 + $0x48] sm:$0xff] }
 0x2ba   : > { %2871 = vrot.lane.b32.xlu0 %v4308_v23, %s3563_s16  ;;  %v2390_v11 = vpop.permute.xlu1 %2389  ;;  %v2308_v23 = vld [vmem:[#allocation4 + $0xc8] sm:$0xff] }
 0x2bb   : > { %2477 = vst.msk [vmem:[#allocation4 + $0x70] sm:$0xff] %vm1022_vm6, %v2447_v57  ;;  %v2456_v29 = vadd.f32 %v2390_v11, %v2306_v41  ;;  %v2525_v57 = vld [vmem:[#allocation4 + $0x10] sm:$0xff] }
 0x2bc   : > { %v2376_v33 = vpop.permute.xlu0 %2375  ;;  %2845 = vrot.lane.b32.xlu1 %v2744_v63, %s3563_s16  ;;  %v2527_v63 = vld [vmem:[#allocation4 + $0x20] sm:$0xff] }
 0x2bd   : > { %v2449_v44 = vadd.f32 %v2376_v33, %v2299_v12  ;;  %2486 = vst.msk [vmem:[#allocation4 + $0xb8] sm:$0xff] %vm1022_vm6, %v2456_v29  ;;  %v2534_v12 = vld [vmem:[#allocation4 + $0x58] sm:$0xff] }
 0x2be   : > { %2879 = vrot.lane.b32.xlu0 %v2761_v25, %s3563_s16  ;;  %v2394_v60 = vpop.permute.xlu1 %2393 }
 0x2bf   : > { %2479 = vst.msk [vmem:[#allocation4 + $0x80] sm:$0xff] %vm1022_vm6, %v2449_v44  ;;  %v2458_v50 = vadd.f32 %v2394_v60, %v2308_v23  ;;  %v2536_v60 = vld [vmem:[#allocation4 + $0x68] sm:$0xff] }
 0x2c0   : > { %v2380_v54 = vpop.permute.xlu0 %2379  ;;  %2853 = vrot.lane.b32.xlu1 %v2748_v56, %s3563_s16 }
 0x2c1   : > { %v2451_v55 = vadd.f32 %v2380_v54, %v2301_v47  ;;  %2488 = vst.msk [vmem:[#allocation4 + $0xc8] sm:$0xff] %vm1022_vm6, %v2458_v50  ;;  %v2529_v54 = vld [vmem:[#allocation4 + $0x30] sm:$0xff] }
 0x2c2   : > { %2827 = vrot.lane.b32.xlu0 %v2735_v18, %s3563_s16  ;;  %v2398_v35 = vpop.permute.xlu1 %2397  ;;  %v2538_v18 = vld [vmem:[#allocation4 + $0x78] sm:$0xff] }
 0x2c3   : > { %2481 = vst.msk [vmem:[#allocation4 + $0x90] sm:$0xff] %vm1022_vm6, %v2451_v55  ;;  %v2460_v10 = vadd.f32 %v2398_v35, %v2310_v58  ;;  %v2531_v35 = vld [vmem:[#allocation4 + $0x40] sm:$0xff] }
 0x2c4   : > { %v2384_v38 = vpop.permute.xlu0 %2383  ;;  %2861 = vrot.lane.b32.xlu1 %v2752_v24, %s3563_s16 }
 0x2c5   : > { %v2453_v61 = vadd.f32 %v2384_v38, %v2303_v59  ;;  %2490 = vst.msk [vmem:[#allocation4 + $0xd8] sm:$0xff] %vm1022_vm6, %v2460_v10 }
 0x2c6   : > { %2835 = vrot.lane.b32.xlu0 %v2739_v0, %s3563_s16  ;;  %v2402_v31 = vpop.permute.xlu1 %2401  ;;  %v2533_v0 = vld [vmem:[#allocation4 + $0x50] sm:$0xff] }
 0x2c7   : > { %2483 = vst.msk [vmem:[#allocation4 + $0xa0] sm:$0xff] %vm1022_vm6, %v2453_v61  ;;  %v2462_v1 = vadd.f32 %v2402_v31, %v2312_v62  ;;  %v2540_v61 = vld [vmem:[#allocation4 + $0x88] sm:$0xff] }
 0x2c8   : > { %v2388_v51 = vpop.permute.xlu0 %2387  ;;  %2869 = vrot.lane.b32.xlu1 %v2756_v2, %s3563_s16  ;;  %v2535_v2 = vld [vmem:[#allocation4 + $0x60] sm:$0xff] }
 0x2c9   : > { %v2455_v3 = vadd.f32 %v2388_v51, %v2305_v14  ;;  %2492 = vst.msk [vmem:[#allocation4 + $0xe8] sm:$0xff] %vm1022_vm6, %v2462_v1  ;;  %v2542_v51 = vld [vmem:[#allocation4 + $0x98] sm:$0xff] }
 0x2ca   : > { %2843 = vrot.lane.b32.xlu0 %v2743_v49, %s3563_s16  ;;  %v2586_v42 = vpop.permute.xlu1 %2585 }
 0x2cb   : > { %2485 = vst.msk [vmem:[#allocation4 + $0xb0] sm:$0xff] %vm1022_vm6, %v2455_v3  ;;  %v2674_v34 = vadd.f32 %v2586_v42, %v2524_v4  ;;  %v2544_v42 = vld [vmem:[#allocation4 + $0xa8] sm:$0xff] }
 0x2cc   : > { %v2392_v32 = vpop.permute.xlu0 %2391  ;;  %2877 = vrot.lane.b32.xlu1 %v2760_v52, %s3563_s16 }
 0x2cd   : > { %v2457_v6 = vadd.f32 %v2392_v32, %v2307_v13  ;;  %2704 = vst.msk [vmem:[#allocation4 + $0x8] sm:$0xff] %vm1022_vm6, %v2674_v34  ;;  %v2537_v32 = vld [vmem:[#allocation4 + $0x70] sm:$0xff] }
 0x2ce   : > { %2851 = vrot.lane.b32.xlu0 %v2747_v9, %s3563_s16  ;;  %v2590_v17 = vpop.permute.xlu1 %2589  ;;  %v2548_v9 = vld [vmem:[#allocation4 + $0xc8] sm:$0xff] }
 0x2cf   : > { %2487 = vst.msk [vmem:[#allocation4 + $0xc0] sm:$0xff] %vm1022_vm6, %v2457_v6  ;;  %v2676_v21 = vadd.f32 %v2590_v17, %v2526_v15 }
 0x2d0   : > { %v2396_v16 = vpop.permute.xlu0 %2395 }
 0x2d1   : > { %v2459_v8 = vadd.f32 %v2396_v16, %v2309_v46  ;;  %2706 = vst.msk [vmem:[#allocation4 + $0x18] sm:$0xff] %vm1022_vm6, %v2676_v21  ;;  %v2539_v46 = vld [vmem:[#allocation4 + $0x80] sm:$0xff] }
 0x2d2   : > { %2859 = vrot.lane.b32.xlu0 %v2751_v53, %s3563_s16  ;;  %v2594_v27 = vpop.permute.xlu1 %2593 }
 0x2d3   : > { %2489 = vst.msk [vmem:[#allocation4 + $0xd0] sm:$0xff] %vm1022_vm6, %v2459_v8  ;;  %v2678_v28 = vadd.f32 %v2594_v27, %v2528_v26  ;;  %v2552_v8 = vld [vmem:[#allocation4 + $0xe8] sm:$0xff]  ;;  %v2541_v26 = vld [vmem:[#allocation4 + $0x90] sm:$0xff] }
 0x2d4   : > { %v2400_v43 = vpop.permute.xlu0 %2399 }
 0x2d5   : > { %v2461_v30 = vadd.f32 %v2400_v43, %v2311_v5  ;;  %2708 = vst.msk [vmem:[#allocation4 + $0x28] sm:$0xff] %vm1022_vm6, %v2678_v28  ;;  %v2546_v28 = vld [vmem:[#allocation4 + $0xb8] sm:$0xff] }
 0x2d6   : > { %2867 = vrot.lane.b32.xlu0 %v2755_v45, %s3563_s16  ;;  %v2598_v22 = vpop.permute.xlu1 %2597  ;;  %v2543_v45 = vld [vmem:[#allocation4 + $0xa0] sm:$0xff] }
 0x2d7   : > { %2491 = vst.msk [vmem:[#allocation4 + $0xe0] sm:$0xff] %vm1022_vm6, %v2461_v30  ;;  %v2680_v36 = vadd.f32 %v2598_v22, %v2530_v48 }
 0x2d8   : > { %v2584_v39 = vpop.permute.xlu0 %2583 }
 0x2d9   : > { %v2673_v37 = vadd.f32 %v2584_v39, %v2523_v20  ;;  %2710 = vst.msk [vmem:[#allocation4 + $0x38] sm:$0xff] %vm1022_vm6, %v2680_v36  ;;  %v2550_v39 = vld [vmem:[#allocation4 + $0xd8] sm:$0xff] }
 0x2da   : > { %2875 = vrot.lane.b32.xlu0 %v2759_v40, %s3563_s16  ;;  %v2602_v19 = vpop.permute.xlu1 %2601 }
 0x2db   : > { %2703 = vst.msk [vmem:[#allocation4] sm:$0xff] %vm1022_vm6, %v2673_v37  ;;  %v2682_v11 = vadd.f32 %v2602_v19, %v2532_v7  ;;  %v2547_v37 = vld [vmem:[#allocation4 + $0xc0] sm:$0xff] }
 0x2dc   : > { %v2588_v41 = vpop.permute.xlu0 %2587 }
 0x2dd   : > { %v2675_v33 = vadd.f32 %v2588_v41, %v2525_v57  ;;  %2712 = vst.msk [vmem:[#allocation4 + $0x48] sm:$0xff] %vm1022_vm6, %v2682_v11  ;;  %v2764_v57 = vld [vmem:[#allocation4 + $0x8] sm:$0xff] }
 0x2de   : > { %v2606_v29 = vpop.permute.xlu1 %2605  ;;  %v2551_v11 = vld [vmem:[#allocation4 + $0xe0] sm:$0xff] }
 0x2df   : > { %2705 = vst.msk [vmem:[#allocation4 + $0x10] sm:$0xff] %vm1022_vm6, %v2675_v33  ;;  %v2684_v25 = vadd.f32 %v2606_v29, %v2534_v12 }
 0x2e0   : > { %v2592_v44 = vpop.permute.xlu0 %2591 }
 0x2e1   : > { %v2677_v23 = vadd.f32 %v2592_v44, %v2527_v63  ;;  %2714 = vst.msk [vmem:[#allocation4 + $0x58] sm:$0xff] %vm1022_vm6, %v2684_v25  ;;  %v2768_v63 = vld [vmem:[#allocation4 + $0x28] sm:$0xff]  ;;  %v2545_v25 = vld [vmem:[#allocation4 + $0xb0] sm:$0xff] }
 0x2e2   : > { %v2610_v47 = vpop.permute.xlu1 %2609 }
 0x2e3   : > { %2707 = vst.msk [vmem:[#allocation4 + $0x20] sm:$0xff] %vm1022_vm6, %v2677_v23  ;;  %v2686_v56 = vadd.f32 %v2610_v47, %v2536_v60 }
 0x2e4   : > { %v2596_v50 = vpop.permute.xlu0 %2595 }
 0x2e5   : > { %v2679_v55 = vadd.f32 %v2596_v50, %v2529_v54  ;;  %2716 = vst.msk [vmem:[#allocation4 + $0x68] sm:$0xff] %vm1022_vm6, %v2686_v56  ;;  %v4573_v54 = vld [vmem:[%s4676_s4] ss:$0 sm:$0xff]  ;;  %v2772_v50 = vld [vmem:[#allocation4 + $0x48] sm:$0xff] }
 0x2e6   : > { %v2614_v58 = vpop.permute.xlu1 %2613 }
 0x2e7   : > { %2709 = vst.msk [vmem:[#allocation4 + $0x30] sm:$0xff] %vm1022_vm6, %v2679_v55  ;;  %v2688_v38 = vadd.f32 %v2614_v58, %v2538_v18  ;;  %v2549_v55 = vld [vmem:[#allocation4 + $0xd0] sm:$0xff] }
 0x2e8   : > { %v2600_v59 = vpop.permute.xlu0 %2599 }
 0x2e9   : > { %v2681_v10 = vadd.f32 %v2600_v59, %v2531_v35  ;;  %2718 = vst.msk [vmem:[#allocation4 + $0x78] sm:$0xff] %vm1022_vm6, %v2688_v38 }
 0x2ea   : > { %v2618_v24 = vpop.permute.xlu1 %2617 }
 0x2eb   : > { %2711 = vst.msk [vmem:[#allocation4 + $0x40] sm:$0xff] %vm1022_vm6, %v2681_v10  ;;  %v2690_v31 = vadd.f32 %v2618_v24, %v2540_v61  ;;  %v2763_v61 = vld [vmem:[#allocation4] sm:$0xff] }
 0x2ec   : > { %v2604_v62 = vpop.permute.xlu0 %2603  ;;  %v2776_v10 = vld [vmem:[#allocation4 + $0x68] sm:$0xff] }
 0x2ed   : > { %v2683_v14 = vadd.f32 %v2604_v62, %v2533_v0  ;;  %2720 = vst.msk [vmem:[#allocation4 + $0x88] sm:$0xff] %vm1022_vm6, %v2690_v31 }
 0x2ee   : > { %v2622_v1 = vpop.permute.xlu1 %2621 }
 0x2ef   : > { %2713 = vst.msk [vmem:[#allocation4 + $0x50] sm:$0xff] %vm1022_vm6, %v2683_v14  ;;  %v2692_v49 = vadd.f32 %v2622_v1, %v2542_v51 }
 0x2f0   : > { %v2608_v3 = vpop.permute.xlu0 %2607 }
 0x2f1   : > { %v2685_v4 = vadd.f32 %v2608_v3, %v2535_v2  ;;  %2722 = vst.msk [vmem:[#allocation4 + $0x98] sm:$0xff] %vm1022_vm6, %v2692_v49  ;;  %v2767_v3 = vld [vmem:[#allocation4 + $0x20] sm:$0xff] }
 0x2f2   : > { %v2626_v13 = vpop.permute.xlu1 %2625 }
 0x2f3   : > { %2715 = vst.msk [vmem:[#allocation4 + $0x60] sm:$0xff] %vm1022_vm6, %v2685_v4  ;;  %v2694_v52 = vadd.f32 %v2626_v13, %v2544_v42 }
 0x2f4   : > { %v2612_v34 = vpop.permute.xlu0 %2611  ;;  %v2780_v2 = vld [vmem:[#allocation4 + $0x88] sm:$0xff] }
 0x2f5   : > { %v2687_v6 = vadd.f32 %v2612_v34, %v2537_v32  ;;  %2724 = vst.msk [vmem:[#allocation4 + $0xa8] sm:$0xff] %vm1022_vm6, %v2694_v52 }
 0x2f6   : > { %v2634_v15 = vpop.permute.xlu1 %2633 }
 0x2f7   : > { %2717 = vst.msk [vmem:[#allocation4 + $0x70] sm:$0xff] %vm1022_vm6, %v2687_v6  ;;  %v2698_v16 = vadd.f32 %v2634_v15, %v2548_v9  ;;  %v2771_v6 = vld [vmem:[#allocation4 + $0x40] sm:$0xff] }
 0x2f8   : > { %v2616_v17 = vpop.permute.xlu0 %2615 }
 0x2f9   : > { %v2689_v21 = vadd.f32 %v2616_v17, %v2539_v46  ;;  %2728 = vst.msk [vmem:[#allocation4 + $0xc8] sm:$0xff] %vm1022_vm6, %v2698_v16 }
 0x2fa   : > { %v2642_v53 = vpop.permute.xlu1 %2641 }
 0x2fb   : > { %2719 = vst.msk [vmem:[#allocation4 + $0x80] sm:$0xff] %vm1022_vm6, %v2689_v21  ;;  %v2702_v5 = vadd.f32 %v2642_v53, %v2552_v8 }
 0x2fc   : > { %v2620_v27 = vpop.permute.xlu0 %2619  ;;  %v2784_v34 = vld [vmem:[#allocation4 + $0xa8] sm:$0xff] }
 0x2fd   : > { %v2691_v43 = vadd.f32 %v2620_v27, %v2541_v26  ;;  %2732 = vst.msk [vmem:[#allocation4 + $0xe8] sm:$0xff] %vm1022_vm6, %v2702_v5  ;;  %v2775_v27 = vld [vmem:[#allocation4 + $0x60] sm:$0xff] }
 0x2fe   : > { %v2630_v30 = vpop.permute.xlu1 %2629 }
 0x2ff   : > { %2721 = vst.msk [vmem:[#allocation4 + $0x90] sm:$0xff] %vm1022_vm6, %v2691_v43  ;;  %v2696_v22 = vadd.f32 %v2630_v30, %v2546_v28 }
 0x300   : > { %v2624_v48 = vpop.permute.xlu0 %2623  ;;  %v2788_v53 = vld [vmem:[#allocation4 + $0xc8] sm:$0xff] }
 0x301   : > { %v2693_v20 = vadd.f32 %v2624_v48, %v2543_v45  ;;  %2726 = vst.msk [vmem:[#allocation4 + $0xb8] sm:$0xff] %vm1022_vm6, %v2696_v22 }
 0x302   : > { %v2638_v36 = vpop.permute.xlu1 %2637 }
 0x303   : > { %2723 = vst.msk [vmem:[#allocation4 + $0xa0] sm:$0xff] %vm1022_vm6, %v2693_v20  ;;  %v2700_v7 = vadd.f32 %v2638_v36, %v2550_v39 }
 0x304   : > { %v2632_v40 = vpop.permute.xlu0 %2631  ;;  %v2792_v20 = vld [vmem:[#allocation4 + $0xe8] sm:$0xff] }
 0x305   : > { %v2697_v19 = vadd.f32 %v2632_v40, %v2547_v37  ;;  %2730 = vst.msk [vmem:[#allocation4 + $0xd8] sm:$0xff] %vm1022_vm6, %v2700_v7  ;;  %v2779_v37 = vld [vmem:[#allocation4 + $0x80] sm:$0xff] }
 0x306   : > { %v2826_v41 = vpop.permute.xlu1 %2825 }
 0x307   : > { %2727 = vst.msk [vmem:[#allocation4 + $0xc0] sm:$0xff] %vm1022_vm6, %v2697_v19  ;;  %v2914_v12 = vadd.f32 %v2826_v41, %v2764_v57 }
 0x308   : > { %v2640_v33 = vpop.permute.xlu0 %2639 }
 0x309   : > { %v2701_v29 = vadd.f32 %v2640_v33, %v2551_v11  ;;  %2944 = vst.msk [vmem:[#allocation4 + $0x8] sm:$0xff] %vm1022_vm6, %v2914_v12  ;;  %v2766_v33 = vld [vmem:[#allocation4 + $0x18] sm:$0xff] }
 0x30a   : > { %v2834_v44 = vpop.permute.xlu1 %2833 }
 0x30b   : > { %2731 = vst.msk [vmem:[#allocation4 + $0xe0] sm:$0xff] %vm1022_vm6, %v2701_v29  ;;  %v2918_v60 = vadd.f32 %v2834_v44, %v2768_v63  ;;  %v2783_v29 = vld [vmem:[#allocation4 + $0xa0] sm:$0xff] }
 0x30c   : > { %v2628_v23 = vpop.permute.xlu0 %2627 }
 0x30d   : > { %v2695_v47 = vadd.f32 %v2628_v23, %v2545_v25  ;;  %2948 = vst.msk [vmem:[#allocation4 + $0x28] sm:$0xff] %vm1022_vm6, %v2918_v60 }
 0x30e   : > { %v2842_v56 = vpop.permute.xlu1 %2841 }
 0x30f   : > { %2725 = vst.msk [vmem:[#allocation4 + $0xb0] sm:$0xff] %vm1022_vm6, %v2695_v47  ;;  %v2922_v58 = vadd.f32 %v2842_v56, %v2772_v50  ;;  %v2770_v56 = vld [vmem:[#allocation4 + $0x38] sm:$0xff] }
 0x310   : > { %v2636_v18 = vpop.permute.xlu0 %2635  ;;  %v2975_v35 = vld [vmem:[#allocation4 + $0x8] sm:$0xff] }
 0x311   : > { %v2699_v59 = vadd.f32 %v2636_v18, %v2549_v55  ;;  %v2983_v38 = vadd.f32 %v4573_v54, %v2975_v35  ;;  %2952 = vst.msk [vmem:[#allocation4 + $0x48] sm:$0xff] %vm1022_vm6, %v2922_v58  ;;  %v2787_v18 = vld [vmem:[#allocation4 + $0xc0] sm:$0xff] }
 0x312   : > { %v2850_v24 = vpop.permute.xlu1 %2849 }
 0x313   : > { %2729 = vst.msk [vmem:[#allocation4 + $0xd0] sm:$0xff] %vm1022_vm6, %v2699_v59  ;;  %2985 = vst.msk [vmem:[%s4578_s29 + $0x8] sm:$0xff] %vm1022_vm6, %v2983_v38  ;;  %v2926_v62 = vadd.f32 %v2850_v24, %v2776_v10 }
 0x314   : > { %v2824_v0 = vpop.permute.xlu0 %2823  ;;  %v2987_v31 = vld [vmem:[#allocation4 + $0x28] sm:$0xff] }
 0x315   : > { %v2913_v14 = vadd.f32 %v2824_v0, %v2763_v61  ;;  %v2989_v51 = vadd.f32 %v4573_v54, %v2987_v31  ;;  %2956 = vst.msk [vmem:[#allocation4 + $0x68] sm:$0xff] %vm1022_vm6, %v2926_v62  ;;  %v2774_v0 = vld [vmem:[#allocation4 + $0x58] sm:$0xff]  ;;  %v2791_v31 = vld [vmem:[#allocation4 + $0xe0] sm:$0xff] }
 0x316   : > { %v2858_v1 = vpop.permute.xlu1 %2857 }
 0x317   : > { %2943 = vst.msk [vmem:[#allocation4] sm:$0xff] %vm1022_vm6, %v2913_v14  ;;  %3281 = vst.msk [vmem:[%s4578_s29 + $0x18] sm:$0xff] %vm1022_vm6, %v2989_v51  ;;  %v2930_v4 = vadd.f32 %v2858_v1, %v2780_v2 }
 0x318   : > { %v2832_v49 = vpop.permute.xlu0 %2831  ;;  %v2994_v42 = vld [vmem:[#allocation4 + $0x48] sm:$0xff] }
 0x319   : > { %v2917_v13 = vadd.f32 %v2832_v49, %v2767_v3  ;;  %v2996_v32 = vadd.f32 %v4573_v54, %v2994_v42  ;;  %2960 = vst.msk [vmem:[#allocation4 + $0x88] sm:$0xff] %vm1022_vm6, %v2930_v4  ;;  %v2778_v49 = vld [vmem:[#allocation4 + $0x78] sm:$0xff]  ;;  %v2765_v42 = vld [vmem:[#allocation4 + $0x10] sm:$0xff] }
 0x31a   : > { %v2866_v52 = vpop.permute.xlu1 %2865 }
 0x31b   : > { %2947 = vst.msk [vmem:[#allocation4 + $0x20] sm:$0xff] %vm1022_vm6, %v2917_v13  ;;  %3283 = vst.msk [vmem:[%s4578_s29 + $0x28] sm:$0xff] %vm1022_vm6, %v2996_v32  ;;  %v2934_v15 = vadd.f32 %v2866_v52, %v2784_v34 }
 0x31c   : > { %v2840_v9 = vpop.permute.xlu0 %2839  ;;  %v3001_v17 = vld [vmem:[#allocation4 + $0x68] sm:$0xff] }
 0x31d   : > { %v2921_v46 = vadd.f32 %v2840_v9, %v2771_v6  ;;  %v3003_v21 = vadd.f32 %v4573_v54, %v3001_v17  ;;  %2964 = vst.msk [vmem:[#allocation4 + $0xa8] sm:$0xff] %vm1022_vm6, %v2934_v15  ;;  %v2782_v9 = vld [vmem:[#allocation4 + $0x98] sm:$0xff]  ;;  %v2769_v17 = vld [vmem:[#allocation4 + $0x30] sm:$0xff] }
 0x31e   : > { %v2974_v16 = vld [vmem:[#allocation4] sm:$0xff]  ;;  %v2874_v26 = vpop.permute.xlu1 %2873 }
 0x31f   : > { %v2982_v8 = vadd.f32 %v4573_v54, %v2974_v16  ;;  %2951 = vst.msk [vmem:[#allocation4 + $0x40] sm:$0xff] %vm1022_vm6, %v2921_v46  ;;  %3285 = vst.msk [vmem:[%s4578_s29 + $0x38] sm:$0xff] %vm1022_vm6, %v3003_v21  ;;  %v2938_v43 = vadd.f32 %v2874_v26, %v2788_v53  ;;  %v2786_v26 = vld [vmem:[#allocation4 + $0xb8] sm:$0xff] }
 0x320   : > { %v2848_v5 = vpop.permute.xlu0 %2847  ;;  %v3008_v28 = vld [vmem:[#allocation4 + $0x88] sm:$0xff] }
 0x321   : > { %2984 = vst.msk [vmem:[%s4578_s29] sm:$0xff] %vm1022_vm6, %v2982_v8  ;;  %v2925_v30 = vadd.f32 %v2848_v5, %v2775_v27  ;;  %v3010_v48 = vadd.f32 %v4573_v54, %v3008_v28  ;;  %2968 = vst.msk [vmem:[#allocation4 + $0xc8] sm:$0xff] %vm1022_vm6, %v2938_v43  ;;  %v2773_v5 = vld [vmem:[#allocation4 + $0x50] sm:$0xff] }
 0x322   : > { %v2986_v45 = vld [vmem:[#allocation4 + $0x20] sm:$0xff]  ;;  %v2882_v39 = vpop.permute.xlu1 %2881 }
 0x323   : > { %v2988_v22 = vadd.f32 %v4573_v54, %v2986_v45  ;;  %2955 = vst.msk [vmem:[#allocation4 + $0x60] sm:$0xff] %vm1022_vm6, %v2925_v30  ;;  %3287 = vst.msk [vmem:[%s4578_s29 + $0x48] sm:$0xff] %vm1022_vm6, %v3010_v48  ;;  %v2942_v40 = vadd.f32 %v2882_v39, %v2792_v20  ;;  %v2790_v45 = vld [vmem:[#allocation4 + $0xd8] sm:$0xff] }
 0x324   : > { %v2856_v36 = vpop.permute.xlu0 %2855  ;;  %v3015_v7 = vld [vmem:[#allocation4 + $0xa8] sm:$0xff] }
 0x325   : > { %3280 = vst.msk [vmem:[%s4578_s29 + $0x10] sm:$0xff] %vm1022_vm6, %v2988_v22  ;;  %v2929_v19 = vadd.f32 %v2856_v36, %v2779_v37  ;;  %v3017_v41 = vadd.f32 %v4573_v54, %v3015_v7  ;;  %2972 = vst.msk [vmem:[#allocation4 + $0xe8] sm:$0xff] %vm1022_vm6, %v2942_v40  ;;  %v2777_v22 = vld [vmem:[#allocation4 + $0x70] sm:$0xff] }
 0x326   : > { %v2993_v57 = vld [vmem:[#allocation4 + $0x40] sm:$0xff]  ;;  %v2830_v12 = vpop.permute.xlu1 %2829  ;;  %v2781_v36 = vld [vmem:[#allocation4 + $0x90] sm:$0xff] }
 0x327   : > { %v2995_v11 = vadd.f32 %v4573_v54, %v2993_v57  ;;  %2959 = vst.msk [vmem:[#allocation4 + $0x80] sm:$0xff] %vm1022_vm6, %v2929_v19  ;;  %3289 = vst.msk [vmem:[%s4578_s29 + $0x58] sm:$0xff] %vm1022_vm6, %v3017_v41  ;;  %v2916_v44 = vadd.f32 %v2830_v12, %v2766_v33  ;;  %v2785_v7 = vld [vmem:[#allocation4 + $0xb0] sm:$0xff] }
 0x328   : > { %v2864_v63 = vpop.permute.xlu0 %2863  ;;  %v3022_v25 = vld [vmem:[#allocation4 + $0xc8] sm:$0xff]  ;;  %v2789_v41 = vld [vmem:[#allocation4 + $0xd0] sm:$0xff] }
 0x329   : > { %3282 = vst.msk [vmem:[%s4578_s29 + $0x20] sm:$0xff] %vm1022_vm6, %v2995_v11  ;;  %v2933_v23 = vadd.f32 %v2864_v63, %v2783_v29  ;;  %v3024_v47 = vadd.f32 %v4573_v54, %v3022_v25  ;;  %2946 = vst.msk [vmem:[#allocation4 + $0x18] sm:$0xff] %vm1022_vm6, %v2916_v44 }
 0x32a   : > { %v3000_v60 = vld [vmem:[#allocation4 + $0x60] sm:$0xff]  ;;  %v2838_v55 = vpop.permute.xlu1 %2837 }
 0x32b   : > { %v3002_v50 = vadd.f32 %v4573_v54, %v3000_v60  ;;  %2963 = vst.msk [vmem:[#allocation4 + $0xa0] sm:$0xff] %vm1022_vm6, %v2933_v23  ;;  %3291 = vst.msk [vmem:[%s4578_s29 + $0x68] sm:$0xff] %vm1022_vm6, %v3024_v47  ;;  %v2920_v35 = vadd.f32 %v2838_v55, %v2770_v56 }
 0x32c   : > { %v2872_v58 = vpop.permute.xlu0 %2871  ;;  %v3029_v59 = vld [vmem:[#allocation4 + $0xe8] sm:$0xff] }
 0x32d   : > { %3284 = vst.msk [vmem:[%s4578_s29 + $0x30] sm:$0xff] %vm1022_vm6, %v3002_v50  ;;  %v2937_v38 = vadd.f32 %v2872_v58, %v2787_v18  ;;  %v3031_v24 = vadd.f32 %v4573_v54, %v3029_v59  ;;  %2950 = vst.msk [vmem:[#allocation4 + $0x38] sm:$0xff] %vm1022_vm6, %v2920_v35 }
 0x32e   : > { %v3007_v10 = vld [vmem:[#allocation4 + $0x80] sm:$0xff]  ;;  %v2846_v62 = vpop.permute.xlu1 %2845 }
 0x32f   : > { %v3009_v61 = vadd.f32 %v4573_v54, %v3007_v10  ;;  %2967 = vst.msk [vmem:[#allocation4 + $0xc0] sm:$0xff] %vm1022_vm6, %v2937_v38  ;;  %3293 = vst.msk [vmem:[%s4578_s29 + $0x78] sm:$0xff] %vm1022_vm6, %v3031_v24  ;;  %v2924_v51 = vadd.f32 %v2846_v62, %v2774_v0 }
 0x330   : > { %v2880_v14 = vpop.permute.xlu0 %2879 }
 0x331   : > { %3286 = vst.msk [vmem:[%s4578_s29 + $0x40] sm:$0xff] %vm1022_vm6, %v3009_v61  ;;  %v2941_v1 = vadd.f32 %v2880_v14, %v2791_v31  ;;  %2954 = vst.msk [vmem:[#allocation4 + $0x58] sm:$0xff] %vm1022_vm6, %v2924_v51 }
 0x332   : > { %v3014_v2 = vld [vmem:[#allocation4 + $0xa0] sm:$0xff]  ;;  %v2854_v4 = vpop.permute.xlu1 %2853 }
 0x333   : > { %v3016_v3 = vadd.f32 %v4573_v54, %v3014_v2  ;;  %2971 = vst.msk [vmem:[#allocation4 + $0xe0] sm:$0xff] %vm1022_vm6, %v2941_v1  ;;  %v2928_v32 = vadd.f32 %v2854_v4, %v2778_v49 }
 0x334   : > { %v2828_v13 = vpop.permute.xlu0 %2827 }
 0x335   : > { %3288 = vst.msk [vmem:[%s4578_s29 + $0x50] sm:$0xff] %vm1022_vm6, %v3016_v3  ;;  %v2915_v34 = vadd.f32 %v2828_v13, %v2765_v42  ;;  %2958 = vst.msk [vmem:[#allocation4 + $0x78] sm:$0xff] %vm1022_vm6, %v2928_v32 }
 0x336   : > { %v3021_v52 = vld [vmem:[#allocation4 + $0xc0] sm:$0xff]  ;;  %v2862_v15 = vpop.permute.xlu1 %2861 }
 0x337   : > { %v3023_v6 = vadd.f32 %v4573_v54, %v3021_v52  ;;  %2945 = vst.msk [vmem:[#allocation4 + $0x10] sm:$0xff] %vm1022_vm6, %v2915_v34  ;;  %v2932_v16 = vadd.f32 %v2862_v15, %v2782_v9 }
 0x338   : > { %v2836_v46 = vpop.permute.xlu0 %2835 }
 0x339   : > { %3290 = vst.msk [vmem:[%s4578_s29 + $0x60] sm:$0xff] %vm1022_vm6, %v3023_v6  ;;  %v2919_v21 = vadd.f32 %v2836_v46, %v2769_v17  ;;  %2962 = vst.msk [vmem:[#allocation4 + $0x98] sm:$0xff] %vm1022_vm6, %v2932_v16 }
 0x33a   : > { %v3028_v8 = vld [vmem:[#allocation4 + $0xe0] sm:$0xff]  ;;  %v2870_v27 = vpop.permute.xlu1 %2869 }
 0x33b   : > { %v3030_v53 = vadd.f32 %v4573_v54, %v3028_v8  ;;  %2949 = vst.msk [vmem:[#allocation4 + $0x30] sm:$0xff] %vm1022_vm6, %v2919_v21  ;;  %v2936_v28 = vadd.f32 %v2870_v27, %v2786_v26 }
 0x33c   : > { %v2844_v43 = vpop.permute.xlu0 %2843 }
 0x33d   : > { %3292 = vst.msk [vmem:[%s4578_s29 + $0x70] sm:$0xff] %vm1022_vm6, %v3030_v53  ;;  %v2923_v30 = vadd.f32 %v2844_v43, %v2773_v5  ;;  %2966 = vst.msk [vmem:[#allocation4 + $0xb8] sm:$0xff] %vm1022_vm6, %v2936_v28 }
 0x33e   : > { %v2878_v48 = vpop.permute.xlu1 %2877 }
 0x33f   : > { %2953 = vst.msk [vmem:[#allocation4 + $0x50] sm:$0xff] %vm1022_vm6, %v2923_v30  ;;  %v2940_v39 = vadd.f32 %v2878_v48, %v2790_v45 }
 0x340   : > { %v2852_v20 = vpop.permute.xlu0 %2851 }
 0x341   : > { %v2927_v54 = vadd.f32 %v2852_v20, %v2777_v22  ;;  %2970 = vst.msk [vmem:[#allocation4 + $0xd8] sm:$0xff] %vm1022_vm6, %v2940_v39 }
 0x343   : > { %2957 = vst.msk [vmem:[#allocation4 + $0x70] sm:$0xff] %vm1022_vm6, %v2927_v54 }
 0x344   : > { %v2860_v37 = vpop.permute.xlu0 %2859 }
 0x345   : > { %v2931_v40 = vadd.f32 %v2860_v37, %v2781_v36 }
 0x347   : > { %2961 = vst.msk [vmem:[#allocation4 + $0x90] sm:$0xff] %vm1022_vm6, %v2931_v40 }
 0x348   : > { %v2868_v19 = vpop.permute.xlu0 %2867 }
 0x349   : > { %v2935_v57 = vadd.f32 %v2868_v19, %v2785_v7 }
 0x34b   : > { %2965 = vst.msk [vmem:[#allocation4 + $0xb0] sm:$0xff] %vm1022_vm6, %v2935_v57 }
 0x34c   : > { %v2876_v11 = vpop.permute.xlu0 %2875 }
 0x34d   : > { %v2939_v33 = vadd.f32 %v2876_v11, %v2789_v41 }
 0x34f   : > { %2969 = vst.msk [vmem:[#allocation4 + $0xd0] sm:$0xff] %vm1022_vm6, %v2939_v33 }
 0x350 PF: > { %s15_s22 = sadd.s32 1, %s3553_s22   ;;  %s4680_s18 = smov %s3545_s20 }
 0x351   : > { %p12_p3 = scmp.ge.s32.totalorder %s15_s22, 6   ;;  %s4681_s19 = smov %s3549_s21 }
 0x352   : > { %s4682_s20 = smov %s4685_s23  ;;  %s4683_s21 = smov %s4689_s24 }
 0x353   :  { %14 = sbr.rel (!%p12_p3) target bundleno = 3 (0x3), region = 87 }

</bundles_post_ra>
